<compile_context>
chip_gen: v7x
topology: tpu7x:2x2x1
jax: 0.10.0
libtpu: 0.0.40
codegen_flags: <defaults>
</compile_context>

<pallas_src>
import math
from functools import partial

import jax
import jax.numpy as jnp
from jax.experimental import pallas as pl
from jax.experimental.pallas import tpu as pltpu

BF16 = jnp.bfloat16


# ----------------------------------------------------------------------------
# Shared matrix-GRU step (evolves the GCN weight matrix) -- kept in f32.
# ----------------------------------------------------------------------------

def _mat_gru_step(w, z, wstk, ustk, uhm, bstk, rows):
    gates = jnp.dot(wstk, z, preferred_element_type=jnp.float32) + bstk
    uq = jnp.dot(ustk, w, preferred_element_type=jnp.float32)
    upd = jax.nn.sigmoid(gates[0:rows] + uq[0:rows])
    rst = jax.nn.sigmoid(gates[rows:2 * rows] + uq[rows:2 * rows])
    hcap = jnp.tanh(gates[2 * rows:3 * rows]
                    + jnp.dot(uhm, rst * w, preferred_element_type=jnp.float32))
    return (1.0 - upd) * w + upd * hcap


# ----------------------------------------------------------------------------
# Kernel 1: GRCU layer 1 (T unrolled) + layer-2 TopK preparation.
# ----------------------------------------------------------------------------

def _grcu1_kernel(adj_ref, x_ref, z_ref, mask_ref, scorer_ref,
                  wstk_ref, ustk_ref, uh_ref, bstk_ref, w0_ref,
                  p2_ref, scaledz_ref, scores_ref, *, seq_len, rows):
    # adj_t @ x_t does not depend on the evolving W -> hoist out of the serial chain.
    p1 = [jnp.dot(adj_ref[t].astype(BF16), x_ref[t].astype(BF16),
                  preferred_element_type=jnp.float32) for t in range(seq_len)]

    wstk = wstk_ref[...]
    ustk = ustk_ref[...]
    uhm = uh_ref[...]
    bstk = bstk_ref[...]

    # Serial part: matrix-GRU weight evolution + (adj@x) @ W (associativity-equivalent
    # to the reference adj @ (x @ W)).
    w = w0_ref[...]
    embs1 = []
    for t in range(seq_len):
        w = _mat_gru_step(w, z_ref[t], wstk, ustk, uhm, bstk, rows)
        embs1.append(jnp.maximum(
            jnp.dot(p1[t].astype(BF16), w.astype(BF16),
                    preferred_element_type=jnp.float32), 0.0))

    # Layer-2 inputs: adj_t @ embs1_t, plus the TopK scores and tanh-scaled embeddings,
    # so only top_k + gather stay in XLA between the two kernels.
    sc = scorer_ref[...]                                            # (F1, 1)
    inv_norm = jax.lax.rsqrt(jnp.sum(sc * sc, keepdims=True))       # (1, 1)
    for t in range(seq_len):
        e = embs1[t]
        p2_ref[t] = jnp.dot(adj_ref[t].astype(BF16), e.astype(BF16),
                            preferred_element_type=jnp.float32)
        s = (jnp.dot(e.astype(BF16), sc.astype(BF16),
                     preferred_element_type=jnp.float32) * inv_norm
             + mask_ref[t])                                         # (N, 1)
        scaledz_ref[t] = e * jnp.tanh(s)
        scores_ref[t] = s


def grcu_layer1(lp, next_scorer, adj, embs, z_topk, mask):
    T, N, R = embs.shape
    C = lp["gcn_w"].shape[1]
    return pl.pallas_call(
        partial(_grcu1_kernel, seq_len=T, rows=R),
        out_shape=(jax.ShapeDtypeStruct((T, N, C), jnp.float32),    # adj @ embs1
                   jax.ShapeDtypeStruct((T, N, C), jnp.float32),    # embs1 * tanh(scores)
                   jax.ShapeDtypeStruct((T, N, 1), jnp.float32)),   # TopK scores (+mask)
    )(adj, embs, z_topk, mask, next_scorer,
      lp["cell"]["W_stk"], lp["cell"]["U_stk"], lp["cell"]["Uh"],
      lp["cell"]["b_stk"], lp["gcn_w"])


# ----------------------------------------------------------------------------
# Kernel 2: GRCU layer 2 + LSTM + online-softmax attention + fcn + linear.
# ----------------------------------------------------------------------------

def _grcu2_head_kernel(p2_ref, z_ref, raw_ref,
                       wstk_ref, ustk_ref, uh_ref, bstk_ref, w0_ref,
                       wih_e_ref, wih_r_ref, whh_ref, b_ref,
                       wa_ref, ba_ref, wfc_ref, bfc_ref, wo_ref, bo_ref,
                       out_ref, ih_sc, *, seq_len, rows, hidden):
    n = p2_ref.shape[1]

    # ---- GRCU layer 2 (serial matrix-GRU + GCN) ----
    wstk = wstk_ref[...]
    ustk = ustk_ref[...]
    uhm = uh_ref[...]
    bstk = bstk_ref[...]
    w = w0_ref[...]
    embs2 = []
    for t in range(seq_len):
        w = _mat_gru_step(w, z_ref[t], wstk, ustk, uhm, bstk, rows)
        embs2.append(jnp.maximum(
            jnp.dot(p2_ref[t].astype(BF16), w.astype(BF16),
                    preferred_element_type=jnp.float32), 0.0))

    # ---- LSTM input projection: h-independent -> one batched (T*N)-row MXU pass ----
    emb_all = jnp.concatenate(embs2, axis=0)                        # (T*N, F2)
    ih_sc[...] = (jnp.dot(emb_all.astype(BF16), wih_e_ref[...].astype(BF16),
                          preferred_element_type=jnp.float32)
                  + jnp.dot(raw_ref[...].astype(BF16), wih_r_ref[...].astype(BF16),
                            preferred_element_type=jnp.float32)
                  + b_ref[...])

    # ---- LSTM with online-softmax attention pooling ----
    whh = whh_ref[...].astype(BF16)
    wa = wa_ref[...]
    ba = ba_ref[...]
    h = jnp.zeros((n, hidden), jnp.float32)
    c = jnp.zeros((n, hidden), jnp.float32)
    m = denom = pooled = None
    for t in range(seq_len):                                        # T tiny & static
        gates = ih_sc[t * n:(t + 1) * n, :] + jnp.dot(
            h.astype(BF16), whh, preferred_element_type=jnp.float32)
        # full 128-lane-tile activations (4*hidden == 128); gate order [i, f, o, g]
        sg = jax.nn.sigmoid(gates)
        gg = jnp.tanh(gates)
        i_g = sg[:, 0:hidden]
        f_g = sg[:, hidden:2 * hidden]
        o_g = sg[:, 2 * hidden:3 * hidden]
        g_g = gg[:, 3 * hidden:4 * hidden]
        c = f_g * c + i_g * g_g
        h = o_g * jnp.tanh(c)
        logit = jnp.sum(h * wa, axis=-1, keepdims=True) + ba        # (N, 1)
        if t == 0:
            m, denom, pooled = logit, jnp.ones_like(logit), h
        else:
            m_new = jnp.maximum(m, logit)
            alpha = jnp.exp(m - m_new)
            p = jnp.exp(logit - m_new)
            denom = denom * alpha + p
            pooled = pooled * alpha + p * h
            m = m_new
    pooled = pooled * pl.reciprocal(denom, approx=True)             # softmax-weighted sum

    # ---- fcn (Linear + ReLU) and output Linear ----
    fc = jnp.maximum(
        jnp.dot(pooled.astype(BF16), wfc_ref[...].astype(BF16),
                preferred_element_type=jnp.float32) + bfc_ref[...], 0.0)
    out_ref[...] = (jnp.dot(fc.astype(BF16), wo_ref[...].astype(BF16),
                            preferred_element_type=jnp.float32) + bo_ref[...])


def grcu_layer2_and_head(lp, lstm_p, head_p, p2, z_topk, raw_flat):
    T, N, _ = p2.shape
    R = lp["gcn_w"].shape[0]
    H = lstm_p["w_hh_t"].shape[0]
    out_dim = head_p["wo"].shape[1]
    return pl.pallas_call(
        partial(_grcu2_head_kernel, seq_len=T, rows=R, hidden=H),
        out_shape=jax.ShapeDtypeStruct((N, out_dim), jnp.float32),
        scratch_shapes=[pltpu.VMEM((T * N, 4 * H), jnp.float32)],   # hoisted LSTM ih proj
    )(p2, z_topk, raw_flat,
      lp["cell"]["W_stk"], lp["cell"]["U_stk"], lp["cell"]["Uh"],
      lp["cell"]["b_stk"], lp["gcn_w"],
      lstm_p["w_ih_emb_t"], lstm_p["w_ih_raw_t"], lstm_p["w_hh_t"], lstm_p["b"],
      head_p["wa"], head_p["ba"], head_p["wfc"], head_p["bfc"],
      head_p["wo"], head_p["bo"])


# ----------------------------------------------------------------------------
# XLA glue: TopK node selection and orchestration
# ----------------------------------------------------------------------------

def topk_select(Z, mask, scorer, k):
    # Z: (N, F), scorer: (F, 1), mask: (N, 1) -> (F, k)
    scores = (Z @ scorer) / jnp.linalg.norm(scorer) + mask
    flat = scores.reshape(-1)
    vals, idx = jax.lax.top_k(flat, k)
    # TODO(synk): u.pad_with_last_val fallback (fewer than k finite scores) not replicated;
    # masks here are finite so top_k always returns k valid indices.
    return (Z[idx] * jnp.tanh(flat[idx])[:, None]).T


def egcn_lstm_forward(params, adj, embs, mask, raw):
    # adj (T,N,N), embs (T,N,F0), mask (T,N,1), raw (T,N,RAW) -> (N, out_dim)
    T, N, _ = embs.shape
    l1, l2 = params["grcu"]
    F1 = l1["gcn_w"].shape[1]
    F2 = l2["gcn_w"].shape[1]

    # Layer-1 TopK depends only on the raw inputs -> plain XLA, vmapped over time.
    z1 = jax.vmap(lambda Z, m: topk_select(Z, m, l1["cell"]["scorer"], F1))(embs, mask)

    # Kernel 1: GRCU layer 1 + layer-2 TopK preparation.
    p2, scaled_z, scores2 = grcu_layer1(l1, l2["cell"]["scorer"], adj, embs, z1, mask)

    # Layer-2 TopK: only top_k + gather + transpose remain in XLA.
    def select(s, zz):
        _, idx = jax.lax.top_k(s.reshape(-1), F2)
        # TODO(synk): u.pad_with_last_val fallback not replicated (masks finite here).
        return zz[idx].T
    z2 = jax.vmap(select)(scores2, scaled_z)                        # (T, F1, F2)

    # Kernel 2: GRCU layer 2 + LSTM + attention + fcn + output linear.
    raw_flat = raw.reshape(T * N, raw.shape[-1])
    return grcu_layer2_and_head(l2, params["lstm"], params["head"], p2, z2, raw_flat)


# ----------------------------------------------------------------------------
# Deterministic parameter initialization (matches module __init__ shapes)
# ----------------------------------------------------------------------------

def _uniform(key, shape, stdv):
    return jax.random.uniform(key, shape, jnp.float32, -stdv, stdv)


def init_mat_gru_cell(key, rows, cols):
    ks = jax.random.split(key, 7)
    s = 1.0 / math.sqrt(rows)
    wu = _uniform(ks[0], (rows, rows), s)
    uu = _uniform(ks[1], (rows, rows), s)
    wr = _uniform(ks[2], (rows, rows), s)
    ur = _uniform(ks[3], (rows, rows), s)
    wh = _uniform(ks[4], (rows, rows), s)
    uh = _uniform(ks[5], (rows, rows), s)
    return {
        # gate weights pre-stacked on the host: one MXU pass each in-kernel
        "W_stk": jnp.concatenate([wu, wr, wh], axis=0),   # (3R, R)
        "U_stk": jnp.concatenate([uu, ur], axis=0),       # (2R, R)
        "Uh": uh,                                         # (R, R)
        "b_stk": jnp.zeros((3 * rows, cols), jnp.float32),
        "scorer": _uniform(ks[6], (rows, 1), 1.0 / math.sqrt(rows)),
    }


def init_params(key, f0, f1, f2, raw_dim, hidden, out_dim):
    ks = jax.random.split(key, 16)
    feats = [f0, f1, f2]
    grcu = []
    for i in range(1, len(feats)):
        fi, fo = feats[i - 1], feats[i]
        grcu.append({
            "gcn_w": _uniform(ks[2 * i - 2], (fi, fo), 1.0 / math.sqrt(fo)),
            "cell": init_mat_gru_cell(ks[2 * i - 1], fi, fo),
        })

    s_lstm = 1.0 / math.sqrt(hidden)
    # LSTM weights stored transposed; W_ih split over [embedding | raw] inputs;
    # gate column order is [i, f, o, g].
    lstm = {
        "w_ih_emb_t": _uniform(ks[4], (f2, 4 * hidden), s_lstm),
        "w_ih_raw_t": _uniform(ks[5], (raw_dim, 4 * hidden), s_lstm),
        "w_hh_t": _uniform(ks[6], (hidden, 4 * hidden), s_lstm),
        "b": (_uniform(ks[7], (1, 4 * hidden), s_lstm)
              + _uniform(ks[8], (1, 4 * hidden), s_lstm)),          # b_ih + b_hh
    }

    head = {
        "wa": _uniform(ks[9], (1, hidden), 1.0 / math.sqrt(hidden)),    # Linear(H,1) weight
        "ba": _uniform(ks[10], (1, 1), 1.0 / math.sqrt(hidden)),
        "wfc": _uniform(ks[11], (hidden, 128), 1.0 / math.sqrt(hidden)),
        "bfc": _uniform(ks[12], (1, 128), 1.0 / math.sqrt(hidden)),
        "wo": _uniform(ks[13], (128, out_dim), 1.0 / math.sqrt(128)),
        "bo": _uniform(ks[14], (1, out_dim), 1.0 / math.sqrt(128)),
    }
    return {"grcu": grcu, "lstm": lstm, "head": head}


# ----------------------------------------------------------------------------
# Main
# ----------------------------------------------------------------------------

if __name__ == "__main__":
    key = jax.random.PRNGKey(0)

    # args: feats_per_node=16, layer_1_feats=32, layer_2_feats=32,
    #       lstm_l2_hidden_dim=32, lstm_l2_layers=1, lstm_l2_feats=8, raw feat dim=20
    N, T = 64, 4
    F0, F1, F2 = 16, 32, 32
    RAW, HID, OUT = 20, 32, 8

    kp, kd = jax.random.split(key)
    params = init_params(kp, F0, F1, F2, RAW, HID, OUT)

    kds = jax.random.split(kd, 3 * T)
    adj_l, nodes_l, mask_l, raw_l = [], [], [], []
    for t in range(T):
        a = jax.random.uniform(kds[3 * t], (N, N), jnp.float32)
        a = a / jnp.sum(a, axis=1, keepdims=True)                   # row-normalized adj_hat
        adj_l.append(a)
        nodes_l.append(0.1 * jax.random.normal(kds[3 * t + 1], (N, F0), jnp.float32))
        mask_l.append(jnp.zeros((N, 1), jnp.float32))
        raw_l.append(0.1 * jax.random.normal(kds[3 * t + 2], (N, RAW), jnp.float32))

    adj = jnp.stack(adj_l)          # (T, N, N)
    nodes = jnp.stack(nodes_l)      # (T, N, F0)
    mask = jnp.stack(mask_l)        # (T, N, 1)
    raw = jnp.stack(raw_l)          # (T, N, RAW)

    fwd = jax.jit(egcn_lstm_forward)
    out = jax.block_until_ready(fwd(params, adj, nodes, mask, raw))

    assert out.shape == (N, OUT), out.shape
    assert bool(jnp.all(jnp.isfinite(out)))
    print("KERNEL_OK")
</pallas_src>

<mosaic_0001>
module attributes {stable_mosaic.version = 11 : i64} {
  func.func @_grcu1_kernel(%arg0: memref<4x64x64xf32, #tpu.memory_space<vmem>>, %arg1: memref<4x64x16xf32, #tpu.memory_space<vmem>>, %arg2: memref<4x16x32xf32, #tpu.memory_space<vmem>>, %arg3: memref<4x64x1xf32, #tpu.memory_space<vmem>>, %arg4: memref<32x1xf32, #tpu.memory_space<vmem>>, %arg5: memref<48x16xf32, #tpu.memory_space<vmem>>, %arg6: memref<32x16xf32, #tpu.memory_space<vmem>>, %arg7: memref<16x16xf32, #tpu.memory_space<vmem>>, %arg8: memref<48x32xf32, #tpu.memory_space<vmem>>, %arg9: memref<16x32xf32, #tpu.memory_space<vmem>>, %arg10: memref<4x64x32xf32, #tpu.memory_space<vmem>>, %arg11: memref<4x64x32xf32, #tpu.memory_space<vmem>>, %arg12: memref<4x64x1xf32, #tpu.memory_space<vmem>>) attributes {dimension_semantics = [], scalar_prefetch = 0 : i64, scratch_operands = 0 : i64, tpu.core_type = #tpu.core_type<tc>} {
    %c0 = arith.constant 0 : index
    %c0_0 = arith.constant 0 : index
    %c0_1 = arith.constant 0 : index
    %0 = vector.load %arg0[%c0, %c0_0, %c0_1] : memref<4x64x64xf32, #tpu.memory_space<vmem>>, vector<1x64x64xf32>
    %1 = vector.shape_cast %0 : vector<1x64x64xf32> to vector<64x64xf32>
    %2 = arith.truncf %1 : vector<64x64xf32> to vector<64x64xbf16>
    %c0_2 = arith.constant 0 : index
    %c0_3 = arith.constant 0 : index
    %c0_4 = arith.constant 0 : index
    %3 = vector.load %arg1[%c0_2, %c0_3, %c0_4] : memref<4x64x16xf32, #tpu.memory_space<vmem>>, vector<1x64x16xf32>
    %4 = vector.shape_cast %3 : vector<1x64x16xf32> to vector<64x16xf32>
    %5 = arith.truncf %4 : vector<64x16xf32> to vector<64x16xbf16>
    %cst = arith.constant dense<0.000000e+00> : vector<64x16xf32>
    %6 = tpu.matmul %2, %5, %cst {dimension_numbers = #tpu.dot_dimension_numbers<[1], [0], [0], [1], [0, 0, 1, 1], [], []>} : vector<64x64xbf16>, vector<64x16xbf16>, vector<64x16xf32> -> vector<64x16xf32>
    %c1 = arith.constant 1 : index
    %c0_5 = arith.constant 0 : index
    %c0_6 = arith.constant 0 : index
    %7 = vector.load %arg0[%c1, %c0_5, %c0_6] : memref<4x64x64xf32, #tpu.memory_space<vmem>>, vector<1x64x64xf32>
    %8 = vector.shape_cast %7 : vector<1x64x64xf32> to vector<64x64xf32>
    %9 = arith.truncf %8 : vector<64x64xf32> to vector<64x64xbf16>
    %c1_7 = arith.constant 1 : index
    %c0_8 = arith.constant 0 : index
    %c0_9 = arith.constant 0 : index
    %10 = vector.load %arg1[%c1_7, %c0_8, %c0_9] : memref<4x64x16xf32, #tpu.memory_space<vmem>>, vector<1x64x16xf32>
    %11 = vector.shape_cast %10 : vector<1x64x16xf32> to vector<64x16xf32>
    %12 = arith.truncf %11 : vector<64x16xf32> to vector<64x16xbf16>
    %cst_10 = arith.constant dense<0.000000e+00> : vector<64x16xf32>
    %13 = tpu.matmul %9, %12, %cst_10 {dimension_numbers = #tpu.dot_dimension_numbers<[1], [0], [0], [1], [0, 0, 1, 1], [], []>} : vector<64x64xbf16>, vector<64x16xbf16>, vector<64x16xf32> -> vector<64x16xf32>
    %c2 = arith.constant 2 : index
    %c0_11 = arith.constant 0 : index
    %c0_12 = arith.constant 0 : index
    %14 = vector.load %arg0[%c2, %c0_11, %c0_12] : memref<4x64x64xf32, #tpu.memory_space<vmem>>, vector<1x64x64xf32>
    %15 = vector.shape_cast %14 : vector<1x64x64xf32> to vector<64x64xf32>
    %16 = arith.truncf %15 : vector<64x64xf32> to vector<64x64xbf16>
    %c2_13 = arith.constant 2 : index
    %c0_14 = arith.constant 0 : index
    %c0_15 = arith.constant 0 : index
    %17 = vector.load %arg1[%c2_13, %c0_14, %c0_15] : memref<4x64x16xf32, #tpu.memory_space<vmem>>, vector<1x64x16xf32>
    %18 = vector.shape_cast %17 : vector<1x64x16xf32> to vector<64x16xf32>
    %19 = arith.truncf %18 : vector<64x16xf32> to vector<64x16xbf16>
    %cst_16 = arith.constant dense<0.000000e+00> : vector<64x16xf32>
    %20 = tpu.matmul %16, %19, %cst_16 {dimension_numbers = #tpu.dot_dimension_numbers<[1], [0], [0], [1], [0, 0, 1, 1], [], []>} : vector<64x64xbf16>, vector<64x16xbf16>, vector<64x16xf32> -> vector<64x16xf32>
    %c3 = arith.constant 3 : index
    %c0_17 = arith.constant 0 : index
    %c0_18 = arith.constant 0 : index
    %21 = vector.load %arg0[%c3, %c0_17, %c0_18] : memref<4x64x64xf32, #tpu.memory_space<vmem>>, vector<1x64x64xf32>
    %22 = vector.shape_cast %21 : vector<1x64x64xf32> to vector<64x64xf32>
    %23 = arith.truncf %22 : vector<64x64xf32> to vector<64x64xbf16>
    %c3_19 = arith.constant 3 : index
    %c0_20 = arith.constant 0 : index
    %c0_21 = arith.constant 0 : index
    %24 = vector.load %arg1[%c3_19, %c0_20, %c0_21] : memref<4x64x16xf32, #tpu.memory_space<vmem>>, vector<1x64x16xf32>
    %25 = vector.shape_cast %24 : vector<1x64x16xf32> to vector<64x16xf32>
    %26 = arith.truncf %25 : vector<64x16xf32> to vector<64x16xbf16>
    %cst_22 = arith.constant dense<0.000000e+00> : vector<64x16xf32>
    %27 = tpu.matmul %23, %26, %cst_22 {dimension_numbers = #tpu.dot_dimension_numbers<[1], [0], [0], [1], [0, 0, 1, 1], [], []>} : vector<64x64xbf16>, vector<64x16xbf16>, vector<64x16xf32> -> vector<64x16xf32>
    %c0_23 = arith.constant 0 : index
    %c0_24 = arith.constant 0 : index
    %28 = vector.load %arg5[%c0_23, %c0_24] : memref<48x16xf32, #tpu.memory_space<vmem>>, vector<48x16xf32>
    %c0_25 = arith.constant 0 : index
    %c0_26 = arith.constant 0 : index
    %29 = vector.load %arg6[%c0_25, %c0_26] : memref<32x16xf32, #tpu.memory_space<vmem>>, vector<32x16xf32>
    %c0_27 = arith.constant 0 : index
    %c0_28 = arith.constant 0 : index
    %30 = vector.load %arg7[%c0_27, %c0_28] : memref<16x16xf32, #tpu.memory_space<vmem>>, vector<16x16xf32>
    %c0_29 = arith.constant 0 : index
    %c0_30 = arith.constant 0 : index
    %31 = vector.load %arg8[%c0_29, %c0_30] : memref<48x32xf32, #tpu.memory_space<vmem>>, vector<48x32xf32>
    %c0_31 = arith.constant 0 : index
    %c0_32 = arith.constant 0 : index
    %32 = vector.load %arg9[%c0_31, %c0_32] : memref<16x32xf32, #tpu.memory_space<vmem>>, vector<16x32xf32>
    %c0_33 = arith.constant 0 : index
    %c0_34 = arith.constant 0 : index
    %c0_35 = arith.constant 0 : index
    %33 = vector.load %arg2[%c0_33, %c0_34, %c0_35] : memref<4x16x32xf32, #tpu.memory_space<vmem>>, vector<1x16x32xf32>
    %34 = vector.shape_cast %33 : vector<1x16x32xf32> to vector<16x32xf32>
    %cst_36 = arith.constant dense<0.000000e+00> : vector<48x32xf32>
    %35 = tpu.matmul %28, %34, %cst_36 {dimension_numbers = #tpu.dot_dimension_numbers<[1], [0], [0], [1], [0, 0, 1, 1], [], []>} : vector<48x16xf32>, vector<16x32xf32>, vector<48x32xf32> -> vector<48x32xf32>
    %36 = arith.addf %35, %31 : vector<48x32xf32>
    %cst_37 = arith.constant dense<0.000000e+00> : vector<32x32xf32>
    %37 = tpu.matmul %29, %32, %cst_37 {dimension_numbers = #tpu.dot_dimension_numbers<[1], [0], [0], [1], [0, 0, 1, 1], [], []>} : vector<32x16xf32>, vector<16x32xf32>, vector<32x32xf32> -> vector<32x32xf32>
    %38 = vector.extract_strided_slice %36 {offsets = [0, 0], sizes = [16, 32], strides = [1, 1]} : vector<48x32xf32> to vector<16x32xf32>
    %39 = vector.extract_strided_slice %37 {offsets = [0, 0], sizes = [16, 32], strides = [1, 1]} : vector<32x32xf32> to vector<16x32xf32>
    %40 = arith.addf %38, %39 : vector<16x32xf32>
    %41 = arith.negf %40 : vector<16x32xf32>
    %42 = math.exp %41 : vector<16x32xf32>
    %cst_38 = arith.constant 1.000000e+00 : f32
    %43 = vector.broadcast %cst_38 : f32 to vector<16x32xf32>
    %44 = arith.addf %43, %42 : vector<16x32xf32>
    %45 = arith.divf %43, %44 : vector<16x32xf32>
    %46 = vector.extract_strided_slice %36 {offsets = [16, 0], sizes = [16, 32], strides = [1, 1]} : vector<48x32xf32> to vector<16x32xf32>
    %47 = vector.extract_strided_slice %37 {offsets = [16, 0], sizes = [16, 32], strides = [1, 1]} : vector<32x32xf32> to vector<16x32xf32>
    %48 = arith.addf %46, %47 : vector<16x32xf32>
    %49 = arith.negf %48 : vector<16x32xf32>
    %50 = math.exp %49 : vector<16x32xf32>
    %cst_39 = arith.constant 1.000000e+00 : f32
    %51 = vector.broadcast %cst_39 : f32 to vector<16x32xf32>
    %52 = arith.addf %51, %50 : vector<16x32xf32>
    %53 = arith.divf %51, %52 : vector<16x32xf32>
    %54 = vector.extract_strided_slice %36 {offsets = [32, 0], sizes = [16, 32], strides = [1, 1]} : vector<48x32xf32> to vector<16x32xf32>
    %55 = arith.mulf %53, %32 : vector<16x32xf32>
    %cst_40 = arith.constant dense<0.000000e+00> : vector<16x32xf32>
    %56 = tpu.matmul %30, %55, %cst_40 {dimension_numbers = #tpu.dot_dimension_numbers<[1], [0], [0], [1], [0, 0, 1, 1], [], []>} : vector<16x16xf32>, vector<16x32xf32>, vector<16x32xf32> -> vector<16x32xf32>
    %57 = arith.addf %54, %56 : vector<16x32xf32>
    %58 = math.tanh %57 : vector<16x32xf32>
    %cst_41 = arith.constant 1.000000e+00 : f32
    %59 = vector.broadcast %cst_41 : f32 to vector<16x32xf32>
    %60 = arith.subf %59, %45 : vector<16x32xf32>
    %61 = arith.mulf %60, %32 : vector<16x32xf32>
    %62 = arith.mulf %45, %58 : vector<16x32xf32>
    %63 = arith.addf %61, %62 : vector<16x32xf32>
    %64 = arith.truncf %6 : vector<64x16xf32> to vector<64x16xbf16>
    %65 = arith.truncf %63 : vector<16x32xf32> to vector<16x32xbf16>
    %cst_42 = arith.constant dense<0.000000e+00> : vector<64x32xf32>
    %66 = tpu.matmul %64, %65, %cst_42 {dimension_numbers = #tpu.dot_dimension_numbers<[1], [0], [0], [1], [0, 0, 1, 1], [], []>} : vector<64x16xbf16>, vector<16x32xbf16>, vector<64x32xf32> -> vector<64x32xf32>
    %cst_43 = arith.constant 0.000000e+00 : f32
    %67 = vector.broadcast %cst_43 : f32 to vector<64x32xf32>
    %68 = arith.maximumf %66, %67 : vector<64x32xf32>
    %c1_44 = arith.constant 1 : index
    %c0_45 = arith.constant 0 : index
    %c0_46 = arith.constant 0 : index
    %69 = vector.load %arg2[%c1_44, %c0_45, %c0_46] : memref<4x16x32xf32, #tpu.memory_space<vmem>>, vector<1x16x32xf32>
    %70 = vector.shape_cast %69 : vector<1x16x32xf32> to vector<16x32xf32>
    %cst_47 = arith.constant dense<0.000000e+00> : vector<48x32xf32>
    %71 = tpu.matmul %28, %70, %cst_47 {dimension_numbers = #tpu.dot_dimension_numbers<[1], [0], [0], [1], [0, 0, 1, 1], [], []>} : vector<48x16xf32>, vector<16x32xf32>, vector<48x32xf32> -> vector<48x32xf32>
    %72 = arith.addf %71, %31 : vector<48x32xf32>
    %cst_48 = arith.constant dense<0.000000e+00> : vector<32x32xf32>
    %73 = tpu.matmul %29, %63, %cst_48 {dimension_numbers = #tpu.dot_dimension_numbers<[1], [0], [0], [1], [0, 0, 1, 1], [], []>} : vector<32x16xf32>, vector<16x32xf32>, vector<32x32xf32> -> vector<32x32xf32>
    %74 = vector.extract_strided_slice %72 {offsets = [0, 0], sizes = [16, 32], strides = [1, 1]} : vector<48x32xf32> to vector<16x32xf32>
    %75 = vector.extract_strided_slice %73 {offsets = [0, 0], sizes = [16, 32], strides = [1, 1]} : vector<32x32xf32> to vector<16x32xf32>
    %76 = arith.addf %74, %75 : vector<16x32xf32>
    %77 = arith.negf %76 : vector<16x32xf32>
    %78 = math.exp %77 : vector<16x32xf32>
    %cst_49 = arith.constant 1.000000e+00 : f32
    %79 = vector.broadcast %cst_49 : f32 to vector<16x32xf32>
    %80 = arith.addf %79, %78 : vector<16x32xf32>
    %81 = arith.divf %79, %80 : vector<16x32xf32>
    %82 = vector.extract_strided_slice %72 {offsets = [16, 0], sizes = [16, 32], strides = [1, 1]} : vector<48x32xf32> to vector<16x32xf32>
    %83 = vector.extract_strided_slice %73 {offsets = [16, 0], sizes = [16, 32], strides = [1, 1]} : vector<32x32xf32> to vector<16x32xf32>
    %84 = arith.addf %82, %83 : vector<16x32xf32>
    %85 = arith.negf %84 : vector<16x32xf32>
    %86 = math.exp %85 : vector<16x32xf32>
    %cst_50 = arith.constant 1.000000e+00 : f32
    %87 = vector.broadcast %cst_50 : f32 to vector<16x32xf32>
    %88 = arith.addf %87, %86 : vector<16x32xf32>
    %89 = arith.divf %87, %88 : vector<16x32xf32>
    %90 = vector.extract_strided_slice %72 {offsets = [32, 0], sizes = [16, 32], strides = [1, 1]} : vector<48x32xf32> to vector<16x32xf32>
    %91 = arith.mulf %89, %63 : vector<16x32xf32>
    %cst_51 = arith.constant dense<0.000000e+00> : vector<16x32xf32>
    %92 = tpu.matmul %30, %91, %cst_51 {dimension_numbers = #tpu.dot_dimension_numbers<[1], [0], [0], [1], [0, 0, 1, 1], [], []>} : vector<16x16xf32>, vector<16x32xf32>, vector<16x32xf32> -> vector<16x32xf32>
    %93 = arith.addf %90, %92 : vector<16x32xf32>
    %94 = math.tanh %93 : vector<16x32xf32>
    %cst_52 = arith.constant 1.000000e+00 : f32
    %95 = vector.broadcast %cst_52 : f32 to vector<16x32xf32>
    %96 = arith.subf %95, %81 : vector<16x32xf32>
    %97 = arith.mulf %96, %63 : vector<16x32xf32>
    %98 = arith.mulf %81, %94 : vector<16x32xf32>
    %99 = arith.addf %97, %98 : vector<16x32xf32>
    %100 = arith.truncf %13 : vector<64x16xf32> to vector<64x16xbf16>
    %101 = arith.truncf %99 : vector<16x32xf32> to vector<16x32xbf16>
    %cst_53 = arith.constant dense<0.000000e+00> : vector<64x32xf32>
    %102 = tpu.matmul %100, %101, %cst_53 {dimension_numbers = #tpu.dot_dimension_numbers<[1], [0], [0], [1], [0, 0, 1, 1], [], []>} : vector<64x16xbf16>, vector<16x32xbf16>, vector<64x32xf32> -> vector<64x32xf32>
    %cst_54 = arith.constant 0.000000e+00 : f32
    %103 = vector.broadcast %cst_54 : f32 to vector<64x32xf32>
    %104 = arith.maximumf %102, %103 : vector<64x32xf32>
    %c2_55 = arith.constant 2 : index
    %c0_56 = arith.constant 0 : index
    %c0_57 = arith.constant 0 : index
    %105 = vector.load %arg2[%c2_55, %c0_56, %c0_57] : memref<4x16x32xf32, #tpu.memory_space<vmem>>, vector<1x16x32xf32>
    %106 = vector.shape_cast %105 : vector<1x16x32xf32> to vector<16x32xf32>
    %cst_58 = arith.constant dense<0.000000e+00> : vector<48x32xf32>
    %107 = tpu.matmul %28, %106, %cst_58 {dimension_numbers = #tpu.dot_dimension_numbers<[1], [0], [0], [1], [0, 0, 1, 1], [], []>} : vector<48x16xf32>, vector<16x32xf32>, vector<48x32xf32> -> vector<48x32xf32>
    %108 = arith.addf %107, %31 : vector<48x32xf32>
    %cst_59 = arith.constant dense<0.000000e+00> : vector<32x32xf32>
    %109 = tpu.matmul %29, %99, %cst_59 {dimension_numbers = #tpu.dot_dimension_numbers<[1], [0], [0], [1], [0, 0, 1, 1], [], []>} : vector<32x16xf32>, vector<16x32xf32>, vector<32x32xf32> -> vector<32x32xf32>
    %110 = vector.extract_strided_slice %108 {offsets = [0, 0], sizes = [16, 32], strides = [1, 1]} : vector<48x32xf32> to vector<16x32xf32>
    %111 = vector.extract_strided_slice %109 {offsets = [0, 0], sizes = [16, 32], strides = [1, 1]} : vector<32x32xf32> to vector<16x32xf32>
    %112 = arith.addf %110, %111 : vector<16x32xf32>
    %113 = arith.negf %112 : vector<16x32xf32>
    %114 = math.exp %113 : vector<16x32xf32>
    %cst_60 = arith.constant 1.000000e+00 : f32
    %115 = vector.broadcast %cst_60 : f32 to vector<16x32xf32>
    %116 = arith.addf %115, %114 : vector<16x32xf32>
    %117 = arith.divf %115, %116 : vector<16x32xf32>
    %118 = vector.extract_strided_slice %108 {offsets = [16, 0], sizes = [16, 32], strides = [1, 1]} : vector<48x32xf32> to vector<16x32xf32>
    %119 = vector.extract_strided_slice %109 {offsets = [16, 0], sizes = [16, 32], strides = [1, 1]} : vector<32x32xf32> to vector<16x32xf32>
    %120 = arith.addf %118, %119 : vector<16x32xf32>
    %121 = arith.negf %120 : vector<16x32xf32>
    %122 = math.exp %121 : vector<16x32xf32>
    %cst_61 = arith.constant 1.000000e+00 : f32
    %123 = vector.broadcast %cst_61 : f32 to vector<16x32xf32>
    %124 = arith.addf %123, %122 : vector<16x32xf32>
    %125 = arith.divf %123, %124 : vector<16x32xf32>
    %126 = vector.extract_strided_slice %108 {offsets = [32, 0], sizes = [16, 32], strides = [1, 1]} : vector<48x32xf32> to vector<16x32xf32>
    %127 = arith.mulf %125, %99 : vector<16x32xf32>
    %cst_62 = arith.constant dense<0.000000e+00> : vector<16x32xf32>
    %128 = tpu.matmul %30, %127, %cst_62 {dimension_numbers = #tpu.dot_dimension_numbers<[1], [0], [0], [1], [0, 0, 1, 1], [], []>} : vector<16x16xf32>, vector<16x32xf32>, vector<16x32xf32> -> vector<16x32xf32>
    %129 = arith.addf %126, %128 : vector<16x32xf32>
    %130 = math.tanh %129 : vector<16x32xf32>
    %cst_63 = arith.constant 1.000000e+00 : f32
    %131 = vector.broadcast %cst_63 : f32 to vector<16x32xf32>
    %132 = arith.subf %131, %117 : vector<16x32xf32>
    %133 = arith.mulf %132, %99 : vector<16x32xf32>
    %134 = arith.mulf %117, %130 : vector<16x32xf32>
    %135 = arith.addf %133, %134 : vector<16x32xf32>
    %136 = arith.truncf %20 : vector<64x16xf32> to vector<64x16xbf16>
    %137 = arith.truncf %135 : vector<16x32xf32> to vector<16x32xbf16>
    %cst_64 = arith.constant dense<0.000000e+00> : vector<64x32xf32>
    %138 = tpu.matmul %136, %137, %cst_64 {dimension_numbers = #tpu.dot_dimension_numbers<[1], [0], [0], [1], [0, 0, 1, 1], [], []>} : vector<64x16xbf16>, vector<16x32xbf16>, vector<64x32xf32> -> vector<64x32xf32>
    %cst_65 = arith.constant 0.000000e+00 : f32
    %139 = vector.broadcast %cst_65 : f32 to vector<64x32xf32>
    %140 = arith.maximumf %138, %139 : vector<64x32xf32>
    %c3_66 = arith.constant 3 : index
    %c0_67 = arith.constant 0 : index
    %c0_68 = arith.constant 0 : index
    %141 = vector.load %arg2[%c3_66, %c0_67, %c0_68] : memref<4x16x32xf32, #tpu.memory_space<vmem>>, vector<1x16x32xf32>
    %142 = vector.shape_cast %141 : vector<1x16x32xf32> to vector<16x32xf32>
    %cst_69 = arith.constant dense<0.000000e+00> : vector<48x32xf32>
    %143 = tpu.matmul %28, %142, %cst_69 {dimension_numbers = #tpu.dot_dimension_numbers<[1], [0], [0], [1], [0, 0, 1, 1], [], []>} : vector<48x16xf32>, vector<16x32xf32>, vector<48x32xf32> -> vector<48x32xf32>
    %144 = arith.addf %143, %31 : vector<48x32xf32>
    %cst_70 = arith.constant dense<0.000000e+00> : vector<32x32xf32>
    %145 = tpu.matmul %29, %135, %cst_70 {dimension_numbers = #tpu.dot_dimension_numbers<[1], [0], [0], [1], [0, 0, 1, 1], [], []>} : vector<32x16xf32>, vector<16x32xf32>, vector<32x32xf32> -> vector<32x32xf32>
    %146 = vector.extract_strided_slice %144 {offsets = [0, 0], sizes = [16, 32], strides = [1, 1]} : vector<48x32xf32> to vector<16x32xf32>
    %147 = vector.extract_strided_slice %145 {offsets = [0, 0], sizes = [16, 32], strides = [1, 1]} : vector<32x32xf32> to vector<16x32xf32>
    %148 = arith.addf %146, %147 : vector<16x32xf32>
    %149 = arith.negf %148 : vector<16x32xf32>
    %150 = math.exp %149 : vector<16x32xf32>
    %cst_71 = arith.constant 1.000000e+00 : f32
    %151 = vector.broadcast %cst_71 : f32 to vector<16x32xf32>
    %152 = arith.addf %151, %150 : vector<16x32xf32>
    %153 = arith.divf %151, %152 : vector<16x32xf32>
    %154 = vector.extract_strided_slice %144 {offsets = [16, 0], sizes = [16, 32], strides = [1, 1]} : vector<48x32xf32> to vector<16x32xf32>
    %155 = vector.extract_strided_slice %145 {offsets = [16, 0], sizes = [16, 32], strides = [1, 1]} : vector<32x32xf32> to vector<16x32xf32>
    %156 = arith.addf %154, %155 : vector<16x32xf32>
    %157 = arith.negf %156 : vector<16x32xf32>
    %158 = math.exp %157 : vector<16x32xf32>
    %cst_72 = arith.constant 1.000000e+00 : f32
    %159 = vector.broadcast %cst_72 : f32 to vector<16x32xf32>
    %160 = arith.addf %159, %158 : vector<16x32xf32>
    %161 = arith.divf %159, %160 : vector<16x32xf32>
    %162 = vector.extract_strided_slice %144 {offsets = [32, 0], sizes = [16, 32], strides = [1, 1]} : vector<48x32xf32> to vector<16x32xf32>
    %163 = arith.mulf %161, %135 : vector<16x32xf32>
    %cst_73 = arith.constant dense<0.000000e+00> : vector<16x32xf32>
    %164 = tpu.matmul %30, %163, %cst_73 {dimension_numbers = #tpu.dot_dimension_numbers<[1], [0], [0], [1], [0, 0, 1, 1], [], []>} : vector<16x16xf32>, vector<16x32xf32>, vector<16x32xf32> -> vector<16x32xf32>
    %165 = arith.addf %162, %164 : vector<16x32xf32>
    %166 = math.tanh %165 : vector<16x32xf32>
    %cst_74 = arith.constant 1.000000e+00 : f32
    %167 = vector.broadcast %cst_74 : f32 to vector<16x32xf32>
    %168 = arith.subf %167, %153 : vector<16x32xf32>
    %169 = arith.mulf %168, %135 : vector<16x32xf32>
    %170 = arith.mulf %153, %166 : vector<16x32xf32>
    %171 = arith.addf %169, %170 : vector<16x32xf32>
    %172 = arith.truncf %27 : vector<64x16xf32> to vector<64x16xbf16>
    %173 = arith.truncf %171 : vector<16x32xf32> to vector<16x32xbf16>
    %cst_75 = arith.constant dense<0.000000e+00> : vector<64x32xf32>
    %174 = tpu.matmul %172, %173, %cst_75 {dimension_numbers = #tpu.dot_dimension_numbers<[1], [0], [0], [1], [0, 0, 1, 1], [], []>} : vector<64x16xbf16>, vector<16x32xbf16>, vector<64x32xf32> -> vector<64x32xf32>
    %cst_76 = arith.constant 0.000000e+00 : f32
    %175 = vector.broadcast %cst_76 : f32 to vector<64x32xf32>
    %176 = arith.maximumf %174, %175 : vector<64x32xf32>
    %c0_77 = arith.constant 0 : index
    %c0_78 = arith.constant 0 : index
    %177 = vector.load %arg4[%c0_77, %c0_78] : memref<32x1xf32, #tpu.memory_space<vmem>>, vector<32x1xf32>
    %178 = arith.mulf %177, %177 : vector<32x1xf32>
    %179 = vector.shape_cast %178 : vector<32x1xf32> to vector<1x32x1xf32>
    %cst_79 = arith.constant dense<0.000000e+00> : vector<1xf32>
    %180 = vector.multi_reduction <add>, %179, %cst_79 [1, 2] : vector<1x32x1xf32> to vector<1xf32>
    %181 = vector.shape_cast %180 : vector<1xf32> to vector<1x1x1xf32>
    %182 = vector.extract %181[0, 0, 0] : f32 from vector<1x1x1xf32>
    %183 = vector.broadcast %182 : f32 to vector<1x1xf32>
    %184 = math.rsqrt %183 : vector<1x1xf32>
    %c0_80 = arith.constant 0 : index
    %c0_81 = arith.constant 0 : index
    %c0_82 = arith.constant 0 : index
    %185 = vector.load %arg0[%c0_80, %c0_81, %c0_82] : memref<4x64x64xf32, #tpu.memory_space<vmem>>, vector<1x64x64xf32>
    %186 = vector.shape_cast %185 : vector<1x64x64xf32> to vector<64x64xf32>
    %187 = arith.truncf %186 : vector<64x64xf32> to vector<64x64xbf16>
    %188 = arith.truncf %68 : vector<64x32xf32> to vector<64x32xbf16>
    %cst_83 = arith.constant dense<0.000000e+00> : vector<64x32xf32>
    %189 = tpu.matmul %187, %188, %cst_83 {dimension_numbers = #tpu.dot_dimension_numbers<[1], [0], [0], [1], [0, 0, 1, 1], [], []>} : vector<64x64xbf16>, vector<64x32xbf16>, vector<64x32xf32> -> vector<64x32xf32>
    %c0_84 = arith.constant 0 : index
    %c0_85 = arith.constant 0 : index
    %c0_86 = arith.constant 0 : index
    %190 = vector.load %arg10[%c0_84, %c0_85, %c0_86] : memref<4x64x32xf32, #tpu.memory_space<vmem>>, vector<1x64x32xf32>
    %191 = vector.shape_cast %190 : vector<1x64x32xf32> to vector<64x32xf32>
    %192 = vector.shape_cast %189 : vector<64x32xf32> to vector<1x64x32xf32>
    tpu.vector_store %arg10[%c0_84, %c0_85, %c0_86], %192 {strides = array<i32>} : memref<4x64x32xf32, #tpu.memory_space<vmem>>, vector<1x64x32xf32>,
    %193 = arith.truncf %68 : vector<64x32xf32> to vector<64x32xbf16>
    %194 = arith.truncf %177 : vector<32x1xf32> to vector<32x1xbf16>
    %cst_87 = arith.constant dense<0.000000e+00> : vector<64x1xf32>
    %195 = tpu.matmul %193, %194, %cst_87 {dimension_numbers = #tpu.dot_dimension_numbers<[1], [0], [0], [1], [0, 0, 1, 1], [], []>} : vector<64x32xbf16>, vector<32x1xbf16>, vector<64x1xf32> -> vector<64x1xf32>
    %196 = vector.broadcast %184 : vector<1x1xf32> to vector<64x1xf32>
    %197 = arith.mulf %195, %196 : vector<64x1xf32>
    %c0_88 = arith.constant 0 : index
    %c0_89 = arith.constant 0 : index
    %c0_90 = arith.constant 0 : index
    %198 = vector.load %arg3[%c0_88, %c0_89, %c0_90] : memref<4x64x1xf32, #tpu.memory_space<vmem>>, vector<1x64x1xf32>
    %199 = vector.shape_cast %198 : vector<1x64x1xf32> to vector<64x1xf32>
    %200 = arith.addf %197, %199 : vector<64x1xf32>
    %201 = math.tanh %200 : vector<64x1xf32>
    %202 = vector.broadcast %201 : vector<64x1xf32> to vector<64x32xf32>
    %203 = arith.mulf %68, %202 : vector<64x32xf32>
    %c0_91 = arith.constant 0 : index
    %c0_92 = arith.constant 0 : index
    %c0_93 = arith.constant 0 : index
    %204 = vector.load %arg11[%c0_91, %c0_92, %c0_93] : memref<4x64x32xf32, #tpu.memory_space<vmem>>, vector<1x64x32xf32>
    %205 = vector.shape_cast %204 : vector<1x64x32xf32> to vector<64x32xf32>
    %206 = vector.shape_cast %203 : vector<64x32xf32> to vector<1x64x32xf32>
    tpu.vector_store %arg11[%c0_91, %c0_92, %c0_93], %206 {strides = array<i32>} : memref<4x64x32xf32, #tpu.memory_space<vmem>>, vector<1x64x32xf32>,
    %c0_94 = arith.constant 0 : index
    %c0_95 = arith.constant 0 : index
    %c0_96 = arith.constant 0 : index
    %207 = vector.load %arg12[%c0_94, %c0_95, %c0_96] : memref<4x64x1xf32, #tpu.memory_space<vmem>>, vector<1x64x1xf32>
    %208 = vector.shape_cast %207 : vector<1x64x1xf32> to vector<64x1xf32>
    %209 = vector.shape_cast %200 : vector<64x1xf32> to vector<1x64x1xf32>
    tpu.vector_store %arg12[%c0_94, %c0_95, %c0_96], %209 {strides = array<i32>} : memref<4x64x1xf32, #tpu.memory_space<vmem>>, vector<1x64x1xf32>,
    %c1_97 = arith.constant 1 : index
    %c0_98 = arith.constant 0 : index
    %c0_99 = arith.constant 0 : index
    %210 = vector.load %arg0[%c1_97, %c0_98, %c0_99] : memref<4x64x64xf32, #tpu.memory_space<vmem>>, vector<1x64x64xf32>
    %211 = vector.shape_cast %210 : vector<1x64x64xf32> to vector<64x64xf32>
    %212 = arith.truncf %211 : vector<64x64xf32> to vector<64x64xbf16>
    %213 = arith.truncf %104 : vector<64x32xf32> to vector<64x32xbf16>
    %cst_100 = arith.constant dense<0.000000e+00> : vector<64x32xf32>
    %214 = tpu.matmul %212, %213, %cst_100 {dimension_numbers = #tpu.dot_dimension_numbers<[1], [0], [0], [1], [0, 0, 1, 1], [], []>} : vector<64x64xbf16>, vector<64x32xbf16>, vector<64x32xf32> -> vector<64x32xf32>
    %c1_101 = arith.constant 1 : index
    %c0_102 = arith.constant 0 : index
    %c0_103 = arith.constant 0 : index
    %215 = vector.load %arg10[%c1_101, %c0_102, %c0_103] : memref<4x64x32xf32, #tpu.memory_space<vmem>>, vector<1x64x32xf32>
    %216 = vector.shape_cast %215 : vector<1x64x32xf32> to vector<64x32xf32>
    %217 = vector.shape_cast %214 : vector<64x32xf32> to vector<1x64x32xf32>
    tpu.vector_store %arg10[%c1_101, %c0_102, %c0_103], %217 {strides = array<i32>} : memref<4x64x32xf32, #tpu.memory_space<vmem>>, vector<1x64x32xf32>,
    %218 = arith.truncf %104 : vector<64x32xf32> to vector<64x32xbf16>
    %219 = arith.truncf %177 : vector<32x1xf32> to vector<32x1xbf16>
    %cst_104 = arith.constant dense<0.000000e+00> : vector<64x1xf32>
    %220 = tpu.matmul %218, %219, %cst_104 {dimension_numbers = #tpu.dot_dimension_numbers<[1], [0], [0], [1], [0, 0, 1, 1], [], []>} : vector<64x32xbf16>, vector<32x1xbf16>, vector<64x1xf32> -> vector<64x1xf32>
    %221 = vector.broadcast %184 : vector<1x1xf32> to vector<64x1xf32>
    %222 = arith.mulf %220, %221 : vector<64x1xf32>
    %c1_105 = arith.constant 1 : index
    %c0_106 = arith.constant 0 : index
    %c0_107 = arith.constant 0 : index
    %223 = vector.load %arg3[%c1_105, %c0_106, %c0_107] : memref<4x64x1xf32, #tpu.memory_space<vmem>>, vector<1x64x1xf32>
    %224 = vector.shape_cast %223 : vector<1x64x1xf32> to vector<64x1xf32>
    %225 = arith.addf %222, %224 : vector<64x1xf32>
    %226 = math.tanh %225 : vector<64x1xf32>
    %227 = vector.broadcast %226 : vector<64x1xf32> to vector<64x32xf32>
    %228 = arith.mulf %104, %227 : vector<64x32xf32>
    %c1_108 = arith.constant 1 : index
    %c0_109 = arith.constant 0 : index
    %c0_110 = arith.constant 0 : index
    %229 = vector.load %arg11[%c1_108, %c0_109, %c0_110] : memref<4x64x32xf32, #tpu.memory_space<vmem>>, vector<1x64x32xf32>
    %230 = vector.shape_cast %229 : vector<1x64x32xf32> to vector<64x32xf32>
    %231 = vector.shape_cast %228 : vector<64x32xf32> to vector<1x64x32xf32>
    tpu.vector_store %arg11[%c1_108, %c0_109, %c0_110], %231 {strides = array<i32>} : memref<4x64x32xf32, #tpu.memory_space<vmem>>, vector<1x64x32xf32>,
    %c1_111 = arith.constant 1 : index
    %c0_112 = arith.constant 0 : index
    %c0_113 = arith.constant 0 : index
    %232 = vector.load %arg12[%c1_111, %c0_112, %c0_113] : memref<4x64x1xf32, #tpu.memory_space<vmem>>, vector<1x64x1xf32>
    %233 = vector.shape_cast %232 : vector<1x64x1xf32> to vector<64x1xf32>
    %234 = vector.shape_cast %225 : vector<64x1xf32> to vector<1x64x1xf32>
    tpu.vector_store %arg12[%c1_111, %c0_112, %c0_113], %234 {strides = array<i32>} : memref<4x64x1xf32, #tpu.memory_space<vmem>>, vector<1x64x1xf32>,
    %c2_114 = arith.constant 2 : index
    %c0_115 = arith.constant 0 : index
    %c0_116 = arith.constant 0 : index
    %235 = vector.load %arg0[%c2_114, %c0_115, %c0_116] : memref<4x64x64xf32, #tpu.memory_space<vmem>>, vector<1x64x64xf32>
    %236 = vector.shape_cast %235 : vector<1x64x64xf32> to vector<64x64xf32>
    %237 = arith.truncf %236 : vector<64x64xf32> to vector<64x64xbf16>
    %238 = arith.truncf %140 : vector<64x32xf32> to vector<64x32xbf16>
    %cst_117 = arith.constant dense<0.000000e+00> : vector<64x32xf32>
    %239 = tpu.matmul %237, %238, %cst_117 {dimension_numbers = #tpu.dot_dimension_numbers<[1], [0], [0], [1], [0, 0, 1, 1], [], []>} : vector<64x64xbf16>, vector<64x32xbf16>, vector<64x32xf32> -> vector<64x32xf32>
    %c2_118 = arith.constant 2 : index
    %c0_119 = arith.constant 0 : index
    %c0_120 = arith.constant 0 : index
    %240 = vector.load %arg10[%c2_118, %c0_119, %c0_120] : memref<4x64x32xf32, #tpu.memory_space<vmem>>, vector<1x64x32xf32>
    %241 = vector.shape_cast %240 : vector<1x64x32xf32> to vector<64x32xf32>
    %242 = vector.shape_cast %239 : vector<64x32xf32> to vector<1x64x32xf32>
    tpu.vector_store %arg10[%c2_118, %c0_119, %c0_120], %242 {strides = array<i32>} : memref<4x64x32xf32, #tpu.memory_space<vmem>>, vector<1x64x32xf32>,
    %243 = arith.truncf %140 : vector<64x32xf32> to vector<64x32xbf16>
    %244 = arith.truncf %177 : vector<32x1xf32> to vector<32x1xbf16>
    %cst_121 = arith.constant dense<0.000000e+00> : vector<64x1xf32>
    %245 = tpu.matmul %243, %244, %cst_121 {dimension_numbers = #tpu.dot_dimension_numbers<[1], [0], [0], [1], [0, 0, 1, 1], [], []>} : vector<64x32xbf16>, vector<32x1xbf16>, vector<64x1xf32> -> vector<64x1xf32>
    %246 = vector.broadcast %184 : vector<1x1xf32> to vector<64x1xf32>
    %247 = arith.mulf %245, %246 : vector<64x1xf32>
    %c2_122 = arith.constant 2 : index
    %c0_123 = arith.constant 0 : index
    %c0_124 = arith.constant 0 : index
    %248 = vector.load %arg3[%c2_122, %c0_123, %c0_124] : memref<4x64x1xf32, #tpu.memory_space<vmem>>, vector<1x64x1xf32>
    %249 = vector.shape_cast %248 : vector<1x64x1xf32> to vector<64x1xf32>
    %250 = arith.addf %247, %249 : vector<64x1xf32>
    %251 = math.tanh %250 : vector<64x1xf32>
    %252 = vector.broadcast %251 : vector<64x1xf32> to vector<64x32xf32>
    %253 = arith.mulf %140, %252 : vector<64x32xf32>
    %c2_125 = arith.constant 2 : index
    %c0_126 = arith.constant 0 : index
    %c0_127 = arith.constant 0 : index
    %254 = vector.load %arg11[%c2_125, %c0_126, %c0_127] : memref<4x64x32xf32, #tpu.memory_space<vmem>>, vector<1x64x32xf32>
    %255 = vector.shape_cast %254 : vector<1x64x32xf32> to vector<64x32xf32>
    %256 = vector.shape_cast %253 : vector<64x32xf32> to vector<1x64x32xf32>
    tpu.vector_store %arg11[%c2_125, %c0_126, %c0_127], %256 {strides = array<i32>} : memref<4x64x32xf32, #tpu.memory_space<vmem>>, vector<1x64x32xf32>,
    %c2_128 = arith.constant 2 : index
    %c0_129 = arith.constant 0 : index
    %c0_130 = arith.constant 0 : index
    %257 = vector.load %arg12[%c2_128, %c0_129, %c0_130] : memref<4x64x1xf32, #tpu.memory_space<vmem>>, vector<1x64x1xf32>
    %258 = vector.shape_cast %257 : vector<1x64x1xf32> to vector<64x1xf32>
    %259 = vector.shape_cast %250 : vector<64x1xf32> to vector<1x64x1xf32>
    tpu.vector_store %arg12[%c2_128, %c0_129, %c0_130], %259 {strides = array<i32>} : memref<4x64x1xf32, #tpu.memory_space<vmem>>, vector<1x64x1xf32>,
    %c3_131 = arith.constant 3 : index
    %c0_132 = arith.constant 0 : index
    %c0_133 = arith.constant 0 : index
    %260 = vector.load %arg0[%c3_131, %c0_132, %c0_133] : memref<4x64x64xf32, #tpu.memory_space<vmem>>, vector<1x64x64xf32>
    %261 = vector.shape_cast %260 : vector<1x64x64xf32> to vector<64x64xf32>
    %262 = arith.truncf %261 : vector<64x64xf32> to vector<64x64xbf16>
    %263 = arith.truncf %176 : vector<64x32xf32> to vector<64x32xbf16>
    %cst_134 = arith.constant dense<0.000000e+00> : vector<64x32xf32>
    %264 = tpu.matmul %262, %263, %cst_134 {dimension_numbers = #tpu.dot_dimension_numbers<[1], [0], [0], [1], [0, 0, 1, 1], [], []>} : vector<64x64xbf16>, vector<64x32xbf16>, vector<64x32xf32> -> vector<64x32xf32>
    %c3_135 = arith.constant 3 : index
    %c0_136 = arith.constant 0 : index
    %c0_137 = arith.constant 0 : index
    %265 = vector.load %arg10[%c3_135, %c0_136, %c0_137] : memref<4x64x32xf32, #tpu.memory_space<vmem>>, vector<1x64x32xf32>
    %266 = vector.shape_cast %265 : vector<1x64x32xf32> to vector<64x32xf32>
    %267 = vector.shape_cast %264 : vector<64x32xf32> to vector<1x64x32xf32>
    tpu.vector_store %arg10[%c3_135, %c0_136, %c0_137], %267 {strides = array<i32>} : memref<4x64x32xf32, #tpu.memory_space<vmem>>, vector<1x64x32xf32>,
    %268 = arith.truncf %176 : vector<64x32xf32> to vector<64x32xbf16>
    %269 = arith.truncf %177 : vector<32x1xf32> to vector<32x1xbf16>
    %cst_138 = arith.constant dense<0.000000e+00> : vector<64x1xf32>
    %270 = tpu.matmul %268, %269, %cst_138 {dimension_numbers = #tpu.dot_dimension_numbers<[1], [0], [0], [1], [0, 0, 1, 1], [], []>} : vector<64x32xbf16>, vector<32x1xbf16>, vector<64x1xf32> -> vector<64x1xf32>
    %271 = vector.broadcast %184 : vector<1x1xf32> to vector<64x1xf32>
    %272 = arith.mulf %270, %271 : vector<64x1xf32>
    %c3_139 = arith.constant 3 : index
    %c0_140 = arith.constant 0 : index
    %c0_141 = arith.constant 0 : index
    %273 = vector.load %arg3[%c3_139, %c0_140, %c0_141] : memref<4x64x1xf32, #tpu.memory_space<vmem>>, vector<1x64x1xf32>
    %274 = vector.shape_cast %273 : vector<1x64x1xf32> to vector<64x1xf32>
    %275 = arith.addf %272, %274 : vector<64x1xf32>
    %276 = math.tanh %275 : vector<64x1xf32>
    %277 = vector.broadcast %276 : vector<64x1xf32> to vector<64x32xf32>
    %278 = arith.mulf %176, %277 : vector<64x32xf32>
    %c3_142 = arith.constant 3 : index
    %c0_143 = arith.constant 0 : index
    %c0_144 = arith.constant 0 : index
    %279 = vector.load %arg11[%c3_142, %c0_143, %c0_144] : memref<4x64x32xf32, #tpu.memory_space<vmem>>, vector<1x64x32xf32>
    %280 = vector.shape_cast %279 : vector<1x64x32xf32> to vector<64x32xf32>
    %281 = vector.shape_cast %278 : vector<64x32xf32> to vector<1x64x32xf32>
    tpu.vector_store %arg11[%c3_142, %c0_143, %c0_144], %281 {strides = array<i32>} : memref<4x64x32xf32, #tpu.memory_space<vmem>>, vector<1x64x32xf32>,
    %c3_145 = arith.constant 3 : index
    %c0_146 = arith.constant 0 : index
    %c0_147 = arith.constant 0 : index
    %282 = vector.load %arg12[%c3_145, %c0_146, %c0_147] : memref<4x64x1xf32, #tpu.memory_space<vmem>>, vector<1x64x1xf32>
    %283 = vector.shape_cast %282 : vector<1x64x1xf32> to vector<64x1xf32>
    %284 = vector.shape_cast %275 : vector<64x1xf32> to vector<1x64x1xf32>
    tpu.vector_store %arg12[%c3_145, %c0_146, %c0_147], %284 {strides = array<i32>} : memref<4x64x1xf32, #tpu.memory_space<vmem>>, vector<1x64x1xf32>,
    return
  }
}

module attributes {stable_mosaic.version = 11 : i64} {
  func.func @_grcu2_head_kernel(%arg0: memref<4x64x32xf32, #tpu.memory_space<vmem>>, %arg1: memref<4x32x32xf32, #tpu.memory_space<vmem>>, %arg2: memref<256x20xf32, #tpu.memory_space<vmem>>, %arg3: memref<96x32xf32, #tpu.memory_space<vmem>>, %arg4: memref<64x32xf32, #tpu.memory_space<vmem>>, %arg5: memref<32x32xf32, #tpu.memory_space<vmem>>, %arg6: memref<96x32xf32, #tpu.memory_space<vmem>>, %arg7: memref<32x32xf32, #tpu.memory_space<vmem>>, %arg8: memref<32x128xf32, #tpu.memory_space<vmem>>, %arg9: memref<20x128xf32, #tpu.memory_space<vmem>>, %arg10: memref<32x128xf32, #tpu.memory_space<vmem>>, %arg11: memref<1x128xf32, #tpu.memory_space<vmem>>, %arg12: memref<1x32xf32, #tpu.memory_space<vmem>>, %arg13: memref<1x1xf32, #tpu.memory_space<vmem>>, %arg14: memref<32x128xf32, #tpu.memory_space<vmem>>, %arg15: memref<1x128xf32, #tpu.memory_space<vmem>>, %arg16: memref<128x8xf32, #tpu.memory_space<vmem>>, %arg17: memref<1x8xf32, #tpu.memory_space<vmem>>, %arg18: memref<64x8xf32, #tpu.memory_space<vmem>>, %arg19: memref<256x128xf32, #tpu.memory_space<vmem>>) attributes {dimension_semantics = [], scalar_prefetch = 0 : i64, scratch_operands = 1 : i64, tpu.core_type = #tpu.core_type<tc>} {
    %c0 = arith.constant 0 : index
    %c0_0 = arith.constant 0 : index
    %0 = vector.load %arg3[%c0, %c0_0] : memref<96x32xf32, #tpu.memory_space<vmem>>, vector<96x32xf32>
    %c0_1 = arith.constant 0 : index
    %c0_2 = arith.constant 0 : index
    %1 = vector.load %arg4[%c0_1, %c0_2] : memref<64x32xf32, #tpu.memory_space<vmem>>, vector<64x32xf32>
    %c0_3 = arith.constant 0 : index
    %c0_4 = arith.constant 0 : index
    %2 = vector.load %arg5[%c0_3, %c0_4] : memref<32x32xf32, #tpu.memory_space<vmem>>, vector<32x32xf32>
    %c0_5 = arith.constant 0 : index
    %c0_6 = arith.constant 0 : index
    %3 = vector.load %arg6[%c0_5, %c0_6] : memref<96x32xf32, #tpu.memory_space<vmem>>, vector<96x32xf32>
    %c0_7 = arith.constant 0 : index
    %c0_8 = arith.constant 0 : index
    %4 = vector.load %arg7[%c0_7, %c0_8] : memref<32x32xf32, #tpu.memory_space<vmem>>, vector<32x32xf32>
    %c0_9 = arith.constant 0 : index
    %c0_10 = arith.constant 0 : index
    %c0_11 = arith.constant 0 : index
    %5 = vector.load %arg1[%c0_9, %c0_10, %c0_11] : memref<4x32x32xf32, #tpu.memory_space<vmem>>, vector<1x32x32xf32>
    %6 = vector.shape_cast %5 : vector<1x32x32xf32> to vector<32x32xf32>
    %cst = arith.constant dense<0.000000e+00> : vector<96x32xf32>
    %7 = tpu.matmul %0, %6, %cst {dimension_numbers = #tpu.dot_dimension_numbers<[1], [0], [0], [1], [0, 0, 1, 1], [], []>} : vector<96x32xf32>, vector<32x32xf32>, vector<96x32xf32> -> vector<96x32xf32>
    %8 = arith.addf %7, %3 : vector<96x32xf32>
    %cst_12 = arith.constant dense<0.000000e+00> : vector<64x32xf32>
    %9 = tpu.matmul %1, %4, %cst_12 {dimension_numbers = #tpu.dot_dimension_numbers<[1], [0], [0], [1], [0, 0, 1, 1], [], []>} : vector<64x32xf32>, vector<32x32xf32>, vector<64x32xf32> -> vector<64x32xf32>
    %10 = vector.extract_strided_slice %8 {offsets = [0, 0], sizes = [32, 32], strides = [1, 1]} : vector<96x32xf32> to vector<32x32xf32>
    %11 = vector.extract_strided_slice %9 {offsets = [0, 0], sizes = [32, 32], strides = [1, 1]} : vector<64x32xf32> to vector<32x32xf32>
    %12 = arith.addf %10, %11 : vector<32x32xf32>
    %13 = arith.negf %12 : vector<32x32xf32>
    %14 = math.exp %13 : vector<32x32xf32>
    %cst_13 = arith.constant 1.000000e+00 : f32
    %15 = vector.broadcast %cst_13 : f32 to vector<32x32xf32>
    %16 = arith.addf %15, %14 : vector<32x32xf32>
    %17 = arith.divf %15, %16 : vector<32x32xf32>
    %18 = vector.extract_strided_slice %8 {offsets = [32, 0], sizes = [32, 32], strides = [1, 1]} : vector<96x32xf32> to vector<32x32xf32>
    %19 = vector.extract_strided_slice %9 {offsets = [32, 0], sizes = [32, 32], strides = [1, 1]} : vector<64x32xf32> to vector<32x32xf32>
    %20 = arith.addf %18, %19 : vector<32x32xf32>
    %21 = arith.negf %20 : vector<32x32xf32>
    %22 = math.exp %21 : vector<32x32xf32>
    %cst_14 = arith.constant 1.000000e+00 : f32
    %23 = vector.broadcast %cst_14 : f32 to vector<32x32xf32>
    %24 = arith.addf %23, %22 : vector<32x32xf32>
    %25 = arith.divf %23, %24 : vector<32x32xf32>
    %26 = vector.extract_strided_slice %8 {offsets = [64, 0], sizes = [32, 32], strides = [1, 1]} : vector<96x32xf32> to vector<32x32xf32>
    %27 = arith.mulf %25, %4 : vector<32x32xf32>
    %cst_15 = arith.constant dense<0.000000e+00> : vector<32x32xf32>
    %28 = tpu.matmul %2, %27, %cst_15 {dimension_numbers = #tpu.dot_dimension_numbers<[1], [0], [0], [1], [0, 0, 1, 1], [], []>} : vector<32x32xf32>, vector<32x32xf32>, vector<32x32xf32> -> vector<32x32xf32>
    %29 = arith.addf %26, %28 : vector<32x32xf32>
    %30 = math.tanh %29 : vector<32x32xf32>
    %cst_16 = arith.constant 1.000000e+00 : f32
    %31 = vector.broadcast %cst_16 : f32 to vector<32x32xf32>
    %32 = arith.subf %31, %17 : vector<32x32xf32>
    %33 = arith.mulf %32, %4 : vector<32x32xf32>
    %34 = arith.mulf %17, %30 : vector<32x32xf32>
    %35 = arith.addf %33, %34 : vector<32x32xf32>
    %c0_17 = arith.constant 0 : index
    %c0_18 = arith.constant 0 : index
    %c0_19 = arith.constant 0 : index
    %36 = vector.load %arg0[%c0_17, %c0_18, %c0_19] : memref<4x64x32xf32, #tpu.memory_space<vmem>>, vector<1x64x32xf32>
    %37 = vector.shape_cast %36 : vector<1x64x32xf32> to vector<64x32xf32>
    %38 = arith.truncf %37 : vector<64x32xf32> to vector<64x32xbf16>
    %39 = arith.truncf %35 : vector<32x32xf32> to vector<32x32xbf16>
    %cst_20 = arith.constant dense<0.000000e+00> : vector<64x32xf32>
    %40 = tpu.matmul %38, %39, %cst_20 {dimension_numbers = #tpu.dot_dimension_numbers<[1], [0], [0], [1], [0, 0, 1, 1], [], []>} : vector<64x32xbf16>, vector<32x32xbf16>, vector<64x32xf32> -> vector<64x32xf32>
    %cst_21 = arith.constant 0.000000e+00 : f32
    %41 = vector.broadcast %cst_21 : f32 to vector<64x32xf32>
    %42 = arith.maximumf %40, %41 : vector<64x32xf32>
    %c1 = arith.constant 1 : index
    %c0_22 = arith.constant 0 : index
    %c0_23 = arith.constant 0 : index
    %43 = vector.load %arg1[%c1, %c0_22, %c0_23] : memref<4x32x32xf32, #tpu.memory_space<vmem>>, vector<1x32x32xf32>
    %44 = vector.shape_cast %43 : vector<1x32x32xf32> to vector<32x32xf32>
    %cst_24 = arith.constant dense<0.000000e+00> : vector<96x32xf32>
    %45 = tpu.matmul %0, %44, %cst_24 {dimension_numbers = #tpu.dot_dimension_numbers<[1], [0], [0], [1], [0, 0, 1, 1], [], []>} : vector<96x32xf32>, vector<32x32xf32>, vector<96x32xf32> -> vector<96x32xf32>
    %46 = arith.addf %45, %3 : vector<96x32xf32>
    %cst_25 = arith.constant dense<0.000000e+00> : vector<64x32xf32>
    %47 = tpu.matmul %1, %35, %cst_25 {dimension_numbers = #tpu.dot_dimension_numbers<[1], [0], [0], [1], [0, 0, 1, 1], [], []>} : vector<64x32xf32>, vector<32x32xf32>, vector<64x32xf32> -> vector<64x32xf32>
    %48 = vector.extract_strided_slice %46 {offsets = [0, 0], sizes = [32, 32], strides = [1, 1]} : vector<96x32xf32> to vector<32x32xf32>
    %49 = vector.extract_strided_slice %47 {offsets = [0, 0], sizes = [32, 32], strides = [1, 1]} : vector<64x32xf32> to vector<32x32xf32>
    %50 = arith.addf %48, %49 : vector<32x32xf32>
    %51 = arith.negf %50 : vector<32x32xf32>
    %52 = math.exp %51 : vector<32x32xf32>
    %cst_26 = arith.constant 1.000000e+00 : f32
    %53 = vector.broadcast %cst_26 : f32 to vector<32x32xf32>
    %54 = arith.addf %53, %52 : vector<32x32xf32>
    %55 = arith.divf %53, %54 : vector<32x32xf32>
    %56 = vector.extract_strided_slice %46 {offsets = [32, 0], sizes = [32, 32], strides = [1, 1]} : vector<96x32xf32> to vector<32x32xf32>
    %57 = vector.extract_strided_slice %47 {offsets = [32, 0], sizes = [32, 32], strides = [1, 1]} : vector<64x32xf32> to vector<32x32xf32>
    %58 = arith.addf %56, %57 : vector<32x32xf32>
    %59 = arith.negf %58 : vector<32x32xf32>
    %60 = math.exp %59 : vector<32x32xf32>
    %cst_27 = arith.constant 1.000000e+00 : f32
    %61 = vector.broadcast %cst_27 : f32 to vector<32x32xf32>
    %62 = arith.addf %61, %60 : vector<32x32xf32>
    %63 = arith.divf %61, %62 : vector<32x32xf32>
    %64 = vector.extract_strided_slice %46 {offsets = [64, 0], sizes = [32, 32], strides = [1, 1]} : vector<96x32xf32> to vector<32x32xf32>
    %65 = arith.mulf %63, %35 : vector<32x32xf32>
    %cst_28 = arith.constant dense<0.000000e+00> : vector<32x32xf32>
    %66 = tpu.matmul %2, %65, %cst_28 {dimension_numbers = #tpu.dot_dimension_numbers<[1], [0], [0], [1], [0, 0, 1, 1], [], []>} : vector<32x32xf32>, vector<32x32xf32>, vector<32x32xf32> -> vector<32x32xf32>
    %67 = arith.addf %64, %66 : vector<32x32xf32>
    %68 = math.tanh %67 : vector<32x32xf32>
    %cst_29 = arith.constant 1.000000e+00 : f32
    %69 = vector.broadcast %cst_29 : f32 to vector<32x32xf32>
    %70 = arith.subf %69, %55 : vector<32x32xf32>
    %71 = arith.mulf %70, %35 : vector<32x32xf32>
    %72 = arith.mulf %55, %68 : vector<32x32xf32>
    %73 = arith.addf %71, %72 : vector<32x32xf32>
    %c1_30 = arith.constant 1 : index
    %c0_31 = arith.constant 0 : index
    %c0_32 = arith.constant 0 : index
    %74 = vector.load %arg0[%c1_30, %c0_31, %c0_32] : memref<4x64x32xf32, #tpu.memory_space<vmem>>, vector<1x64x32xf32>
    %75 = vector.shape_cast %74 : vector<1x64x32xf32> to vector<64x32xf32>
    %76 = arith.truncf %75 : vector<64x32xf32> to vector<64x32xbf16>
    %77 = arith.truncf %73 : vector<32x32xf32> to vector<32x32xbf16>
    %cst_33 = arith.constant dense<0.000000e+00> : vector<64x32xf32>
    %78 = tpu.matmul %76, %77, %cst_33 {dimension_numbers = #tpu.dot_dimension_numbers<[1], [0], [0], [1], [0, 0, 1, 1], [], []>} : vector<64x32xbf16>, vector<32x32xbf16>, vector<64x32xf32> -> vector<64x32xf32>
    %cst_34 = arith.constant 0.000000e+00 : f32
    %79 = vector.broadcast %cst_34 : f32 to vector<64x32xf32>
    %80 = arith.maximumf %78, %79 : vector<64x32xf32>
    %c2 = arith.constant 2 : index
    %c0_35 = arith.constant 0 : index
    %c0_36 = arith.constant 0 : index
    %81 = vector.load %arg1[%c2, %c0_35, %c0_36] : memref<4x32x32xf32, #tpu.memory_space<vmem>>, vector<1x32x32xf32>
    %82 = vector.shape_cast %81 : vector<1x32x32xf32> to vector<32x32xf32>
    %cst_37 = arith.constant dense<0.000000e+00> : vector<96x32xf32>
    %83 = tpu.matmul %0, %82, %cst_37 {dimension_numbers = #tpu.dot_dimension_numbers<[1], [0], [0], [1], [0, 0, 1, 1], [], []>} : vector<96x32xf32>, vector<32x32xf32>, vector<96x32xf32> -> vector<96x32xf32>
    %84 = arith.addf %83, %3 : vector<96x32xf32>
    %cst_38 = arith.constant dense<0.000000e+00> : vector<64x32xf32>
    %85 = tpu.matmul %1, %73, %cst_38 {dimension_numbers = #tpu.dot_dimension_numbers<[1], [0], [0], [1], [0, 0, 1, 1], [], []>} : vector<64x32xf32>, vector<32x32xf32>, vector<64x32xf32> -> vector<64x32xf32>
    %86 = vector.extract_strided_slice %84 {offsets = [0, 0], sizes = [32, 32], strides = [1, 1]} : vector<96x32xf32> to vector<32x32xf32>
    %87 = vector.extract_strided_slice %85 {offsets = [0, 0], sizes = [32, 32], strides = [1, 1]} : vector<64x32xf32> to vector<32x32xf32>
    %88 = arith.addf %86, %87 : vector<32x32xf32>
    %89 = arith.negf %88 : vector<32x32xf32>
    %90 = math.exp %89 : vector<32x32xf32>
    %cst_39 = arith.constant 1.000000e+00 : f32
    %91 = vector.broadcast %cst_39 : f32 to vector<32x32xf32>
    %92 = arith.addf %91, %90 : vector<32x32xf32>
    %93 = arith.divf %91, %92 : vector<32x32xf32>
    %94 = vector.extract_strided_slice %84 {offsets = [32, 0], sizes = [32, 32], strides = [1, 1]} : vector<96x32xf32> to vector<32x32xf32>
    %95 = vector.extract_strided_slice %85 {offsets = [32, 0], sizes = [32, 32], strides = [1, 1]} : vector<64x32xf32> to vector<32x32xf32>
    %96 = arith.addf %94, %95 : vector<32x32xf32>
    %97 = arith.negf %96 : vector<32x32xf32>
    %98 = math.exp %97 : vector<32x32xf32>
    %cst_40 = arith.constant 1.000000e+00 : f32
    %99 = vector.broadcast %cst_40 : f32 to vector<32x32xf32>
    %100 = arith.addf %99, %98 : vector<32x32xf32>
    %101 = arith.divf %99, %100 : vector<32x32xf32>
    %102 = vector.extract_strided_slice %84 {offsets = [64, 0], sizes = [32, 32], strides = [1, 1]} : vector<96x32xf32> to vector<32x32xf32>
    %103 = arith.mulf %101, %73 : vector<32x32xf32>
    %cst_41 = arith.constant dense<0.000000e+00> : vector<32x32xf32>
    %104 = tpu.matmul %2, %103, %cst_41 {dimension_numbers = #tpu.dot_dimension_numbers<[1], [0], [0], [1], [0, 0, 1, 1], [], []>} : vector<32x32xf32>, vector<32x32xf32>, vector<32x32xf32> -> vector<32x32xf32>
    %105 = arith.addf %102, %104 : vector<32x32xf32>
    %106 = math.tanh %105 : vector<32x32xf32>
    %cst_42 = arith.constant 1.000000e+00 : f32
    %107 = vector.broadcast %cst_42 : f32 to vector<32x32xf32>
    %108 = arith.subf %107, %93 : vector<32x32xf32>
    %109 = arith.mulf %108, %73 : vector<32x32xf32>
    %110 = arith.mulf %93, %106 : vector<32x32xf32>
    %111 = arith.addf %109, %110 : vector<32x32xf32>
    %c2_43 = arith.constant 2 : index
    %c0_44 = arith.constant 0 : index
    %c0_45 = arith.constant 0 : index
    %112 = vector.load %arg0[%c2_43, %c0_44, %c0_45] : memref<4x64x32xf32, #tpu.memory_space<vmem>>, vector<1x64x32xf32>
    %113 = vector.shape_cast %112 : vector<1x64x32xf32> to vector<64x32xf32>
    %114 = arith.truncf %113 : vector<64x32xf32> to vector<64x32xbf16>
    %115 = arith.truncf %111 : vector<32x32xf32> to vector<32x32xbf16>
    %cst_46 = arith.constant dense<0.000000e+00> : vector<64x32xf32>
    %116 = tpu.matmul %114, %115, %cst_46 {dimension_numbers = #tpu.dot_dimension_numbers<[1], [0], [0], [1], [0, 0, 1, 1], [], []>} : vector<64x32xbf16>, vector<32x32xbf16>, vector<64x32xf32> -> vector<64x32xf32>
    %cst_47 = arith.constant 0.000000e+00 : f32
    %117 = vector.broadcast %cst_47 : f32 to vector<64x32xf32>
    %118 = arith.maximumf %116, %117 : vector<64x32xf32>
    %c3 = arith.constant 3 : index
    %c0_48 = arith.constant 0 : index
    %c0_49 = arith.constant 0 : index
    %119 = vector.load %arg1[%c3, %c0_48, %c0_49] : memref<4x32x32xf32, #tpu.memory_space<vmem>>, vector<1x32x32xf32>
    %120 = vector.shape_cast %119 : vector<1x32x32xf32> to vector<32x32xf32>
    %cst_50 = arith.constant dense<0.000000e+00> : vector<96x32xf32>
    %121 = tpu.matmul %0, %120, %cst_50 {dimension_numbers = #tpu.dot_dimension_numbers<[1], [0], [0], [1], [0, 0, 1, 1], [], []>} : vector<96x32xf32>, vector<32x32xf32>, vector<96x32xf32> -> vector<96x32xf32>
    %122 = arith.addf %121, %3 : vector<96x32xf32>
    %cst_51 = arith.constant dense<0.000000e+00> : vector<64x32xf32>
    %123 = tpu.matmul %1, %111, %cst_51 {dimension_numbers = #tpu.dot_dimension_numbers<[1], [0], [0], [1], [0, 0, 1, 1], [], []>} : vector<64x32xf32>, vector<32x32xf32>, vector<64x32xf32> -> vector<64x32xf32>
    %124 = vector.extract_strided_slice %122 {offsets = [0, 0], sizes = [32, 32], strides = [1, 1]} : vector<96x32xf32> to vector<32x32xf32>
    %125 = vector.extract_strided_slice %123 {offsets = [0, 0], sizes = [32, 32], strides = [1, 1]} : vector<64x32xf32> to vector<32x32xf32>
    %126 = arith.addf %124, %125 : vector<32x32xf32>
    %127 = arith.negf %126 : vector<32x32xf32>
    %128 = math.exp %127 : vector<32x32xf32>
    %cst_52 = arith.constant 1.000000e+00 : f32
    %129 = vector.broadcast %cst_52 : f32 to vector<32x32xf32>
    %130 = arith.addf %129, %128 : vector<32x32xf32>
    %131 = arith.divf %129, %130 : vector<32x32xf32>
    %132 = vector.extract_strided_slice %122 {offsets = [32, 0], sizes = [32, 32], strides = [1, 1]} : vector<96x32xf32> to vector<32x32xf32>
    %133 = vector.extract_strided_slice %123 {offsets = [32, 0], sizes = [32, 32], strides = [1, 1]} : vector<64x32xf32> to vector<32x32xf32>
    %134 = arith.addf %132, %133 : vector<32x32xf32>
    %135 = arith.negf %134 : vector<32x32xf32>
    %136 = math.exp %135 : vector<32x32xf32>
    %cst_53 = arith.constant 1.000000e+00 : f32
    %137 = vector.broadcast %cst_53 : f32 to vector<32x32xf32>
    %138 = arith.addf %137, %136 : vector<32x32xf32>
    %139 = arith.divf %137, %138 : vector<32x32xf32>
    %140 = vector.extract_strided_slice %122 {offsets = [64, 0], sizes = [32, 32], strides = [1, 1]} : vector<96x32xf32> to vector<32x32xf32>
    %141 = arith.mulf %139, %111 : vector<32x32xf32>
    %cst_54 = arith.constant dense<0.000000e+00> : vector<32x32xf32>
    %142 = tpu.matmul %2, %141, %cst_54 {dimension_numbers = #tpu.dot_dimension_numbers<[1], [0], [0], [1], [0, 0, 1, 1], [], []>} : vector<32x32xf32>, vector<32x32xf32>, vector<32x32xf32> -> vector<32x32xf32>
    %143 = arith.addf %140, %142 : vector<32x32xf32>
    %144 = math.tanh %143 : vector<32x32xf32>
    %cst_55 = arith.constant 1.000000e+00 : f32
    %145 = vector.broadcast %cst_55 : f32 to vector<32x32xf32>
    %146 = arith.subf %145, %131 : vector<32x32xf32>
    %147 = arith.mulf %146, %111 : vector<32x32xf32>
    %148 = arith.mulf %131, %144 : vector<32x32xf32>
    %149 = arith.addf %147, %148 : vector<32x32xf32>
    %c3_56 = arith.constant 3 : index
    %c0_57 = arith.constant 0 : index
    %c0_58 = arith.constant 0 : index
    %150 = vector.load %arg0[%c3_56, %c0_57, %c0_58] : memref<4x64x32xf32, #tpu.memory_space<vmem>>, vector<1x64x32xf32>
    %151 = vector.shape_cast %150 : vector<1x64x32xf32> to vector<64x32xf32>
    %152 = arith.truncf %151 : vector<64x32xf32> to vector<64x32xbf16>
    %153 = arith.truncf %149 : vector<32x32xf32> to vector<32x32xbf16>
    %cst_59 = arith.constant dense<0.000000e+00> : vector<64x32xf32>
    %154 = tpu.matmul %152, %153, %cst_59 {dimension_numbers = #tpu.dot_dimension_numbers<[1], [0], [0], [1], [0, 0, 1, 1], [], []>} : vector<64x32xbf16>, vector<32x32xbf16>, vector<64x32xf32> -> vector<64x32xf32>
    %cst_60 = arith.constant 0.000000e+00 : f32
    %155 = vector.broadcast %cst_60 : f32 to vector<64x32xf32>
    %156 = arith.maximumf %154, %155 : vector<64x32xf32>
    %157 = tpu.concatenate %42, %80, %118, %156 in 0 : vector<64x32xf32>, vector<64x32xf32>, vector<64x32xf32>, vector<64x32xf32> -> vector<256x32xf32>
    %158 = arith.truncf %157 : vector<256x32xf32> to vector<256x32xbf16>
    %c0_61 = arith.constant 0 : index
    %c0_62 = arith.constant 0 : index
    %159 = vector.load %arg8[%c0_61, %c0_62] : memref<32x128xf32, #tpu.memory_space<vmem>>, vector<32x128xf32>
    %160 = arith.truncf %159 : vector<32x128xf32> to vector<32x128xbf16>
    %cst_63 = arith.constant dense<0.000000e+00> : vector<256x128xf32>
    %161 = tpu.matmul %158, %160, %cst_63 {dimension_numbers = #tpu.dot_dimension_numbers<[1], [0], [0], [1], [0, 0, 1, 1], [], []>} : vector<256x32xbf16>, vector<32x128xbf16>, vector<256x128xf32> -> vector<256x128xf32>
    %c0_64 = arith.constant 0 : index
    %c0_65 = arith.constant 0 : index
    %162 = vector.load %arg2[%c0_64, %c0_65] : memref<256x20xf32, #tpu.memory_space<vmem>>, vector<256x20xf32>
    %163 = arith.truncf %162 : vector<256x20xf32> to vector<256x20xbf16>
    %c0_66 = arith.constant 0 : index
    %c0_67 = arith.constant 0 : index
    %164 = vector.load %arg9[%c0_66, %c0_67] : memref<20x128xf32, #tpu.memory_space<vmem>>, vector<20x128xf32>
    %165 = arith.truncf %164 : vector<20x128xf32> to vector<20x128xbf16>
    %cst_68 = arith.constant dense<0.000000e+00> : vector<256x128xf32>
    %166 = tpu.matmul %163, %165, %cst_68 {dimension_numbers = #tpu.dot_dimension_numbers<[1], [0], [0], [1], [0, 0, 1, 1], [], []>} : vector<256x20xbf16>, vector<20x128xbf16>, vector<256x128xf32> -> vector<256x128xf32>
    %167 = arith.addf %161, %166 : vector<256x128xf32>
    %c0_69 = arith.constant 0 : index
    %c0_70 = arith.constant 0 : index
    %168 = vector.load %arg11[%c0_69, %c0_70] : memref<1x128xf32, #tpu.memory_space<vmem>>, vector<1x128xf32>
    %169 = vector.broadcast %168 : vector<1x128xf32> to vector<256x128xf32>
    %170 = arith.addf %167, %169 : vector<256x128xf32>
    %c0_71 = arith.constant 0 : index
    %c0_72 = arith.constant 0 : index
    %171 = vector.load %arg19[%c0_71, %c0_72] : memref<256x128xf32, #tpu.memory_space<vmem>>, vector<256x128xf32>
    tpu.vector_store %arg19[%c0_71, %c0_72], %170 {strides = array<i32>} : memref<256x128xf32, #tpu.memory_space<vmem>>, vector<256x128xf32>,
    %c0_73 = arith.constant 0 : index
    %c0_74 = arith.constant 0 : index
    %172 = vector.load %arg10[%c0_73, %c0_74] : memref<32x128xf32, #tpu.memory_space<vmem>>, vector<32x128xf32>
    %173 = arith.truncf %172 : vector<32x128xf32> to vector<32x128xbf16>
    %c0_75 = arith.constant 0 : index
    %c0_76 = arith.constant 0 : index
    %174 = vector.load %arg12[%c0_75, %c0_76] : memref<1x32xf32, #tpu.memory_space<vmem>>, vector<1x32xf32>
    %c0_77 = arith.constant 0 : index
    %c0_78 = arith.constant 0 : index
    %175 = vector.load %arg13[%c0_77, %c0_78] : memref<1x1xf32, #tpu.memory_space<vmem>>, vector<1x1xf32>
    %cst_79 = arith.constant 0.000000e+00 : f32
    %176 = vector.broadcast %cst_79 : f32 to vector<64x32xf32>
    %cst_80 = arith.constant 0.000000e+00 : f32
    %177 = vector.broadcast %cst_80 : f32 to vector<64x32xf32>
    %c0_81 = arith.constant 0 : index
    %c0_82 = arith.constant 0 : index
    %178 = vector.load %arg19[%c0_81, %c0_82] : memref<256x128xf32, #tpu.memory_space<vmem>>, vector<64x128xf32>
    %179 = arith.truncf %176 : vector<64x32xf32> to vector<64x32xbf16>
    %cst_83 = arith.constant dense<0.000000e+00> : vector<64x128xf32>
    %180 = tpu.matmul %179, %173, %cst_83 {dimension_numbers = #tpu.dot_dimension_numbers<[1], [0], [0], [1], [0, 0, 1, 1], [], []>} : vector<64x32xbf16>, vector<32x128xbf16>, vector<64x128xf32> -> vector<64x128xf32>
    %181 = arith.addf %178, %180 : vector<64x128xf32>
    %182 = arith.negf %181 : vector<64x128xf32>
    %183 = math.exp %182 : vector<64x128xf32>
    %cst_84 = arith.constant 1.000000e+00 : f32
    %184 = vector.broadcast %cst_84 : f32 to vector<64x128xf32>
    %185 = arith.addf %184, %183 : vector<64x128xf32>
    %186 = arith.divf %184, %185 : vector<64x128xf32>
    %187 = math.tanh %181 : vector<64x128xf32>
    %188 = vector.extract_strided_slice %186 {offsets = [0, 0], sizes = [64, 32], strides = [1, 1]} : vector<64x128xf32> to vector<64x32xf32>
    %189 = vector.extract_strided_slice %186 {offsets = [0, 32], sizes = [64, 32], strides = [1, 1]} : vector<64x128xf32> to vector<64x32xf32>
    %190 = vector.extract_strided_slice %186 {offsets = [0, 64], sizes = [64, 32], strides = [1, 1]} : vector<64x128xf32> to vector<64x32xf32>
    %191 = vector.extract_strided_slice %187 {offsets = [0, 96], sizes = [64, 32], strides = [1, 1]} : vector<64x128xf32> to vector<64x32xf32>
    %192 = arith.mulf %189, %177 : vector<64x32xf32>
    %193 = arith.mulf %188, %191 : vector<64x32xf32>
    %194 = arith.addf %192, %193 : vector<64x32xf32>
    %195 = math.tanh %194 : vector<64x32xf32>
    %196 = arith.mulf %190, %195 : vector<64x32xf32>
    %197 = vector.broadcast %174 : vector<1x32xf32> to vector<64x32xf32>
    %198 = arith.mulf %196, %197 : vector<64x32xf32>
    %cst_85 = arith.constant dense<0.000000e+00> : vector<64xf32>
    %199 = vector.multi_reduction <add>, %198, %cst_85 [1] : vector<64x32xf32> to vector<64xf32>
    %200 = vector.shape_cast %199 : vector<64xf32> to vector<64x1xf32>
    %201 = vector.broadcast %175 : vector<1x1xf32> to vector<64x1xf32>
    %202 = arith.addf %200, %201 : vector<64x1xf32>
    %cst_86 = arith.constant 1.000000e+00 : f32
    %203 = vector.broadcast %cst_86 : f32 to vector<64x1xf32>
    %c64 = arith.constant 64 : index
    %c0_87 = arith.constant 0 : index
    %204 = vector.load %arg19[%c64, %c0_87] : memref<256x128xf32, #tpu.memory_space<vmem>>, vector<64x128xf32>
    %205 = arith.truncf %196 : vector<64x32xf32> to vector<64x32xbf16>
    %cst_88 = arith.constant dense<0.000000e+00> : vector<64x128xf32>
    %206 = tpu.matmul %205, %173, %cst_88 {dimension_numbers = #tpu.dot_dimension_numbers<[1], [0], [0], [1], [0, 0, 1, 1], [], []>} : vector<64x32xbf16>, vector<32x128xbf16>, vector<64x128xf32> -> vector<64x128xf32>
    %207 = arith.addf %204, %206 : vector<64x128xf32>
    %208 = arith.negf %207 : vector<64x128xf32>
    %209 = math.exp %208 : vector<64x128xf32>
    %cst_89 = arith.constant 1.000000e+00 : f32
    %210 = vector.broadcast %cst_89 : f32 to vector<64x128xf32>
    %211 = arith.addf %210, %209 : vector<64x128xf32>
    %212 = arith.divf %210, %211 : vector<64x128xf32>
    %213 = math.tanh %207 : vector<64x128xf32>
    %214 = vector.extract_strided_slice %212 {offsets = [0, 0], sizes = [64, 32], strides = [1, 1]} : vector<64x128xf32> to vector<64x32xf32>
    %215 = vector.extract_strided_slice %212 {offsets = [0, 32], sizes = [64, 32], strides = [1, 1]} : vector<64x128xf32> to vector<64x32xf32>
    %216 = vector.extract_strided_slice %212 {offsets = [0, 64], sizes = [64, 32], strides = [1, 1]} : vector<64x128xf32> to vector<64x32xf32>
    %217 = vector.extract_strided_slice %213 {offsets = [0, 96], sizes = [64, 32], strides = [1, 1]} : vector<64x128xf32> to vector<64x32xf32>
    %218 = arith.mulf %215, %194 : vector<64x32xf32>
    %219 = arith.mulf %214, %217 : vector<64x32xf32>
    %220 = arith.addf %218, %219 : vector<64x32xf32>
    %221 = math.tanh %220 : vector<64x32xf32>
    %222 = arith.mulf %216, %221 : vector<64x32xf32>
    %223 = vector.broadcast %174 : vector<1x32xf32> to vector<64x32xf32>
    %224 = arith.mulf %222, %223 : vector<64x32xf32>
    %cst_90 = arith.constant dense<0.000000e+00> : vector<64xf32>
    %225 = vector.multi_reduction <add>, %224, %cst_90 [1] : vector<64x32xf32> to vector<64xf32>
    %226 = vector.shape_cast %225 : vector<64xf32> to vector<64x1xf32>
    %227 = vector.broadcast %175 : vector<1x1xf32> to vector<64x1xf32>
    %228 = arith.addf %226, %227 : vector<64x1xf32>
    %229 = arith.maximumf %202, %228 : vector<64x1xf32>
    %230 = arith.subf %202, %229 : vector<64x1xf32>
    %231 = math.exp %230 : vector<64x1xf32>
    %232 = arith.subf %228, %229 : vector<64x1xf32>
    %233 = math.exp %232 : vector<64x1xf32>
    %234 = arith.mulf %203, %231 : vector<64x1xf32>
    %235 = arith.addf %234, %233 : vector<64x1xf32>
    %236 = vector.broadcast %231 : vector<64x1xf32> to vector<64x32xf32>
    %237 = arith.mulf %196, %236 : vector<64x32xf32>
    %238 = vector.broadcast %233 : vector<64x1xf32> to vector<64x32xf32>
    %239 = arith.mulf %238, %222 : vector<64x32xf32>
    %240 = arith.addf %237, %239 : vector<64x32xf32>
    %c128 = arith.constant 128 : index
    %c0_91 = arith.constant 0 : index
    %241 = vector.load %arg19[%c128, %c0_91] : memref<256x128xf32, #tpu.memory_space<vmem>>, vector<64x128xf32>
    %242 = arith.truncf %222 : vector<64x32xf32> to vector<64x32xbf16>
    %cst_92 = arith.constant dense<0.000000e+00> : vector<64x128xf32>
    %243 = tpu.matmul %242, %173, %cst_92 {dimension_numbers = #tpu.dot_dimension_numbers<[1], [0], [0], [1], [0, 0, 1, 1], [], []>} : vector<64x32xbf16>, vector<32x128xbf16>, vector<64x128xf32> -> vector<64x128xf32>
    %244 = arith.addf %241, %243 : vector<64x128xf32>
    %245 = arith.negf %244 : vector<64x128xf32>
    %246 = math.exp %245 : vector<64x128xf32>
    %cst_93 = arith.constant 1.000000e+00 : f32
    %247 = vector.broadcast %cst_93 : f32 to vector<64x128xf32>
    %248 = arith.addf %247, %246 : vector<64x128xf32>
    %249 = arith.divf %247, %248 : vector<64x128xf32>
    %250 = math.tanh %244 : vector<64x128xf32>
    %251 = vector.extract_strided_slice %249 {offsets = [0, 0], sizes = [64, 32], strides = [1, 1]} : vector<64x128xf32> to vector<64x32xf32>
    %252 = vector.extract_strided_slice %249 {offsets = [0, 32], sizes = [64, 32], strides = [1, 1]} : vector<64x128xf32> to vector<64x32xf32>
    %253 = vector.extract_strided_slice %249 {offsets = [0, 64], sizes = [64, 32], strides = [1, 1]} : vector<64x128xf32> to vector<64x32xf32>
    %254 = vector.extract_strided_slice %250 {offsets = [0, 96], sizes = [64, 32], strides = [1, 1]} : vector<64x128xf32> to vector<64x32xf32>
    %255 = arith.mulf %252, %220 : vector<64x32xf32>
    %256 = arith.mulf %251, %254 : vector<64x32xf32>
    %257 = arith.addf %255, %256 : vector<64x32xf32>
    %258 = math.tanh %257 : vector<64x32xf32>
    %259 = arith.mulf %253, %258 : vector<64x32xf32>
    %260 = vector.broadcast %174 : vector<1x32xf32> to vector<64x32xf32>
    %261 = arith.mulf %259, %260 : vector<64x32xf32>
    %cst_94 = arith.constant dense<0.000000e+00> : vector<64xf32>
    %262 = vector.multi_reduction <add>, %261, %cst_94 [1] : vector<64x32xf32> to vector<64xf32>
    %263 = vector.shape_cast %262 : vector<64xf32> to vector<64x1xf32>
    %264 = vector.broadcast %175 : vector<1x1xf32> to vector<64x1xf32>
    %265 = arith.addf %263, %264 : vector<64x1xf32>
    %266 = arith.maximumf %229, %265 : vector<64x1xf32>
    %267 = arith.subf %229, %266 : vector<64x1xf32>
    %268 = math.exp %267 : vector<64x1xf32>
    %269 = arith.subf %265, %266 : vector<64x1xf32>
    %270 = math.exp %269 : vector<64x1xf32>
    %271 = arith.mulf %235, %268 : vector<64x1xf32>
    %272 = arith.addf %271, %270 : vector<64x1xf32>
    %273 = vector.broadcast %268 : vector<64x1xf32> to vector<64x32xf32>
    %274 = arith.mulf %240, %273 : vector<64x32xf32>
    %275 = vector.broadcast %270 : vector<64x1xf32> to vector<64x32xf32>
    %276 = arith.mulf %275, %259 : vector<64x32xf32>
    %277 = arith.addf %274, %276 : vector<64x32xf32>
    %c192 = arith.constant 192 : index
    %c0_95 = arith.constant 0 : index
    %278 = vector.load %arg19[%c192, %c0_95] : memref<256x128xf32, #tpu.memory_space<vmem>>, vector<64x128xf32>
    %279 = arith.truncf %259 : vector<64x32xf32> to vector<64x32xbf16>
    %cst_96 = arith.constant dense<0.000000e+00> : vector<64x128xf32>
    %280 = tpu.matmul %279, %173, %cst_96 {dimension_numbers = #tpu.dot_dimension_numbers<[1], [0], [0], [1], [0, 0, 1, 1], [], []>} : vector<64x32xbf16>, vector<32x128xbf16>, vector<64x128xf32> -> vector<64x128xf32>
    %281 = arith.addf %278, %280 : vector<64x128xf32>
    %282 = arith.negf %281 : vector<64x128xf32>
    %283 = math.exp %282 : vector<64x128xf32>
    %cst_97 = arith.constant 1.000000e+00 : f32
    %284 = vector.broadcast %cst_97 : f32 to vector<64x128xf32>
    %285 = arith.addf %284, %283 : vector<64x128xf32>
    %286 = arith.divf %284, %285 : vector<64x128xf32>
    %287 = math.tanh %281 : vector<64x128xf32>
    %288 = vector.extract_strided_slice %286 {offsets = [0, 0], sizes = [64, 32], strides = [1, 1]} : vector<64x128xf32> to vector<64x32xf32>
    %289 = vector.extract_strided_slice %286 {offsets = [0, 32], sizes = [64, 32], strides = [1, 1]} : vector<64x128xf32> to vector<64x32xf32>
    %290 = vector.extract_strided_slice %286 {offsets = [0, 64], sizes = [64, 32], strides = [1, 1]} : vector<64x128xf32> to vector<64x32xf32>
    %291 = vector.extract_strided_slice %287 {offsets = [0, 96], sizes = [64, 32], strides = [1, 1]} : vector<64x128xf32> to vector<64x32xf32>
    %292 = arith.mulf %289, %257 : vector<64x32xf32>
    %293 = arith.mulf %288, %291 : vector<64x32xf32>
    %294 = arith.addf %292, %293 : vector<64x32xf32>
    %295 = math.tanh %294 : vector<64x32xf32>
    %296 = arith.mulf %290, %295 : vector<64x32xf32>
    %297 = vector.broadcast %174 : vector<1x32xf32> to vector<64x32xf32>
    %298 = arith.mulf %296, %297 : vector<64x32xf32>
    %cst_98 = arith.constant dense<0.000000e+00> : vector<64xf32>
    %299 = vector.multi_reduction <add>, %298, %cst_98 [1] : vector<64x32xf32> to vector<64xf32>
    %300 = vector.shape_cast %299 : vector<64xf32> to vector<64x1xf32>
    %301 = vector.broadcast %175 : vector<1x1xf32> to vector<64x1xf32>
    %302 = arith.addf %300, %301 : vector<64x1xf32>
    %303 = arith.maximumf %266, %302 : vector<64x1xf32>
    %304 = arith.subf %266, %303 : vector<64x1xf32>
    %305 = math.exp %304 : vector<64x1xf32>
    %306 = arith.subf %302, %303 : vector<64x1xf32>
    %307 = math.exp %306 : vector<64x1xf32>
    %308 = arith.mulf %272, %305 : vector<64x1xf32>
    %309 = arith.addf %308, %307 : vector<64x1xf32>
    %310 = vector.broadcast %305 : vector<64x1xf32> to vector<64x32xf32>
    %311 = arith.mulf %277, %310 : vector<64x32xf32>
    %312 = vector.broadcast %307 : vector<64x1xf32> to vector<64x32xf32>
    %313 = arith.mulf %312, %296 : vector<64x32xf32>
    %314 = arith.addf %311, %313 : vector<64x32xf32>
    %315 = tpu.reciprocal %309 {approx = true} : vector<64x1xf32> -> vector<64x1xf32>
    %316 = vector.broadcast %315 : vector<64x1xf32> to vector<64x32xf32>
    %317 = arith.mulf %314, %316 : vector<64x32xf32>
    %318 = arith.truncf %317 : vector<64x32xf32> to vector<64x32xbf16>
    %c0_99 = arith.constant 0 : index
    %c0_100 = arith.constant 0 : index
    %319 = vector.load %arg14[%c0_99, %c0_100] : memref<32x128xf32, #tpu.memory_space<vmem>>, vector<32x128xf32>
    %320 = arith.truncf %319 : vector<32x128xf32> to vector<32x128xbf16>
    %cst_101 = arith.constant dense<0.000000e+00> : vector<64x128xf32>
    %321 = tpu.matmul %318, %320, %cst_101 {dimension_numbers = #tpu.dot_dimension_numbers<[1], [0], [0], [1], [0, 0, 1, 1], [], []>} : vector<64x32xbf16>, vector<32x128xbf16>, vector<64x128xf32> -> vector<64x128xf32>
    %c0_102 = arith.constant 0 : index
    %c0_103 = arith.constant 0 : index
    %322 = vector.load %arg15[%c0_102, %c0_103] : memref<1x128xf32, #tpu.memory_space<vmem>>, vector<1x128xf32>
    %323 = vector.broadcast %322 : vector<1x128xf32> to vector<64x128xf32>
    %324 = arith.addf %321, %323 : vector<64x128xf32>
    %cst_104 = arith.constant 0.000000e+00 : f32
    %325 = vector.broadcast %cst_104 : f32 to vector<64x128xf32>
    %326 = arith.maximumf %324, %325 : vector<64x128xf32>
    %327 = arith.truncf %326 : vector<64x128xf32> to vector<64x128xbf16>
    %c0_105 = arith.constant 0 : index
    %c0_106 = arith.constant 0 : index
    %328 = vector.load %arg16[%c0_105, %c0_106] : memref<128x8xf32, #tpu.memory_space<vmem>>, vector<128x8xf32>
    %329 = arith.truncf %328 : vector<128x8xf32> to vector<128x8xbf16>
    %cst_107 = arith.constant dense<0.000000e+00> : vector<64x8xf32>
    %330 = tpu.matmul %327, %329, %cst_107 {dimension_numbers = #tpu.dot_dimension_numbers<[1], [0], [0], [1], [0, 0, 1, 1], [], []>} : vector<64x128xbf16>, vector<128x8xbf16>, vector<64x8xf32> -> vector<64x8xf32>
    %c0_108 = arith.constant 0 : index
    %c0_109 = arith.constant 0 : index
    %331 = vector.load %arg17[%c0_108, %c0_109] : memref<1x8xf32, #tpu.memory_space<vmem>>, vector<1x8xf32>
    %332 = vector.broadcast %331 : vector<1x8xf32> to vector<64x8xf32>
    %333 = arith.addf %330, %332 : vector<64x8xf32>
    %c0_110 = arith.constant 0 : index
    %c0_111 = arith.constant 0 : index
    %334 = vector.load %arg18[%c0_110, %c0_111] : memref<64x8xf32, #tpu.memory_space<vmem>>, vector<64x8xf32>
    tpu.vector_store %arg18[%c0_110, %c0_111], %333 {strides = array<i32>} : memref<64x8xf32, #tpu.memory_space<vmem>>, vector<64x8xf32>,
    return
  }
}

</mosaic_0001>

<bundles_post_ra>
// kernel: egcn_lstm_forward.2
= control target key start
LH: loop header
LB: loop body
LE: loop exit
PB: predicated region body
PF: predicated region fallthrough
CT: control target
= control target key end

     0   :  { %vm63_vm0 = vcmask 523264   ;;  %vm472_vm1 = vcmask 130048   ;;  %vm2074_vm2 = vcmask 7168   ;;  %vm2162_vm3 = vcmask 261120   ;;  %s5941_s1 = inlined_call_operand.vmem [shape: f32[4,64,16], index: 1, kind: input, shape index: {}]   ;;  %s5942_s0 = inlined_call_operand.vmem [shape: f32[4,64,64], index: 0, kind: input, shape index: {}]   ;;  %s5943_s2 = inlined_call_operand.vmem [shape: f32[4,16,32], index: 2, kind: input, shape index: {}]   ;;  %s5944_s9 = inlined_call_operand.vmem [shape: f32[16,32], index: 9, kind: input, shape index: {}]   ;;  %s5945_s5 = inlined_call_operand.vmem [shape: f32[48,16], index: 5, kind: input, shape index: {}]   ;;  %s5946_s6 = inlined_call_operand.vmem [shape: f32[32,16], index: 6, kind: input, shape index: {}]   ;;  %s5947_s7 = inlined_call_operand.vmem [shape: f32[16,16], index: 7, kind: input, shape index: {}]   ;;  %s5948_s8 = inlined_call_operand.vmem [shape: f32[48,32], index: 8, kind: input, shape index: {}]   ;;  %s5949_s4 = inlined_call_operand.vmem [shape: f32[32,1], index: 4, kind: input, shape index: {}]   ;;  %s5950_s3 = inlined_call_operand.vmem [shape: f32[4,64,1], index: 3, kind: input, shape index: {}]   ;;  %s5951_s12 = inlined_call_operand.vmem [shape: f32[4,64,1], index: 12, kind: output, shape index: {2}]   ;;  %s5952_s11 = inlined_call_operand.vmem [shape: f32[4,64,32], index: 11, kind: output, shape index: {1}]   ;;  %s5953_s10 = inlined_call_operand.vmem [shape: f32[4,64,32], index: 10, kind: output, shape index: {0}]  }
   0x1   :  { %v51_v0 = vld [vmem:[%s5941_s1] sm:$0xff]  ;;  %v52_v1 = vld [vmem:[%s5941_s1 + $0x8] sm:$0xff]  ;;  %v53_v2 = vld [vmem:[%s5941_s1 + $0x10] sm:$0xff] }
   0x2   :  { %v59_v3 = vpack.c.bf16 %v52_v1, %v51_v0  ;;  %v54_v4 = vld [vmem:[%s5941_s1 + $0x18] sm:$0xff]  ;;  %v55_v6 = vld [vmem:[%s5941_s1 + $0x20] sm:$0xff]  ;;  %v56_v7 = vld [vmem:[%s5941_s1 + $0x28] sm:$0xff] }
   0x3   :  { %v60_v5 = vpack.c.bf16 %v54_v4, %v53_v2  ;;  %v39_v8 = vld [vmem:[%s5942_s0] sm:$0xff]  ;;  %v40_v9 = vld [vmem:[%s5942_s0 + $0x8] sm:$0xff]  ;;  %v61_v11 = vpack.c.bf16 %v56_v7, %v55_v6  ;;  %v57_v12 = vld [vmem:[%s5941_s1 + $0x30] sm:$0xff] }
   0x4   :  { %3674 = vmatprep.subr.bf16.mxu0 %v59_v3  ;;  %v4347_v10 = vpack.c.bf16 %v40_v9, %v39_v8  ;;  %v58_v13 = vld [vmem:[%s5941_s1 + $0x38] sm:$0xff]  ;;  %v3224_v15 = vld [vmem:[%s5941_s1 + $0x80] sm:$0xff]  ;;  %v3225_v16 = vld [vmem:[%s5941_s1 + $0x88] sm:$0xff] }
   0x5   :  { %3675 = vmatpush3.bf16.msra.mxu0 %v59_v3  ;;  %v62_v14 = vpack.c.bf16 %v58_v13, %v57_v12  ;;  %v41_v17 = vld [vmem:[%s5942_s0 + $0x10] sm:$0xff]  ;;  %v42_v18 = vld [vmem:[%s5942_s0 + $0x18] sm:$0xff]  ;;  %v266_v19 = vpack.c.bf16 %v3225_v16, %v3224_v15  ;;  %v43_v20 = vld [vmem:[%s5942_s0 + $0x20] sm:$0xff] }
   0x6   :  { %5981 = vst [vmem:[#allocation2_spill] sm:$0xff] %v4347_v10  ;;  %3676 = vmatprep.subr.bf16.mxu0 %v60_v5  ;;  %3682 = vmatprep.mubr.msk.bf16.mxu0 %vm63_vm0, %v4347_v10  ;;  %v44_v21 = vld [vmem:[%s5942_s0 + $0x28] sm:$0xff]  ;;  %v3226_v22 = vld [vmem:[%s5941_s1 + $0x90] sm:$0xff]  ;;  %v3227_v23 = vld [vmem:[%s5941_s1 + $0x98] sm:$0xff]  ;;  %v4381_v24 = vpack.c.bf16 %v42_v18, %v41_v17 }
   0x7   :  { %v3204_v25 = vld [vmem:[%s5941_s1 + $0x40] sm:$0xff]  ;;  %v3205_v26 = vld [vmem:[%s5941_s1 + $0x48] sm:$0xff]  ;;  %v4389_v27 = vpack.c.bf16 %v44_v21, %v43_v20  ;;  %v3206_v29 = vld [vmem:[%s5941_s1 + $0x50] sm:$0xff]  ;;  %v267_v31 = vpack.c.bf16 %v3227_v23, %v3226_v22 }
   0x8   :  { %5982 = vst [vmem:[#allocation3_spill] sm:$0xff] %v4381_v24  ;;  %v163_v28 = vpack.c.bf16 %v3205_v26, %v3204_v25  ;;  %v3207_v30 = vld [vmem:[%s5941_s1 + $0x58] sm:$0xff]  ;;  %v3228_v32 = vld [vmem:[%s5941_s1 + $0xa0] sm:$0xff]  ;;  %v3209_v35 = vld [vmem:[%s5941_s1 + $0x68] sm:$0xff] }
   0x9   :  { %3677 = vmatpush3.bf16.msra.mxu0 %v60_v5  ;;  %5983 = vst [vmem:[#allocation4_spill] sm:$0xff] %v4389_v27  ;;  %v164_v33 = vpack.c.bf16 %v3207_v30, %v3206_v29  ;;  %v3208_v34 = vld [vmem:[%s5941_s1 + $0x60] sm:$0xff]  ;;  %v3229_v36 = vld [vmem:[%s5941_s1 + $0xa8] sm:$0xff]  ;;  %v45_v40 = vld [vmem:[%s5942_s0 + $0x30] sm:$0xff] }
   0xa   :  { %3678 = vmatprep.subr.bf16.mxu0 %v61_v11  ;;  %3690 = vmatprep.subr.bf16.mxu1 %v163_v28  ;;  %v3196_v37 = vld [vmem:[%s5942_s0 + $0x40] sm:$0xff]  ;;  %v3197_v38 = vld [vmem:[%s5942_s0 + $0x48] sm:$0xff]  ;;  %v46_v41 = vld [vmem:[%s5942_s0 + $0x38] sm:$0xff]  ;;  %v165_v42 = vpack.c.bf16 %v3209_v35, %v3208_v34  ;;  %v268_v43 = vpack.c.bf16 %v3229_v36, %v3228_v32 }
   0xb   :  { %3691 = vmatpush3.bf16.msra.mxu1 %v163_v28  ;;  %v150_v39 = vpack.c.bf16 %v3197_v38, %v3196_v37  ;;  %v3230_v44 = vld [vmem:[%s5941_s1 + $0xb0] sm:$0xff]  ;;  %v3216_v45 = vld [vmem:[%s5942_s0 + $0x80] sm:$0xff]  ;;  %v3217_v46 = vld [vmem:[%s5942_s0 + $0x88] sm:$0xff]  ;;  %v4444_v50 = vpack.c.bf16 %v46_v41, %v45_v40 }
   0xc   :  { %3692 = vmatprep.subr.bf16.mxu1 %v164_v33  ;;  %v3231_v47 = vld [vmem:[%s5941_s1 + $0xb8] sm:$0xff]  ;;  %v3210_v48 = vld [vmem:[%s5941_s1 + $0x70] sm:$0xff]  ;;  %v253_v51 = vpack.c.bf16 %v3217_v46, %v3216_v45  ;;  %v3244_v54 = vld [vmem:[%s5941_s1 + $0xc0] sm:$0xff] }
   0xd   :  { %3679 = vmatpush3.bf16.msra.mxu0 %v61_v11  ;;  %v3211_v49 = vld [vmem:[%s5941_s1 + $0x78] sm:$0xff]  ;;  %3698 = vmatprep.mubr.msk.bf16.mxu1 %vm63_vm0, %v150_v39  ;;  %5984 = vst [vmem:[#allocation5_spill] sm:$0xff] %v4444_v50  ;;  %v269_v52 = vpack.c.bf16 %v3231_v47, %v3230_v44  ;;  %v3245_v55 = vld [vmem:[%s5941_s1 + $0xc8] sm:$0xff]  ;;  %v470_v56 = vld [vmem:[%s5943_s2] sm:$0xff] }
   0xe   :  { %3680 = vmatprep.subr.bf16.mxu0 %v62_v14  ;;  %v166_v53 = vpack.c.bf16 %v3211_v49, %v3210_v48  ;;  %v471_v57 = vld [vmem:[%s5943_s2 + $0x8] sm:$0xff]  ;;  %v3198_v58 = vld [vmem:[%s5942_s0 + $0x50] sm:$0xff]  ;;  %v3199_v59 = vld [vmem:[%s5942_s0 + $0x58] sm:$0xff]  ;;  %v369_v62 = vpack.c.bf16 %v3245_v55, %v3244_v54 }
   0xf   :  { %3693 = vmatpush3.bf16.msra.mxu1 %v164_v33  ;;  %v3218_v60 = vld [vmem:[%s5942_s0 + $0x90] sm:$0xff]  ;;  %v3219_v61 = vld [vmem:[%s5942_s0 + $0x98] sm:$0xff]  ;;  %v3220_v63 = vld [vmem:[%s5942_s0 + $0xa0] sm:$0xff]  ;;  %v4010_v1 = vpack.c.bf16 %v471_v57, %v470_v56  ;;  %v151_v4 = vpack.c.bf16 %v3199_v59, %v3198_v58 }
  0x10   :  { %3694 = vmatprep.subr.bf16.mxu1 %v165_v42  ;;  %v3221_v0 = vld [vmem:[%s5942_s0 + $0xa8] sm:$0xff]  ;;  %v4482_v2 = vld [vmem:[%s5944_s9] sm:$0xff]  ;;  %v3246_v5 = vld [vmem:[%s5941_s1 + $0xd0] sm:$0xff]  ;;  %v254_v7 = vpack.c.bf16 %v3219_v61, %v3218_v60 }
  0x11   :  { %3681 = vmatpush3.bf16.msra.mxu0 %v62_v14  ;;  %v4487_v3 = vld [vmem:[%s5944_s9 + $0x8] sm:$0xff]  ;;  %v3247_v6 = vld [vmem:[%s5941_s1 + $0xd8] sm:$0xff]  ;;  %v3200_v8 = vld [vmem:[%s5942_s0 + $0x60] sm:$0xff]  ;;  %v255_v11 = vpack.c.bf16 %v3221_v0, %v3220_v63 }
  0x12   :  { %3706 = vmatprep.subr.bf16.mxu0 %v266_v19  ;;  %v3201_v9 = vld [vmem:[%s5942_s0 + $0x68] sm:$0xff]  ;;  %v4014_v12 = vpack.c.bf16 %v4487_v3, %v4482_v2  ;;  %v370_v13 = vpack.c.bf16 %v3247_v6, %v3246_v5  ;;  %v3248_v14 = vld [vmem:[%s5941_s1 + $0xe0] sm:$0xff]  ;;  %v3202_v17 = vld [vmem:[%s5942_s0 + $0x70] sm:$0xff] }
  0x13   :  { %3695 = vmatpush3.bf16.msra.mxu1 %v165_v42  ;;  %v3249_v15 = vld [vmem:[%s5941_s1 + $0xe8] sm:$0xff]  ;;  %v152_v16 = vpack.c.bf16 %v3201_v9, %v3200_v8  ;;  %v3203_v18 = vld [vmem:[%s5942_s0 + $0x78] sm:$0xff]  ;;  %v3250_v22 = vld [vmem:[%s5941_s1 + $0xf0] sm:$0xff] }
  0x14   :  { %3683 = vmatmul.mubr.msk.bf16.vlgmr.msra.gmra.mrb[0].mxu0 %vm63_vm0, %v4381_v24  ;;  %3696 = vmatprep.subr.bf16.mxu1 %v166_v53  ;;  %v3223_v20 = vld [vmem:[%s5942_s0 + $0xb8] sm:$0xff]  ;;  %v371_v21 = vpack.c.bf16 %v3249_v15, %v3248_v14  ;;  %v153_v25 = vpack.c.bf16 %v3203_v18, %v3202_v17  ;;  %v3236_v26 = vld [vmem:[%s5942_s0 + $0xc0] sm:$0xff]  ;;  %v3237_v28 = vld [vmem:[%s5942_s0 + $0xc8] sm:$0xff] }
  0x15   :  { %3707 = vmatpush3.bf16.msra.mxu0 %v266_v19  ;;  %3686 = vmatprep.mubr.msk.bf16.mxu0 %vm63_vm0, %v4389_v27  ;;  %v3222_v19 = vld [vmem:[%s5942_s0 + $0xb0] sm:$0xff]  ;;  %v3251_v23 = vld [vmem:[%s5941_s1 + $0xf8] sm:$0xff]  ;;  %v356_v32 = vpack.c.bf16 %v3237_v28, %v3236_v26  ;;  %v4556_v36 = vld [vmem:[%s5945_s5 + $0x8] sm:$0xff] }
  0x16   :  { %3708 = vmatprep.subr.bf16.mxu0 %v267_v31  ;;  %v256_v29 = vpack.c.bf16 %v3223_v20, %v3222_v19  ;;  %v372_v30 = vpack.c.bf16 %v3251_v23, %v3250_v22  ;;  %v3238_v33 = vld [vmem:[%s5942_s0 + $0xd0] sm:$0xff]  ;;  %v3239_v34 = vld [vmem:[%s5942_s0 + $0xd8] sm:$0xff]  ;;  %v4576_v39 = vld [vmem:[%s5945_s5 + $0x20] sm:$0xff] }
  0x17   :  { %3697 = vmatpush3.bf16.msra.mxu1 %v166_v53  ;;  %v357_v35 = vpack.c.bf16 %v3239_v34, %v3238_v33  ;;  %v4561_v37 = vld [vmem:[%s5945_s5 + $0x10] sm:$0xff]  ;;  %v4571_v38 = vld [vmem:[%s5945_s5 + $0x18] sm:$0xff]  ;;  %v4585_v40 = vld [vmem:[%s5945_s5 + $0x28] sm:$0xff] }
  0x18   :  { %3722 = vmatprep.subr.bf16.mxu1 %v369_v62  ;;  %v4590_v41 = vld [vmem:[%s5946_s6] sm:$0xff]  ;;  %v4599_v42 = vld [vmem:[%s5946_s6 + $0x8] sm:$0xff]  ;;  %v4613_v44 = vld [vmem:[%s5946_s6 + $0x18] sm:$0xff] }
  0x19   :  { %3709 = vmatpush3.bf16.msra.mxu0 %v267_v31  ;;  %v4540_v31 = vld [vmem:[%s5945_s5] sm:$0xff]  ;;  %v3241_v46 = vld [vmem:[%s5942_s0 + $0xe8] sm:$0xff]  ;;  %v3242_v48 = vld [vmem:[%s5942_s0 + $0xf0] sm:$0xff] }
  0x1a   :  { %3710 = vmatprep.subr.bf16.mxu0 %v268_v43  ;;  %3699 = vmatmul.mubr.msk.bf16.vlgmr.msra.gmra.mrb[0].mxu1 %vm63_vm0, %v151_v4  ;;  %v3240_v45 = vld [vmem:[%s5942_s0 + $0xe0] sm:$0xff]  ;;  %v3243_v49 = vld [vmem:[%s5942_s0 + $0xf8] sm:$0xff]  ;;  %v4689_v19 = vld [vmem:[%s5948_s8 + $0x10] sm:$0xff] }
  0x1b   :  { %3723 = vmatpush3.bf16.msra.mxu1 %v369_v62  ;;  %3702 = vmatprep.mubr.msk.bf16.mxu1 %vm63_vm0, %v152_v16  ;;  %v358_v47 = vpack.c.bf16 %v3241_v46, %v3240_v45  ;;  %v4684_v18 = vld [vmem:[%s5948_s8 + $0x18] sm:$0xff]  ;;  %v4760_v8 = vld [vmem:[%s5948_s8 + $0x28] sm:$0xff] }
  0x1c   :  { %3687 = vmatmul.mubr.msk.bf16.gmra.mrb[4].mxu0 %vm63_vm0, %v4444_v50  ;;  %3724 = vmatprep.subr.bf16.mxu1 %v370_v13 }
  0x1d   :  { %3711 = vmatpush3.bf16.msra.mxu0 %v268_v43  ;;  %3714 = vmatprep.mubr.msk.bf16.mxu0 %vm63_vm0, %v253_v51  ;;  %v4604_v43 = vld [vmem:[%s5946_s6 + $0x10] sm:$0xff]  ;;  %v359_v51 = vpack.c.bf16 %v3243_v49, %v3242_v48 }
  0x1e   :  { %3712 = vmatprep.subr.bf16.mxu0 %v269_v52 }
  0x1f   :  { %3725 = vmatpush3.bf16.msra.mxu1 %v370_v13  ;;  %v4753_v13 = vld [vmem:[%s5948_s8] sm:$0xff] }
  0x20   :  { %3726 = vmatprep.subr.bf16.mxu1 %v371_v21 }
  0x21   :  { %3713 = vmatpush3.bf16.msra.mxu0 %v269_v52  ;;  %v4634_v52 = vld [vmem:[%s5947_s7] sm:$0xff] }
  0x22   :  { %4011 = vmatprep.subr.bf16.mxu0 %v4010_v1  ;;  %3703 = vmatmul.mubr.msk.bf16.gmra.mrb[4].mxu1 %vm63_vm0, %v153_v25 }
  0x23   :  { %3727 = vmatpush3.bf16.msra.mxu1 %v371_v21  ;;  %3730 = vmatprep.mubr.msk.bf16.mxu1 %vm63_vm0, %v356_v32 }
  0x24   :  { %3715 = vmatmul.mubr.msk.bf16.vlgmr.msra.gmra.mrb[8].mxu0 %vm63_vm0, %v254_v7  ;;  %3728 = vmatprep.subr.bf16.mxu1 %v372_v30 }
  0x25   :  { %3718 = vmatprep.mubr.msk.bf16.mxu0 %vm63_vm0, %v255_v11  ;;  %4013 = vmatpush3.bf16.msra.mxu0 %v4010_v1 }
  0x26   :  { %4015 = vmatprep.subr.bf16.mxu0 %v4014_v12 }
  0x27   :  { %3729 = vmatpush3.bf16.msra.mxu1 %v372_v30 }
  0x2a   :  { %3731 = vmatmul.mubr.msk.bf16.vlgmr.msra.gmra.mrb[8].mxu1 %vm63_vm0, %v357_v35 }
  0x2b   :  { %3734 = vmatprep.mubr.msk.bf16.mxu1 %vm63_vm0, %v358_v47  ;;  %v4698_v47 = vld [vmem:[%s5947_s7 + $0x8] sm:$0xff] }
  0x2c   :  { %3719 = vmatmul.mubr.msk.bf16.gmra.mrb[12].mxu0 %vm63_vm0, %v256_v29 }
  0x2d   :  { %3742 = vmatprep.mubr.msk.f32.mxu0 %vm472_vm1, %v4540_v31 }
  0x32   :  { %3735 = vmatmul.mubr.msk.bf16.gmra.mrb[12].mxu1 %vm63_vm0, %v359_v51 }
  0x34   :  { %3743 = vmatmul.mubr.msk.f32.vlgmr.msra.gmra.mrb[16].mxu0 %vm472_vm1, %v4556_v36 }
  0x35   :  { %3745 = vmatprep.mubr.msk.f32.mxu0 %vm472_vm1, %v4561_v37  ;;  %4017 = vmatpush3.bf16.msra.mxu0 %v4014_v12 }
  0x38   :  { %3746 = vmatmul.mubr.msk.f32.gmra.mrb[18].mxu0 %vm472_vm1, %v4571_v38 }
  0x39   :  { %3748 = vmatprep.mubr.msk.f32.mxu0 %vm472_vm1, %v4576_v39 }
  0x3c   :  { %3749 = vmatmul.mubr.msk.f32.gmra.mrb[20].mxu0 %vm472_vm1, %v4585_v40 }
  0x3d   :  { %3755 = vmatprep.mubr.msk.f32.mxu0 %vm472_vm1, %v4590_v41 }
  0x40   :  { %3756 = vmatmul.mubr.msk.f32.vlgmr.msra.gmra.mrb[16].mxu0 %vm472_vm1, %v4599_v42 }
  0x41   :  { %3758 = vmatprep.mubr.msk.f32.mxu0 %vm472_vm1, %v4604_v43 }
  0x44   :  { %3759 = vmatmul.mubr.msk.f32.gmra.mrb[18].mxu0 %vm472_vm1, %v4613_v44 }
  0x45   :  { %3765 = vmatprep.mubr.msk.f32.mxu0 %vm472_vm1, %v4634_v52 }
  0xe7   :  { %v4638_v53 = vpop.f32.mrb[0].mxu0 }
  0xe8   :  { %v110_v54 = vpop.f32.mrb[1].mxu0 }
  0xe9   :  { %v4640_v55 = vpop.f32.mrb[2].mxu0 }
  0xea   :  { %v113_v57 = vpop.f32.mrb[3].mxu0 }
  0xeb   :  { %v806_v58 = vpack.c.bf16 %v113_v57, %v110_v54 }
  0xed   :  { %3770 = vmatprep.mubr.msk.bf16.mxu1 %vm472_vm1, %v806_v58  ;;  %v4702_v48 = vpop.f32.mrb[0].mxu1 }
  0xee   :  { %v213_v49 = vpop.f32.mrb[1].mxu1 }
  0xef   :  { %v4645_v59 = vpop.f32.mrb[4].mxu0  ;;  %v4704_v51 = vpop.f32.mrb[2].mxu1 }
  0xf0   :  { %v4647_v60 = vpop.f32.mrb[5].mxu0  ;;  %v216_v57 = vpop.f32.mrb[3].mxu1 }
  0xf1   :  { %v4649_v61 = vpop.f32.mrb[6].mxu0  ;;  %v1196_v58 = vpack.c.bf16 %v216_v57, %v213_v49 }
  0xf2   :  { %v4653_v63 = vpop.f32.mrb[7].mxu0 }
  0xf7   :  { %v4657_v1 = vpop.f32.mrb[8].mxu0 }
  0xf8   :  { %v4659_v4 = vpop.f32.mrb[9].mxu0 }
  0xf9   :  { %v4661_v5 = vpop.f32.mrb[10].mxu0 }
  0xfa   :  { %v4665_v7 = vpop.f32.mrb[11].mxu0 }
  0xff   :  { %v4669_v9 = vpop.f32.mrb[12].mxu0 }
 0x100   :  { %v4671_v11 = vpop.f32.mrb[13].mxu0 }
 0x101   :  { %v4673_v12 = vpop.f32.mrb[14].mxu0 }
 0x102   :  { %v4677_v14 = vpop.f32.mrb[15].mxu0 }
 0x113   :  { %v3757_v16 = vpop.f32.mrb[16].mxu0 }
 0x114   :  { %v664_v17 = vpop.f32.mrb[17].mxu0 }
 0x115   :  { %v4059_v6 = vadd.f32 %v664_v17, %v4753_v13 }
 0x117   :  { %v3760_v20 = vpop.f32.mrb[18].mxu0 }
 0x118   :  { %v4060_v21 = vadd.f32 %v3760_v20, %v4684_v18  ;;  %v674_v22 = vpop.f32.mrb[19].mxu0  ;;  %v4708_v20 = vpop.f32.mrb[4].mxu1 }
 0x119   :  { %v4061_v23 = vadd.f32 %v674_v22, %v4689_v19 }
 0x11a   :  { %v3269_v25 = vmul.f32 -1.442695, %v4060_v21  ;;  %v4710_v21 = vpop.f32.mrb[5].mxu1 }
 0x11b   :  { %v3268_v26 = vmul.f32 -1.442695, %v4061_v23  ;;  %v4713_v22 = vpop.f32.mrb[6].mxu1 }
 0x11c   :  { %4111 = vpow2.f32 %v3269_v25  ;;  %v4717_v25 = vpop.f32.mrb[7].mxu1 }
 0x11d   :  { %4113 = vpow2.f32 %v3268_v26 }
 0x126   :  { %v4112_v28 = vpop.eup %4111 }
 0x127   :  { %v4114_v29 = vpop.eup %4113  ;;  %v706_v30 = vadd.f32 1.0, %v4112_v28  ;;  %v4721_v28 = vpop.f32.mrb[8].mxu1 }
 0x128   :  { %v705_v32 = vadd.f32 1.0, %v4114_v29  ;;  %v4723_v29 = vpop.f32.mrb[9].mxu1 }
 0x129   :  { %4115 = vrcp.f32 %v706_v30  ;;  %v4725_v30 = vpop.f32.mrb[10].mxu1 }
 0x12a   :  { %4117 = vrcp.f32 %v705_v32  ;;  %v4748_v32 = vld [vmem:[%s5948_s8 + $0x8] sm:$0xff] }
 0x12b   :  { %v4058_v15 = vadd.f32 %v3757_v16, %v4748_v32  ;;  %v4765_v16 = vld [vmem:[%s5948_s8 + $0x20] sm:$0xff] }
 0x12d   :  { %v3267_v49 = vmul.f32 -1.442695, %v4058_v15 }
 0x12f   :  { %4119 = vpow2.f32 %v3267_v49 }
 0x133   :  { %v4116_v33 = vpop.eup %4115 }
 0x134   :  { %v4118_v34 = vpop.eup %4117  ;;  %v712_v35 = vmul.f32 %v4116_v33, %v4487_v3  ;;  %v4729_v33 = vpop.f32.mrb[11].mxu1 }
 0x135   :  { %v711_v45 = vmul.f32 %v4118_v34, %v4482_v2  ;;  %v3266_v34 = vmul.f32 -1.442695, %v4059_v6 }
 0x137   :  { %v4018_v46 = vpack.c.bf16 %v712_v35, %v711_v45  ;;  %v4733_v35 = vpop.f32.mrb[12].mxu1  ;;  %4121 = vpow2.f32 %v3266_v34 }
 0x138   :  { %5985 = vst [vmem:[#allocation6_spill] sm:$0xff] %v4733_v35  ;;  %v4735_v45 = vpop.f32.mrb[13].mxu1 }
 0x139   :  { %4019 = vmatprep.subr.bf16.mxu0 %v4018_v46  ;;  %v4120_v23 = vpop.eup %4119 }
 0x13a   :  { %4021 = vmatpush3.bf16.msra.mxu0 %v4018_v46  ;;  %v4737_v46 = vpop.f32.mrb[14].mxu1  ;;  %v692_v26 = vadd.f32 1.0, %v4120_v23 }
 0x13b   :  { %5986 = vst [vmem:[#allocation7_spill] sm:$0xff] %v4737_v46  ;;  %v4741_v57 = vpop.f32.mrb[15].mxu1 }
 0x13c   :  { %4123 = vrcp.f32 %v692_v26 }
 0x13d   :  { %3766 = vmatmul.mubr.msk.f32.vlgmr.msra.gmra.mrb[20].mxu0 %vm472_vm1, %v4698_v47 }
 0x13e   :  { %3810 = vmatprep.mubr.msk.bf16.mxu0 %vm472_vm1, %v1196_v58 }
 0x141   :  { %v4122_v58 = vpop.eup %4121 }
 0x142   :  { %v691_v54 = vadd.f32 1.0, %v4122_v58 }
 0x144   :  { %4125 = vrcp.f32 %v691_v54 }
 0x146   :  { %v4124_v23 = vpop.eup %4123 }
 0x147   :  { %v799_v26 = vsub.f32 1.0, %v4124_v23 }
 0x149   :  { %v801_v56 = vmul.f32 %v799_v26, %v4487_v3  ;;  %v5988_v3 = vpack.c.bf16 %v4653_v63, %v4647_v60 }
 0x14e   :  { %v4126_v54 = vpop.eup %4125 }
 0x14f   :  { %v798_v49 = vsub.f32 1.0, %v4126_v54 }
 0x151   :  { %v800_v27 = vmul.f32 %v798_v49, %v4482_v2  ;;  %v5987_v2 = vpack.c.bf16 %v4640_v55, %v4638_v53 }
 0x210   :  { %v3767_v15 = vpop.f32.mrb[20].mxu0 }
 0x211   :  { %v4062_v6 = vadd.f32 %v3767_v15, %v4760_v8  ;;  %v785_v17 = vpop.f32.mrb[21].mxu0  ;;  %v3276_v15 = vld [vmem:[%s5943_s2 + $0x10] sm:$0xff] }
 0x212   :  { %v4063_v34 = vadd.f32 %v785_v17, %v4765_v16 }
 0x213   :  { %4127 = vtanh.f32 %v4062_v6  ;;  %v3277_v6 = vld [vmem:[%s5943_s2 + $0x18] sm:$0xff] }
 0x214   :  { %4129 = vtanh.f32 %v4063_v34 }
 0x21d   :  { %v4128_v58 = vpop.eup %4127 }
 0x21e   :  { %v4130_v62 = vpop.eup %4129  ;;  %v803_v0 = vmul.f32 %v4128_v58, %v4124_v23  ;;  %v4022_v23 = vpack.c.bf16 %v3277_v6, %v3276_v15 }
 0x21f   :  { %v802_v50 = vmul.f32 %v4130_v62, %v4126_v54 }
 0x220   :  { %v4771_v24 = vadd.f32 %v803_v0, %v801_v56 }
 0x221   :  { %v4779_v17 = vadd.f32 %v802_v50, %v800_v27  ;;  %v5989_v27 = vpack.c.bf16 %v4649_v61, %v4645_v59 }
 0x223   :  { %v810_v34 = vpack.c.bf16 %v4771_v24, %v4779_v17 }
 0x225   :  { %3768 = vmatprep.subr.bf16.mxu1 %v810_v34 }
 0x226   :  { %3769 = vmatpush3.bf16.msra.mxu1 %v810_v34 }
 0x227   :  { %4023 = vmatprep.subr.bf16.mxu1 %v4022_v23 }
 0x229   :  { %3771 = vmatmul.mubr.msk.bf16.vlgmr.msra.gmra.mrb[16].mxu1 %vm472_vm1, %v5987_v2 }
 0x22a   :  { %3774 = vmatprep.mubr.msk.bf16.mxu1 %vm472_vm1, %v5988_v3  ;;  %4025 = vmatpush3.bf16.msra.mxu1 %v4022_v23 }
 0x22b   :  { %4027 = vmatprep.subr.bf16.mxu1 %v810_v34 }
 0x231   :  { %3775 = vmatmul.mubr.msk.bf16.gmra.mrb[20].mxu1 %vm472_vm1, %v5989_v27 }
 0x232   :  { %3782 = vmatprep.mubr.msk.f32.mxu1 %vm472_vm1, %v4540_v31 }
 0x239   :  { %3783 = vmatmul.mubr.msk.f32.vlgmr.msra.gmra.mrb[24].mxu1 %vm472_vm1, %v4556_v36 }
 0x23a   :  { %4029 = vmatpush3.bf16.msra.mxu1 %v810_v34  ;;  %3785 = vmatprep.mubr.msk.f32.mxu1 %vm472_vm1, %v4561_v37 }
 0x23d   :  { %3786 = vmatmul.mubr.msk.f32.gmra.mrb[26].mxu1 %vm472_vm1, %v4571_v38 }
 0x23e   :  { %3788 = vmatprep.mubr.msk.f32.mxu1 %vm472_vm1, %v4576_v39 }
 0x241   :  { %3789 = vmatmul.mubr.msk.f32.gmra.mrb[28].mxu1 %vm472_vm1, %v4585_v40 }
 0x242   :  { %3795 = vmatprep.mubr.msk.f32.mxu1 %vm472_vm1, %v4590_v41 }
 0x245   :  { %3796 = vmatmul.mubr.msk.f32.vlgmr.msra.gmra.mrb[24].mxu1 %vm472_vm1, %v4599_v42 }
 0x246   :  { %3798 = vmatprep.mubr.msk.f32.mxu1 %vm472_vm1, %v4604_v43 }
 0x249   :  { %3799 = vmatmul.mubr.msk.f32.gmra.mrb[26].mxu1 %vm472_vm1, %v4613_v44 }
 0x24a   :  { %3805 = vmatprep.mubr.msk.f32.mxu1 %vm472_vm1, %v4634_v52 }
 0x2fc   :  { %v4817_v50 = vpop.f32.mrb[16].mxu1 }
 0x2fd   :  { %v4819_v53 = vpop.f32.mrb[17].mxu1 }
 0x2fe   :  { %v4821_v55 = vpop.f32.mrb[18].mxu1 }
 0x2ff   :  { %v4823_v56 = vpop.f32.mrb[19].mxu1 }
 0x304   :  { %v4825_v59 = vpop.f32.mrb[20].mxu1 }
 0x305   :  { %v4827_v60 = vpop.f32.mrb[21].mxu1 }
 0x306   :  { %v4829_v61 = vpop.f32.mrb[22].mxu1 }
 0x307   :  { %v4831_v62 = vpop.f32.mrb[23].mxu1 }
 0x318   :  { %v3797_v63 = vpop.f32.mrb[24].mxu1 }
 0x319   :  { %v1060_v0 = vpop.f32.mrb[25].mxu1 }
 0x31c   :  { %v3800_v54 = vpop.f32.mrb[26].mxu1 }
 0x31d   :  { %v4066_v26 = vadd.f32 %v3800_v54, %v4684_v18  ;;  %v1070_v49 = vpop.f32.mrb[27].mxu1 }
 0x31e   :  { %v4067_v58 = vadd.f32 %v1070_v49, %v4689_v19  ;;  %v4064_v49 = vadd.f32 %v3797_v63, %v4748_v32 }
 0x31f   :  { %v3291_v15 = vmul.f32 -1.442695, %v4066_v26  ;;  %v5990_v26 = vpack.c.bf16 %v4665_v7, %v4659_v4 }
 0x320   :  { %v3290_v6 = vmul.f32 -1.442695, %v4067_v58  ;;  %v4065_v58 = vadd.f32 %v1060_v0, %v4753_v13 }
 0x321   :  { %4131 = vpow2.f32 %v3291_v15  ;;  %v3289_v15 = vmul.f32 -1.442695, %v4064_v49 }
 0x322   :  { %4133 = vpow2.f32 %v3290_v6  ;;  %v3288_v6 = vmul.f32 -1.442695, %v4065_v58 }
 0x32b   :  { %v4132_v34 = vpop.eup %4131 }
 0x32c   :  { %v4134_v23 = vpop.eup %4133  ;;  %v1102_v2 = vadd.f32 1.0, %v4132_v34 }
 0x32d   :  { %v1101_v3 = vadd.f32 1.0, %v4134_v23 }
 0x32e   :  { %4135 = vrcp.f32 %v1102_v2 }
 0x32f   :  { %4137 = vrcp.f32 %v1101_v3 }
 0x330   :  { %4139 = vpow2.f32 %v3289_v15 }
 0x331   :  { %4141 = vpow2.f32 %v3288_v6 }
 0x338   :  { %v4136_v27 = vpop.eup %4135 }
 0x339   :  { %v4138_v10 = vpop.eup %4137  ;;  %v1108_v35 = vmul.f32 %v4136_v27, %v4771_v24 }
 0x33a   :  { %v1107_v46 = vmul.f32 %v4138_v10, %v4779_v17  ;;  %v4140_v10 = vpop.eup %4139 }
 0x33c   :  { %v4030_v54 = vpack.c.bf16 %v1108_v35, %v1107_v46  ;;  %v4142_v35 = vpop.eup %4141  ;;  %v1088_v46 = vadd.f32 1.0, %v4140_v10 }
 0x33d   :  { %v1087_v34 = vadd.f32 1.0, %v4142_v35  ;;  %v3298_v35 = vld [vmem:[%s5943_s2 + $0x20] sm:$0xff] }
 0x33e   :  { %4031 = vmatprep.subr.bf16.mxu1 %v4030_v54  ;;  %4143 = vrcp.f32 %v1088_v46  ;;  %v3299_v46 = vld [vmem:[%s5943_s2 + $0x28] sm:$0xff] }
 0x33f   :  { %4033 = vmatpush3.bf16.msra.mxu1 %v4030_v54  ;;  %4145 = vrcp.f32 %v1087_v34 }
 0x342   :  { %3806 = vmatmul.mubr.msk.f32.vlgmr.msra.gmra.mrb[28].mxu1 %vm472_vm1, %v4698_v47 }
 0x343   :  { %3850 = vmatprep.mubr.msk.bf16.mxu1 %vm472_vm1, %v5990_v26 }
 0x348   :  { %v4144_v63 = vpop.eup %4143 }
 0x349   :  { %v4146_v0 = vpop.eup %4145  ;;  %v1189_v3 = vsub.f32 1.0, %v4144_v63 }
 0x34a   :  { %v1188_v27 = vsub.f32 1.0, %v4146_v0 }
 0x34b   :  { %v1191_v58 = vmul.f32 %v1189_v3, %v4771_v24  ;;  %v5991_v24 = vpack.c.bf16 %v4704_v51, %v4702_v48 }
 0x34c   :  { %v1190_v6 = vmul.f32 %v1188_v27, %v4779_v17  ;;  %v5992_v17 = vpack.c.bf16 %v4717_v25, %v4710_v21 }
 0x415   :  { %v3807_v23 = vpop.f32.mrb[28].mxu1 }
 0x416   :  { %v4068_v2 = vadd.f32 %v3807_v23, %v4760_v8  ;;  %v1175_v4 = vpop.f32.mrb[29].mxu1 }
 0x417   :  { %v4069_v7 = vadd.f32 %v1175_v4, %v4765_v16  ;;  %v5993_v4 = vpack.c.bf16 %v4713_v22, %v4708_v20 }
 0x418   :  { %4147 = vtanh.f32 %v4068_v2  ;;  %v4034_v2 = vpack.c.bf16 %v3299_v46, %v3298_v35 }
 0x419   :  { %4149 = vtanh.f32 %v4069_v7 }
 0x422   :  { %v4148_v54 = vpop.eup %4147 }
 0x423   :  { %v4150_v26 = vpop.eup %4149  ;;  %v1193_v49 = vmul.f32 %v4148_v54, %v4144_v63 }
 0x424   :  { %v1192_v15 = vmul.f32 %v4150_v26, %v4146_v0 }
 0x425   :  { %v4849_v10 = vadd.f32 %v1193_v49, %v1191_v58 }
 0x426   :  { %v4857_v34 = vadd.f32 %v1192_v15, %v1190_v6 }
 0x428   :  { %v1200_v23 = vpack.c.bf16 %v4849_v10, %v4857_v34 }
 0x42a   :  { %3808 = vmatprep.subr.bf16.mxu0 %v1200_v23 }
 0x42b   :  { %3809 = vmatpush3.bf16.msra.mxu0 %v1200_v23 }
 0x42c   :  { %4035 = vmatprep.subr.bf16.mxu0 %v4034_v2 }
 0x42e   :  { %3811 = vmatmul.mubr.msk.bf16.vlgmr.msra.gmra.mrb[24].mxu0 %vm472_vm1, %v5991_v24 }
 0x42f   :  { %3814 = vmatprep.mubr.msk.bf16.mxu0 %vm472_vm1, %v5992_v17  ;;  %4037 = vmatpush3.bf16.msra.mxu0 %v4034_v2 }
 0x430   :  { %4039 = vmatprep.subr.bf16.mxu0 %v1200_v23 }
 0x436   :  { %3815 = vmatmul.mubr.msk.bf16.gmra.mrb[28].mxu0 %vm472_vm1, %v5993_v4 }
 0x437   :  { %3822 = vmatprep.mubr.msk.f32.mxu0 %vm472_vm1, %v4540_v31 }
 0x43e   :  { %3823 = vmatmul.mubr.msk.f32.vlgmr.msra.gmra.mrb[22].mxu0 %vm472_vm1, %v4556_v36 }
 0x43f   :  { %4041 = vmatpush3.bf16.msra.mxu0 %v1200_v23  ;;  %3825 = vmatprep.mubr.msk.f32.mxu0 %vm472_vm1, %v4561_v37 }
 0x442   :  { %3826 = vmatmul.mubr.msk.f32.gmra.mrb[32].mxu0 %vm472_vm1, %v4571_v38 }
 0x443   :  { %3828 = vmatprep.mubr.msk.f32.mxu0 %vm472_vm1, %v4576_v39 }
 0x446   :  { %3829 = vmatmul.mubr.msk.f32.gmra.mrb[34].mxu0 %vm472_vm1, %v4585_v40 }
 0x447   :  { %3835 = vmatprep.mubr.msk.f32.mxu0 %vm472_vm1, %v4590_v41 }
 0x44a   :  { %3836 = vmatmul.mubr.msk.f32.vlgmr.msra.gmra.mrb[22].mxu0 %vm472_vm1, %v4599_v42 }
 0x44b   :  { %3838 = vmatprep.mubr.msk.f32.mxu0 %vm472_vm1, %v4604_v43 }
 0x44e   :  { %3839 = vmatmul.mubr.msk.f32.gmra.mrb[32].mxu0 %vm472_vm1, %v4613_v44 }
 0x44f   :  { %3845 = vmatprep.mubr.msk.f32.mxu0 %vm472_vm1, %v4634_v52 }
 0x501   :  { %v4895_v48 = vpop.f32.mrb[24].mxu0 }
 0x502   :  { %v4897_v51 = vpop.f32.mrb[25].mxu0 }
 0x503   :  { %v4899_v20 = vpop.f32.mrb[26].mxu0 }
 0x504   :  { %v4901_v21 = vpop.f32.mrb[27].mxu0 }
 0x509   :  { %v4903_v22 = vpop.f32.mrb[28].mxu0 }
 0x50a   :  { %v4905_v25 = vpop.f32.mrb[29].mxu0 }
 0x50b   :  { %v4907_v7 = vpop.f32.mrb[30].mxu0 }
 0x50c   :  { %v4909_v63 = vpop.f32.mrb[31].mxu0 }
 0x51d   :  { %v3837_v0 = vpop.f32.mrb[22].mxu0 }
 0x51e   :  { %v1450_v3 = vpop.f32.mrb[23].mxu0 }
 0x521   :  { %v3840_v27 = vpop.f32.mrb[32].mxu0 }
 0x522   :  { %v4072_v54 = vadd.f32 %v3840_v27, %v4684_v18  ;;  %v1460_v26 = vpop.f32.mrb[33].mxu0 }
 0x523   :  { %v4073_v49 = vadd.f32 %v1460_v26, %v4689_v19  ;;  %v4070_v26 = vadd.f32 %v3837_v0, %v4748_v32 }
 0x524   :  { %v3313_v58 = vmul.f32 -1.442695, %v4072_v54  ;;  %v5994_v54 = vpack.c.bf16 %v4729_v33, %v4723_v29 }
 0x525   :  { %v3312_v15 = vmul.f32 -1.442695, %v4073_v49  ;;  %v4071_v49 = vadd.f32 %v1450_v3, %v4753_v13 }
 0x526   :  { %4151 = vpow2.f32 %v3313_v58  ;;  %v3311_v58 = vmul.f32 -1.442695, %v4070_v26 }
 0x527   :  { %4153 = vpow2.f32 %v3312_v15  ;;  %v3310_v15 = vmul.f32 -1.442695, %v4071_v49 }
 0x530   :  { %v4152_v6 = vpop.eup %4151 }
 0x531   :  { %v4154_v35 = vpop.eup %4153  ;;  %v1492_v46 = vadd.f32 1.0, %v4152_v6 }
 0x532   :  { %v1491_v23 = vadd.f32 1.0, %v4154_v35 }
 0x533   :  { %4155 = vrcp.f32 %v1492_v46 }
 0x534   :  { %4157 = vrcp.f32 %v1491_v23 }
 0x535   :  { %4159 = vpow2.f32 %v3311_v58 }
 0x536   :  { %4161 = vpow2.f32 %v3310_v15 }
 0x53d   :  { %v4156_v2 = vpop.eup %4155 }
 0x53e   :  { %v4158_v24 = vpop.eup %4157  ;;  %v1498_v17 = vmul.f32 %v4156_v2, %v4849_v10 }
 0x53f   :  { %v1497_v4 = vmul.f32 %v4158_v24, %v4857_v34  ;;  %v4160_v6 = vpop.eup %4159 }
 0x540   :  { %v4162_v35 = vpop.eup %4161  ;;  %v1478_v46 = vadd.f32 1.0, %v4160_v6 }
 0x541   :  { %v4042_v27 = vpack.c.bf16 %v1498_v17, %v1497_v4  ;;  %v1477_v23 = vadd.f32 1.0, %v4162_v35  ;;  %v3320_v35 = vld [vmem:[%s5943_s2 + $0x30] sm:$0xff] }
 0x542   :  { %4163 = vrcp.f32 %v1478_v46  ;;  %v3321_v46 = vld [vmem:[%s5943_s2 + $0x38] sm:$0xff] }
 0x543   :  { %4043 = vmatprep.subr.bf16.mxu0 %v4042_v27  ;;  %4165 = vrcp.f32 %v1477_v23 }
 0x544   :  { %4045 = vmatpush3.bf16.msra.mxu0 %v4042_v27 }
 0x547   :  { %3846 = vmatmul.mubr.msk.f32.vlgmr.msra.gmra.mrb[34].mxu0 %vm472_vm1, %v4698_v47 }
 0x548   :  { %3890 = vmatprep.mubr.msk.bf16.mxu0 %vm472_vm1, %v5994_v54 }
 0x54c   :  { %v4164_v0 = vpop.eup %4163 }
 0x54d   :  { %v4166_v3 = vpop.eup %4165  ;;  %v1579_v17 = vsub.f32 1.0, %v4164_v0 }
 0x54e   :  { %v1578_v4 = vsub.f32 1.0, %v4166_v3 }
 0x54f   :  { %v1581_v49 = vmul.f32 %v1579_v17, %v4849_v10  ;;  %v5995_v10 = vpack.c.bf16 %v4661_v5, %v4657_v1 }
 0x550   :  { %v1580_v15 = vmul.f32 %v1578_v4, %v4857_v34  ;;  %v5996_v34 = vpack.c.bf16 %v4677_v14, %v4671_v11 }
 0x61a   :  { %v3847_v2 = vpop.f32.mrb[34].mxu0 }
 0x61b   :  { %v4074_v24 = vadd.f32 %v3847_v2, %v4760_v8  ;;  %v1565_v29 = vpop.f32.mrb[35].mxu0 }
 0x61c   :  { %v4075_v33 = vadd.f32 %v1565_v29, %v4765_v16  ;;  %v5997_v29 = vpack.c.bf16 %v4673_v12, %v4669_v9 }
 0x61d   :  { %4167 = vtanh.f32 %v4074_v24  ;;  %v4046_v24 = vpack.c.bf16 %v3321_v46, %v3320_v35 }
 0x61e   :  { %4169 = vtanh.f32 %v4075_v33 }
 0x627   :  { %v4168_v27 = vpop.eup %4167 }
 0x628   :  { %v4170_v54 = vpop.eup %4169  ;;  %v1583_v26 = vmul.f32 %v4168_v27, %v4164_v0 }
 0x629   :  { %v1582_v58 = vmul.f32 %v4170_v54, %v4166_v3 }
 0x62a   :  { %v4927_v6 = vadd.f32 %v1583_v26, %v1581_v49 }
 0x62b   :  { %v4935_v23 = vadd.f32 %v1582_v58, %v1580_v15 }
 0x62d   :  { %v1590_v2 = vpack.c.bf16 %v4927_v6, %v4935_v23 }
 0x62f   :  { %3848 = vmatprep.subr.bf16.mxu1 %v1590_v2 }
 0x630   :  { %3849 = vmatpush3.bf16.msra.mxu1 %v1590_v2 }
 0x631   :  { %4047 = vmatprep.subr.bf16.mxu1 %v4046_v24 }
 0x633   :  { %3851 = vmatmul.mubr.msk.bf16.vlgmr.msra.gmra.mrb[32].mxu1 %vm472_vm1, %v5995_v10 }
 0x634   :  { %3854 = vmatprep.mubr.msk.bf16.mxu1 %vm472_vm1, %v5996_v34  ;;  %4049 = vmatpush3.bf16.msra.mxu1 %v4046_v24 }
 0x635   :  { %4051 = vmatprep.subr.bf16.mxu1 %v1590_v2 }
 0x63b   :  { %3855 = vmatmul.mubr.msk.bf16.gmra.mrb[36].mxu1 %vm472_vm1, %v5997_v29 }
 0x63c   :  { %3862 = vmatprep.mubr.msk.f32.mxu1 %vm472_vm1, %v4540_v31  ;;  %v2066_v31 = vld [vmem:[%s5949_s4] sm:$0xff] }
 0x643   :  { %3863 = vmatmul.mubr.msk.f32.vlgmr.msra.gmra.mrb[30].mxu1 %vm472_vm1, %v4556_v36  ;;  %v2067_v36 = vld [vmem:[%s5949_s4 + $0x8] sm:$0xff] }
 0x644   :  { %4053 = vmatpush3.bf16.msra.mxu1 %v1590_v2  ;;  %3865 = vmatprep.mubr.msk.f32.mxu1 %vm472_vm1, %v4561_v37  ;;  %v2070_v37 = vmul.f32 %v2066_v31, %v2066_v31 }
 0x647   :  { %3866 = vmatmul.mubr.msk.f32.gmra.mrb[40].mxu1 %vm472_vm1, %v4571_v38  ;;  %v2071_v38 = vmul.f32 %v2067_v36, %v2067_v36 }
 0x648   :  { %3868 = vmatprep.mubr.msk.f32.mxu1 %vm472_vm1, %v4576_v39  ;;  %v2068_v39 = vld [vmem:[%s5949_s4 + $0x10] sm:$0xff] }
 0x64b   :  { %3869 = vmatmul.mubr.msk.f32.gmra.mrb[42].mxu1 %vm472_vm1, %v4585_v40  ;;  %v2072_v40 = vmul.f32 %v2068_v39, %v2068_v39 }
 0x64c   :  { %3875 = vmatprep.mubr.msk.f32.mxu1 %vm472_vm1, %v4590_v41  ;;  %v2075_v41 = vsel %vm2074_vm2, %v2070_v37, 0.0 }
 0x64d   :  { %v2078_v5 = vsel %vm2074_vm2, %v2072_v40, 0.0 }
 0x64f   :  { %3876 = vmatmul.mubr.msk.f32.vlgmr.msra.gmra.mrb[30].mxu1 %vm472_vm1, %v4599_v42  ;;  %v2076_v42 = vsel %vm2074_vm2, %v2071_v38, 0.0 }
 0x650   :  { %3878 = vmatprep.mubr.msk.f32.mxu1 %vm472_vm1, %v4604_v43  ;;  %v4984_v43 = vpack.c.bf16 %v2067_v36, %v2066_v31 }
 0x653   :  { %3879 = vmatmul.mubr.msk.f32.gmra.mrb[40].mxu1 %vm472_vm1, %v4613_v44  ;;  %v2069_v44 = vld [vmem:[%s5949_s4 + $0x18] sm:$0xff] }
 0x654   :  { %3885 = vmatprep.mubr.msk.f32.mxu1 %vm472_vm1, %v4634_v52  ;;  %v2077_v52 = vadd.f32 %v2076_v42, %v2075_v41  ;;  %v2073_v1 = vmul.f32 %v2069_v44, %v2069_v44  ;;  %v4990_v11 = vpack.c.bf16 %v2069_v44, %v2068_v39  ;;  %v5980_v41 = vmax.f32 %v4823_v56, 0.0 }
 0x655   :  { %v891_v44 = vmax.f32 %v4821_v55, 0.0 }
 0x656   :  { %v2079_v9 = vadd.f32 %v2078_v5, %v2077_v52  ;;  %v2080_v12 = vsel %vm2074_vm2, %v2073_v1, 0.0  ;;  %v5976_v52 = vmax.f32 %v4831_v62, 0.0  ;;  %v890_v1 = vmax.f32 %v4817_v50, 0.0 }
 0x657   :  { %v5978_v5 = vmax.f32 %v4827_v60, 0.0 }
 0x658   :  { %v2081_v14 = vadd.f32 %v2080_v12, %v2079_v9  ;;  %v5977_v12 = vmax.f32 %v4829_v61, 0.0 }
 0x659   :  { %v5048_v9 = vpack.c.bf16 %v5976_v52, %v5978_v5 }
 0x65a   :  { %2082 = vadd.xlane.f32.xlu0 %v2081_v14  ;;  %v5960_v14 = vmax.f32 %v4901_v21, 0.0 }
 0x706   :  { %v4993_v33 = vpop.f32.mrb[32].mxu1 }
 0x707   :  { %v4995_v0 = vpop.f32.mrb[33].mxu1 }
 0x708   :  { %v4997_v3 = vpop.f32.mrb[34].mxu1 }
 0x709   :  { %v4999_v17 = vpop.f32.mrb[35].mxu1 }
 0x70e   :  { %v5001_v4 = vpop.f32.mrb[36].mxu1 }
 0x70f   :  { %v5003_v27 = vpop.f32.mrb[37].mxu1 }
 0x710   :  { %v5005_v54 = vpop.f32.mrb[38].mxu1 }
 0x711   :  { %v5007_v26 = vpop.f32.mrb[39].mxu1 }
 0x722   :  { %v5009_v49 = vpop.f32.mrb[30].mxu1 }
 0x723   :  { %v5011_v58 = vpop.f32.mrb[31].mxu1 }
 0x726   :  { %v3880_v15 = vpop.f32.mrb[40].mxu1 }
 0x727   :  { %v4078_v35 = vadd.f32 %v3880_v15, %v4684_v18  ;;  %v1850_v46 = vpop.f32.mrb[41].mxu1  ;;  %v5979_v15 = vmax.f32 %v4825_v59, 0.0 }
 0x728   :  { %v4079_v2 = vadd.f32 %v1850_v46, %v4689_v19  ;;  %v888_v19 = vmax.f32 %v4819_v53, 0.0  ;;  %v6007_v53 = vmax.f32 %v4823_v56, 0.0 }
 0x729   :  { %v3335_v24 = vmul.f32 -1.442695, %v4078_v35  ;;  %v5963_v35 = vmax.f32 %v4897_v51, 0.0  ;;  %v5065_v46 = vpack.c.bf16 %v5977_v12, %v5979_v15 }
 0x72a   :  { %v3334_v10 = vmul.f32 -1.442695, %v4079_v2  ;;  %v5024_v42 = vpack.c.bf16 %v5980_v41, %v888_v19 }
 0x72b   :  { %4171 = vpow2.f32 %v3335_v24  ;;  %v5072_v2 = vpack.c.bf16 %v5960_v14, %v5963_v35  ;;  %v5962_v24 = vmax.f32 %v4899_v20, 0.0 }
 0x72c   :  { %4173 = vpow2.f32 %v3334_v10  ;;  %v2083_v10 = vpop.xlane.xlu0 %2082 }
 0x735   :  { %v4172_v34 = vpop.eup %4171 }
 0x736   :  { %v4174_v29 = vpop.eup %4173  ;;  %v1882_v31 = vadd.f32 1.0, %v4172_v34  ;;  %v5964_v34 = vmax.f32 %v4909_v63, 0.0 }
 0x737   :  { %v1881_v36 = vadd.f32 1.0, %v4174_v29  ;;  %v2084_v29 = vrot.slane %v2083_v10, 4 }
 0x738   :  { %4175 = vrcp.f32 %v1882_v31  ;;  %v5972_v31 = vmax.f32 %v4895_v48, 0.0 }
 0x739   :  { %4177 = vrcp.f32 %v1881_v36  ;;  %v5961_v36 = vmax.f32 %v4905_v25, 0.0 }
 0x742   :  { %v4176_v37 = vpop.eup %4175 }
 0x743   :  { %v4178_v38 = vpop.eup %4177  ;;  %v1888_v39 = vmul.f32 %v4176_v37, %v4927_v6  ;;  %v2085_v37 = vadd.f32 %v2084_v29, %v2083_v10  ;;  %v5973_v10 = vmax.f32 %v4907_v7, 0.0  ;;  %v5967_v29 = vmax.f32 %v4999_v17, 0.0 }
 0x744   :  { %v1887_v40 = vmul.f32 %v4178_v38, %v4935_v23  ;;  %v5086_v38 = vpack.c.bf16 %v5962_v24, %v5972_v31  ;;  %v5966_v24 = vmax.f32 %v4995_v0, 0.0 }
 0x746   :  { %v4054_v18 = vpack.c.bf16 %v1888_v39, %v1887_v40  ;;  %v5092_v39 = vpack.c.bf16 %v5964_v34, %v5961_v36  ;;  %v2086_v40 = vrot.slane %v2085_v37, 2  ;;  %v5965_v36 = vmax.f32 %v4903_v22, 0.0 }
 0x748   :  { %4055 = vmatprep.subr.bf16.mxu1 %v4054_v18  ;;  %v5109_v34 = vpack.c.bf16 %v5973_v10, %v5965_v36  ;;  %v5969_v36 = vmax.f32 %v5003_v27, 0.0 }
 0x749   :  { %4057 = vmatpush3.bf16.msra.mxu1 %v4054_v18  ;;  %v2087_v18 = vadd.f32 %v2086_v40, %v2085_v37  ;;  %v5116_v37 = vpack.c.bf16 %v5967_v29, %v5966_v24  ;;  %v5970_v40 = vmax.f32 %v5007_v26, 0.0  ;;  %v5975_v29 = vmax.f32 %v5005_v54, 0.0 }
 0x74a   :  { %3914 = vmatprep.subr.bf16.mxu1 %v4984_v43 }
 0x74b   :  { %v2088_v14 = vrot.slane %v2087_v18, 1 }
 0x74c   :  { %3886 = vmatmul.mubr.msk.f32.vlgmr.msra.gmra.mrb[42].mxu1 %vm472_vm1, %v4698_v47  ;;  %v5041_v47 = vpack.c.bf16 %v891_v44, %v890_v1 }
 0x74d   :  { %3915 = vmatpush3.bf16.msra.mxu1 %v4984_v43  ;;  %3918 = vmatprep.mubr.msk.bf16.mxu1 %vm2162_vm3, %v5024_v42  ;;  %v2089_v35 = vadd.f32 %v2088_v14, %v2087_v18  ;;  %v5971_v14 = vmax.f32 %v4997_v3, 0.0  ;;  %v5968_v18 = vmax.f32 %v4993_v33, 0.0 }
 0x74e   :  { %3916 = vmatprep.subr.bf16.mxu1 %v4990_v11 }
 0x74f   :  { %4106 = vpush %v2089_v35  ;;  %v5130_v24 = vpack.c.bf16 %v5971_v14, %v5968_v18  ;;  %v5136_v35 = vpack.c.bf16 %v5970_v40, %v5969_v36  ;;  %v5974_v18 = vmax.f32 %v5001_v4, 0.0  ;;  %v4257_v40 = vmov 0  }
 0x750   :  { %4109 = vset.pattern.permute.xlu1 %v4257_v40  ;;  %4110 = vset.pattern.permute.xlu0 %v4257_v40  ;;  %v4077_v14 = vadd.f32 %v5011_v58, %v4753_v13 }
 0x751   :  { %3917 = vmatpush3.bf16.msra.mxu1 %v4990_v11  ;;  %v5151_v36 = vpack.c.bf16 %v5975_v29, %v5974_v18 }
 0x752   :  { %3942 = vmatprep.subr.bf16.mxu1 %v4984_v43 }
 0x754   :  { %3919 = vmatmul.mubr.msk.bf16.vlgmr.msra.gmra.mrb[44].mxu1 %vm2162_vm3, %v5041_v47 }
 0x755   :  { %3922 = vmatprep.mubr.msk.bf16.mxu1 %vm2162_vm3, %v5048_v9  ;;  %3943 = vmatpush3.bf16.msra.mxu1 %v4984_v43 }
 0x756   :  { %3944 = vmatprep.subr.bf16.mxu1 %v4990_v11 }
 0x759   :  { %3945 = vmatpush3.bf16.msra.mxu1 %v4990_v11 }
 0x75a   :  { %3970 = vmatprep.subr.bf16.mxu1 %v4984_v43 }
 0x75c   :  { %3923 = vmatmul.mubr.msk.bf16.gmra.mrb[48].mxu1 %vm2162_vm3, %v5065_v46 }
 0x75d   :  { %3946 = vmatprep.mubr.msk.bf16.mxu1 %vm2162_vm3, %v5072_v2 }
 0x764   :  { %3947 = vmatmul.mubr.msk.bf16.vlgmr.msra.gmra.mrb[52].mxu1 %vm2162_vm3, %v5086_v38 }
 0x765   :  { %3950 = vmatprep.mubr.msk.bf16.mxu1 %vm2162_vm3, %v5092_v39  ;;  %3971 = vmatpush3.bf16.msra.mxu1 %v4984_v43 }
 0x766   :  { %3972 = vmatprep.subr.bf16.mxu1 %v4990_v11 }
 0x769   :  { %3973 = vmatpush3.bf16.msra.mxu1 %v4990_v11 }
 0x76a   :  { %3998 = vmatprep.subr.bf16.mxu1 %v4984_v43 }
 0x76c   :  { %3951 = vmatmul.mubr.msk.bf16.gmra.mrb[56].mxu1 %vm2162_vm3, %v5109_v34 }
 0x76d   :  { %3974 = vmatprep.mubr.msk.bf16.mxu1 %vm2162_vm3, %v5116_v37 }
 0x774   :  { %3975 = vmatmul.mubr.msk.bf16.vlgmr.msra.gmra.mrb[60].mxu1 %vm2162_vm3, %v5130_v24 }
 0x775   :  { %3978 = vmatprep.mubr.msk.bf16.mxu1 %vm2162_vm3, %v5136_v35  ;;  %3999 = vmatpush3.bf16.msra.mxu1 %v4984_v43  ;;  %v4076_v43 = vadd.f32 %v5009_v49, %v4748_v32 }
 0x776   :  { %4000 = vmatprep.subr.bf16.mxu1 %v4990_v11 }
 0x777   :  { %v3333_v31 = vmul.f32 -1.442695, %v4076_v43 }
 0x779   :  { %4001 = vmatpush3.bf16.msra.mxu1 %v4990_v11  ;;  %v3332_v11 = vmul.f32 -1.442695, %v4077_v14  ;;  %4179 = vpow2.f32 %v3333_v31 }
 0x77b   :  { %4181 = vpow2.f32 %v3332_v11 }
 0x77c   :  { %3979 = vmatmul.mubr.msk.bf16.gmra.mrb[64].mxu1 %vm2162_vm3, %v5151_v36 }
 0x780   :  { %s4107_s4 = spop %4106 }
 0x781   :  { %v2091_v52 = vstv %s4107_s4 }
 0x782   :  { %4183 = vrsqrt.f32 %v2091_v52 }
 0x783   :  { %v4180_v10 = vpop.eup %4179 }
 0x784   :  { %v1868_v29 = vadd.f32 1.0, %v4180_v10  ;;  %v2260_v10 = vld [vmem:[%s5950_s3 + $0x10] sm:$0xff] }
 0x785   :  { %v4182_v18 = vpop.eup %4181 }
 0x786   :  { %v1867_v12 = vadd.f32 1.0, %v4182_v18  ;;  %4185 = vrcp.f32 %v1868_v29  ;;  %v2261_v29 = vld [vmem:[%s5950_s3 + $0x18] sm:$0xff] }
 0x788   :  { %4187 = vrcp.f32 %v1867_v12 }
 0x78c   :  { %v5161_v13 = vpop.eup %4183 }
 0x790   :  { %v4186_v58 = vpop.eup %4185 }
 0x791   :  { %v1969_v18 = vsub.f32 1.0, %v4186_v58 }
 0x792   :  { %v4188_v31 = vpop.eup %4187 }
 0x81f   :  { %v3887_v40 = vpop.f32.mrb[42].mxu1 }
 0x820   :  { %v4080_v5 = vadd.f32 %v3887_v40, %v4760_v8  ;;  %v1955_v32 = vpop.f32.mrb[43].mxu1  ;;  %v2258_v8 = vld [vmem:[%s5950_s3] sm:$0xff] }
 0x821   :  { %v4081_v49 = vadd.f32 %v1955_v32, %v4765_v16  ;;  %v2259_v32 = vld [vmem:[%s5950_s3 + $0x8] sm:$0xff] }
 0x822   :  { %4189 = vtanh.f32 %v4080_v5 }
 0x823   :  { %4191 = vtanh.f32 %v4081_v49  ;;  %v1968_v49 = vsub.f32 1.0, %v4188_v31 }
 0x827   :  { %v3920_v14 = vpop.f32.mrb[44].mxu1 }
 0x828   :  { %v2252_v52 = vmul.f32 %v5161_v13, %v3920_v14  ;;  %v2219_v12 = vpop.f32.mrb[45].mxu1 }
 0x829   :  { %v2250_v16 = vmul.f32 %v5161_v13, %v2219_v12  ;;  %v3921_v5 = vpop.f32.mrb[46].mxu1 }
 0x82a   :  { %v2268_v43 = vadd.f32 %v2260_v10, %v2252_v52  ;;  %v2253_v11 = vmul.f32 %v5161_v13, %v3921_v5  ;;  %v2222_v40 = vpop.f32.mrb[47].mxu1  ;;  %v1970_v5 = vmul.f32 %v1968_v49, %v4935_v23  ;;  %v2262_v23 = vld [vmem:[%s5950_s3 + $0x20] sm:$0xff] }
 0x82b   :  { %v2266_v14 = vadd.f32 %v2258_v8, %v2250_v16  ;;  %v2251_v15 = vmul.f32 %v5161_v13, %v2222_v40  ;;  %v1971_v8 = vmul.f32 %v1969_v18, %v4927_v6  ;;  %v2265_v40 = vld [vmem:[%s5950_s3 + $0x38] sm:$0xff] }
 0x82c   :  { %v4190_v41 = vpop.eup %4189  ;;  %4193 = vtanh.f32 %v2268_v43  ;;  %2340 = vst.msk [vmem:[%s5951_s12 + $0x10] sm:$0xff] %vm2074_vm2, %v2268_v43  ;;  %v2269_v12 = vadd.f32 %v2261_v29, %v2253_v11 }
 0x82d   :  { %v4192_v10 = vpop.eup %4191  ;;  %4195 = vtanh.f32 %v2266_v14  ;;  %2338 = vst.msk [vmem:[%s5951_s12] sm:$0xff] %vm2074_vm2, %v2266_v14  ;;  %v2267_v52 = vadd.f32 %v2259_v32, %v2251_v15  ;;  %v1973_v16 = vmul.f32 %v4190_v41, %v4186_v58  ;;  %v2264_v15 = vld [vmem:[%s5950_s3 + $0x30] sm:$0xff] }
 0x82e   :  { %2341 = vst.msk [vmem:[%s5951_s12 + $0x18] sm:$0xff] %vm2074_vm2, %v2269_v12  ;;  %v1972_v43 = vmul.f32 %v4192_v10, %v4188_v31  ;;  %4197 = vtanh.f32 %v2269_v12  ;;  %v2263_v12 = vld [vmem:[%s5950_s3 + $0x28] sm:$0xff] }
 0x82f   :  { %2339 = vst.msk [vmem:[%s5951_s12 + $0x8] sm:$0xff] %vm2074_vm2, %v2267_v52  ;;  %v3924_v29 = vpop.f32.mrb[48].mxu1  ;;  %v1975_v6 = vadd.f32 %v1973_v16, %v1971_v8  ;;  %4199 = vtanh.f32 %v2267_v52 }
 0x830   :  { %v2256_v41 = vmul.f32 %v5161_v13, %v3924_v29  ;;  %v2235_v58 = vpop.f32.mrb[49].mxu1  ;;  %v1974_v31 = vadd.f32 %v1972_v43, %v1970_v5 }
 0x831   :  { %v2254_v18 = vmul.f32 %v5161_v13, %v2235_v58  ;;  %v3925_v11 = vpop.f32.mrb[50].mxu1  ;;  %v5998_v58 = vpack.c.bf16 %v4725_v30, %v4721_v28  ;;  %v3377_v28 = vld [vmem:[%s5950_s3 + $0x58] sm:$0xff] }
 0x832   :  { %v2272_v32 = vadd.f32 %v2264_v15, %v2256_v41  ;;  %v2257_v49 = vmul.f32 %v5161_v13, %v3925_v11  ;;  %v2238_v14 = vpop.f32.mrb[51].mxu1  ;;  %v1980_v10 = vpack.c.bf16 %v1975_v6, %v1974_v31  ;;  %v3376_v6 = vld [vmem:[%s5950_s3 + $0x50] sm:$0xff]  ;;  %v3374_v31 = vld [vmem:[%s5950_s3 + $0x40] sm:$0xff]  ;;  %v5999_v11 = vpack.c.bf16 %v4741_v57, %v4735_v45  ;;  %v3375_v45 = vld [vmem:[%s5950_s3 + $0x48] sm:$0xff] }
 0x833   :  { %v2270_v8 = vadd.f32 %v2262_v23, %v2254_v18  ;;  %v2255_v16 = vmul.f32 %v5161_v13, %v2238_v14 }
 0x834   :  { %2344 = vst.msk [vmem:[%s5951_s12 + $0x30] sm:$0xff] %vm2074_vm2, %v2272_v32  ;;  %v2273_v5 = vadd.f32 %v2265_v40, %v2257_v49  ;;  %3888 = vmatprep.subr.bf16.mxu0 %v1980_v10  ;;  %4201 = vtanh.f32 %v2272_v32 }
 0x835   :  { %2342 = vst.msk [vmem:[%s5951_s12 + $0x20] sm:$0xff] %vm2074_vm2, %v2270_v8  ;;  %v2271_v43 = vadd.f32 %v2263_v12, %v2255_v16  ;;  %3889 = vmatpush3.bf16.msra.mxu0 %v1980_v10  ;;  %4203 = vtanh.f32 %v2270_v8 }
 0x836   :  { %v4194_v29 = vpop.eup %4193  ;;  %2345 = vst.msk [vmem:[%s5951_s12 + $0x38] sm:$0xff] %vm2074_vm2, %v2273_v5  ;;  %3898 = vmatprep.subr.bf16.mxu0 %v5024_v42  ;;  %4205 = vtanh.f32 %v2273_v5  ;;  %v3381_v5 = vld [vmem:[%s5950_s3 + $0x78] sm:$0xff] }
 0x837   :  { %v4196_v52 = vpop.eup %4195  ;;  %2343 = vst.msk [vmem:[%s5951_s12 + $0x28] sm:$0xff] %vm2074_vm2, %v2271_v43  ;;  %2294 = vperm.xlu1 %4109, %v4194_v29   ;;  %v3948_v15 = vpop.f32.mrb[52].mxu1  ;;  %4207 = vtanh.f32 %v2271_v43 }
 0x838   :  { %v2527_v41 = vmul.f32 %v5161_v13, %v3948_v15  ;;  %2284 = vperm.xlu0 %4110, %v4196_v52   ;;  %3891 = vmatmul.mubr.msk.bf16.vlgmr.msra.gmra.mrb[36].mxu0 %vm472_vm1, %v5998_v58  ;;  %v2494_v23 = vpop.f32.mrb[53].mxu1  ;;  %v4198_v30 = vpop.eup %4197  ;;  %v6000_v52 = vld [vmem:[#allocation7_spill] sm:$0xff]  ;;  %v6001_v15 = vld [vmem:[#allocation6_spill] sm:$0xff] }
 0x839   :  { %v2525_v18 = vmul.f32 %v5161_v13, %v2494_v23  ;;  %3894 = vmatprep.mubr.msk.bf16.mxu0 %vm472_vm1, %v5999_v11  ;;  %3899 = vmatpush3.bf16.msra.mxu0 %v5024_v42  ;;  %v3949_v40 = vpop.f32.mrb[54].mxu1  ;;  %v4200_v16 = vpop.eup %4199  ;;  %v3378_v58 = vld [vmem:[%s5950_s3 + $0x60] sm:$0xff] }
 0x83a   :  { %v2544_v32 = vadd.f32 %v3376_v6, %v2527_v41  ;;  %v2528_v49 = vmul.f32 %v5161_v13, %v3949_v40  ;;  %3900 = vmatprep.subr.bf16.mxu0 %v5041_v47  ;;  %v2497_v14 = vpop.f32.mrb[55].mxu1  ;;  %v6002_v6 = vpack.c.bf16 %v6000_v52, %v6001_v15  ;;  %v6004_v52 = vld [vmem:[#allocation3_spill] sm:$0xff] }
 0x83b   :  { %v5255_v57 = vadd.f32 %v3374_v31, %v2525_v18  ;;  %v2526_v42 = vmul.f32 %v5161_v13, %v2497_v14  ;;  %2299 = vperm.xlu1 %4109, %v4198_v30   ;;  %v6003_v18 = vld [vmem:[#allocation2_spill] sm:$0xff] }
 0x83c   :  { %3392 = vst.msk [vmem:[%s5951_s12 + $0x50] sm:$0xff] %vm2074_vm2, %v2544_v32  ;;  %v5262_v12 = vadd.f32 %v3377_v28, %v2528_v49 }
 0x83d   :  { %3390 = vst.msk [vmem:[%s5951_s12 + $0x40] sm:$0xff] %vm2074_vm2, %v5255_v57  ;;  %v5269_v10 = vadd.f32 %v3375_v45, %v2526_v42  ;;  %3901 = vmatpush3.bf16.msra.mxu0 %v5041_v47  ;;  %v3380_v47 = vld [vmem:[%s5950_s3 + $0x70] sm:$0xff] }
 0x83e   :  { %3393 = vst.msk [vmem:[%s5951_s12 + $0x58] sm:$0xff] %vm2074_vm2, %v5262_v12  ;;  %3902 = vmatprep.subr.bf16.mxu0 %v5048_v9  ;;  %v4202_v11 = vpop.eup %4201 }
 0x83f   :  { %3391 = vst.msk [vmem:[%s5951_s12 + $0x48] sm:$0xff] %vm2074_vm2, %v5269_v10  ;;  %2289 = vperm.xlu1 %4109, %v4200_v16   ;;  %v3952_v8 = vpop.f32.mrb[56].mxu1  ;;  %v4204_v16 = vpop.eup %4203 }
 0x840   :  { %v2531_v29 = vmul.f32 %v5161_v13, %v3952_v8  ;;  %3895 = vmatmul.mubr.msk.bf16.gmra.mrb[40].mxu0 %vm472_vm1, %v6002_v6  ;;  %v2510_v41 = vpop.f32.mrb[57].mxu1 }
 0x841   :  { %v2529_v23 = vmul.f32 %v5161_v13, %v2510_v41  ;;  %3903 = vmatpush3.bf16.msra.mxu0 %v5048_v9  ;;  %v3953_v31 = vpop.f32.mrb[58].mxu1  ;;  %3906 = vmatprep.mubr.msk.bf16.mxu0 %vm63_vm0, %v6003_v18  ;;  %v3379_v9 = vld [vmem:[%s5950_s3 + $0x68] sm:$0xff]  ;;  %v3425_v41 = vld [vmem:[%s5950_s3 + $0x98] sm:$0xff] }
 0x842   :  { %v5301_v40 = vadd.f32 %v3380_v47, %v2531_v29  ;;  %v2532_v28 = vmul.f32 %v5161_v13, %v3953_v31  ;;  %3904 = vmatprep.subr.bf16.mxu0 %v5065_v46  ;;  %v2513_v30 = vpop.f32.mrb[59].mxu1  ;;  %v3422_v29 = vld [vmem:[%s5950_s3 + $0x80] sm:$0xff] }
 0x843   :  { %v5308_v49 = vadd.f32 %v3378_v58, %v2529_v23  ;;  %v2530_v14 = vmul.f32 %v5161_v13, %v2513_v30  ;;  %2314 = vperm.xlu1 %4109, %v4202_v11   ;;  %v4206_v58 = vpop.eup %4205  ;;  %v3351_v30 = vld [vmem:[%s5942_s0 + $0x48] sm:$0xff] }
 0x844   :  { %3396 = vst.msk [vmem:[%s5951_s12 + $0x70] sm:$0xff] %vm2074_vm2, %v5301_v40  ;;  %v2549_v45 = vadd.f32 %v3381_v5, %v2532_v28  ;;  %v3350_v28 = vld [vmem:[%s5942_s0 + $0x40] sm:$0xff] }
 0x845   :  { %3394 = vst.msk [vmem:[%s5951_s12 + $0x60] sm:$0xff] %vm2074_vm2, %v5308_v49  ;;  %v2547_v42 = vadd.f32 %v3379_v9, %v2530_v14  ;;  %3905 = vmatpush3.bf16.msra.mxu0 %v5065_v46  ;;  %v3424_v46 = vld [vmem:[%s5950_s3 + $0x90] sm:$0xff] }
 0x846   :  { %4209 = vtanh.f32 %v2549_v45  ;;  %3397 = vst.msk [vmem:[%s5951_s12 + $0x78] sm:$0xff] %vm2074_vm2, %v2549_v45  ;;  %3926 = vmatprep.subr.bf16.mxu0 %v5072_v2  ;;  %v4208_v45 = vpop.eup %4207 }
 0x847   :  { %3395 = vst.msk [vmem:[%s5951_s12 + $0x68] sm:$0xff] %vm2074_vm2, %v2547_v42  ;;  %2304 = vperm.xlu1 %4109, %v4204_v16   ;;  %v3976_v43 = vpop.f32.mrb[60].mxu1  ;;  %4211 = vtanh.f32 %v2544_v32  ;;  %v6005_v32 = vld [vmem:[#allocation4_spill] sm:$0xff] }
 0x848   :  { %v2805_v8 = vmul.f32 %v5161_v13, %v3976_v43  ;;  %v2772_v47 = vpop.f32.mrb[61].mxu1  ;;  %3907 = vmatmul.mubr.msk.bf16.vlgmr.msra.gmra.mrb[44].mxu0 %vm63_vm0, %v6004_v52  ;;  %4213 = vtanh.f32 %v2547_v42 }
 0x849   :  { %v2803_v15 = vmul.f32 %v5161_v13, %v2772_v47  ;;  %3927 = vmatpush3.bf16.msra.mxu0 %v5072_v2  ;;  %v3977_v6 = vpop.f32.mrb[62].mxu1  ;;  %3910 = vmatprep.mubr.msk.bf16.mxu0 %vm63_vm0, %v6005_v32  ;;  %v3423_v2 = vld [vmem:[%s5950_s3 + $0x88] sm:$0xff]  ;;  %4215 = vtanh.f32 %v5255_v57  ;;  %v2354_v57 = vpack.c.bf16 %v3351_v30, %v3350_v28  ;;  %v6006_v47 = vld [vmem:[#allocation5_spill] sm:$0xff] }
 0x84a   :  { %v5347_v23 = vadd.f32 %v3424_v46, %v2805_v8  ;;  %v2806_v31 = vmul.f32 %v5161_v13, %v3977_v6  ;;  %3928 = vmatprep.subr.bf16.mxu0 %v5086_v38  ;;  %v2775_v5 = vpop.f32.mrb[63].mxu1  ;;  %v3426_v8 = vld [vmem:[%s5950_s3 + $0xa0] sm:$0xff]  ;;  %v3353_v6 = vld [vmem:[%s5942_s0 + $0x58] sm:$0xff] }
 0x84b   :  { %v5354_v18 = vadd.f32 %v3422_v29, %v2803_v15  ;;  %v2804_v11 = vmul.f32 %v5161_v13, %v2775_v5  ;;  %2319 = vperm.xlu1 %4109, %v4206_v58   ;;  %v3352_v15 = vld [vmem:[%s5942_s0 + $0x50] sm:$0xff] }
 0x84c   :  { %3440 = vst.msk [vmem:[%s5951_s12 + $0x90] sm:$0xff] %vm2074_vm2, %v5347_v23  ;;  %v2823_v9 = vadd.f32 %v3425_v41, %v2806_v31  ;;  %v3427_v31 = vld [vmem:[%s5950_s3 + $0xa8] sm:$0xff]  ;;  %v2355_v30 = vpack.c.bf16 %v3353_v6, %v3352_v15  ;;  %v3401_v15 = vld [vmem:[%s5942_s0 + $0x98] sm:$0xff] }
 0x84d   :  { %3438 = vst.msk [vmem:[%s5951_s12 + $0x80] sm:$0xff] %vm2074_vm2, %v5354_v18  ;;  %v2821_v14 = vadd.f32 %v3423_v2, %v2804_v11  ;;  %3929 = vmatpush3.bf16.msra.mxu0 %v5086_v38  ;;  %v3428_v38 = vld [vmem:[%s5950_s3 + $0xb0] sm:$0xff] }
 0x84e   :  { %4217 = vtanh.f32 %v2823_v9  ;;  %3441 = vst.msk [vmem:[%s5951_s12 + $0x98] sm:$0xff] %vm2074_vm2, %v2823_v9  ;;  %3930 = vmatprep.subr.bf16.mxu0 %v5092_v39 }
 0x84f   :  { %3439 = vst.msk [vmem:[%s5951_s12 + $0x88] sm:$0xff] %vm2074_vm2, %v2821_v14  ;;  %v3980_v42 = vpop.f32.mrb[64].mxu1  ;;  %2309 = vperm.xlu1 %4109, %v4208_v45   ;;  %4219 = vtanh.f32 %v5262_v12  ;;  %v3429_v12 = vld [vmem:[%s5950_s3 + $0xb8] sm:$0xff] }
 0x850   :  { %v4210_v16 = vpop.eup %4209  ;;  %v2809_v43 = vmul.f32 %v5161_v13, %v3980_v42  ;;  %v2788_v46 = vpop.f32.mrb[65].mxu1  ;;  %3911 = vmatmul.mubr.msk.bf16.gmra.mrb[48].mxu0 %vm63_vm0, %v6006_v47  ;;  %4221 = vtanh.f32 %v2821_v14  ;;  %v3398_v47 = vld [vmem:[%s5942_s0 + $0x80] sm:$0xff] }
 0x851   :  { %v2807_v29 = vmul.f32 %v5161_v13, %v2788_v46  ;;  %2595 = vperm.xlu0 %4110, %v4210_v16   ;;  %3931 = vmatpush3.bf16.msra.mxu0 %v5092_v39  ;;  %v3981_v52 = vpop.f32.mrb[66].mxu1  ;;  %v4212_v41 = vpop.eup %4211  ;;  %4223 = vtanh.f32 %v5269_v10  ;;  %v3354_v16 = vld [vmem:[%s5942_s0 + $0x60] sm:$0xff]  ;;  %v3357_v46 = vld [vmem:[%s5942_s0 + $0x78] sm:$0xff] }
 0x852   :  { %v2826_v32 = vadd.f32 %v3428_v38, %v2809_v43  ;;  %v2810_v58 = vmul.f32 %v5161_v13, %v3981_v52  ;;  %3932 = vmatprep.subr.bf16.mxu0 %v5109_v34  ;;  %v2791_v39 = vpop.f32.mrb[67].mxu1  ;;  %3934 = vmatprep.mubr.msk.bf16.mxu0 %vm63_vm0, %v2354_v57  ;;  %v4214_v11 = vpop.eup %4213  ;;  %v3356_v43 = vld [vmem:[%s5942_s0 + $0x70] sm:$0xff] }
 0x853   :  { %v2824_v5 = vadd.f32 %v3426_v8, %v2807_v29  ;;  %v2808_v2 = vmul.f32 %v5161_v13, %v2791_v39  ;;  %2570 = vperm.xlu1 %4109, %v4212_v41   ;;  %v4216_v14 = vpop.eup %4215  ;;  %v2357_v8 = vpack.c.bf16 %v3357_v46, %v3356_v43  ;;  %v3399_v29 = vld [vmem:[%s5942_s0 + $0x88] sm:$0xff]  ;;  %v3402_v41 = vld [vmem:[%s5942_s0 + $0xa0] sm:$0xff]  ;;  %v6015_v46 = vmax.f32 %v4897_v51, 0.0 }
 0x854   :  { %3444 = vst.msk [vmem:[%s5951_s12 + $0xb0] sm:$0xff] %vm2074_vm2, %v2826_v32  ;;  %v2827_v28 = vadd.f32 %v3429_v12, %v2810_v58  ;;  %v2632_v52 = vpack.c.bf16 %v3399_v29, %v3398_v47  ;;  %v3400_v12 = vld [vmem:[%s5942_s0 + $0x90] sm:$0xff]  ;;  %v6016_v47 = vmax.f32 %v4997_v3, 0.0 }
 0x855   :  { %3442 = vst.msk [vmem:[%s5951_s12 + $0xa0] sm:$0xff] %vm2074_vm2, %v2824_v5  ;;  %v2825_v9 = vadd.f32 %v3427_v31, %v2808_v2  ;;  %2585 = vperm.xlu0 %4110, %v4214_v11   ;;  %3933 = vmatpush3.bf16.msra.mxu0 %v5109_v34  ;;  %v2633_v6 = vpack.c.bf16 %v3401_v15, %v3400_v12  ;;  %v3404_v58 = vld [vmem:[%s5942_s0 + $0xb0] sm:$0xff]  ;;  %v3405_v31 = vld [vmem:[%s5942_s0 + $0xb8] sm:$0xff]  ;;  %v3447_v2 = vld [vmem:[%s5942_s0 + $0xc8] sm:$0xff]  ;;  %v6018_v15 = vmax.f32 %v4999_v17, 0.0 }
 0x856   :  { %4225 = vtanh.f32 %v2827_v28  ;;  %3445 = vst.msk [vmem:[%s5951_s12 + $0xb8] sm:$0xff] %vm2074_vm2, %v2827_v28  ;;  %3954 = vmatprep.subr.bf16.mxu0 %v5116_v37  ;;  %v2635_v11 = vpack.c.bf16 %v3405_v31, %v3404_v58  ;;  %v6020_v58 = vmax.f32 %v5005_v54, 0.0  ;;  %v6021_v31 = vmax.f32 %v4903_v22, 0.0 }
 0x857   :  { %3443 = vst.msk [vmem:[%s5951_s12 + $0xa8] sm:$0xff] %vm2074_vm2, %v2825_v9  ;;  %2560 = vperm.xlu1 %4109, %v4216_v14   ;;  %4227 = vtanh.f32 %v5301_v40 }
 0x858   :  { %v4218_v10 = vpop.eup %4217  ;;  %3935 = vmatmul.mubr.msk.bf16.vlgmr.msra.gmra.mrb[52].mxu0 %vm63_vm0, %v2355_v30  ;;  %4229 = vtanh.f32 %v2825_v9 }
 0x859   :  { %2853 = vperm.xlu0 %4110, %v4218_v10   ;;  %3955 = vmatpush3.bf16.msra.mxu0 %v5116_v37  ;;  %v4220_v34 = vpop.eup %4219  ;;  %4231 = vtanh.f32 %v5308_v49 }
 0x85a   :  { %3956 = vmatprep.subr.bf16.mxu0 %v5130_v24  ;;  %v4222_v45 = vpop.eup %4221  ;;  %4233 = vtanh.f32 %v5347_v23 }
 0x85b   :  { %2575 = vperm.xlu1 %4109, %v4220_v34   ;;  %v4224_v57 = vpop.eup %4223  ;;  %4235 = vtanh.f32 %v5354_v18 }
 0x85c   :  { %4237 = vtanh.f32 %v2826_v32  ;;  %v3403_v32 = vld [vmem:[%s5942_s0 + $0xa8] sm:$0xff] }
 0x85d   :  { %2843 = vperm.xlu0 %4110, %v4222_v45   ;;  %3957 = vmatpush3.bf16.msra.mxu0 %v5130_v24  ;;  %4239 = vtanh.f32 %v2824_v5  ;;  %v2634_v39 = vpack.c.bf16 %v3403_v32, %v3402_v41  ;;  %v3446_v5 = vld [vmem:[%s5942_s0 + $0xc0] sm:$0xff]  ;;  %v6019_v41 = vmax.f32 %v4901_v21, 0.0 }
 0x85e   :  { %3958 = vmatprep.subr.bf16.mxu0 %v5136_v35  ;;  %v2910_v28 = vpack.c.bf16 %v3447_v2, %v3446_v5  ;;  %v6022_v2 = vmax.f32 %v5007_v26, 0.0 }
 0x85f   :  { %2565 = vperm.xlu1 %4109, %v4224_v57   ;;  %v6008_v57 = vmax.f32 %v4825_v59, 0.0 }
 0x860   :  { %v4226_v40 = vpop.eup %4225 }
 0x861   :  { %2873 = vperm.xlu0 %4110, %v4226_v40   ;;  %3959 = vmatpush3.bf16.msra.mxu0 %v5136_v35  ;;  %v4228_v37 = vpop.eup %4227 }
 0x862   :  { %3960 = vmatprep.subr.bf16.mxu0 %v5151_v36  ;;  %v4230_v42 = vpop.eup %4229 }
 0x863   :  { %2590 = vperm.xlu1 %4109, %v4228_v37   ;;  %v4232_v24 = vpop.eup %4231 }
 0x864   :  { %v4234_v49 = vpop.eup %4233 }
 0x865   :  { %2863 = vperm.xlu0 %4110, %v4230_v42   ;;  %3961 = vmatpush3.bf16.msra.mxu0 %v5151_v36  ;;  %v4236_v23 = vpop.eup %4235  ;;  %v3355_v36 = vld [vmem:[%s5942_s0 + $0x68] sm:$0xff]  ;;  %v6010_v42 = vmax.f32 %v4829_v61, 0.0 }
 0x866   :  { %v4238_v38 = vpop.eup %4237  ;;  %v2356_v18 = vpack.c.bf16 %v3355_v36, %v3354_v16  ;;  %v6013_v16 = vmax.f32 %v4895_v48, 0.0 }
 0x867   :  { %2580 = vperm.xlu1 %4109, %v4232_v24   ;;  %v4240_v35 = vpop.eup %4239 }
 0x868   :  { %3938 = vmatprep.mubr.msk.bf16.mxu0 %vm63_vm0, %v2356_v18  ;;  %v6014_v18 = vmax.f32 %v4909_v63, 0.0 }
 0x869   :  { %3939 = vmatmul.mubr.msk.bf16.gmra.mrb[56].mxu0 %vm63_vm0, %v2357_v8 }
 0x86a   :  { %3962 = vmatprep.mubr.msk.bf16.mxu0 %vm63_vm0, %v2632_v52  ;;  %v6017_v52 = vmax.f32 %v4899_v20, 0.0 }
 0x86b   :  { %2848 = vperm.xlu1 %4109, %v4234_v49   ;;  %v6011_v49 = vmax.f32 %v4831_v62, 0.0 }
 0x86f   :  { %2838 = vperm.xlu1 %4109, %v4236_v23  }
 0x871   :  { %3963 = vmatmul.mubr.msk.bf16.vlgmr.msra.gmra.mrb[60].mxu0 %vm63_vm0, %v2633_v6 }
 0x872   :  { %3966 = vmatprep.mubr.msk.bf16.mxu0 %vm63_vm0, %v2634_v39 }
 0x873   :  { %2868 = vperm.xlu1 %4109, %v4238_v38   ;;  %v6012_v38 = vmax.f32 %v4907_v7, 0.0 }
 0x877   :  { %2858 = vperm.xlu1 %4109, %v4240_v35  }
 0x879   :  { %3967 = vmatmul.mubr.msk.bf16.gmra.mrb[64].mxu0 %vm63_vm0, %v2635_v11 }
 0x87a   :  { %3990 = vmatprep.mubr.msk.bf16.mxu0 %vm63_vm0, %v2910_v28  ;;  %v6023_v28 = vmax.f32 %v4905_v25, 0.0 }
 0x8b6   :  { %v2295_v30 = vpop.permute.xlu1 %2294 }
 0x8b7   :  { %v2324_v9 = vmul.f32 %v2295_v30, %v890_v1  ;;  %v2285_v14 = vpop.permute.xlu0 %2284 }
 0x8b8   :  { %v2322_v10 = vmul.f32 %v2285_v14, %v888_v19 }
 0x8b9   :  { %2332 = vst.msk [vmem:[%s5952_s11 + $0x10] sm:$0xff] %vm2162_vm3, %v2324_v9  ;;  %v6024_v9 = vmax.f32 %v4993_v33, 0.0 }
 0x8ba   :  { %2330 = vst.msk [vmem:[%s5952_s11] sm:$0xff] %vm2162_vm3, %v2322_v10  ;;  %v2300_v34 = vpop.permute.xlu1 %2299  ;;  %v6025_v10 = vmax.f32 %v4995_v0, 0.0 }
 0x8bb   :  { %v2325_v45 = vmul.f32 %v2300_v34, %v891_v44  ;;  %v6009_v44 = vmax.f32 %v4827_v60, 0.0 }
 0x8bd   :  { %2333 = vst.msk [vmem:[%s5952_s11 + $0x18] sm:$0xff] %vm2162_vm3, %v2325_v45  ;;  %v6026_v45 = vmax.f32 %v5001_v4, 0.0 }
 0x8be   :  { %v2290_v50 = vpop.permute.xlu1 %2289 }
 0x8bf   :  { %v2323_v19 = vmul.f32 %v2290_v50, %v6007_v53  ;;  %v6027_v53 = vmax.f32 %v5003_v27, 0.0 }
 0x8c1   :  { %2331 = vst.msk [vmem:[%s5952_s11 + $0x8] sm:$0xff] %vm2162_vm3, %v2323_v19 }
 0x8c2   :  { %v2315_v1 = vpop.permute.xlu1 %2314 }
 0x8c3   :  { %v2328_v40 = vmul.f32 %v2315_v1, %v6008_v57 }
 0x8c5   :  { %2336 = vst.msk [vmem:[%s5952_s11 + $0x30] sm:$0xff] %vm2162_vm3, %v2328_v40 }
 0x8c6   :  { %v2305_v55 = vpop.permute.xlu1 %2304 }
 0x8c7   :  { %v2326_v37 = vmul.f32 %v2305_v55, %v6009_v44 }
 0x8c9   :  { %2334 = vst.msk [vmem:[%s5952_s11 + $0x20] sm:$0xff] %vm2162_vm3, %v2326_v37 }
 0x8ca   :  { %v2320_v56 = vpop.permute.xlu1 %2319 }
 0x8cb   :  { %v2329_v24 = vmul.f32 %v2320_v56, %v6010_v42 }
 0x8cd   :  { %2337 = vst.msk [vmem:[%s5952_s11 + $0x38] sm:$0xff] %vm2162_vm3, %v2329_v24 }
 0x8ce   :  { %v2310_v59 = vpop.permute.xlu1 %2309 }
 0x8cf   :  { %v2327_v23 = vmul.f32 %v2310_v59, %v6011_v49 }
 0x8d0   :  { %v2596_v60 = vpop.permute.xlu0 %2595 }
 0x8d1   :  { %2335 = vst.msk [vmem:[%s5952_s11 + $0x28] sm:$0xff] %vm2162_vm3, %v2327_v23  ;;  %v2605_v35 = vmul.f32 %v2596_v60, %v6012_v38 }
 0x8d2   :  { %v2571_v61 = vpop.permute.xlu1 %2570 }
 0x8d3   :  { %3389 = vst.msk [vmem:[%s5952_s11 + $0x78] sm:$0xff] %vm2162_vm3, %v2605_v35  ;;  %v2600_v36 = vmul.f32 %v2571_v61, %v6013_v16 }
 0x8d4   :  { %v2586_v62 = vpop.permute.xlu0 %2585 }
 0x8d5   :  { %3384 = vst.msk [vmem:[%s5952_s11 + $0x50] sm:$0xff] %vm2162_vm3, %v2600_v36  ;;  %v2603_v43 = vmul.f32 %v2586_v62, %v6014_v18  ;;  %v3448_v36 = vld [vmem:[%s5942_s0 + $0xd0] sm:$0xff]  ;;  %v3449_v62 = vld [vmem:[%s5942_s0 + $0xd8] sm:$0xff]  ;;  %v3450_v18 = vld [vmem:[%s5942_s0 + $0xe0] sm:$0xff] }
 0x8d6   :  { %v2561_v7 = vpop.permute.xlu1 %2560 }
 0x8d7   :  { %3387 = vst.msk [vmem:[%s5952_s11 + $0x68] sm:$0xff] %vm2162_vm3, %v2603_v43  ;;  %v2598_v8 = vmul.f32 %v2561_v7, %v6015_v46  ;;  %v3451_v43 = vld [vmem:[%s5942_s0 + $0xe8] sm:$0xff]  ;;  %v2911_v7 = vpack.c.bf16 %v3449_v62, %v3448_v36 }
 0x8d8   :  { %v2854_v48 = vpop.permute.xlu0 %2853  ;;  %v2912_v46 = vpack.c.bf16 %v3451_v43, %v3450_v18  ;;  %v3474_v18 = vld [vmem:[%s5950_s3 + $0xe0] sm:$0xff] }
 0x8d9   :  { %3382 = vst.msk [vmem:[%s5952_s11 + $0x40] sm:$0xff] %vm2162_vm3, %v2598_v8  ;;  %v2879_v29 = vmul.f32 %v2854_v48, %v6016_v47  ;;  %v3452_v8 = vld [vmem:[%s5942_s0 + $0xf0] sm:$0xff]  ;;  %v3453_v48 = vld [vmem:[%s5942_s0 + $0xf8] sm:$0xff] }
 0x8da   :  { %v2576_v63 = vpop.permute.xlu1 %2575  ;;  %v2913_v47 = vpack.c.bf16 %v3453_v48, %v3452_v8 }
 0x8db   :  { %3433 = vst.msk [vmem:[%s5952_s11 + $0x98] sm:$0xff] %vm2162_vm3, %v2879_v29  ;;  %v2601_v12 = vmul.f32 %v2576_v63, %v6017_v52 }
 0x8dc   :  { %v2844_v51 = vpop.permute.xlu0 %2843 }
 0x8dd   :  { %3385 = vst.msk [vmem:[%s5952_s11 + $0x58] sm:$0xff] %vm2162_vm3, %v2601_v12  ;;  %v2877_v6 = vmul.f32 %v2844_v51, %v6018_v15 }
 0x8de   :  { %v2566_v3 = vpop.permute.xlu1 %2565 }
 0x8df   :  { %3431 = vst.msk [vmem:[%s5952_s11 + $0x88] sm:$0xff] %vm2162_vm3, %v2877_v6  ;;  %v2599_v32 = vmul.f32 %v2566_v3, %v6019_v41 }
 0x8e0   :  { %v2874_v20 = vpop.permute.xlu0 %2873 }
 0x8e1   :  { %3383 = vst.msk [vmem:[%s5952_s11 + $0x48] sm:$0xff] %vm2162_vm3, %v2599_v32  ;;  %v2883_v39 = vmul.f32 %v2874_v20, %v6020_v58 }
 0x8e2   :  { %v2591_v17 = vpop.permute.xlu1 %2590 }
 0x8e3   :  { %3437 = vst.msk [vmem:[%s5952_s11 + $0xb8] sm:$0xff] %vm2162_vm3, %v2883_v39  ;;  %v2604_v5 = vmul.f32 %v2591_v17, %v6021_v31 }
 0x8e4   :  { %v2864_v21 = vpop.permute.xlu0 %2863 }
 0x8e5   :  { %3388 = vst.msk [vmem:[%s5952_s11 + $0x70] sm:$0xff] %vm2162_vm3, %v2604_v5  ;;  %v2881_v11 = vmul.f32 %v2864_v21, %v6022_v2  ;;  %v3472_v2 = vld [vmem:[%s5950_s3 + $0xd0] sm:$0xff] }
 0x8e6   :  { %v2581_v54 = vpop.permute.xlu1 %2580 }
 0x8e7   :  { %3435 = vst.msk [vmem:[%s5952_s11 + $0xa8] sm:$0xff] %vm2162_vm3, %v2881_v11  ;;  %v2602_v30 = vmul.f32 %v2581_v54, %v6023_v28  ;;  %v3470_v28 = vld [vmem:[%s5950_s3 + $0xc0] sm:$0xff] }
 0x8e9   :  { %3386 = vst.msk [vmem:[%s5952_s11 + $0x60] sm:$0xff] %vm2162_vm3, %v2602_v30 }
 0x8ea   :  { %v2849_v22 = vpop.permute.xlu1 %2848 }
 0x8eb   :  { %v2878_v14 = vmul.f32 %v2849_v22, %v6024_v9  ;;  %v3473_v9 = vld [vmem:[%s5950_s3 + $0xd8] sm:$0xff] }
 0x8ed   :  { %3432 = vst.msk [vmem:[%s5952_s11 + $0x90] sm:$0xff] %vm2162_vm3, %v2878_v14 }
 0x8ee   :  { %v2839_v26 = vpop.permute.xlu1 %2838 }
 0x8ef   :  { %v2876_v34 = vmul.f32 %v2839_v26, %v6025_v10 }
 0x8f1   :  { %3430 = vst.msk [vmem:[%s5952_s11 + $0x80] sm:$0xff] %vm2162_vm3, %v2876_v34  ;;  %v3471_v34 = vld [vmem:[%s5950_s3 + $0xc8] sm:$0xff] }
 0x8f2   :  { %v2869_v25 = vpop.permute.xlu1 %2868 }
 0x8f3   :  { %v2882_v50 = vmul.f32 %v2869_v25, %v6026_v45 }
 0x8f5   :  { %3436 = vst.msk [vmem:[%s5952_s11 + $0xb0] sm:$0xff] %vm2162_vm3, %v2882_v50 }
 0x8f6   :  { %v2859_v33 = vpop.permute.xlu1 %2858 }
 0x8f7   :  { %v2880_v19 = vmul.f32 %v2859_v33, %v6027_v53 }
 0x8f9   :  { %3434 = vst.msk [vmem:[%s5952_s11 + $0xa0] sm:$0xff] %vm2162_vm3, %v2880_v19 }
 0x90b   :  { %v5636_v0 = vpop.f32.mrb[36].mxu0 }
 0x90c   :  { %v5638_v1 = vpop.f32.mrb[37].mxu0  ;;  %v2060_v44 = vmax.f32 %v5636_v0, 0.0 }
 0x90d   :  { %v5640_v4 = vpop.f32.mrb[38].mxu0  ;;  %v2058_v55 = vmax.f32 %v5638_v1, 0.0 }
 0x90e   :  { %v2061_v57 = vmax.f32 %v5640_v4, 0.0  ;;  %v5643_v40 = vpop.f32.mrb[39].mxu0 }
 0x90f   :  { %v2059_v27 = vmax.f32 %v5643_v40, 0.0 }
 0x910   :  { %v2915_v56 = vpack.c.bf16 %v2061_v57, %v2060_v44 }
 0x911   :  { %v2914_v37 = vpack.c.bf16 %v2059_v27, %v2058_v55 }
 0x913   :  { %v5656_v42 = vpop.f32.mrb[40].mxu0  ;;  %3982 = vmatprep.subr.bf16.mxu0 %v2914_v37  ;;  %4002 = vmatprep.mubr.msk.bf16.mxu1 %vm2162_vm3, %v2914_v37 }
 0x914   :  { %v5659_v24 = vpop.f32.mrb[41].mxu0  ;;  %3983 = vmatpush3.bf16.msra.mxu0 %v2914_v37  ;;  %4003 = vmatmul.mubr.msk.bf16.vlgmr.msra.gmra.mrb[68].mxu1 %vm2162_vm3, %v2915_v56  ;;  %v2064_v35 = vmax.f32 %v5656_v42, 0.0 }
 0x915   :  { %v5662_v59 = vpop.f32.mrb[42].mxu0  ;;  %3984 = vmatprep.subr.bf16.mxu0 %v2915_v56  ;;  %v2062_v60 = vmax.f32 %v5659_v24, 0.0 }
 0x916   :  { %v2065_v49 = vmax.f32 %v5662_v59, 0.0  ;;  %v5665_v23 = vpop.f32.mrb[43].mxu0 }
 0x917   :  { %v2063_v38 = vmax.f32 %v5665_v23, 0.0 }
 0x918   :  { %3985 = vmatpush3.bf16.msra.mxu0 %v2915_v56  ;;  %v2917_v16 = vpack.c.bf16 %v2065_v49, %v2064_v35 }
 0x919   :  { %v2916_v61 = vpack.c.bf16 %v2063_v38, %v2062_v60 }
 0x91b   :  { %3986 = vmatprep.subr.bf16.mxu0 %v2916_v61  ;;  %4006 = vmatprep.mubr.msk.bf16.mxu1 %vm2162_vm3, %v2916_v61  ;;  %v3908_v29 = vpop.f32.mrb[44].mxu0 }
 0x91c   :  { %3987 = vmatpush3.bf16.msra.mxu0 %v2916_v61  ;;  %4007 = vmatmul.mubr.msk.bf16.gmra.mrb[72].mxu1 %vm2162_vm3, %v2917_v16  ;;  %2165 = vst.msk [vmem:[%s5953_s10 + $0x10] sm:$0xff] %vm2162_vm3, %v3908_v29  ;;  %v2131_v63 = vpop.f32.mrb[45].mxu0  ;;  %v3475_v29 = vld [vmem:[%s5950_s3 + $0xe8] sm:$0xff] }
 0x91d   :  { %3988 = vmatprep.subr.bf16.mxu0 %v2917_v16  ;;  %2163 = vst.msk [vmem:[%s5953_s10] sm:$0xff] %vm2162_vm3, %v2131_v63  ;;  %v3909_v52 = vpop.f32.mrb[46].mxu0 }
 0x91e   :  { %2166 = vst.msk [vmem:[%s5953_s10 + $0x18] sm:$0xff] %vm2162_vm3, %v3909_v52  ;;  %v2134_v12 = vpop.f32.mrb[47].mxu0 }
 0x91f   :  { %2164 = vst.msk [vmem:[%s5953_s10 + $0x8] sm:$0xff] %vm2162_vm3, %v2134_v12 }
 0x920   :  { %3989 = vmatpush3.bf16.msra.mxu0 %v2917_v16  ;;  %v3476_v16 = vld [vmem:[%s5950_s3 + $0xf0] sm:$0xff] }
 0x923   :  { %3991 = vmatmul.mubr.msk.bf16.vlgmr.msra.gmra.mrb[68].mxu0 %vm63_vm0, %v2911_v7  ;;  %v3912_v51 = vpop.f32.mrb[48].mxu0 }
 0x924   :  { %3994 = vmatprep.mubr.msk.bf16.mxu0 %vm63_vm0, %v2912_v46  ;;  %2169 = vst.msk [vmem:[%s5953_s10 + $0x30] sm:$0xff] %vm2162_vm3, %v3912_v51  ;;  %v2147_v15 = vpop.f32.mrb[49].mxu0  ;;  %v3477_v46 = vld [vmem:[%s5950_s3 + $0xf8] sm:$0xff] }
 0x925   :  { %2167 = vst.msk [vmem:[%s5953_s10 + $0x20] sm:$0xff] %vm2162_vm3, %v2147_v15  ;;  %v3913_v6 = vpop.f32.mrb[50].mxu0 }
 0x926   :  { %2170 = vst.msk [vmem:[%s5953_s10 + $0x38] sm:$0xff] %vm2162_vm3, %v3913_v6  ;;  %v2150_v3 = vpop.f32.mrb[51].mxu0 }
 0x927   :  { %2168 = vst.msk [vmem:[%s5953_s10 + $0x28] sm:$0xff] %vm2162_vm3, %v2150_v3 }
 0x92b   :  { %3995 = vmatmul.mubr.msk.bf16.gmra.mrb[72].mxu0 %vm63_vm0, %v2913_v47  ;;  %v3936_v41 = vpop.f32.mrb[52].mxu0 }
 0x92c   :  { %3364 = vst.msk [vmem:[%s5953_s10 + $0x50] sm:$0xff] %vm2162_vm3, %v3936_v41  ;;  %v2408_v32 = vpop.f32.mrb[53].mxu0 }
 0x92d   :  { %3362 = vst.msk [vmem:[%s5953_s10 + $0x40] sm:$0xff] %vm2162_vm3, %v2408_v32  ;;  %v3937_v20 = vpop.f32.mrb[54].mxu0 }
 0x92e   :  { %3365 = vst.msk [vmem:[%s5953_s10 + $0x58] sm:$0xff] %vm2162_vm3, %v3937_v20  ;;  %v2411_v58 = vpop.f32.mrb[55].mxu0 }
 0x92f   :  { %3363 = vst.msk [vmem:[%s5953_s10 + $0x48] sm:$0xff] %vm2162_vm3, %v2411_v58 }
 0x93c   :  { %v3940_v39 = vpop.f32.mrb[56].mxu0 }
 0x93d   :  { %3368 = vst.msk [vmem:[%s5953_s10 + $0x70] sm:$0xff] %vm2162_vm3, %v3940_v39  ;;  %v2424_v17 = vpop.f32.mrb[57].mxu0 }
 0x93e   :  { %3366 = vst.msk [vmem:[%s5953_s10 + $0x60] sm:$0xff] %vm2162_vm3, %v2424_v17  ;;  %v3941_v31 = vpop.f32.mrb[58].mxu0 }
 0x93f   :  { %3369 = vst.msk [vmem:[%s5953_s10 + $0x78] sm:$0xff] %vm2162_vm3, %v3941_v31  ;;  %v2427_v5 = vpop.f32.mrb[59].mxu0 }
 0x940   :  { %3367 = vst.msk [vmem:[%s5953_s10 + $0x68] sm:$0xff] %vm2162_vm3, %v2427_v5 }
 0x944   :  { %v3964_v25 = vpop.f32.mrb[60].mxu0 }
 0x945   :  { %3412 = vst.msk [vmem:[%s5953_s10 + $0x90] sm:$0xff] %vm2162_vm3, %v3964_v25  ;;  %v2686_v33 = vpop.f32.mrb[61].mxu0 }
 0x946   :  { %3410 = vst.msk [vmem:[%s5953_s10 + $0x80] sm:$0xff] %vm2162_vm3, %v2686_v33  ;;  %v3965_v19 = vpop.f32.mrb[62].mxu0 }
 0x947   :  { %3413 = vst.msk [vmem:[%s5953_s10 + $0x98] sm:$0xff] %vm2162_vm3, %v3965_v19  ;;  %v2689_v56 = vpop.f32.mrb[63].mxu0 }
 0x948   :  { %3411 = vst.msk [vmem:[%s5953_s10 + $0x88] sm:$0xff] %vm2162_vm3, %v2689_v56 }
 0x94c   :  { %v3968_v63 = vpop.f32.mrb[64].mxu0 }
 0x94d   :  { %3416 = vst.msk [vmem:[%s5953_s10 + $0xb0] sm:$0xff] %vm2162_vm3, %v3968_v63  ;;  %v2702_v51 = vpop.f32.mrb[65].mxu0 }
 0x94e   :  { %3414 = vst.msk [vmem:[%s5953_s10 + $0xa0] sm:$0xff] %vm2162_vm3, %v2702_v51  ;;  %v3969_v6 = vpop.f32.mrb[66].mxu0 }
 0x94f   :  { %3417 = vst.msk [vmem:[%s5953_s10 + $0xb8] sm:$0xff] %vm2162_vm3, %v3969_v6  ;;  %v2705_v3 = vpop.f32.mrb[67].mxu0 }
 0x950   :  { %3415 = vst.msk [vmem:[%s5953_s10 + $0xa8] sm:$0xff] %vm2162_vm3, %v2705_v3 }
 0x9e7   :  { %v4004_v21 = vpop.f32.mrb[68].mxu1 }
 0x9e8   :  { %v3083_v11 = vmul.f32 %v5161_v13, %v4004_v21  ;;  %v3050_v54 = vpop.f32.mrb[69].mxu1 }
 0x9e9   :  { %v3081_v30 = vmul.f32 %v5161_v13, %v3050_v54  ;;  %v4005_v22 = vpop.f32.mrb[70].mxu1 }
 0x9ea   :  { %v3100_v14 = vadd.f32 %v3472_v2, %v3083_v11  ;;  %v3084_v26 = vmul.f32 %v5161_v13, %v4005_v22  ;;  %v3053_v10 = vpop.f32.mrb[71].mxu1 }
 0x9eb   :  { %v3098_v45 = vadd.f32 %v3470_v28, %v3081_v30  ;;  %v3082_v50 = vmul.f32 %v5161_v13, %v3053_v10 }
 0x9ec   :  { %4241 = vtanh.f32 %v3100_v14  ;;  %3488 = vst.msk [vmem:[%s5951_s12 + $0xd0] sm:$0xff] %vm2074_vm2, %v3100_v14  ;;  %v3101_v53 = vadd.f32 %v3473_v9, %v3084_v26 }
 0x9ed   :  { %3486 = vst.msk [vmem:[%s5951_s12 + $0xc0] sm:$0xff] %vm2074_vm2, %v3098_v45  ;;  %v3099_v37 = vadd.f32 %v3471_v34, %v3082_v50 }
 0x9ee   :  { %4243 = vtanh.f32 %v3101_v53  ;;  %3489 = vst.msk [vmem:[%s5951_s12 + $0xd8] sm:$0xff] %vm2074_vm2, %v3101_v53 }
 0x9ef   :  { %3487 = vst.msk [vmem:[%s5951_s12 + $0xc8] sm:$0xff] %vm2074_vm2, %v3099_v37  ;;  %v4008_v61 = vpop.f32.mrb[72].mxu1  ;;  %4245 = vtanh.f32 %v3098_v45 }
 0x9f0   :  { %v3087_v36 = vmul.f32 %v5161_v13, %v4008_v61  ;;  %v3066_v62 = vpop.f32.mrb[73].mxu1  ;;  %4247 = vtanh.f32 %v3099_v37 }
 0x9f1   :  { %v3085_v43 = vmul.f32 %v5161_v13, %v3066_v62  ;;  %v4009_v7 = vpop.f32.mrb[74].mxu1 }
 0x9f2   :  { %v3104_v8 = vadd.f32 %v3476_v16, %v3087_v36  ;;  %v3088_v48 = vmul.f32 %v5161_v13, %v4009_v7  ;;  %v3069_v47 = vpop.f32.mrb[75].mxu1 }
 0x9f3   :  { %v3102_v52 = vadd.f32 %v3474_v18, %v3085_v43  ;;  %v3086_v12 = vmul.f32 %v5161_v13, %v3069_v47 }
 0x9f4   :  { %3492 = vst.msk [vmem:[%s5951_s12 + $0xf0] sm:$0xff] %vm2074_vm2, %v3104_v8  ;;  %v3105_v15 = vadd.f32 %v3477_v46, %v3088_v48 }
 0x9f5   :  { %4249 = vtanh.f32 %v3102_v52  ;;  %3490 = vst.msk [vmem:[%s5951_s12 + $0xe0] sm:$0xff] %vm2074_vm2, %v3102_v52  ;;  %v3103_v13 = vadd.f32 %v3475_v29, %v3086_v12 }
 0x9f6   :  { %v4242_v41 = vpop.eup %4241  ;;  %3493 = vst.msk [vmem:[%s5951_s12 + $0xf8] sm:$0xff] %vm2074_vm2, %v3105_v15  ;;  %v3992_v58 = vpop.f32.mrb[68].mxu0 }
 0x9f7   :  { %4251 = vtanh.f32 %v3103_v13  ;;  %3491 = vst.msk [vmem:[%s5951_s12 + $0xe8] sm:$0xff] %vm2074_vm2, %v3103_v13  ;;  %3126 = vperm.xlu1 %4109, %v4242_v41   ;;  %v2964_v39 = vpop.f32.mrb[69].mxu0 }
 0x9f8   :  { %v4244_v32 = vpop.eup %4243  ;;  %4253 = vtanh.f32 %v3104_v8  ;;  %3460 = vst.msk [vmem:[%s5953_s10 + $0xd0] sm:$0xff] %vm2162_vm3, %v3992_v58  ;;  %3458 = vst.msk [vmem:[%s5953_s10 + $0xc0] sm:$0xff] %vm2162_vm3, %v2964_v39  ;;  %v3993_v31 = vpop.f32.mrb[70].mxu0 }
 0x9f9   :  { %3131 = vperm.xlu0 %4110, %v4244_v32   ;;  %v4246_v20 = vpop.eup %4245  ;;  %4255 = vtanh.f32 %v3105_v15  ;;  %3461 = vst.msk [vmem:[%s5953_s10 + $0xd8] sm:$0xff] %vm2162_vm3, %v3993_v31  ;;  %v2967_v5 = vpop.f32.mrb[71].mxu0 }
 0x9fa   :  { %v4248_v17 = vpop.eup %4247  ;;  %3459 = vst.msk [vmem:[%s5953_s10 + $0xc8] sm:$0xff] %vm2162_vm3, %v2967_v5 }
 0x9fb   :  { %3116 = vperm.xlu1 %4109, %v4246_v20  }
 0x9fd   :  { %3121 = vperm.xlu0 %4110, %v4248_v17  }
 0x9fe   :  { %v3996_v11 = vpop.f32.mrb[72].mxu0 }
 0x9ff   :  { %v4250_v21 = vpop.eup %4249  ;;  %3464 = vst.msk [vmem:[%s5953_s10 + $0xf0] sm:$0xff] %vm2162_vm3, %v3996_v11  ;;  %v2980_v28 = vpop.f32.mrb[73].mxu0 }
 0xa00   :  { %3136 = vperm.xlu1 %4109, %v4250_v21   ;;  %3462 = vst.msk [vmem:[%s5953_s10 + $0xe0] sm:$0xff] %vm2162_vm3, %v2980_v28  ;;  %v3997_v30 = vpop.f32.mrb[74].mxu0 }
 0xa01   :  { %v4252_v2 = vpop.eup %4251  ;;  %3465 = vst.msk [vmem:[%s5953_s10 + $0xf8] sm:$0xff] %vm2162_vm3, %v3997_v30  ;;  %v2983_v9 = vpop.f32.mrb[75].mxu0 }
 0xa02   :  { %3141 = vperm.xlu0 %4110, %v4252_v2   ;;  %v4254_v54 = vpop.eup %4253  ;;  %3463 = vst.msk [vmem:[%s5953_s10 + $0xe8] sm:$0xff] %vm2162_vm3, %v2983_v9 }
 0xa03   :  { %v4256_v22 = vpop.eup %4255 }
 0xa04   :  { %3146 = vperm.xlu1 %4109, %v4254_v54  }
 0xa06   :  { %3151 = vperm.xlu0 %4110, %v4256_v22  }
 0xa76   :  { %v3127_v14 = vpop.permute.xlu1 %3126 }
 0xa77   :  { %v3156_v26 = vmul.f32 %v3127_v14, %v2060_v44 }
 0xa78   :  { %v3132_v10 = vpop.permute.xlu0 %3131 }
 0xa79   :  { %3480 = vst.msk [vmem:[%s5952_s11 + $0xd0] sm:$0xff] %vm2162_vm3, %v3156_v26  ;;  %v3157_v34 = vmul.f32 %v3132_v10, %v2061_v57 }
 0xa7a   :  { %v3117_v25 = vpop.permute.xlu1 %3116 }
 0xa7b   :  { %3481 = vst.msk [vmem:[%s5952_s11 + $0xd8] sm:$0xff] %vm2162_vm3, %v3157_v34  ;;  %v3154_v45 = vmul.f32 %v3117_v25, %v2058_v55 }
 0xa7c   :  { %v3122_v0 = vpop.permute.xlu0 %3121 }
 0xa7d   :  { %3478 = vst.msk [vmem:[%s5952_s11 + $0xc0] sm:$0xff] %vm2162_vm3, %v3154_v45  ;;  %v3155_v44 = vmul.f32 %v3122_v0, %v2059_v27 }
 0xa7f   :  { %3479 = vst.msk [vmem:[%s5952_s11 + $0xc8] sm:$0xff] %vm2162_vm3, %v3155_v44  ;;  %v3137_v4 = vpop.permute.xlu1 %3136 }
 0xa80   :  { %v3158_v57 = vmul.f32 %v3137_v4, %v2062_v60 }
 0xa81   :  { %v3142_v1 = vpop.permute.xlu0 %3141 }
 0xa82   :  { %3482 = vst.msk [vmem:[%s5952_s11 + $0xe0] sm:$0xff] %vm2162_vm3, %v3158_v57  ;;  %v3159_v55 = vmul.f32 %v3142_v1, %v2063_v38 }
 0xa83   :  { %v3147_v40 = vpop.permute.xlu1 %3146 }
 0xa84   :  { %3483 = vst.msk [vmem:[%s5952_s11 + $0xe8] sm:$0xff] %vm2162_vm3, %v3159_v55  ;;  %v3160_v27 = vmul.f32 %v3147_v40, %v2064_v35 }
 0xa85   :  { %v3152_v24 = vpop.permute.xlu0 %3151 }
 0xa86   :  { %3484 = vst.msk [vmem:[%s5952_s11 + $0xf0] sm:$0xff] %vm2162_vm3, %v3160_v27  ;;  %v3161_v60 = vmul.f32 %v3152_v24, %v2065_v49 }
 0xa88   :  { %3485 = vst.msk [vmem:[%s5952_s11 + $0xf8] sm:$0xff] %vm2162_vm3, %v3161_v60 }

// kernel: egcn_lstm_forward.3
= control target key start
LH: loop header
LB: loop body
LE: loop exit
PB: predicated region body
PF: predicated region fallthrough
CT: control target
= control target key end

     0   :  { %vm106_vm0 = vcmask 261120   ;;  %vm2313_vm1 = vcmask 1041408   ;;  %vm2264_vm2 = vcmask 162816   ;;  %s6869_s24 = smov 32   ;;  %vm5037_vm3 = vcmask 64512   ;;  %s9103_s1 = inlined_call_operand.vmem [shape: f32[4,32,32], index: 1, kind: input, shape index: {}]   ;;  %s9104_s3 = inlined_call_operand.vmem [shape: f32[96,32], index: 3, kind: input, shape index: {}]   ;;  %s9105_s7 = inlined_call_operand.vmem [shape: f32[32,32], index: 7, kind: input, shape index: {}]   ;;  %s9106_s4 = inlined_call_operand.vmem [shape: f32[64,32], index: 4, kind: input, shape index: {}]   ;;  %s9107_s5 = inlined_call_operand.vmem [shape: f32[32,32], index: 5, kind: input, shape index: {}]   ;;  %s9108_s6 = inlined_call_operand.vmem [shape: f32[96,32], index: 6, kind: input, shape index: {}]   ;;  %s9109_s0 = inlined_call_operand.vmem [shape: f32[4,64,32], index: 0, kind: input, shape index: {}]   ;;  %s9110_s8 = inlined_call_operand.vmem [shape: f32[32,128], index: 8, kind: input, shape index: {}]   ;;  %s9111_s10 = inlined_call_operand.vmem [shape: f32[32,128], index: 10, kind: input, shape index: {}]   ;;  %s9112_s9 = inlined_call_operand.vmem [shape: f32[20,128], index: 9, kind: input, shape index: {}]   ;;  %s9113_s2 = inlined_call_operand.vmem [shape: f32[256,20], index: 2, kind: input, shape index: {}]   ;;  %s9114_s11 = inlined_call_operand.vmem [shape: f32[1,128], index: 11, kind: input, shape index: {}]   ;;  %s9115_s12 = inlined_call_operand.vmem [shape: f32[1,32], index: 12, kind: input, shape index: {}]   ;;  %s9116_s13 = inlined_call_operand.<no memory space> [shape: f32[1,1], index: 13, kind: input, shape index: {}]   ;;  %s9117_s14 = inlined_call_operand.vmem [shape: f32[32,128], index: 14, kind: input, shape index: {}]   ;;  %s9118_s16 = inlined_call_operand.vmem [shape: f32[128,8], index: 16, kind: input, shape index: {}]   ;;  %s9119_s15 = inlined_call_operand.vmem [shape: f32[1,128], index: 15, kind: input, shape index: {}]   ;;  %s9120_s17 = inlined_call_operand.vmem [shape: f32[1,8], index: 17, kind: input, shape index: {}]   ;;  %s9121_s18 = inlined_call_operand.vmem [shape: f32[64,8], index: 18, kind: output, shape index: {}]  }
   0x1   :  { %9145 = sst [smem:[#allocation25_spill]] %s9103_s1  ;;  %v7059_v20 = vld [vmem:[%s9106_s4] sm:$0xff]  ;;  %v7068_v21 = vld [vmem:[%s9106_s4 + $0x8] sm:$0xff]  ;;  %v7073_v22 = vld [vmem:[%s9106_s4 + $0x10] sm:$0xff] }
   0x2   :  { %9146 = sst [smem:[#allocation26_spill]] %s9104_s3  ;;  %s9148_s29 = sld [smem:[#allocation25_spill]]  ;;  %v7082_v23 = vld [vmem:[%s9106_s4 + $0x18] sm:$0xff]  ;;  %v7087_v24 = vld [vmem:[%s9106_s4 + $0x20] sm:$0xff]  ;;  %v7096_v25 = vld [vmem:[%s9106_s4 + $0x28] sm:$0xff] }
   0x3   :  { %9147 = sst [smem:[#allocation27_spill]] %s9105_s7  ;;  %s9149_s23 = sld [smem:[#allocation26_spill]]  ;;  %v7101_v26 = vld [vmem:[%s9106_s4 + $0x30] sm:$0xff]  ;;  %v7110_v27 = vld [vmem:[%s9106_s4 + $0x38] sm:$0xff]  ;;  %v7136_v31 = vld [vmem:[%s9107_s5] sm:$0xff] }
   0x4   :  { %s9150_s26 = sld [smem:[#allocation27_spill]]  ;;  %v7160_v37 = vld [vmem:[%s9108_s6 + $0x28] sm:$0xff]  ;;  %v7165_v38 = vld [vmem:[%s9108_s6 + $0x20] sm:$0xff]  ;;  %v7172_v43 = vld [vmem:[%s9108_s6 + $0x38] sm:$0xff] }
   0x5   :  { %v7177_v45 = vld [vmem:[%s9108_s6 + $0x30] sm:$0xff] }
   0x8   :  { %v102_v0 = vld [vmem:[%s9148_s29] sm:$0xff]  ;;  %v103_v1 = vld [vmem:[%s9148_s29 + $0x8] sm:$0xff]  ;;  %v104_v2 = vld [vmem:[%s9148_s29 + $0x10] sm:$0xff] }
   0x9   :  { %v6005_v3 = vpack.c.bf16 %v103_v1, %v102_v0  ;;  %v105_v4 = vld [vmem:[%s9148_s29 + $0x18] sm:$0xff]  ;;  %v6981_v5 = vld [vmem:[%s9149_s23] sm:$0xff]  ;;  %v7010_v12 = vld [vmem:[%s9149_s23 + $0x8] sm:$0xff] }
   0xa   :  { %v6009_v6 = vpack.c.bf16 %v105_v4, %v104_v2  ;;  %5569 = vmatprep.mubr.msk.f32.mxu0 %vm106_vm0, %v6981_v5  ;;  %v6988_v7 = vld [vmem:[%s9150_s26] sm:$0xff]  ;;  %v6993_v8 = vld [vmem:[%s9150_s26 + $0x8] sm:$0xff]  ;;  %v7000_v10 = vld [vmem:[%s9150_s26 + $0x10] sm:$0xff] }
   0xb   :  { %6006 = vmatprep.subr.bf16.mxu0 %v6005_v3  ;;  %6101 = vmatprep.subr.bf16.mxu1 %v6005_v3  ;;  %v6013_v9 = vpack.c.bf16 %v6993_v8, %v6988_v7  ;;  %v7005_v11 = vld [vmem:[%s9150_s26 + $0x18] sm:$0xff]  ;;  %v7015_v13 = vld [vmem:[%s9149_s23 + $0x10] sm:$0xff]  ;;  %v7031_v16 = vld [vmem:[%s9149_s23 + $0x20] sm:$0xff] }
   0xc   :  { %6008 = vmatpush3.bf16.msra.mxu0 %v6005_v3  ;;  %6103 = vmatpush3.bf16.msra.mxu1 %v6005_v3  ;;  %v6017_v14 = vpack.c.bf16 %v7005_v11, %v7000_v10  ;;  %v7026_v15 = vld [vmem:[%s9149_s23 + $0x18] sm:$0xff]  ;;  %v7040_v17 = vld [vmem:[%s9149_s23 + $0x28] sm:$0xff]  ;;  %v7045_v18 = vld [vmem:[%s9149_s23 + $0x30] sm:$0xff] }
   0xd   :  { %6010 = vmatprep.subr.bf16.mxu0 %v6009_v6  ;;  %6102 = vmatprep.subr.bf16.mxu1 %v6009_v6  ;;  %v7054_v19 = vld [vmem:[%s9149_s23 + $0x38] sm:$0xff]  ;;  %v7117_v28 = vld [vmem:[%s9149_s23 + $0x40] sm:$0xff]  ;;  %v7124_v29 = vld [vmem:[%s9149_s23 + $0x48] sm:$0xff] }
   0xe   :  { %5581 = vmatprep.mubr.msk.f32.mxu1 %vm106_vm0, %v7117_v28  ;;  %v7131_v30 = vld [vmem:[%s9149_s23 + $0x50] sm:$0xff]  ;;  %v7145_v32 = vld [vmem:[%s9149_s23 + $0x58] sm:$0xff] }
  0x10   :  { %6012 = vmatpush3.bf16.msra.mxu0 %v6009_v6  ;;  %6104 = vmatpush3.bf16.msra.mxu1 %v6009_v6 }
  0x11   :  { %6014 = vmatprep.subr.bf16.mxu0 %v6013_v9 }
  0x13   :  { %5570 = vmatmul.mubr.msk.f32.vlgmr.msra.gmra.mrb[0].mxu0 %vm106_vm0, %v7010_v12  ;;  %5582 = vmatmul.mubr.msk.f32.vlgmr.msra.gmra.mrb[0].mxu1 %vm106_vm0, %v7124_v29 }
  0x14   :  { %5572 = vmatprep.mubr.msk.f32.mxu0 %vm106_vm0, %v7015_v13  ;;  %6016 = vmatpush3.bf16.msra.mxu0 %v6013_v9 }
  0x15   :  { %6018 = vmatprep.subr.bf16.mxu0 %v6017_v14  ;;  %5584 = vmatprep.mubr.msk.f32.mxu1 %vm106_vm0, %v7131_v30 }
  0x17   :  { %5573 = vmatmul.mubr.msk.f32.gmra.mrb[2].mxu0 %vm106_vm0, %v7026_v15  ;;  %5585 = vmatmul.mubr.msk.f32.gmra.mrb[2].mxu1 %vm106_vm0, %v7145_v32 }
  0x18   :  { %5575 = vmatprep.mubr.msk.f32.mxu0 %vm106_vm0, %v7031_v16  ;;  %6020 = vmatpush3.bf16.msra.mxu0 %v6017_v14  ;;  %v7188_v14 = vld [vmem:[%s9107_s5 + $0x8] sm:$0xff] }
  0x1b   :  { %5576 = vmatmul.mubr.msk.f32.gmra.mrb[4].mxu0 %vm106_vm0, %v7040_v17 }
  0x1c   :  { %5578 = vmatprep.mubr.msk.f32.mxu0 %vm106_vm0, %v7045_v18 }
  0x1f   :  { %5579 = vmatmul.mubr.msk.f32.gmra.mrb[6].mxu0 %vm106_vm0, %v7054_v19 }
  0x20   :  { %5595 = vmatprep.mubr.msk.f32.mxu0 %vm106_vm0, %v7059_v20 }
  0x23   :  { %5596 = vmatmul.mubr.msk.f32.vlgmr.msra.gmra.mrb[0].mxu0 %vm106_vm0, %v7068_v21 }
  0x24   :  { %5598 = vmatprep.mubr.msk.f32.mxu0 %vm106_vm0, %v7073_v22 }
  0x27   :  { %5599 = vmatmul.mubr.msk.f32.gmra.mrb[2].mxu0 %vm106_vm0, %v7082_v23 }
  0x28   :  { %5601 = vmatprep.mubr.msk.f32.mxu0 %vm106_vm0, %v7087_v24 }
  0x2b   :  { %5602 = vmatmul.mubr.msk.f32.gmra.mrb[4].mxu0 %vm106_vm0, %v7096_v25 }
  0x2c   :  { %5604 = vmatprep.mubr.msk.f32.mxu0 %vm106_vm0, %v7101_v26 }
  0x2f   :  { %5605 = vmatmul.mubr.msk.f32.gmra.mrb[6].mxu0 %vm106_vm0, %v7110_v27 }
  0x30   :  { %5615 = vmatprep.mubr.msk.f32.mxu0 %vm106_vm0, %v7136_v31 }
  0xf6   :  { %v7149_v33 = vpop.f32.mrb[0].mxu0 }
  0xf7   :  { %v7151_v34 = vpop.f32.mrb[1].mxu0 }
  0xfa   :  { %v7153_v35 = vpop.f32.mrb[2].mxu0 }
  0xfb   :  { %v7155_v36 = vpop.f32.mrb[3].mxu0 }
  0xfe   :  { %v5603_v39 = vpop.f32.mrb[4].mxu0 }
  0xff   :  { %v6109_v40 = vadd.f32 %v5603_v39, %v7160_v37  ;;  %v378_v41 = vpop.f32.mrb[5].mxu0  ;;  %v7193_v39 = vld [vmem:[%s9107_s5 + $0x10] sm:$0xff] }
 0x100   :  { %v6110_v42 = vadd.f32 %v378_v41, %v7165_v38  ;;  %v5583_v41 = vpop.f32.mrb[0].mxu1 }
 0x101   :  { %v5075_v44 = vmul.f32 -1.442695, %v6109_v40  ;;  %v7202_v40 = vld [vmem:[%s9107_s5 + $0x18] sm:$0xff] }
 0x102   :  { %v5074_v46 = vmul.f32 -1.442695, %v6110_v42  ;;  %v5606_v47 = vpop.f32.mrb[6].mxu0  ;;  %v249_v42 = vpop.f32.mrb[1].mxu1 }
 0x103   :  { %6303 = vpow2.f32 %v5075_v44  ;;  %v6111_v48 = vadd.f32 %v5606_v47, %v7172_v43  ;;  %v388_v49 = vpop.f32.mrb[7].mxu0  ;;  %v5586_v44 = vpop.f32.mrb[2].mxu1  ;;  %v578_v47 = vld [vmem:[%s9109_s0] sm:$0xff] }
 0x104   :  { %6305 = vpow2.f32 %v5074_v46  ;;  %v6112_v50 = vadd.f32 %v388_v49, %v7177_v45  ;;  %v259_v46 = vpop.f32.mrb[3].mxu1 }
 0x105   :  { %v5077_v51 = vmul.f32 -1.442695, %v6111_v48  ;;  %v579_v48 = vld [vmem:[%s9109_s0 + $0x8] sm:$0xff] }
 0x106   :  { %v5076_v52 = vmul.f32 -1.442695, %v6112_v50  ;;  %v586_v49 = vpack.c.bf16 %v579_v48, %v578_v47  ;;  %v7216_v50 = vld [vmem:[%s9108_s6 + $0x8] sm:$0xff]  ;;  %v7261_v47 = vld [vmem:[%s9108_s6 + $0x50] sm:$0xff] }
 0x107   :  { %6307 = vpow2.f32 %v5077_v51  ;;  %v7221_v51 = vld [vmem:[%s9108_s6] sm:$0xff] }
 0x108   :  { %6309 = vpow2.f32 %v5076_v52  ;;  %5625 = vmatprep.mubr.msk.bf16.mxu1 %vm106_vm0, %v586_v49  ;;  %v6105_v52 = vadd.f32 %v7149_v33, %v7216_v50 }
 0x10d   :  { %v6304_v53 = vpop.eup %6303 }
 0x10e   :  { %v6306_v54 = vpop.eup %6305  ;;  %v442_v55 = vadd.f32 1.0, %v6304_v53  ;;  %v6106_v53 = vadd.f32 %v7151_v34, %v7221_v51 }
 0x10f   :  { %v441_v56 = vadd.f32 1.0, %v6306_v54  ;;  %v7230_v54 = vld [vmem:[%s9108_s6 + $0x18] sm:$0xff] }
 0x110   :  { %6311 = vrcp.f32 %v442_v55  ;;  %v7235_v55 = vld [vmem:[%s9108_s6 + $0x10] sm:$0xff] }
 0x111   :  { %v6308_v57 = vpop.eup %6307  ;;  %6313 = vrcp.f32 %v441_v56  ;;  %v5071_v56 = vmul.f32 -1.442695, %v6105_v52  ;;  %v6108_v33 = vadd.f32 %v7155_v36, %v7235_v55  ;;  %v7249_v36 = vld [vmem:[%s9108_s6 + $0x40] sm:$0xff] }
 0x112   :  { %v444_v58 = vadd.f32 1.0, %v6308_v57  ;;  %v6310_v59 = vpop.eup %6309  ;;  %v6107_v57 = vadd.f32 %v7153_v35, %v7230_v54 }
 0x113   :  { %v443_v60 = vadd.f32 1.0, %v6310_v59  ;;  %v5072_v59 = vmul.f32 -1.442695, %v6108_v33 }
 0x114   :  { %6315 = vrcp.f32 %v444_v58  ;;  %v5070_v58 = vmul.f32 -1.442695, %v6106_v53  ;;  %v5073_v34 = vmul.f32 -1.442695, %v6107_v57 }
 0x115   :  { %6317 = vrcp.f32 %v443_v60 }
 0x116   :  { %6319 = vpow2.f32 %v5071_v56 }
 0x117   :  { %6321 = vpow2.f32 %v5070_v58 }
 0x118   :  { %6323 = vpow2.f32 %v5073_v34 }
 0x119   :  { %6325 = vpow2.f32 %v5072_v59 }
 0x11a   :  { %v6312_v61 = vpop.eup %6311 }
 0x11b   :  { %v6314_v62 = vpop.eup %6313  ;;  %v454_v63 = vmul.f32 %v6312_v61, %v6993_v8 }
 0x11c   :  { %v453_v0 = vmul.f32 %v6314_v62, %v6988_v7 }
 0x11e   :  { %v6316_v1 = vpop.eup %6315  ;;  %v6021_v2 = vpack.c.bf16 %v454_v63, %v453_v0 }
 0x11f   :  { %v456_v3 = vmul.f32 %v6316_v1, %v7005_v11  ;;  %v6318_v4 = vpop.eup %6317  ;;  %v7244_v1 = vld [vmem:[%s9108_s6 + $0x48] sm:$0xff] }
 0x120   :  { %6022 = vmatprep.subr.bf16.mxu0 %v6021_v2  ;;  %v455_v6 = vmul.f32 %v6318_v4, %v7000_v10  ;;  %v6320_v60 = vpop.eup %6319 }
 0x121   :  { %6024 = vmatpush3.bf16.msra.mxu0 %v6021_v2  ;;  %v6322_v61 = vpop.eup %6321  ;;  %v414_v62 = vadd.f32 1.0, %v6320_v60 }
 0x122   :  { %v6025_v9 = vpack.c.bf16 %v456_v3, %v455_v6  ;;  %v6324_v63 = vpop.eup %6323  ;;  %v413_v0 = vadd.f32 1.0, %v6322_v61  ;;  %v255_v3 = vadd.f32 %v5583_v41, %v7244_v1  ;;  %v250_v6 = vadd.f32 %v249_v42, %v7249_v36 }
 0x123   :  { %v6326_v35 = vpop.eup %6325  ;;  %6327 = vrcp.f32 %v414_v62  ;;  %v416_v2 = vadd.f32 1.0, %v6324_v63  ;;  %v260_v42 = vadd.f32 %v259_v46, %v7261_v47 }
 0x124   :  { %6026 = vmatprep.subr.bf16.mxu0 %v6025_v9  ;;  %6329 = vrcp.f32 %v413_v0  ;;  %v415_v4 = vadd.f32 1.0, %v6326_v35 }
 0x125   :  { %6028 = vmatpush3.bf16.msra.mxu0 %v6025_v9  ;;  %v7256_v9 = vld [vmem:[%s9108_s6 + $0x58] sm:$0xff]  ;;  %6331 = vrcp.f32 %v416_v2 }
 0x126   :  { %v265_v52 = vadd.f32 %v5586_v44, %v7256_v9  ;;  %6333 = vrcp.f32 %v415_v4 }
 0x128   :  { %5616 = vmatmul.mubr.msk.f32.vlgmr.msra.gmra.mrb[8].mxu0 %vm106_vm0, %v7188_v14 }
 0x129   :  { %5618 = vmatprep.mubr.msk.f32.mxu0 %vm106_vm0, %v7193_v39 }
 0x12c   :  { %5619 = vmatmul.mubr.msk.f32.gmra.mrb[10].mxu0 %vm106_vm0, %v7202_v40 }
 0x12d   :  { %v6328_v34 = vpop.eup %6327 }
 0x12e   :  { %v6330_v59 = vpop.eup %6329  ;;  %v563_v60 = vsub.f32 1.0, %v6328_v34 }
 0x12f   :  { %v6332_v61 = vpop.eup %6331  ;;  %v562_v62 = vsub.f32 1.0, %v6330_v59 }
 0x130   :  { %v6334_v63 = vpop.eup %6333  ;;  %v565_v35 = vsub.f32 1.0, %v6332_v61  ;;  %v567_v46 = vmul.f32 %v563_v60, %v6993_v8 }
 0x1fb   :  { %v5617_v48 = vpop.f32.mrb[8].mxu0 }
 0x1fc   :  { %v555_v49 = vadd.f32 %v5617_v48, %v255_v3  ;;  %v535_v41 = vpop.f32.mrb[9].mxu0  ;;  %v564_v3 = vsub.f32 1.0, %v6334_v63 }
 0x1fd   :  { %v554_v53 = vadd.f32 %v535_v41, %v250_v6  ;;  %v566_v6 = vmul.f32 %v562_v62, %v6988_v7  ;;  %v5086_v7 = vld [vmem:[%s9148_s29 + $0x20] sm:$0xff]  ;;  %v583_v62 = vld [vmem:[%s9109_s0 + $0x28] sm:$0xff] }
 0x1fe   :  { %6335 = vtanh.f32 %v555_v49 }
 0x1ff   :  { %6337 = vtanh.f32 %v554_v53  ;;  %v5620_v56 = vpop.f32.mrb[10].mxu0 }
 0x200   :  { %v557_v57 = vadd.f32 %v5620_v56, %v265_v52  ;;  %v545_v58 = vpop.f32.mrb[11].mxu0 }
 0x201   :  { %v556_v33 = vadd.f32 %v545_v58, %v260_v42  ;;  %v569_v42 = vmul.f32 %v565_v35, %v7005_v11  ;;  %v568_v58 = vmul.f32 %v564_v3, %v7000_v10  ;;  %v580_v11 = vld [vmem:[%s9109_s0 + $0x10] sm:$0xff]  ;;  %v581_v10 = vld [vmem:[%s9109_s0 + $0x18] sm:$0xff] }
 0x202   :  { %6339 = vtanh.f32 %v557_v57  ;;  %v585_v3 = vld [vmem:[%s9109_s0 + $0x38] sm:$0xff] }
 0x203   :  { %6341 = vtanh.f32 %v556_v33  ;;  %v5087_v33 = vld [vmem:[%s9148_s29 + $0x28] sm:$0xff] }
 0x204   :  { %v6029_v60 = vpack.c.bf16 %v5087_v33, %v5086_v7 }
 0x208   :  { %v6336_v44 = vpop.eup %6335 }
 0x209   :  { %v6338_v0 = vpop.eup %6337  ;;  %v571_v2 = vmul.f32 %v6336_v44, %v6328_v34  ;;  %v5089_v44 = vld [vmem:[%s9148_s29 + $0x38] sm:$0xff] }
 0x20a   :  { %v570_v4 = vmul.f32 %v6338_v0, %v6330_v59  ;;  %v587_v0 = vpack.c.bf16 %v581_v10, %v580_v11 }
 0x20b   :  { %v7267_v48 = vadd.f32 %v571_v2, %v567_v46  ;;  %v584_v46 = vld [vmem:[%s9109_s0 + $0x30] sm:$0xff] }
 0x20c   :  { %v6340_v49 = vpop.eup %6339  ;;  %v7269_v52 = vadd.f32 %v570_v4, %v566_v6  ;;  %v589_v4 = vpack.c.bf16 %v585_v3, %v584_v46 }
 0x20d   :  { %v6342_v41 = vpop.eup %6341  ;;  %v573_v53 = vmul.f32 %v6340_v49, %v6332_v61  ;;  %v582_v61 = vld [vmem:[%s9109_s0 + $0x20] sm:$0xff] }
 0x20e   :  { %v572_v56 = vmul.f32 %v6342_v41, %v6334_v63  ;;  %v590_v57 = vpack.c.bf16 %v7267_v48, %v7269_v52  ;;  %v5088_v63 = vld [vmem:[%s9148_s29 + $0x30] sm:$0xff]  ;;  %v588_v35 = vpack.c.bf16 %v583_v62, %v582_v61 }
 0x20f   :  { %v7275_v8 = vadd.f32 %v573_v53, %v569_v42  ;;  %v6033_v2 = vpack.c.bf16 %v5089_v44, %v5088_v63 }
 0x210   :  { %5621 = vmatprep.subr.bf16.mxu1 %v590_v57  ;;  %v7283_v34 = vadd.f32 %v572_v56, %v568_v58 }
 0x211   :  { %5622 = vmatpush3.bf16.msra.mxu1 %v590_v57 }
 0x212   :  { %v591_v59 = vpack.c.bf16 %v7275_v8, %v7283_v34 }
 0x214   :  { %5623 = vmatprep.subr.bf16.mxu1 %v591_v59 }
 0x215   :  { %5624 = vmatpush3.bf16.msra.mxu1 %v591_v59 }
 0x216   :  { %6030 = vmatprep.subr.bf16.mxu1 %v6029_v60 }
 0x218   :  { %5626 = vmatmul.mubr.msk.bf16.vlgmr.msra.gmra.mrb[4].mxu1 %vm106_vm0, %v587_v0 }
 0x219   :  { %6032 = vmatpush3.bf16.msra.mxu1 %v6029_v60  ;;  %5629 = vmatprep.mubr.msk.bf16.mxu1 %vm106_vm0, %v588_v35 }
 0x21a   :  { %6034 = vmatprep.subr.bf16.mxu1 %v6033_v2 }
 0x21d   :  { %6036 = vmatpush3.bf16.msra.mxu1 %v6033_v2 }
 0x21e   :  { %6038 = vmatprep.subr.bf16.mxu1 %v590_v57 }
 0x220   :  { %5630 = vmatmul.mubr.msk.bf16.gmra.mrb[8].mxu1 %vm106_vm0, %v589_v4 }
 0x221   :  { %5641 = vmatprep.mubr.msk.f32.mxu1 %vm106_vm0, %v6981_v5 }
 0x228   :  { %5642 = vmatmul.mubr.msk.f32.vlgmr.msra.gmra.mrb[12].mxu1 %vm106_vm0, %v7010_v12 }
 0x229   :  { %6040 = vmatpush3.bf16.msra.mxu1 %v590_v57  ;;  %5644 = vmatprep.mubr.msk.f32.mxu1 %vm106_vm0, %v7015_v13 }
 0x22a   :  { %6042 = vmatprep.subr.bf16.mxu1 %v591_v59 }
 0x22c   :  { %5645 = vmatmul.mubr.msk.f32.gmra.mrb[14].mxu1 %vm106_vm0, %v7026_v15 }
 0x22d   :  { %6044 = vmatpush3.bf16.msra.mxu1 %v591_v59  ;;  %5647 = vmatprep.mubr.msk.f32.mxu1 %vm106_vm0, %v7031_v16 }
 0x230   :  { %5648 = vmatmul.mubr.msk.f32.gmra.mrb[16].mxu1 %vm106_vm0, %v7040_v17 }
 0x231   :  { %5650 = vmatprep.mubr.msk.f32.mxu1 %vm106_vm0, %v7045_v18 }
 0x234   :  { %5651 = vmatmul.mubr.msk.f32.gmra.mrb[18].mxu1 %vm106_vm0, %v7054_v19 }
 0x235   :  { %5653 = vmatprep.mubr.msk.f32.mxu1 %vm106_vm0, %v7117_v28 }
 0x238   :  { %5654 = vmatmul.mubr.msk.f32.gmra.mrb[20].mxu1 %vm106_vm0, %v7124_v29 }
 0x239   :  { %5656 = vmatprep.mubr.msk.f32.mxu1 %vm106_vm0, %v7131_v30 }
 0x23c   :  { %5657 = vmatmul.mubr.msk.f32.gmra.mrb[22].mxu1 %vm106_vm0, %v7145_v32 }
 0x23d   :  { %5667 = vmatprep.mubr.msk.f32.mxu1 %vm106_vm0, %v7059_v20 }
 0x240   :  { %5668 = vmatmul.mubr.msk.f32.vlgmr.msra.gmra.mrb[12].mxu1 %vm106_vm0, %v7068_v21 }
 0x241   :  { %5670 = vmatprep.mubr.msk.f32.mxu1 %vm106_vm0, %v7073_v22 }
 0x244   :  { %5671 = vmatmul.mubr.msk.f32.gmra.mrb[14].mxu1 %vm106_vm0, %v7082_v23 }
 0x245   :  { %5673 = vmatprep.mubr.msk.f32.mxu1 %vm106_vm0, %v7087_v24 }
 0x248   :  { %5674 = vmatmul.mubr.msk.f32.gmra.mrb[16].mxu1 %vm106_vm0, %v7096_v25 }
 0x249   :  { %5676 = vmatprep.mubr.msk.f32.mxu1 %vm106_vm0, %v7101_v26 }
 0x24c   :  { %5677 = vmatmul.mubr.msk.f32.gmra.mrb[18].mxu1 %vm106_vm0, %v7110_v27 }
 0x24d   :  { %5687 = vmatprep.mubr.msk.f32.mxu1 %vm106_vm0, %v7136_v31 }
 0x2eb   :  { %v5627_v6 = vpop.f32.mrb[4].mxu1 }
 0x2ec   :  { %v638_v49 = vpop.f32.mrb[5].mxu1  ;;  %v671_v53 = vmax.f32 %v5627_v6, 0.0 }
 0x2ed   :  { %v5628_v41 = vpop.f32.mrb[6].mxu1  ;;  %v669_v57 = vmax.f32 %v638_v49, 0.0 }
 0x2ee   :  { %v672_v42 = vmax.f32 %v5628_v41, 0.0  ;;  %v641_v56 = vpop.f32.mrb[7].mxu1 }
 0x2ef   :  { %v670_v58 = vmax.f32 %v641_v56, 0.0 }
 0x2f0   :  { %v7356_v7 = vpack.c.bf16 %v672_v42, %v671_v53 }
 0x2f1   :  { %v7358_v33 = vpack.c.bf16 %v670_v58, %v669_v57 }
 0x2f3   :  { %v5631_v11 = vpop.f32.mrb[8].mxu1 }
 0x2f4   :  { %v654_v10 = vpop.f32.mrb[9].mxu1  ;;  %v675_v60 = vmax.f32 %v5631_v11, 0.0 }
 0x2f5   :  { %v5632_v59 = vpop.f32.mrb[10].mxu1  ;;  %v673_v63 = vmax.f32 %v654_v10, 0.0 }
 0x2f6   :  { %v676_v61 = vmax.f32 %v5632_v59, 0.0  ;;  %v657_v62 = vpop.f32.mrb[11].mxu1 }
 0x2f7   :  { %v674_v44 = vmax.f32 %v657_v62, 0.0 }
 0x2f8   :  { %v7360_v0 = vpack.c.bf16 %v676_v61, %v675_v60 }
 0x2f9   :  { %v7362_v35 = vpack.c.bf16 %v674_v44, %v673_v63 }
 0x2fa   :  { %9151 = vst [vmem:[#allocation4_spill] sm:$0xff] %v7360_v0 }
 0x2fb   :  { %9152 = vst [vmem:[#allocation5_spill] sm:$0xff] %v7362_v35 }
 0x313   :  { %v5669_v2 = vpop.f32.mrb[12].mxu1 }
 0x314   :  { %v873_v46 = vpop.f32.mrb[13].mxu1 }
 0x317   :  { %v5672_v3 = vpop.f32.mrb[14].mxu1 }
 0x318   :  { %v883_v4 = vpop.f32.mrb[15].mxu1 }
 0x31b   :  { %v5675_v6 = vpop.f32.mrb[16].mxu1 }
 0x31c   :  { %v6125_v49 = vadd.f32 %v5675_v6, %v7160_v37  ;;  %v893_v41 = vpop.f32.mrb[17].mxu1 }
 0x31d   :  { %v6126_v53 = vadd.f32 %v893_v41, %v7165_v38 }
 0x31e   :  { %v5115_v42 = vmul.f32 -1.442695, %v6125_v49 }
 0x31f   :  { %v5114_v56 = vmul.f32 -1.442695, %v6126_v53  ;;  %v5678_v57 = vpop.f32.mrb[18].mxu1 }
 0x320   :  { %6343 = vpow2.f32 %v5115_v42  ;;  %v6127_v58 = vadd.f32 %v5678_v57, %v7172_v43  ;;  %v903_v11 = vpop.f32.mrb[19].mxu1 }
 0x321   :  { %6345 = vpow2.f32 %v5114_v56  ;;  %v6128_v10 = vadd.f32 %v903_v11, %v7177_v45 }
 0x322   :  { %v5117_v59 = vmul.f32 -1.442695, %v6127_v58 }
 0x323   :  { %v5116_v60 = vmul.f32 -1.442695, %v6128_v10 }
 0x324   :  { %6347 = vpow2.f32 %v5117_v59 }
 0x325   :  { %6349 = vpow2.f32 %v5116_v60 }
 0x32a   :  { %v6344_v61 = vpop.eup %6343 }
 0x32b   :  { %v6346_v62 = vpop.eup %6345  ;;  %v957_v63 = vadd.f32 1.0, %v6344_v61 }
 0x32c   :  { %v956_v44 = vadd.f32 1.0, %v6346_v62 }
 0x32d   :  { %6351 = vrcp.f32 %v957_v63  ;;  %v5122_v63 = vld [vmem:[%s9109_s0 + $0x40] sm:$0xff] }
 0x32e   :  { %v6348_v6 = vpop.eup %6347  ;;  %6353 = vrcp.f32 %v956_v44  ;;  %v5123_v44 = vld [vmem:[%s9109_s0 + $0x48] sm:$0xff] }
 0x32f   :  { %v959_v49 = vadd.f32 1.0, %v6348_v6  ;;  %v6350_v41 = vpop.eup %6349  ;;  %v1090_v6 = vpack.c.bf16 %v5123_v44, %v5122_v63 }
 0x330   :  { %v958_v53 = vadd.f32 1.0, %v6350_v41  ;;  %v6122_v41 = vadd.f32 %v873_v46, %v7221_v51 }
 0x331   :  { %6355 = vrcp.f32 %v959_v49  ;;  %5697 = vmatprep.mubr.msk.bf16.mxu0 %vm106_vm0, %v1090_v6  ;;  %v6121_v49 = vadd.f32 %v5669_v2, %v7216_v50 }
 0x332   :  { %6357 = vrcp.f32 %v958_v53 }
 0x333   :  { %v5111_v53 = vmul.f32 -1.442695, %v6121_v49 }
 0x335   :  { %6359 = vpow2.f32 %v5111_v53 }
 0x337   :  { %v6352_v42 = vpop.eup %6351 }
 0x338   :  { %v6354_v56 = vpop.eup %6353  ;;  %v969_v57 = vmul.f32 %v6352_v42, %v7267_v48  ;;  %v6123_v42 = vadd.f32 %v5672_v3, %v7230_v54 }
 0x339   :  { %v968_v58 = vmul.f32 %v6354_v56, %v7269_v52  ;;  %v5110_v56 = vmul.f32 -1.442695, %v6122_v41 }
 0x33b   :  { %v6356_v11 = vpop.eup %6355  ;;  %v6045_v10 = vpack.c.bf16 %v969_v57, %v968_v58  ;;  %v6124_v57 = vadd.f32 %v883_v4, %v7235_v55  ;;  %v5113_v58 = vmul.f32 -1.442695, %v6123_v42  ;;  %6361 = vpow2.f32 %v5110_v56 }
 0x33c   :  { %v971_v59 = vmul.f32 %v6356_v11, %v7275_v8  ;;  %v6358_v60 = vpop.eup %6357 }
 0x33d   :  { %6046 = vmatprep.subr.bf16.mxu1 %v6045_v10  ;;  %v970_v61 = vmul.f32 %v6358_v60, %v7283_v34  ;;  %v5112_v11 = vmul.f32 -1.442695, %v6124_v57  ;;  %6363 = vpow2.f32 %v5113_v58 }
 0x33e   :  { %6048 = vmatpush3.bf16.msra.mxu1 %v6045_v10 }
 0x33f   :  { %v6049_v62 = vpack.c.bf16 %v971_v59, %v970_v61  ;;  %6365 = vpow2.f32 %v5112_v11  ;;  %v6360_v10 = vpop.eup %6359 }
 0x340   :  { %v929_v60 = vadd.f32 1.0, %v6360_v10 }
 0x341   :  { %6050 = vmatprep.subr.bf16.mxu1 %v6049_v62 }
 0x342   :  { %6052 = vmatpush3.bf16.msra.mxu1 %v6049_v62  ;;  %6367 = vrcp.f32 %v929_v60 }
 0x345   :  { %5688 = vmatmul.mubr.msk.f32.vlgmr.msra.gmra.mrb[20].mxu1 %vm106_vm0, %v7188_v14  ;;  %v6362_v59 = vpop.eup %6361 }
 0x346   :  { %5690 = vmatprep.mubr.msk.f32.mxu1 %vm106_vm0, %v7193_v39  ;;  %v928_v62 = vadd.f32 1.0, %v6362_v59 }
 0x347   :  { %v6364_v61 = vpop.eup %6363 }
 0x348   :  { %v931_v46 = vadd.f32 1.0, %v6364_v61  ;;  %6369 = vrcp.f32 %v928_v62 }
 0x349   :  { %5691 = vmatmul.mubr.msk.f32.gmra.mrb[22].mxu1 %vm106_vm0, %v7202_v40  ;;  %v6366_v2 = vpop.eup %6365 }
 0x34a   :  { %v930_v63 = vadd.f32 1.0, %v6366_v2  ;;  %6371 = vrcp.f32 %v931_v46 }
 0x34c   :  { %6373 = vrcp.f32 %v930_v63  ;;  %v6368_v56 = vpop.eup %6367 }
 0x34d   :  { %v1066_v58 = vsub.f32 1.0, %v6368_v56 }
 0x34f   :  { %v1070_v46 = vmul.f32 %v1066_v58, %v7267_v48 }
 0x352   :  { %v6370_v57 = vpop.eup %6369 }
 0x353   :  { %v1065_v10 = vsub.f32 1.0, %v6370_v57 }
 0x354   :  { %v6372_v11 = vpop.eup %6371 }
 0x355   :  { %v1068_v62 = vsub.f32 1.0, %v6372_v11 }
 0x356   :  { %v6374_v59 = vpop.eup %6373 }
 0x357   :  { %v1067_v63 = vsub.f32 1.0, %v6374_v59 }
 0x418   :  { %v5689_v3 = vpop.f32.mrb[20].mxu1 }
 0x419   :  { %v6129_v4 = vadd.f32 %v5689_v3, %v7244_v1  ;;  %v1038_v44 = vpop.f32.mrb[21].mxu1 }
 0x41a   :  { %v6130_v6 = vadd.f32 %v1038_v44, %v7249_v36 }
 0x41b   :  { %6375 = vtanh.f32 %v6129_v4  ;;  %v1069_v4 = vmul.f32 %v1065_v10, %v7269_v52  ;;  %v5134_v52 = vld [vmem:[%s9148_s29 + $0x40] sm:$0xff] }
 0x41c   :  { %6377 = vtanh.f32 %v6130_v6  ;;  %v5692_v49 = vpop.f32.mrb[22].mxu1 }
 0x41d   :  { %v6131_v41 = vadd.f32 %v5692_v49, %v7256_v9  ;;  %v1048_v53 = vpop.f32.mrb[23].mxu1 }
 0x41e   :  { %v6132_v42 = vadd.f32 %v1048_v53, %v7261_v47 }
 0x41f   :  { %6379 = vtanh.f32 %v6131_v41 }
 0x420   :  { %6381 = vtanh.f32 %v6132_v42  ;;  %v1072_v42 = vmul.f32 %v1068_v62, %v7275_v8  ;;  %v5124_v8 = vld [vmem:[%s9109_s0 + $0x50] sm:$0xff] }
 0x425   :  { %v6376_v60 = vpop.eup %6375 }
 0x426   :  { %v6378_v61 = vpop.eup %6377  ;;  %v1074_v2 = vmul.f32 %v6376_v60, %v6368_v56  ;;  %v1071_v56 = vmul.f32 %v1067_v63, %v7283_v34  ;;  %v5125_v34 = vld [vmem:[%s9109_s0 + $0x58] sm:$0xff]  ;;  %v5136_v60 = vld [vmem:[%s9148_s29 + $0x50] sm:$0xff] }
 0x427   :  { %v1073_v3 = vmul.f32 %v6378_v61, %v6370_v57  ;;  %v5135_v57 = vld [vmem:[%s9148_s29 + $0x48] sm:$0xff]  ;;  %v5137_v61 = vld [vmem:[%s9148_s29 + $0x58] sm:$0xff]  ;;  %v1091_v62 = vpack.c.bf16 %v5125_v34, %v5124_v8  ;;  %v5128_v63 = vld [vmem:[%s9109_s0 + $0x70] sm:$0xff] }
 0x428   :  { %v7395_v44 = vadd.f32 %v1074_v2, %v1070_v46  ;;  %v6053_v10 = vpack.c.bf16 %v5135_v57, %v5134_v52  ;;  %v6057_v46 = vpack.c.bf16 %v5137_v61, %v5136_v60 }
 0x429   :  { %v6380_v6 = vpop.eup %6379  ;;  %v7397_v49 = vadd.f32 %v1073_v3, %v1069_v4  ;;  %v5129_v3 = vld [vmem:[%s9109_s0 + $0x78] sm:$0xff] }
 0x42a   :  { %v6382_v41 = vpop.eup %6381  ;;  %v1076_v53 = vmul.f32 %v6380_v6, %v6372_v11  ;;  %v1093_v4 = vpack.c.bf16 %v5129_v3, %v5128_v63 }
 0x42b   :  { %v1075_v0 = vmul.f32 %v6382_v41, %v6374_v59  ;;  %v1094_v35 = vpack.c.bf16 %v7395_v44, %v7397_v49  ;;  %v5126_v59 = vld [vmem:[%s9109_s0 + $0x60] sm:$0xff] }
 0x42c   :  { %v7403_v48 = vadd.f32 %v1076_v53, %v1072_v42 }
 0x42d   :  { %5693 = vmatprep.subr.bf16.mxu0 %v1094_v35  ;;  %v7411_v58 = vadd.f32 %v1075_v0, %v1071_v56  ;;  %v5127_v0 = vld [vmem:[%s9109_s0 + $0x68] sm:$0xff] }
 0x42e   :  { %5694 = vmatpush3.bf16.msra.mxu0 %v1094_v35  ;;  %v1092_v2 = vpack.c.bf16 %v5127_v0, %v5126_v59 }
 0x42f   :  { %v1095_v11 = vpack.c.bf16 %v7403_v48, %v7411_v58 }
 0x431   :  { %5695 = vmatprep.subr.bf16.mxu0 %v1095_v11 }
 0x432   :  { %5696 = vmatpush3.bf16.msra.mxu0 %v1095_v11 }
 0x433   :  { %6054 = vmatprep.subr.bf16.mxu0 %v6053_v10 }
 0x435   :  { %5698 = vmatmul.mubr.msk.bf16.vlgmr.msra.gmra.mrb[12].mxu0 %vm106_vm0, %v1091_v62 }
 0x436   :  { %6056 = vmatpush3.bf16.msra.mxu0 %v6053_v10  ;;  %5701 = vmatprep.mubr.msk.bf16.mxu0 %vm106_vm0, %v1092_v2 }
 0x437   :  { %6058 = vmatprep.subr.bf16.mxu0 %v6057_v46 }
 0x43a   :  { %6060 = vmatpush3.bf16.msra.mxu0 %v6057_v46 }
 0x43b   :  { %6062 = vmatprep.subr.bf16.mxu0 %v1094_v35 }
 0x43d   :  { %5702 = vmatmul.mubr.msk.bf16.gmra.mrb[16].mxu0 %vm106_vm0, %v1093_v4 }
 0x43e   :  { %5713 = vmatprep.mubr.msk.f32.mxu0 %vm106_vm0, %v6981_v5 }
 0x445   :  { %5714 = vmatmul.mubr.msk.f32.vlgmr.msra.gmra.mrb[20].mxu0 %vm106_vm0, %v7010_v12 }
 0x446   :  { %6064 = vmatpush3.bf16.msra.mxu0 %v1094_v35  ;;  %5716 = vmatprep.mubr.msk.f32.mxu0 %vm106_vm0, %v7015_v13 }
 0x447   :  { %6066 = vmatprep.subr.bf16.mxu0 %v1095_v11 }
 0x449   :  { %5717 = vmatmul.mubr.msk.f32.gmra.mrb[22].mxu0 %vm106_vm0, %v7026_v15 }
 0x44a   :  { %6068 = vmatpush3.bf16.msra.mxu0 %v1095_v11  ;;  %5719 = vmatprep.mubr.msk.f32.mxu0 %vm106_vm0, %v7031_v16 }
 0x44d   :  { %5720 = vmatmul.mubr.msk.f32.gmra.mrb[24].mxu0 %vm106_vm0, %v7040_v17 }
 0x44e   :  { %5722 = vmatprep.mubr.msk.f32.mxu0 %vm106_vm0, %v7045_v18 }
 0x451   :  { %5723 = vmatmul.mubr.msk.f32.gmra.mrb[26].mxu0 %vm106_vm0, %v7054_v19 }
 0x452   :  { %5725 = vmatprep.mubr.msk.f32.mxu0 %vm106_vm0, %v7117_v28 }
 0x455   :  { %5726 = vmatmul.mubr.msk.f32.gmra.mrb[28].mxu0 %vm106_vm0, %v7124_v29 }
 0x456   :  { %5728 = vmatprep.mubr.msk.f32.mxu0 %vm106_vm0, %v7131_v30 }
 0x459   :  { %5729 = vmatmul.mubr.msk.f32.gmra.mrb[30].mxu0 %vm106_vm0, %v7145_v32 }
 0x45a   :  { %5739 = vmatprep.mubr.msk.f32.mxu0 %vm106_vm0, %v7059_v20 }
 0x45d   :  { %5740 = vmatmul.mubr.msk.f32.vlgmr.msra.gmra.mrb[20].mxu0 %vm106_vm0, %v7068_v21 }
 0x45e   :  { %5742 = vmatprep.mubr.msk.f32.mxu0 %vm106_vm0, %v7073_v22 }
 0x461   :  { %5743 = vmatmul.mubr.msk.f32.gmra.mrb[22].mxu0 %vm106_vm0, %v7082_v23 }
 0x462   :  { %5745 = vmatprep.mubr.msk.f32.mxu0 %vm106_vm0, %v7087_v24 }
 0x465   :  { %5746 = vmatmul.mubr.msk.f32.gmra.mrb[24].mxu0 %vm106_vm0, %v7096_v25 }
 0x466   :  { %5748 = vmatprep.mubr.msk.f32.mxu0 %vm106_vm0, %v7101_v26 }
 0x469   :  { %5749 = vmatmul.mubr.msk.f32.gmra.mrb[26].mxu0 %vm106_vm0, %v7110_v27 }
 0x46a   :  { %5759 = vmatprep.mubr.msk.f32.mxu0 %vm106_vm0, %v7136_v31 }
 0x508   :  { %v5699_v5 = vpop.f32.mrb[12].mxu0 }
 0x509   :  { %v1142_v12 = vpop.f32.mrb[13].mxu0  ;;  %v1175_v15 = vmax.f32 %v5699_v5, 0.0 }
 0x50a   :  { %v5700_v13 = vpop.f32.mrb[14].mxu0  ;;  %v1173_v18 = vmax.f32 %v1142_v12, 0.0 }
 0x50b   :  { %v1176_v16 = vmax.f32 %v5700_v13, 0.0  ;;  %v1145_v17 = vpop.f32.mrb[15].mxu0 }
 0x50c   :  { %v1174_v19 = vmax.f32 %v1145_v17, 0.0 }
 0x50d   :  { %v7484_v20 = vpack.c.bf16 %v1176_v16, %v1175_v15 }
 0x50e   :  { %v7486_v21 = vpack.c.bf16 %v1174_v19, %v1173_v18  ;;  %v5170_v19 = vld [vmem:[%s9109_s0 + $0x80] sm:$0xff] }
 0x510   :  { %v5703_v22 = vpop.f32.mrb[16].mxu0 }
 0x511   :  { %v1158_v23 = vpop.f32.mrb[17].mxu0  ;;  %v1179_v25 = vmax.f32 %v5703_v22, 0.0  ;;  %v5171_v22 = vld [vmem:[%s9109_s0 + $0x88] sm:$0xff] }
 0x512   :  { %v5704_v24 = vpop.f32.mrb[18].mxu0  ;;  %v1177_v28 = vmax.f32 %v1158_v23, 0.0  ;;  %v1594_v23 = vpack.c.bf16 %v5171_v22, %v5170_v19  ;;  %v5174_v19 = vld [vmem:[%s9109_s0 + $0xa0] sm:$0xff]  ;;  %v5175_v22 = vld [vmem:[%s9109_s0 + $0xa8] sm:$0xff] }
 0x513   :  { %v1180_v26 = vmax.f32 %v5704_v24, 0.0  ;;  %v1161_v27 = vpop.f32.mrb[19].mxu0 }
 0x514   :  { %v1178_v29 = vmax.f32 %v1161_v27, 0.0  ;;  %5769 = vmatprep.mubr.msk.bf16.mxu1 %vm106_vm0, %v1594_v23  ;;  %v5184_v23 = vld [vmem:[%s9148_s29 + $0x70] sm:$0xff] }
 0x515   :  { %v7488_v30 = vpack.c.bf16 %v1180_v26, %v1179_v25 }
 0x516   :  { %v7490_v31 = vpack.c.bf16 %v1178_v29, %v1177_v28 }
 0x530   :  { %v5741_v32 = vpop.f32.mrb[20].mxu0 }
 0x531   :  { %v1377_v35 = vpop.f32.mrb[21].mxu0  ;;  %v6133_v24 = vadd.f32 %v5741_v32, %v7216_v50 }
 0x533   :  { %v5159_v25 = vmul.f32 -1.442695, %v6133_v24  ;;  %v5185_v24 = vld [vmem:[%s9148_s29 + $0x78] sm:$0xff] }
 0x534   :  { %v5744_v6 = vpop.f32.mrb[22].mxu0 }
 0x535   :  { %v1387_v41 = vpop.f32.mrb[23].mxu0 }
 0x538   :  { %v5747_v53 = vpop.f32.mrb[24].mxu0 }
 0x539   :  { %v6137_v42 = vadd.f32 %v5747_v53, %v7160_v37  ;;  %v1397_v56 = vpop.f32.mrb[25].mxu0 }
 0x53a   :  { %v6138_v52 = vadd.f32 %v1397_v56, %v7165_v38 }
 0x53b   :  { %v5163_v57 = vmul.f32 -1.442695, %v6137_v42 }
 0x53c   :  { %v5162_v8 = vmul.f32 -1.442695, %v6138_v52  ;;  %v5750_v34 = vpop.f32.mrb[26].mxu0 }
 0x53d   :  { %6383 = vpow2.f32 %v5163_v57  ;;  %v6139_v11 = vadd.f32 %v5750_v34, %v7172_v43  ;;  %v1407_v10 = vpop.f32.mrb[27].mxu0 }
 0x53e   :  { %6385 = vpow2.f32 %v5162_v8  ;;  %v6140_v59 = vadd.f32 %v1407_v10, %v7177_v45 }
 0x53f   :  { %v5165_v0 = vmul.f32 -1.442695, %v6139_v11 }
 0x540   :  { %v5164_v60 = vmul.f32 -1.442695, %v6140_v59 }
 0x541   :  { %6387 = vpow2.f32 %v5165_v0 }
 0x542   :  { %6389 = vpow2.f32 %v5164_v60 }
 0x547   :  { %v6384_v61 = vpop.eup %6383 }
 0x548   :  { %v6386_v62 = vpop.eup %6385  ;;  %v1461_v37 = vadd.f32 1.0, %v6384_v61 }
 0x549   :  { %v1460_v2 = vadd.f32 1.0, %v6386_v62 }
 0x54a   :  { %6391 = vrcp.f32 %v1461_v37 }
 0x54b   :  { %v6388_v38 = vpop.eup %6387  ;;  %6393 = vrcp.f32 %v1460_v2 }
 0x54c   :  { %v1463_v46 = vadd.f32 1.0, %v6388_v38  ;;  %v6390_v63 = vpop.eup %6389 }
 0x54d   :  { %v1462_v3 = vadd.f32 1.0, %v6390_v63 }
 0x54e   :  { %6395 = vrcp.f32 %v1463_v46 }
 0x54f   :  { %6397 = vrcp.f32 %v1462_v3 }
 0x550   :  { %6399 = vpow2.f32 %v5159_v25  ;;  %v1596_v25 = vpack.c.bf16 %v5175_v22, %v5174_v19 }
 0x554   :  { %v6392_v43 = vpop.eup %6391 }
 0x555   :  { %v6394_v4 = vpop.eup %6393  ;;  %v1473_v45 = vmul.f32 %v6392_v43, %v7395_v44 }
 0x556   :  { %v1472_v5 = vmul.f32 %v6394_v4, %v7397_v49 }
 0x558   :  { %v6396_v12 = vpop.eup %6395  ;;  %v6069_v13 = vpack.c.bf16 %v1473_v45, %v1472_v5 }
 0x559   :  { %v1475_v15 = vmul.f32 %v6396_v12, %v7403_v48  ;;  %v6398_v16 = vpop.eup %6397 }
 0x55a   :  { %6070 = vmatprep.subr.bf16.mxu0 %v6069_v13  ;;  %v1474_v17 = vmul.f32 %v6398_v16, %v7411_v58  ;;  %v6400_v29 = vpop.eup %6399 }
 0x55b   :  { %6072 = vmatpush3.bf16.msra.mxu0 %v6069_v13  ;;  %v1433_v42 = vadd.f32 1.0, %v6400_v29  ;;  %v6832_v29 = vld [vmem:[%s9149_s23 + $0x8] sm:$0xff] }
 0x55c   :  { %v6073_v18 = vpack.c.bf16 %v1475_v15, %v1474_v17  ;;  %v5183_v15 = vld [vmem:[%s9148_s29 + $0x68] sm:$0xff] }
 0x55e   :  { %6074 = vmatprep.subr.bf16.mxu0 %v6073_v18 }
 0x55f   :  { %6076 = vmatpush3.bf16.msra.mxu0 %v6073_v18 }
 0x562   :  { %5760 = vmatmul.mubr.msk.f32.vlgmr.msra.gmra.mrb[28].mxu0 %vm106_vm0, %v7188_v14  ;;  %v6134_v14 = vadd.f32 %v1377_v35, %v7221_v51 }
 0x563   :  { %5762 = vmatprep.mubr.msk.f32.mxu0 %vm106_vm0, %v7193_v39  ;;  %v6135_v39 = vadd.f32 %v5744_v6, %v7230_v54 }
 0x564   :  { %v5158_v26 = vmul.f32 -1.442695, %v6134_v14 }
 0x565   :  { %v5161_v27 = vmul.f32 -1.442695, %v6135_v39  ;;  %v6081_v39 = vpack.c.bf16 %v5185_v24, %v5184_v23  ;;  %v6852_v23 = vld [vmem:[%s9108_s6 + $0x28] sm:$0xff] }
 0x566   :  { %5763 = vmatmul.mubr.msk.f32.gmra.mrb[30].mxu0 %vm106_vm0, %v7202_v40  ;;  %v6136_v40 = vadd.f32 %v1387_v41, %v7235_v55  ;;  %6401 = vpow2.f32 %v5158_v26  ;;  %v5176_v26 = vld [vmem:[%s9109_s0 + $0xb0] sm:$0xff] }
 0x567   :  { %6403 = vpow2.f32 %v5161_v27 }
 0x568   :  { %v5160_v28 = vmul.f32 -1.442695, %v6136_v40  ;;  %v5177_v40 = vld [vmem:[%s9109_s0 + $0xb8] sm:$0xff] }
 0x569   :  { %v1597_v27 = vpack.c.bf16 %v5177_v40, %v5176_v26 }
 0x56a   :  { %6405 = vpow2.f32 %v5160_v28  ;;  %v6831_v28 = vld [vmem:[%s9149_s23] sm:$0xff] }
 0x56b   :  { %6407 = vrcp.f32 %v1433_v42  ;;  %v6834_v42 = vld [vmem:[%s9149_s23 + $0x18] sm:$0xff] }
 0x570   :  { %v6402_v53 = vpop.eup %6401 }
 0x571   :  { %v6404_v56 = vpop.eup %6403  ;;  %v1432_v52 = vadd.f32 1.0, %v6402_v53  ;;  %v6833_v53 = vld [vmem:[%s9149_s23 + $0x10] sm:$0xff] }
 0x572   :  { %v1435_v51 = vadd.f32 1.0, %v6404_v56  ;;  %v6835_v56 = vld [vmem:[%s9149_s23 + $0x20] sm:$0xff] }
 0x573   :  { %6409 = vrcp.f32 %v1432_v52  ;;  %v6836_v52 = vld [vmem:[%s9149_s23 + $0x28] sm:$0xff] }
 0x574   :  { %v6406_v50 = vpop.eup %6405  ;;  %6411 = vrcp.f32 %v1435_v51  ;;  %v6838_v51 = vld [vmem:[%s9149_s23 + $0x38] sm:$0xff] }
 0x575   :  { %v1434_v32 = vadd.f32 1.0, %v6406_v50  ;;  %v6408_v11 = vpop.eup %6407  ;;  %v6837_v50 = vld [vmem:[%s9149_s23 + $0x30] sm:$0xff] }
 0x576   :  { %v1570_v59 = vsub.f32 1.0, %v6408_v11 }
 0x577   :  { %6413 = vrcp.f32 %v1434_v32  ;;  %v6839_v32 = vld [vmem:[%s9149_s23 + $0x40] sm:$0xff] }
 0x578   :  { %v1574_v2 = vmul.f32 %v1570_v59, %v7395_v44  ;;  %v6850_v59 = vld [vmem:[%s9106_s4 + $0x38] sm:$0xff] }
 0x57d   :  { %v6410_v10 = vpop.eup %6409 }
 0x57e   :  { %v6412_v0 = vpop.eup %6411  ;;  %v1569_v60 = vsub.f32 1.0, %v6410_v10 }
 0x57f   :  { %v1572_v37 = vsub.f32 1.0, %v6412_v0 }
 0x581   :  { %v1576_v45 = vmul.f32 %v1572_v37, %v7403_v48  ;;  %v5172_v48 = vld [vmem:[%s9109_s0 + $0x90] sm:$0xff] }
 0x635   :  { %v5761_v54 = vpop.f32.mrb[28].mxu0 }
 0x636   :  { %v6141_v55 = vadd.f32 %v5761_v54, %v7244_v1  ;;  %v1542_v35 = vpop.f32.mrb[29].mxu0  ;;  %v6414_v1 = vpop.eup %6413  ;;  %v6840_v54 = vld [vmem:[%s9149_s23 + $0x48] sm:$0xff] }
 0x637   :  { %v6142_v6 = vadd.f32 %v1542_v35, %v7249_v36  ;;  %v1571_v38 = vsub.f32 1.0, %v6414_v1  ;;  %v6842_v35 = vld [vmem:[%s9149_s23 + $0x58] sm:$0xff] }
 0x638   :  { %6415 = vtanh.f32 %v6141_v55  ;;  %v6841_v55 = vld [vmem:[%s9149_s23 + $0x50] sm:$0xff] }
 0x639   :  { %6417 = vtanh.f32 %v6142_v6  ;;  %v5764_v41 = vpop.f32.mrb[30].mxu0  ;;  %v1575_v13 = vmul.f32 %v1571_v38, %v7411_v58  ;;  %v5173_v58 = vld [vmem:[%s9109_s0 + $0x98] sm:$0xff]  ;;  %v6843_v6 = vld [vmem:[%s9106_s4] sm:$0xff] }
 0x63a   :  { %v6143_v57 = vadd.f32 %v5764_v41, %v7256_v9  ;;  %v1552_v8 = vpop.f32.mrb[31].mxu0  ;;  %v1573_v9 = vmul.f32 %v1569_v60, %v7397_v49  ;;  %v5182_v49 = vld [vmem:[%s9148_s29 + $0x60] sm:$0xff]  ;;  %v1595_v14 = vpack.c.bf16 %v5173_v58, %v5172_v48  ;;  %v6844_v41 = vld [vmem:[%s9106_s4 + $0x8] sm:$0xff] }
 0x63b   :  { %v6144_v34 = vadd.f32 %v1552_v8, %v7261_v47  ;;  %v6077_v18 = vpack.c.bf16 %v5183_v15, %v5182_v49  ;;  %v6846_v8 = vld [vmem:[%s9106_s4 + $0x18] sm:$0xff] }
 0x63c   :  { %6419 = vtanh.f32 %v6143_v57  ;;  %v6845_v57 = vld [vmem:[%s9106_s4 + $0x10] sm:$0xff] }
 0x63d   :  { %6421 = vtanh.f32 %v6144_v34  ;;  %v6847_v34 = vld [vmem:[%s9106_s4 + $0x20] sm:$0xff] }
 0x642   :  { %v6416_v61 = vpop.eup %6415 }
 0x643   :  { %v6418_v62 = vpop.eup %6417  ;;  %v1578_v36 = vmul.f32 %v6416_v61, %v6408_v11  ;;  %v6848_v11 = vld [vmem:[%s9106_s4 + $0x28] sm:$0xff] }
 0x644   :  { %v1577_v46 = vmul.f32 %v6418_v62, %v6410_v10  ;;  %v6849_v10 = vld [vmem:[%s9106_s4 + $0x30] sm:$0xff] }
 0x645   :  { %v7523_v63 = vadd.f32 %v1578_v36, %v1574_v2 }
 0x646   :  { %v6420_v47 = vpop.eup %6419  ;;  %v7525_v3 = vadd.f32 %v1577_v46, %v1573_v9 }
 0x647   :  { %v6422_v43 = vpop.eup %6421  ;;  %v1580_v4 = vmul.f32 %v6420_v47, %v6412_v0  ;;  %v6851_v0 = vld [vmem:[%s9107_s5] sm:$0xff] }
 0x648   :  { %v1579_v5 = vmul.f32 %v6422_v43, %v6414_v1  ;;  %v1598_v12 = vpack.c.bf16 %v7523_v63, %v7525_v3 }
 0x649   :  { %v7531_v44 = vadd.f32 %v1580_v4, %v1576_v45 }
 0x64a   :  { %5765 = vmatprep.subr.bf16.mxu1 %v1598_v12  ;;  %v7539_v16 = vadd.f32 %v1579_v5, %v1575_v13 }
 0x64b   :  { %5766 = vmatpush3.bf16.msra.mxu1 %v1598_v12 }
 0x64c   :  { %v1599_v17 = vpack.c.bf16 %v7531_v44, %v7539_v16 }
 0x64e   :  { %5767 = vmatprep.subr.bf16.mxu1 %v1599_v17 }
 0x64f   :  { %5768 = vmatpush3.bf16.msra.mxu1 %v1599_v17 }
 0x650   :  { %6078 = vmatprep.subr.bf16.mxu1 %v6077_v18 }
 0x652   :  { %5770 = vmatmul.mubr.msk.bf16.vlgmr.msra.gmra.mrb[24].mxu1 %vm106_vm0, %v1595_v14 }
 0x653   :  { %6080 = vmatpush3.bf16.msra.mxu1 %v6077_v18  ;;  %5773 = vmatprep.mubr.msk.bf16.mxu1 %vm106_vm0, %v1596_v25  ;;  %v6853_v25 = vld [vmem:[%s9108_s6 + $0x20] sm:$0xff] }
 0x654   :  { %6082 = vmatprep.subr.bf16.mxu1 %v6081_v39 }
 0x657   :  { %6084 = vmatpush3.bf16.msra.mxu1 %v6081_v39 }
 0x658   :  { %6086 = vmatprep.subr.bf16.mxu1 %v1598_v12 }
 0x65a   :  { %5774 = vmatmul.mubr.msk.bf16.gmra.mrb[28].mxu1 %vm106_vm0, %v1597_v27 }
 0x65b   :  { %5785 = vmatprep.mubr.msk.f32.mxu1 %vm106_vm0, %v6831_v28  ;;  %v6854_v28 = vld [vmem:[%s9108_s6 + $0x38] sm:$0xff] }
 0x662   :  { %5786 = vmatmul.mubr.msk.f32.vlgmr.msra.gmra.mrb[32].mxu1 %vm106_vm0, %v6832_v29 }
 0x663   :  { %6088 = vmatpush3.bf16.msra.mxu1 %v1598_v12  ;;  %5788 = vmatprep.mubr.msk.f32.mxu1 %vm106_vm0, %v6833_v53 }
 0x664   :  { %6090 = vmatprep.subr.bf16.mxu1 %v1599_v17 }
 0x666   :  { %5789 = vmatmul.mubr.msk.f32.gmra.mrb[34].mxu1 %vm106_vm0, %v6834_v42  ;;  %v6855_v42 = vld [vmem:[%s9108_s6 + $0x30] sm:$0xff] }
 0x667   :  { %6092 = vmatpush3.bf16.msra.mxu1 %v1599_v17  ;;  %5791 = vmatprep.mubr.msk.f32.mxu1 %vm106_vm0, %v6835_v56 }
 0x66a   :  { %5792 = vmatmul.mubr.msk.f32.gmra.mrb[36].mxu1 %vm106_vm0, %v6836_v52 }
 0x66b   :  { %5794 = vmatprep.mubr.msk.f32.mxu1 %vm106_vm0, %v6837_v50 }
 0x66e   :  { %5795 = vmatmul.mubr.msk.f32.gmra.mrb[38].mxu1 %vm106_vm0, %v6838_v51 }
 0x66f   :  { %5797 = vmatprep.mubr.msk.f32.mxu1 %vm106_vm0, %v6839_v32 }
 0x672   :  { %5798 = vmatmul.mubr.msk.f32.gmra.mrb[40].mxu1 %vm106_vm0, %v6840_v54 }
 0x673   :  { %5800 = vmatprep.mubr.msk.f32.mxu1 %vm106_vm0, %v6841_v55 }
 0x676   :  { %5801 = vmatmul.mubr.msk.f32.gmra.mrb[42].mxu1 %vm106_vm0, %v6842_v35 }
 0x677   :  { %5811 = vmatprep.mubr.msk.f32.mxu1 %vm106_vm0, %v6843_v6 }
 0x67a   :  { %5812 = vmatmul.mubr.msk.f32.vlgmr.msra.gmra.mrb[32].mxu1 %vm106_vm0, %v6844_v41 }
 0x67b   :  { %5814 = vmatprep.mubr.msk.f32.mxu1 %vm106_vm0, %v6845_v57 }
 0x67e   :  { %5815 = vmatmul.mubr.msk.f32.gmra.mrb[34].mxu1 %vm106_vm0, %v6846_v8 }
 0x67f   :  { %5817 = vmatprep.mubr.msk.f32.mxu1 %vm106_vm0, %v6847_v34 }
 0x682   :  { %5818 = vmatmul.mubr.msk.f32.gmra.mrb[36].mxu1 %vm106_vm0, %v6848_v11 }
 0x683   :  { %5820 = vmatprep.mubr.msk.f32.mxu1 %vm106_vm0, %v6849_v10 }
 0x686   :  { %5821 = vmatmul.mubr.msk.f32.gmra.mrb[38].mxu1 %vm106_vm0, %v6850_v59 }
 0x687   :  { %5831 = vmatprep.mubr.msk.f32.mxu1 %vm106_vm0, %v6851_v0 }
 0x725   :  { %v5771_v60 = vpop.f32.mrb[24].mxu1 }
 0x726   :  { %v1646_v1 = vpop.f32.mrb[25].mxu1  ;;  %v1679_v62 = vmax.f32 %v5771_v60, 0.0 }
 0x727   :  { %v5772_v61 = vpop.f32.mrb[26].mxu1  ;;  %v1677_v2 = vmax.f32 %v1646_v1, 0.0 }
 0x728   :  { %v1680_v37 = vmax.f32 %v5772_v61, 0.0  ;;  %v1649_v36 = vpop.f32.mrb[27].mxu1 }
 0x729   :  { %v1678_v38 = vmax.f32 %v1649_v36, 0.0  ;;  %v6857_v36 = vld [vmem:[%s9107_s5 + $0x10] sm:$0xff] }
 0x72a   :  { %v7654_v46 = vpack.c.bf16 %v1680_v37, %v1679_v62  ;;  %v6856_v37 = vld [vmem:[%s9107_s5 + $0x8] sm:$0xff] }
 0x72b   :  { %v7656_v9 = vpack.c.bf16 %v1678_v38, %v1677_v2  ;;  %v6858_v2 = vld [vmem:[%s9107_s5 + $0x18] sm:$0xff]  ;;  %v5218_v38 = vld [vmem:[%s9109_s0 + $0xc0] sm:$0xff]  ;;  %s6870_s5 = smov 64  }
 0x72d   :  { %v5775_v47 = vpop.f32.mrb[28].mxu1 }
 0x72e   :  { %v1662_v43 = vpop.f32.mrb[29].mxu1  ;;  %v1683_v45 = vmax.f32 %v5775_v47, 0.0  ;;  %v5219_v47 = vld [vmem:[%s9109_s0 + $0xc8] sm:$0xff] }
 0x72f   :  { %v5776_v4 = vpop.f32.mrb[30].mxu1  ;;  %v1681_v13 = vmax.f32 %v1662_v43, 0.0  ;;  %v2098_v43 = vpack.c.bf16 %v5219_v47, %v5218_v38 }
 0x730   :  { %v1684_v5 = vmax.f32 %v5776_v4, 0.0  ;;  %v1665_v12 = vpop.f32.mrb[31].mxu1  ;;  %v6859_v4 = vld [vmem:[%s9108_s6 + $0x8] sm:$0xff] }
 0x731   :  { %v1682_v49 = vmax.f32 %v1665_v12, 0.0  ;;  %5841 = vmatprep.mubr.msk.bf16.mxu0 %vm106_vm0, %v2098_v43 }
 0x732   :  { %v7658_v15 = vpack.c.bf16 %v1684_v5, %v1683_v45  ;;  %v6860_v5 = vld [vmem:[%s9108_s6] sm:$0xff] }
 0x733   :  { %v7660_v48 = vpack.c.bf16 %v1682_v49, %v1681_v13  ;;  %v6861_v49 = vld [vmem:[%s9108_s6 + $0x18] sm:$0xff] }
 0x74d   :  { %v5813_v58 = vpop.f32.mrb[32].mxu1 }
 0x74e   :  { %v1881_v17 = vpop.f32.mrb[33].mxu1  ;;  %v6145_v45 = vadd.f32 %v6859_v4, %v5813_v58 }
 0x74f   :  { %v6146_v12 = vadd.f32 %v6860_v5, %v1881_v17 }
 0x750   :  { %v5207_v13 = vmul.f32 -1.442695, %v6145_v45 }
 0x751   :  { %v7662_v18 = vpop.f32.mrb[34].mxu1 }
 0x752   :  { %v7664_v19 = vpop.f32.mrb[35].mxu1 }
 0x755   :  { %v5819_v22 = vpop.f32.mrb[36].mxu1 }
 0x756   :  { %v6149_v24 = vadd.f32 %v6852_v23, %v5819_v22  ;;  %v1901_v14 = vpop.f32.mrb[37].mxu1  ;;  %v6147_v22 = vadd.f32 %v6861_v49, %v7662_v18  ;;  %v5206_v23 = vmul.f32 -1.442695, %v6146_v12 }
 0x757   :  { %v6150_v39 = vadd.f32 %v6853_v25, %v1901_v14 }
 0x758   :  { %v5211_v26 = vmul.f32 -1.442695, %v6149_v24  ;;  %v6862_v24 = vld [vmem:[%s9108_s6 + $0x10] sm:$0xff]  ;;  %v5209_v58 = vmul.f32 -1.442695, %v6147_v22 }
 0x759   :  { %v5210_v40 = vmul.f32 -1.442695, %v6150_v39  ;;  %v5822_v27 = vpop.f32.mrb[38].mxu1  ;;  %v6148_v14 = vadd.f32 %v6862_v24, %v7664_v19  ;;  %v6863_v19 = vld [vmem:[%s9108_s6 + $0x48] sm:$0xff]  ;;  %v5222_v24 = vld [vmem:[%s9109_s0 + $0xe0] sm:$0xff] }
 0x75a   :  { %6423 = vpow2.f32 %v5211_v26  ;;  %v6151_v29 = vadd.f32 %v6854_v28, %v5822_v27  ;;  %v1911_v53 = vpop.f32.mrb[39].mxu1 }
 0x75b   :  { %6425 = vpow2.f32 %v5210_v40  ;;  %v6152_v56 = vadd.f32 %v6855_v42, %v1911_v53  ;;  %v5208_v25 = vmul.f32 -1.442695, %v6148_v14  ;;  %v5223_v14 = vld [vmem:[%s9109_s0 + $0xe8] sm:$0xff] }
 0x75c   :  { %v5213_v52 = vmul.f32 -1.442695, %v6151_v29 }
 0x75d   :  { %v5212_v50 = vmul.f32 -1.442695, %v6152_v56 }
 0x75e   :  { %6427 = vpow2.f32 %v5213_v52  ;;  %v6864_v52 = vld [vmem:[%s9108_s6 + $0x40] sm:$0xff] }
 0x75f   :  { %6429 = vpow2.f32 %v5212_v50 }
 0x764   :  { %v6424_v51 = vpop.eup %6423 }
 0x765   :  { %v6426_v32 = vpop.eup %6425  ;;  %v1965_v54 = vadd.f32 1.0, %v6424_v51 }
 0x766   :  { %v1964_v55 = vadd.f32 1.0, %v6426_v32  ;;  %v6865_v32 = vld [vmem:[%s9108_s6 + $0x58] sm:$0xff] }
 0x767   :  { %6431 = vrcp.f32 %v1965_v54 }
 0x768   :  { %v6428_v35 = vpop.eup %6427  ;;  %6433 = vrcp.f32 %v1964_v55 }
 0x769   :  { %v1967_v6 = vadd.f32 1.0, %v6428_v35  ;;  %v6430_v41 = vpop.eup %6429  ;;  %v6866_v35 = vld [vmem:[%s9108_s6 + $0x50] sm:$0xff] }
 0x76a   :  { %v1966_v57 = vadd.f32 1.0, %v6430_v41 }
 0x76b   :  { %6435 = vrcp.f32 %v1967_v6 }
 0x76c   :  { %6437 = vrcp.f32 %v1966_v57 }
 0x76d   :  { %6439 = vpow2.f32 %v5207_v13 }
 0x76e   :  { %6441 = vpow2.f32 %v5206_v23 }
 0x76f   :  { %6443 = vpow2.f32 %v5209_v58 }
 0x770   :  { %6445 = vpow2.f32 %v5208_v25  ;;  %v2207_v25 = vld [vmem:[%s9110_s8 + $0x10] sm:$0xff] }
 0x771   :  { %v6432_v8 = vpop.eup %6431 }
 0x772   :  { %v6434_v34 = vpop.eup %6433  ;;  %v1977_v11 = vmul.f32 %v6432_v8, %v7523_v63 }
 0x773   :  { %v1976_v10 = vmul.f32 %v6434_v34, %v7525_v3 }
 0x775   :  { %v6436_v59 = vpop.eup %6435  ;;  %v6093_v0 = vpack.c.bf16 %v1977_v11, %v1976_v10 }
 0x776   :  { %v1979_v60 = vmul.f32 %v6436_v59, %v7531_v44  ;;  %v6438_v1 = vpop.eup %6437 }
 0x777   :  { %6094 = vmatprep.subr.bf16.mxu1 %v6093_v0  ;;  %v1978_v61 = vmul.f32 %v6438_v1, %v7539_v16  ;;  %v6440_v17 = vpop.eup %6439 }
 0x778   :  { %6096 = vmatpush3.bf16.msra.mxu1 %v6093_v0  ;;  %v6442_v39 = vpop.eup %6441  ;;  %v1937_v26 = vadd.f32 1.0, %v6440_v17  ;;  %v2208_v17 = vld [vmem:[%s9110_s8 + $0x18] sm:$0xff] }
 0x779   :  { %v6097_v62 = vpack.c.bf16 %v1979_v60, %v1978_v61  ;;  %v6444_v40 = vpop.eup %6443  ;;  %v1936_v27 = vadd.f32 1.0, %v6442_v39 }
 0x77a   :  { %v6446_v28 = vpop.eup %6445  ;;  %6447 = vrcp.f32 %v1937_v26  ;;  %v1939_v18 = vadd.f32 1.0, %v6444_v40  ;;  %v2100_v26 = vpack.c.bf16 %v5223_v14, %v5222_v24  ;;  %v2210_v40 = vpack.c.bf16 %v2208_v17, %v2207_v25 }
 0x77b   :  { %6098 = vmatprep.subr.bf16.mxu1 %v6097_v62  ;;  %6449 = vrcp.f32 %v1936_v27  ;;  %v1938_v29 = vadd.f32 1.0, %v6446_v28  ;;  %v2758_v27 = vld [vmem:[%s9111_s10] sm:$0xff]  ;;  %v2759_v28 = vld [vmem:[%s9111_s10 + $0x8] sm:$0xff] }
 0x77c   :  { %6100 = vmatpush3.bf16.msra.mxu1 %v6097_v62  ;;  %6451 = vrcp.f32 %v1939_v18  ;;  %v5224_v18 = vld [vmem:[%s9109_s0 + $0xf0] sm:$0xff] }
 0x77d   :  { %6453 = vrcp.f32 %v1938_v29  ;;  %v5225_v29 = vld [vmem:[%s9109_s0 + $0xf8] sm:$0xff] }
 0x77f   :  { %5832 = vmatmul.mubr.msk.f32.vlgmr.msra.gmra.mrb[40].mxu1 %vm106_vm0, %v6856_v37 }
 0x780   :  { %5834 = vmatprep.mubr.msk.f32.mxu1 %vm106_vm0, %v6857_v36 }
 0x783   :  { %5835 = vmatmul.mubr.msk.f32.gmra.mrb[42].mxu1 %vm106_vm0, %v6858_v2 }
 0x784   :  { %v6448_v41 = vpop.eup %6447 }
 0x785   :  { %v6450_v57 = vpop.eup %6449  ;;  %v2074_v8 = vsub.f32 1.0, %v6448_v41 }
 0x786   :  { %v6452_v34 = vpop.eup %6451  ;;  %v2073_v11 = vsub.f32 1.0, %v6450_v57 }
 0x787   :  { %v6454_v10 = vpop.eup %6453  ;;  %v2078_v60 = vmul.f32 %v2074_v8, %v7523_v63  ;;  %v2076_v61 = vsub.f32 1.0, %v6452_v34  ;;  %v2205_v63 = vld [vmem:[%s9110_s8] sm:$0xff]  ;;  %v2218_v8 = vld [vmem:[%s9113_s2 + $0x38] sm:$0xff] }
 0x788   :  { %v2077_v62 = vmul.f32 %v2073_v11, %v7525_v3  ;;  %v2075_v36 = vsub.f32 1.0, %v6454_v10  ;;  %v2206_v3 = vld [vmem:[%s9110_s8 + $0x8] sm:$0xff] }
 0x789   :  { %v2080_v4 = vmul.f32 %v2076_v61, %v7531_v44  ;;  %v5220_v44 = vld [vmem:[%s9109_s0 + $0xd0] sm:$0xff]  ;;  %v2209_v58 = vpack.c.bf16 %v2206_v3, %v2205_v63 }
 0x78a   :  { %v2079_v12 = vmul.f32 %v2075_v36, %v7539_v16  ;;  %v5221_v16 = vld [vmem:[%s9109_s0 + $0xd8] sm:$0xff] }
 0x78b   :  { %v2099_v39 = vpack.c.bf16 %v5221_v16, %v5220_v44 }
 0x852   :  { %v5833_v53 = vpop.f32.mrb[40].mxu1 }
 0x853   :  { %v6153_v42 = vadd.f32 %v6863_v19, %v5833_v53  ;;  %v2046_v56 = vpop.f32.mrb[41].mxu1  ;;  %v7769_v53 = vpack.c.bf16 %v2759_v28, %v2758_v27  ;;  %v2101_v19 = vpack.c.bf16 %v5225_v29, %v5224_v18 }
 0x854   :  { %v6154_v50 = vadd.f32 %v6864_v52, %v2046_v56  ;;  %v9154_v56 = vld [vmem:[#allocation4_spill] sm:$0xff] }
 0x855   :  { %6455 = vtanh.f32 %v6153_v42  ;;  %v9153_v42 = vld [vmem:[#allocation5_spill] sm:$0xff] }
 0x856   :  { %6457 = vtanh.f32 %v6154_v50  ;;  %v5836_v51 = vpop.f32.mrb[42].mxu1  ;;  %v2212_v52 = vld [vmem:[%s9113_s2 + $0x8] sm:$0xff] }
 0x857   :  { %v6155_v54 = vadd.f32 %v6865_v32, %v5836_v51  ;;  %v2056_v55 = vpop.f32.mrb[43].mxu1  ;;  %v2213_v51 = vld [vmem:[%s9113_s2 + $0x10] sm:$0xff]  ;;  %v2214_v32 = vld [vmem:[%s9113_s2 + $0x18] sm:$0xff] }
 0x858   :  { %v6156_v6 = vadd.f32 %v6866_v35, %v2056_v55  ;;  %v6868_v55 = vmov 0   ;;  %v2215_v35 = vld [vmem:[%s9113_s2 + $0x20] sm:$0xff] }
 0x859   :  { %6459 = vtanh.f32 %v6155_v54  ;;  %v2244_v54 = vpack.c.bf16 %v2214_v32, %v2213_v51  ;;  %6302 = vset.pattern.permute.xlu1 %v6868_v55  ;;  %6301 = vset.pattern.permute.xlu0 %v6868_v55 }
 0x85a   :  { %6461 = vtanh.f32 %v6156_v6  ;;  %v2216_v6 = vld [vmem:[%s9113_s2 + $0x28] sm:$0xff] }
 0x85f   :  { %v6456_v59 = vpop.eup %6455 }
 0x860   :  { %v6458_v0 = vpop.eup %6457  ;;  %v2082_v1 = vmul.f32 %v6456_v59, %v6448_v41  ;;  %v2217_v41 = vld [vmem:[%s9113_s2 + $0x30] sm:$0xff] }
 0x861   :  { %v2081_v37 = vmul.f32 %v6458_v0, %v6450_v57  ;;  %v2245_v57 = vpack.c.bf16 %v2216_v6, %v2215_v35 }
 0x862   :  { %v2086_v2 = vadd.f32 %v2082_v1, %v2078_v60 }
 0x863   :  { %v6460_v38 = vpop.eup %6459  ;;  %v2085_v47 = vadd.f32 %v2081_v37, %v2077_v62 }
 0x864   :  { %v6462_v43 = vpop.eup %6461  ;;  %v2084_v45 = vmul.f32 %v6460_v38, %v6452_v34  ;;  %v2246_v34 = vpack.c.bf16 %v2218_v8, %v2217_v41 }
 0x865   :  { %v2102_v5 = vpack.c.bf16 %v2086_v2, %v2085_v47  ;;  %v2083_v13 = vmul.f32 %v6462_v43, %v6454_v10 }
 0x866   :  { %v2088_v49 = vadd.f32 %v2084_v45, %v2080_v4 }
 0x867   :  { %5837 = vmatprep.subr.bf16.mxu0 %v2102_v5  ;;  %v2087_v22 = vadd.f32 %v2083_v13, %v2079_v12 }
 0x868   :  { %5838 = vmatpush3.bf16.msra.mxu0 %v2102_v5 }
 0x869   :  { %v2103_v23 = vpack.c.bf16 %v2088_v49, %v2087_v22 }
 0x86b   :  { %5839 = vmatprep.subr.bf16.mxu0 %v2103_v23 }
 0x86c   :  { %5840 = vmatpush3.bf16.msra.mxu0 %v2103_v23 }
 0x86d   :  { %5885 = vmatprep.subr.bf16.mxu0 %v2209_v58 }
 0x86f   :  { %5842 = vmatmul.mubr.msk.bf16.vlgmr.msra.gmra.mrb[32].mxu0 %vm106_vm0, %v2099_v39 }
 0x870   :  { %5845 = vmatprep.mubr.msk.bf16.mxu0 %vm106_vm0, %v2100_v26  ;;  %5886 = vmatpush3.bf16.msra.mxu0 %v2209_v58  ;;  %v7857_v58 = vld [vmem:[%s9114_s11] ss:$0 sm:$0xff] }
 0x871   :  { %5887 = vmatprep.subr.bf16.mxu0 %v2210_v40 }
 0x874   :  { %5888 = vmatpush3.bf16.msra.mxu0 %v2210_v40 }
 0x875   :  { %5921 = vmatprep.subr.bf16.mxu0 %v7769_v53 }
 0x877   :  { %5846 = vmatmul.mubr.msk.bf16.gmra.mrb[36].mxu0 %vm106_vm0, %v2101_v19 }
 0x878   :  { %5889 = vmatprep.mubr.msk.bf16.mxu0 %vm106_vm0, %v7358_v33  ;;  %v2761_v33 = vld [vmem:[%s9111_s10 + $0x18] sm:$0xff] }
 0x87f   :  { %5890 = vmatmul.mubr.msk.bf16.vlgmr.msra.gmra.mrb[40].mxu0 %vm106_vm0, %v7356_v7  ;;  %v2760_v7 = vld [vmem:[%s9111_s10 + $0x10] sm:$0xff] }
 0x880   :  { %5893 = vmatprep.mubr.msk.bf16.mxu0 %vm106_vm0, %v9153_v42  ;;  %5922 = vmatpush3.bf16.msra.mxu0 %v7769_v53 }
 0x887   :  { %5894 = vmatmul.mubr.msk.bf16.gmra.mrb[44].mxu0 %vm106_vm0, %v9154_v56 }
 0x888   :  { %5897 = vmatprep.mubr.msk.bf16.mxu0 %vm106_vm0, %v7486_v21  ;;  %v2259_v21 = vld [vmem:[%s9112_s9] sm:$0xff] }
 0x88f   :  { %5898 = vmatmul.mubr.msk.bf16.gmra.mrb[48].mxu0 %vm106_vm0, %v7484_v20  ;;  %v7804_v20 = vpack.c.bf16 %v2761_v33, %v2760_v7 }
 0x890   :  { %5901 = vmatprep.mubr.msk.bf16.mxu0 %vm106_vm0, %v7490_v31 }
 0x891   :  { %5923 = vmatprep.subr.bf16.mxu0 %v7804_v20 }
 0x892   :  { %5924 = vmatpush3.bf16.msra.mxu0 %v7804_v20 }
 0x893   :  { %5933 = vmatprep.subr.bf16.mxu0 %v7769_v53 }
 0x897   :  { %5902 = vmatmul.mubr.msk.bf16.gmra.mrb[52].mxu0 %vm106_vm0, %v7488_v30  ;;  %v2260_v30 = vld [vmem:[%s9112_s9 + $0x8] sm:$0xff] }
 0x898   :  { %5905 = vmatprep.mubr.msk.bf16.mxu0 %vm106_vm0, %v7656_v9  ;;  %v2262_v31 = vpack.c.bf16 %v2260_v30, %v2259_v21 }
 0x89a   :  { %5849 = vmatprep.subr.bf16.mxu1 %v2262_v31 }
 0x89b   :  { %5850 = vmatpush3.bf16.msra.mxu1 %v2262_v31 }
 0x89f   :  { %5906 = vmatmul.mubr.msk.bf16.gmra.mrb[56].mxu0 %vm106_vm0, %v7654_v46  ;;  %v2261_v46 = vld [vmem:[%s9112_s9 + $0x10] sm:$0xf] }
 0x8a0   :  { %5909 = vmatprep.mubr.msk.bf16.mxu0 %vm106_vm0, %v7660_v48  ;;  %v2263_v9 = vpack.c.bf16 %v2261_v46, %v2261_v46  ;;  %v2211_v48 = vld [vmem:[%s9113_s2] sm:$0xff] }
 0x8a1   :  { %v2243_v50 = vpack.c.bf16 %v2212_v52, %v2211_v48 }
 0x8a2   :  { %6297 = vmatprep.subr.msk.bf16.mxu1 %vm2313_vm1, %v2263_v9 }
 0x8a3   :  { %5853 = vmatprep.mubr.msk.bf16.mxu1 %vm2264_vm2, %v2243_v50 }
 0x8a7   :  { %5910 = vmatmul.mubr.msk.bf16.gmra.mrb[60].mxu0 %vm106_vm0, %v7658_v15  ;;  %v2315_v15 = vsel %vm2313_vm1, %v2263_v9, 0 }
 0x8a8   :  { %5852 = vmatpush3.bf16.msra.mxu1 %v2315_v15 }
 0x8ab   :  { %5854 = vmatmul.mubr.msk.bf16.vlgmr.msra.gmra.mrb[44].mxu1 %vm2264_vm2, %v2244_v54 }
 0x8ac   :  { %5857 = vmatprep.mubr.msk.bf16.mxu1 %vm2264_vm2, %v2245_v57 }
 0x8b3   :  { %5858 = vmatmul.mubr.msk.bf16.gmra.mrb[48].mxu1 %vm2264_vm2, %v2246_v34 }
 0x942   :  { %v5843_v11 = vpop.f32.mrb[32].mxu0 }
 0x943   :  { %v2150_v10 = vpop.f32.mrb[33].mxu0  ;;  %v2183_v0 = vmax.f32 %v5843_v11, 0.0 }
 0x944   :  { %v5844_v59 = vpop.f32.mrb[34].mxu0  ;;  %v2181_v61 = vmax.f32 %v2150_v10, 0.0 }
 0x945   :  { %v2184_v60 = vmax.f32 %v5844_v59, 0.0  ;;  %v2153_v1 = vpop.f32.mrb[35].mxu0 }
 0x946   :  { %v2182_v62 = vmax.f32 %v2153_v1, 0.0 }
 0x947   :  { %v2202_v37 = vpack.c.bf16 %v2184_v60, %v2183_v0 }
 0x948   :  { %v2201_v36 = vpack.c.bf16 %v2182_v62, %v2181_v61 }
 0x94a   :  { %v5847_v2 = vpop.f32.mrb[36].mxu0  ;;  %5913 = vmatprep.mubr.msk.bf16.mxu0 %vm106_vm0, %v2201_v36 }
 0x94b   :  { %v2166_v38 = vpop.f32.mrb[37].mxu0  ;;  %5914 = vmatmul.mubr.msk.bf16.gmra.mrb[64].mxu0 %vm106_vm0, %v2202_v37  ;;  %v2187_v43 = vmax.f32 %v5847_v2, 0.0 }
 0x94c   :  { %v5848_v47 = vpop.f32.mrb[38].mxu0  ;;  %v2185_v5 = vmax.f32 %v2166_v38, 0.0 }
 0x94d   :  { %v2188_v4 = vmax.f32 %v5848_v47, 0.0  ;;  %v2169_v45 = vpop.f32.mrb[39].mxu0 }
 0x94e   :  { %v2186_v12 = vmax.f32 %v2169_v45, 0.0 }
 0x94f   :  { %v2204_v13 = vpack.c.bf16 %v2188_v4, %v2187_v43 }
 0x950   :  { %v2203_v49 = vpack.c.bf16 %v2186_v12, %v2185_v5 }
 0x952   :  { %5917 = vmatprep.mubr.msk.bf16.mxu0 %vm106_vm0, %v2203_v49 }
 0x953   :  { %5918 = vmatmul.mubr.msk.bf16.gmra.mrb[68].mxu0 %vm106_vm0, %v2204_v13 }
 0x954   :  { %5925 = vmatprep.mubr.bf16.mxu0 %v6868_v55 }
 0x95b   :  { %5926 = vmatmul.mubr.bf16.vlgmr.msra.gmra.mrb[40].mxu0 %v6868_v55 }
 0x95c   :  { %5929 = vmatprep.mubr.bf16.mxu0 %v6868_v55  ;;  %5934 = vmatpush3.bf16.msra.mxu0 %v7769_v53 }
 0x95d   :  { %5935 = vmatprep.subr.bf16.mxu0 %v7804_v20 }
 0x960   :  { %5936 = vmatpush3.bf16.msra.mxu0 %v7804_v20 }
 0x961   :  { %5945 = vmatprep.subr.bf16.mxu0 %v7769_v53 }
 0x963   :  { %5930 = vmatmul.mubr.bf16.gmra.mrb[44].mxu0 %v6868_v55 }
 0x97e   :  { %v5855_v63 = vpop.f32.mrb[44].mxu1 }
 0x97f   :  { %v2351_v3 = vpop.f32.mrb[45].mxu1  ;;  %v6157_v25 = vadd.f32 %v5855_v63, %v7857_v58 }
 0x980   :  { %v5856_v22 = vpop.f32.mrb[46].mxu1  ;;  %v6159_v17 = vadd.f32 %v7857_v58, %v2351_v3 }
 0x981   :  { %v2354_v44 = vpop.f32.mrb[47].mxu1  ;;  %v6161_v26 = vadd.f32 %v5856_v22, %v7857_v58 }
 0x982   :  { %v6163_v28 = vadd.f32 %v7857_v58, %v2354_v44 }
 0x986   :  { %v5859_v16 = vpop.f32.mrb[48].mxu1 }
 0x987   :  { %v2367_v23 = vpop.f32.mrb[49].mxu1  ;;  %v6165_v7 = vadd.f32 %v5859_v16, %v7857_v58 }
 0x988   :  { %v5860_v24 = vpop.f32.mrb[50].mxu1  ;;  %v6167_v33 = vadd.f32 %v7857_v58, %v2367_v23 }
 0x989   :  { %v2370_v14 = vpop.f32.mrb[51].mxu1  ;;  %v6169_v21 = vadd.f32 %v5860_v24, %v7857_v58 }
 0x98a   :  { %v6171_v31 = vadd.f32 %v7857_v58, %v2370_v14 }
 0xa2e   :  { %v5927_v39 = vpop.f32.mrb[40].mxu0 }
 0xa2f   :  { %v6158_v40 = vadd.f32 %v6157_v25, %v5927_v39  ;;  %v2811_v27 = vpop.f32.mrb[41].mxu0 }
 0xa30   :  { %v6160_v18 = vadd.f32 %v6159_v17, %v2811_v27  ;;  %v5928_v29 = vpop.f32.mrb[42].mxu0 }
 0xa31   :  { %6463 = vtanh.f32 %v6158_v40  ;;  %v6162_v19 = vadd.f32 %v6161_v26, %v5928_v29  ;;  %v2814_v42 = vpop.f32.mrb[43].mxu0  ;;  %v5265_v11 = vmul.f32 -1.442695, %v6158_v40 }
 0xa32   :  { %6465 = vtanh.f32 %v6160_v18  ;;  %v6164_v56 = vadd.f32 %v6163_v28, %v2814_v42  ;;  %v5263_v34 = vmul.f32 -1.442695, %v6160_v18 }
 0xa33   :  { %6467 = vtanh.f32 %v6162_v19  ;;  %v5266_v59 = vmul.f32 -1.442695, %v6162_v19 }
 0xa34   :  { %6469 = vtanh.f32 %v6164_v56  ;;  %v5264_v10 = vmul.f32 -1.442695, %v6164_v56 }
 0xa36   :  { %v5931_v30 = vpop.f32.mrb[44].mxu0 }
 0xa37   :  { %v6166_v46 = vadd.f32 %v6165_v7, %v5931_v30  ;;  %v2827_v9 = vpop.f32.mrb[45].mxu0 }
 0xa38   :  { %v6168_v15 = vadd.f32 %v6167_v33, %v2827_v9  ;;  %v5932_v48 = vpop.f32.mrb[46].mxu0 }
 0xa39   :  { %v6170_v52 = vadd.f32 %v6169_v21, %v5932_v48  ;;  %v2830_v50 = vpop.f32.mrb[47].mxu0  ;;  %v5269_v1 = vmul.f32 -1.442695, %v6166_v46 }
 0xa3a   :  { %6471 = vtanh.f32 %v6168_v15  ;;  %v6172_v51 = vadd.f32 %v6171_v31, %v2830_v50  ;;  %v5267_v0 = vmul.f32 -1.442695, %v6168_v15 }
 0xa3b   :  { %v6464_v32 = vpop.eup %6463  ;;  %6473 = vtanh.f32 %v6166_v46  ;;  %v5270_v2 = vmul.f32 -1.442695, %v6170_v52 }
 0xa3c   :  { %v6466_v54 = vpop.eup %6465  ;;  %2926 = vrot.lane.b32.xlu1 %v6464_v32, %s6869_s24  ;;  %6475 = vtanh.f32 %v6172_v51  ;;  %v5268_v61 = vmul.f32 -1.442695, %v6172_v51 }
 0xa3d   :  { %2922 = vrot.lane.b32.xlu0 %v6466_v54, %s6869_s24  ;;  %v6468_v55 = vpop.eup %6467  ;;  %6477 = vtanh.f32 %v6170_v52 }
 0xa3e   :  { %v6470_v35 = vpop.eup %6469  ;;  %6479 = vpow2.f32 %v5263_v34 }
 0xa3f   :  { %6481 = vpow2.f32 %v5265_v11 }
 0xa40   :  { %2928 = vrot.lane.b32.xlu1 %v6468_v55, %s6869_s24  ;;  %6483 = vpow2.f32 %v5264_v10 }
 0xa41   :  { %2924 = vrot.lane.b32.xlu0 %v6470_v35, %s6869_s24  ;;  %6485 = vpow2.f32 %v5266_v59 }
 0xa42   :  { %6487 = vpow2.f32 %v5267_v0 }
 0xa43   :  { %6489 = vpow2.f32 %v5269_v1 }
 0xa44   :  { %v6472_v6 = vpop.eup %6471  ;;  %6491 = vpow2.f32 %v5268_v61 }
 0xa45   :  { %2930 = vrot.lane.b32.xlu0 %v6472_v6, %s6869_s24  ;;  %v6474_v41 = vpop.eup %6473 }
 0xa46   :  { %v6476_v57 = vpop.eup %6475 }
 0xa47   :  { %2932 = vrot.lane.b32.xlu1 %v6476_v57, %s6869_s24  ;;  %v6478_v8 = vpop.eup %6477 }
 0xa48   :  { %v6480_v60 = vpop.eup %6479 }
 0xa49   :  { %2934 = vrot.lane.b32.xlu0 %v6474_v41, %s6869_s24  ;;  %v2874_v62 = vadd.f32 1.0, %v6480_v60  ;;  %v6482_v37 = vpop.eup %6481 }
 0xa4a   :  { %v6484_v36 = vpop.eup %6483  ;;  %v2876_v38 = vadd.f32 1.0, %v6482_v37 }
 0xa4b   :  { %2936 = vrot.lane.b32.xlu1 %v6478_v8, %s6869_s24  ;;  %6493 = vrcp.f32 %v2874_v62  ;;  %v6486_v47 = vpop.eup %6485  ;;  %v2875_v43 = vadd.f32 1.0, %v6484_v36 }
 0xa4c   :  { %v6488_v4 = vpop.eup %6487  ;;  %6495 = vpow2.f32 %v5270_v2  ;;  %v2877_v45 = vadd.f32 1.0, %v6486_v47 }
 0xa4d   :  { %6497 = vrcp.f32 %v2876_v38  ;;  %v2878_v5 = vadd.f32 1.0, %v6488_v4  ;;  %v6490_v12 = vpop.eup %6489 }
 0xa4e   :  { %6499 = vrcp.f32 %v2875_v43  ;;  %v6492_v13 = vpop.eup %6491  ;;  %v2880_v63 = vadd.f32 1.0, %v6490_v12 }
 0xa4f   :  { %6501 = vrcp.f32 %v2877_v45  ;;  %v2879_v23 = vadd.f32 1.0, %v6492_v13  ;;  %v2219_v13 = vld [vmem:[%s9113_s2 + $0x40] sm:$0xff] }
 0xa50   :  { %6503 = vrcp.f32 %v2878_v5 }
 0xa51   :  { %6505 = vrcp.f32 %v2880_v63  ;;  %v2220_v63 = vld [vmem:[%s9113_s2 + $0x48] sm:$0xff] }
 0xa52   :  { %6507 = vrcp.f32 %v2879_v23 }
 0xa55   :  { %v7875_v49 = vpop.eup %6493 }
 0xa56   :  { %v6496_v16 = vpop.eup %6495  ;;  %v2906_v15 = vmul.f32 0.0, %v7875_v49 }
 0xa57   :  { %v7879_v24 = vpop.eup %6497  ;;  %v2881_v39 = vadd.f32 1.0, %v6496_v16 }
 0xa58   :  { %v7882_v25 = vpop.eup %6499  ;;  %v2908_v50 = vmul.f32 0.0, %v7879_v24 }
 0xa59   :  { %v7886_v27 = vpop.eup %6501  ;;  %6509 = vrcp.f32 %v2881_v39  ;;  %v2907_v54 = vmul.f32 0.0, %v7882_v25 }
 0xa5a   :  { %v7889_v28 = vpop.eup %6503  ;;  %v2909_v41 = vmul.f32 0.0, %v7886_v27 }
 0xa5b   :  { %v7895_v42 = vpop.eup %6505  ;;  %v2910_v6 = vmul.f32 0.0, %v7889_v28 }
 0xa5c   :  { %v7898_v33 = vpop.eup %6507  ;;  %v2912_v59 = vmul.f32 0.0, %v7895_v42 }
 0xa5d   :  { %v2911_v1 = vmul.f32 0.0, %v7898_v33 }
 0xa63   :  { %v7903_v31 = vpop.eup %6509 }
 0xa64   :  { %v2913_v2 = vmul.f32 0.0, %v7903_v31 }
 0xaae   :  { %v2927_v44 = vpop.permute.xlu1 %2926 }
 0xaaf   :  { %v2923_v3 = vpop.permute.xlu0 %2922  ;;  %v2948_v14 = vmul.f32 %v7879_v24, %v2927_v44  ;;  %v2222_v44 = vld [vmem:[%s9113_s2 + $0x58] sm:$0xff] }
 0xab0   :  { %v2946_v22 = vmul.f32 %v7875_v49, %v2923_v3  ;;  %v2221_v3 = vld [vmem:[%s9113_s2 + $0x50] sm:$0xff] }
 0xab1   :  { %v2248_v16 = vpack.c.bf16 %v2222_v44, %v2221_v3 }
 0xab2   :  { %2962 = vrot.lane.b32.xlu0 %v2946_v22, %s6869_s24  ;;  %v2929_v40 = vpop.permute.xlu1 %2928  ;;  %v2247_v22 = vpack.c.bf16 %v2220_v63, %v2219_v13 }
 0xab3   :  { %v2925_v17 = vpop.permute.xlu0 %2924  ;;  %v2949_v29 = vmul.f32 %v7886_v27, %v2929_v40 }
 0xab4   :  { %v2947_v26 = vmul.f32 %v7882_v25, %v2925_v17  ;;  %5861 = vmatprep.mubr.msk.bf16.mxu1 %vm2264_vm2, %v2247_v22 }
 0xab5   :  { %5862 = vmatmul.mubr.msk.bf16.gmra.mrb[52].mxu1 %vm2264_vm2, %v2248_v16 }
 0xab6   :  { %2966 = vrot.lane.b32.xlu0 %v2948_v14, %s6869_s24  ;;  %2964 = vrot.lane.b32.xlu1 %v2947_v26, %s6869_s24 }
 0xab7   :  { %v2931_v18 = vpop.permute.xlu0 %2930 }
 0xab8   :  { %v2950_v19 = vmul.f32 %v7889_v28, %v2931_v18  ;;  %v2223_v18 = vld [vmem:[%s9113_s2 + $0x60] sm:$0xff] }
 0xab9   :  { %v2933_v21 = vpop.permute.xlu1 %2932 }
 0xaba   :  { %2970 = vrot.lane.b32.xlu0 %v2950_v19, %s6869_s24  ;;  %2968 = vrot.lane.b32.xlu1 %v2949_v29, %s6869_s24  ;;  %v2951_v30 = vmul.f32 %v7898_v33, %v2933_v21  ;;  %v2224_v29 = vld [vmem:[%s9113_s2 + $0x68] sm:$0xff] }
 0xabb   :  { %v2935_v56 = vpop.permute.xlu0 %2934  ;;  %v2249_v19 = vpack.c.bf16 %v2224_v29, %v2223_v18 }
 0xabc   :  { %v2952_v7 = vmul.f32 %v7895_v42, %v2935_v56 }
 0xabd   :  { %v2937_v46 = vpop.permute.xlu1 %2936  ;;  %5865 = vmatprep.mubr.msk.bf16.mxu1 %vm2264_vm2, %v2249_v19 }
 0xabe   :  { %2974 = vrot.lane.b32.xlu0 %v2952_v7, %s6869_s24  ;;  %2972 = vrot.lane.b32.xlu1 %v2951_v30, %s6869_s24  ;;  %v2953_v9 = vmul.f32 %v7903_v31, %v2937_v46 }
 0xac2   :  { %2976 = vrot.lane.b32.xlu1 %v2953_v9, %s6869_s24 }
 0xb24   :  { %v2963_v48 = vpop.permute.xlu0 %2962 }
 0xb25   :  { %v7908_v52 = vadd.f32 %v2963_v48, %v2906_v15 }
 0xb27   :  { %6511 = vtanh.f32 %v7908_v52 }
 0xb28   :  { %v2967_v51 = vpop.permute.xlu0 %2966  ;;  %v2965_v55 = vpop.permute.xlu1 %2964 }
 0xb29   :  { %v7912_v32 = vadd.f32 %v2967_v51, %v2908_v50  ;;  %v7916_v35 = vadd.f32 %v2965_v55, %v2907_v54 }
 0xb2b   :  { %6513 = vtanh.f32 %v7912_v32 }
 0xb2c   :  { %6515 = vtanh.f32 %v7916_v35  ;;  %v2971_v57 = vpop.permute.xlu0 %2970  ;;  %v2969_v8 = vpop.permute.xlu1 %2968 }
 0xb2d   :  { %v7921_v34 = vadd.f32 %v2971_v57, %v2910_v6  ;;  %v7923_v11 = vadd.f32 %v2969_v8, %v2909_v41 }
 0xb2f   :  { %6517 = vtanh.f32 %v7921_v34 }
 0xb30   :  { %6519 = vtanh.f32 %v7923_v11  ;;  %v2975_v0 = vpop.permute.xlu0 %2974  ;;  %v2973_v62 = vpop.permute.xlu1 %2972 }
 0xb31   :  { %v6512_v10 = vpop.eup %6511  ;;  %v7929_v60 = vadd.f32 %v2975_v0, %v2912_v59  ;;  %v7933_v37 = vadd.f32 %v2973_v62, %v2911_v1 }
 0xb32   :  { %3010 = vrot.lane.b32.xlu0 %v6512_v10, %s6869_s24 }
 0xb33   :  { %6521 = vtanh.f32 %v7929_v60 }
 0xb34   :  { %6523 = vtanh.f32 %v7933_v37  ;;  %v2977_v38 = vpop.permute.xlu1 %2976 }
 0xb35   :  { %v6514_v61 = vpop.eup %6513  ;;  %v7939_v47 = vadd.f32 %v2977_v38, %v2913_v2 }
 0xb36   :  { %3014 = vrot.lane.b32.xlu0 %v6514_v61, %s6869_s24  ;;  %v6516_v36 = vpop.eup %6515 }
 0xb37   :  { %3012 = vrot.lane.b32.xlu1 %v6516_v36, %s6869_s24  ;;  %6525 = vtanh.f32 %v7939_v47 }
 0xb39   :  { %v6518_v43 = vpop.eup %6517 }
 0xb3a   :  { %v6520_v4 = vpop.eup %6519  ;;  %3018 = vrot.lane.b32.xlu0 %v6518_v43, %s6869_s24 }
 0xb3b   :  { %3016 = vrot.lane.b32.xlu1 %v6520_v4, %s6869_s24 }
 0xb3d   :  { %v6522_v45 = vpop.eup %6521 }
 0xb3e   :  { %3022 = vrot.lane.b32.xlu0 %v6522_v45, %s6869_s24  ;;  %v6524_v5 = vpop.eup %6523 }
 0xb3f   :  { %3020 = vrot.lane.b32.xlu1 %v6524_v5, %s6869_s24 }
 0xb41   :  { %v6526_v12 = vpop.eup %6525 }
 0xb43   :  { %3024 = vrot.lane.b32.xlu1 %v6526_v12, %s6869_s24 }
 0xb88   :  { %v5863_v41 = vpop.f32.mrb[52].mxu1 }
 0xb89   :  { %v2383_v57 = vpop.f32.mrb[53].mxu1  ;;  %v6173_v62 = vadd.f32 %v5863_v41, %v7857_v58 }
 0xb8a   :  { %v5864_v8 = vpop.f32.mrb[54].mxu1  ;;  %v6175_v36 = vadd.f32 %v7857_v58, %v2383_v57 }
 0xb8b   :  { %v2386_v10 = vpop.f32.mrb[55].mxu1  ;;  %v6177_v38 = vadd.f32 %v5864_v8, %v7857_v58 }
 0xb8c   :  { %v6179_v45 = vadd.f32 %v7857_v58, %v2386_v10 }
 0xba4   :  { %v3011_v23 = vpop.permute.xlu0 %3010 }
 0xba5   :  { %v7962_v17 = vmul.f32 %v7875_v49, %v3011_v23  ;;  %v2225_v49 = vld [vmem:[%s9113_s2 + $0x70] sm:$0xff] }
 0xba8   :  { %v3015_v39 = vpop.permute.xlu0 %3014 }
 0xba9   :  { %v3013_v14 = vpop.permute.xlu1 %3012  ;;  %v7983_v21 = vmul.f32 %v7879_v24, %v3015_v39 }
 0xbaa   :  { %v7965_v26 = vmul.f32 %v7882_v25, %v3013_v14  ;;  %v2226_v25 = vld [vmem:[%s9113_s2 + $0x78] sm:$0xff] }
 0xbab   :  { %v2250_v7 = vpack.c.bf16 %v2226_v25, %v2225_v49 }
 0xbac   :  { %v3136_v40 = vpack.c.bf16 %v7965_v26, %v7962_v17  ;;  %v3019_v46 = vpop.permute.xlu0 %3018 }
 0xbad   :  { %v3017_v56 = vpop.permute.xlu1 %3016  ;;  %5866 = vmatmul.mubr.msk.bf16.gmra.mrb[56].mxu1 %vm2264_vm2, %v2250_v7  ;;  %v7994_v48 = vmul.f32 %v7889_v28, %v3019_v46 }
 0xbae   :  { %3144 = vrot.lane.b32.xlu0 %v3136_v40, %s6870_s5  ;;  %v7986_v30 = vmul.f32 %v7886_v27, %v3017_v56 }
 0xbaf   :  { %9155 = vst [vmem:[#allocation5_spill] sm:$0xff] %v7994_v48 }
 0xbb0   :  { %v3137_v9 = vpack.c.bf16 %v7986_v30, %v7983_v21  ;;  %v3023_v50 = vpop.permute.xlu0 %3022 }
 0xbb1   :  { %v3021_v15 = vpop.permute.xlu1 %3020  ;;  %v8002_v54 = vmul.f32 %v7895_v42, %v3023_v50 }
 0xbb2   :  { %3146 = vrot.lane.b32.xlu1 %v3137_v9, %s6870_s5  ;;  %v7997_v24 = vmul.f32 %v7898_v33, %v3021_v15 }
 0xbb3   :  { %9157 = vst [vmem:[#allocation6_spill] sm:$0xff] %v8002_v54 }
 0xbb4   :  { %9156 = vst [vmem:[#allocation4_spill] sm:$0xff] %v7997_v24  ;;  %v3138_v27 = vpack.c.bf16 %v7997_v24, %v7994_v48 }
 0xbb5   :  { %v3025_v51 = vpop.permute.xlu1 %3024 }
 0xbb6   :  { %v8005_v55 = vmul.f32 %v7903_v31, %v3025_v51  ;;  %3148 = vrot.lane.b32.xlu0 %v3138_v27, %s6870_s5 }
 0xbb8   :  { %9158 = vst [vmem:[#allocation7_spill] sm:$0xff] %v8005_v55  ;;  %v3139_v28 = vpack.c.bf16 %v8005_v55, %v8002_v54 }
 0xbba   :  { %3150 = vrot.lane.b32.xlu1 %v3139_v28, %s6870_s5 }
 0xc20   :  { %v3145_v33 = vpop.permute.xlu0 %3144 }
 0xc21   :  { %5937 = vmatprep.mubr.msk.bf16.mxu0 %vm106_vm0, %v3145_v33 }
 0xc24   :  { %v3147_v6 = vpop.permute.xlu1 %3146 }
 0xc25   :  { %5938 = vmatmul.mubr.msk.bf16.vlgmr.msra.gmra.mrb[48].mxu0 %vm106_vm0, %v3147_v6 }
 0xc26   :  { %5946 = vmatpush3.bf16.msra.mxu0 %v7769_v53 }
 0xc27   :  { %5947 = vmatprep.subr.bf16.mxu0 %v7804_v20 }
 0xc28   :  { %v3149_v42 = vpop.permute.xlu0 %3148 }
 0xc29   :  { %5941 = vmatprep.mubr.msk.bf16.mxu0 %vm106_vm0, %v3149_v42 }
 0xc2a   :  { %5948 = vmatpush3.bf16.msra.mxu0 %v7804_v20 }
 0xc2b   :  { %5957 = vmatprep.subr.bf16.mxu0 %v7769_v53 }
 0xc2c   :  { %v3151_v31 = vpop.permute.xlu1 %3150 }
 0xc2d   :  { %5942 = vmatmul.mubr.msk.bf16.gmra.mrb[52].mxu0 %vm106_vm0, %v3151_v31 }
 0xc80   :  { %v5867_v59 = vpop.f32.mrb[56].mxu1 }
 0xc81   :  { %v2399_v0 = vpop.f32.mrb[57].mxu1  ;;  %v6181_v22 = vadd.f32 %v5867_v59, %v7857_v58 }
 0xc82   :  { %v5868_v1 = vpop.f32.mrb[58].mxu1  ;;  %v6183_v44 = vadd.f32 %v7857_v58, %v2399_v0 }
 0xc83   :  { %v2402_v61 = vpop.f32.mrb[59].mxu1  ;;  %v6185_v16 = vadd.f32 %v5868_v1, %v7857_v58 }
 0xc84   :  { %v6187_v14 = vadd.f32 %v7857_v58, %v2402_v61 }
 0xcf8   :  { %v5939_v2 = vpop.f32.mrb[48].mxu0 }
 0xcf9   :  { %v6174_v43 = vadd.f32 %v6173_v62, %v5939_v2  ;;  %v3198_v4 = vpop.f32.mrb[49].mxu0 }
 0xcfa   :  { %v6176_v5 = vadd.f32 %v6175_v36, %v3198_v4  ;;  %v5940_v12 = vpop.f32.mrb[50].mxu0 }
 0xcfb   :  { %v6178_v13 = vadd.f32 %v6177_v38, %v5940_v12  ;;  %v3201_v63 = vpop.f32.mrb[51].mxu0  ;;  %v5279_v33 = vmul.f32 -1.442695, %v6174_v43 }
 0xcfc   :  { %6527 = vtanh.f32 %v6176_v5  ;;  %v6180_v3 = vadd.f32 %v6179_v45, %v3201_v63  ;;  %v5277_v28 = vmul.f32 -1.442695, %v6176_v5 }
 0xcfd   :  { %6529 = vtanh.f32 %v6174_v43  ;;  %v5280_v42 = vmul.f32 -1.442695, %v6178_v13 }
 0xcfe   :  { %6531 = vtanh.f32 %v6180_v3  ;;  %v5278_v6 = vmul.f32 -1.442695, %v6180_v3 }
 0xcff   :  { %6533 = vtanh.f32 %v6178_v13 }
 0xd00   :  { %v5943_v23 = vpop.f32.mrb[52].mxu0 }
 0xd01   :  { %v6182_v39 = vadd.f32 %v6181_v22, %v5943_v23  ;;  %v3214_v40 = vpop.f32.mrb[53].mxu0 }
 0xd02   :  { %v6184_v18 = vadd.f32 %v6183_v44, %v3214_v40  ;;  %v5944_v29 = vpop.f32.mrb[54].mxu0 }
 0xd03   :  { %v6186_v49 = vadd.f32 %v6185_v16, %v5944_v29  ;;  %v3217_v19 = vpop.f32.mrb[55].mxu0  ;;  %v5283_v57 = vmul.f32 -1.442695, %v6182_v39 }
 0xd04   :  { %6535 = vtanh.f32 %v6184_v18  ;;  %v6188_v56 = vadd.f32 %v6187_v14, %v3217_v19  ;;  %v5281_v31 = vmul.f32 -1.442695, %v6184_v18 }
 0xd05   :  { %6537 = vtanh.f32 %v6182_v39  ;;  %v5284_v2 = vmul.f32 -1.442695, %v6186_v49 }
 0xd06   :  { %v6528_v25 = vpop.eup %6527  ;;  %6539 = vtanh.f32 %v6188_v56  ;;  %v5282_v0 = vmul.f32 -1.442695, %v6188_v56 }
 0xd07   :  { %3309 = vrot.lane.b32.xlu0 %v6528_v25, %s6869_s24  ;;  %v6530_v7 = vpop.eup %6529  ;;  %6541 = vtanh.f32 %v6186_v49 }
 0xd08   :  { %v6532_v46 = vpop.eup %6531  ;;  %6543 = vpow2.f32 %v5277_v28 }
 0xd09   :  { %3311 = vrot.lane.b32.xlu1 %v6532_v46, %s6869_s24  ;;  %v6534_v9 = vpop.eup %6533  ;;  %6545 = vpow2.f32 %v5279_v33 }
 0xd0a   :  { %6547 = vpow2.f32 %v5278_v6 }
 0xd0b   :  { %3313 = vrot.lane.b32.xlu0 %v6530_v7, %s6869_s24  ;;  %6549 = vpow2.f32 %v5280_v42 }
 0xd0c   :  { %6551 = vpow2.f32 %v5281_v31 }
 0xd0d   :  { %3315 = vrot.lane.b32.xlu1 %v6534_v9, %s6869_s24  ;;  %6553 = vpow2.f32 %v5283_v57 }
 0xd0e   :  { %v6536_v15 = vpop.eup %6535 }
 0xd0f   :  { %3317 = vrot.lane.b32.xlu0 %v6536_v15, %s6869_s24  ;;  %v6538_v50 = vpop.eup %6537 }
 0xd10   :  { %v6540_v27 = vpop.eup %6539 }
 0xd11   :  { %3319 = vrot.lane.b32.xlu1 %v6540_v27, %s6869_s24  ;;  %v6542_v51 = vpop.eup %6541 }
 0xd12   :  { %v6544_v41 = vpop.eup %6543 }
 0xd13   :  { %3321 = vrot.lane.b32.xlu0 %v6538_v50, %s6869_s24  ;;  %v3261_v8 = vadd.f32 1.0, %v6544_v41  ;;  %v6546_v10 = vpop.eup %6545 }
 0xd14   :  { %v6548_v59 = vpop.eup %6547  ;;  %v3263_v1 = vadd.f32 1.0, %v6546_v10 }
 0xd15   :  { %3323 = vrot.lane.b32.xlu1 %v6542_v51, %s6869_s24  ;;  %6555 = vrcp.f32 %v3261_v8  ;;  %v6550_v61 = vpop.eup %6549  ;;  %v3262_v62 = vadd.f32 1.0, %v6548_v59 }
 0xd16   :  { %v6552_v36 = vpop.eup %6551  ;;  %6557 = vpow2.f32 %v5282_v0  ;;  %v3264_v38 = vadd.f32 1.0, %v6550_v61 }
 0xd17   :  { %6559 = vrcp.f32 %v3263_v1  ;;  %v3265_v43 = vadd.f32 1.0, %v6552_v36  ;;  %v6554_v4 = vpop.eup %6553 }
 0xd18   :  { %6561 = vrcp.f32 %v3262_v62  ;;  %v3267_v5 = vadd.f32 1.0, %v6554_v4 }
 0xd19   :  { %6563 = vpow2.f32 %v5284_v2 }
 0xd1a   :  { %6565 = vrcp.f32 %v3264_v38 }
 0xd1b   :  { %6567 = vrcp.f32 %v3265_v43 }
 0xd1c   :  { %6569 = vrcp.f32 %v3267_v5 }
 0xd1f   :  { %v8035_v45 = vpop.eup %6555 }
 0xd20   :  { %v6558_v63 = vpop.eup %6557  ;;  %v3293_v42 = vmul.f32 %v8035_v45, %v7908_v52 }
 0xd21   :  { %v8039_v3 = vpop.eup %6559  ;;  %v3266_v23 = vadd.f32 1.0, %v6558_v63 }
 0xd22   :  { %v8042_v16 = vpop.eup %6561  ;;  %v3295_v57 = vmul.f32 %v8039_v3, %v7912_v32 }
 0xd23   :  { %v6564_v39 = vpop.eup %6563  ;;  %6571 = vrcp.f32 %v3266_v23  ;;  %v3294_v10 = vmul.f32 %v8042_v16, %v7916_v35 }
 0xd24   :  { %v8046_v18 = vpop.eup %6565  ;;  %v3268_v49 = vadd.f32 1.0, %v6564_v39 }
 0xd25   :  { %v8049_v29 = vpop.eup %6567  ;;  %v3296_v52 = vmul.f32 %v8046_v18, %v7923_v11 }
 0xd26   :  { %v8055_v46 = vpop.eup %6569  ;;  %6573 = vrcp.f32 %v3268_v49  ;;  %v3297_v61 = vmul.f32 %v8049_v29, %v7921_v34  ;;  %v2229_v49 = vld [vmem:[%s9113_s2 + $0x90] sm:$0xff] }
 0xd27   :  { %v3299_v38 = vmul.f32 %v8055_v46, %v7929_v60 }
 0xd2d   :  { %v8059_v50 = vpop.eup %6571 }
 0xd2e   :  { %v3298_v5 = vmul.f32 %v8059_v50, %v7933_v37 }
 0xd30   :  { %v8063_v28 = vpop.eup %6573 }
 0xd31   :  { %v3300_v63 = vmul.f32 %v8063_v28, %v7939_v47  ;;  %v2227_v47 = vld [vmem:[%s9113_s2 + $0x80] sm:$0xff] }
 0xd79   :  { %v3310_v12 = vpop.permute.xlu0 %3309 }
 0xd7a   :  { %v3333_v13 = vmul.f32 %v8035_v45, %v3310_v12 }
 0xd7b   :  { %v3312_v14 = vpop.permute.xlu1 %3311 }
 0xd7c   :  { %3349 = vrot.lane.b32.xlu0 %v3333_v13, %s6869_s24  ;;  %v3334_v40 = vmul.f32 %v8042_v16, %v3312_v14 }
 0xd7d   :  { %v3314_v22 = vpop.permute.xlu0 %3313 }
 0xd7e   :  { %v3335_v44 = vmul.f32 %v8039_v3, %v3314_v22  ;;  %3351 = vrot.lane.b32.xlu1 %v3334_v40, %s6869_s24  ;;  %v2228_v40 = vld [vmem:[%s9113_s2 + $0x88] sm:$0xff] }
 0xd7f   :  { %v3316_v19 = vpop.permute.xlu1 %3315 }
 0xd80   :  { %3353 = vrot.lane.b32.xlu0 %v3335_v44, %s6869_s24  ;;  %v3336_v56 = vmul.f32 %v8046_v18, %v3316_v19  ;;  %v2251_v19 = vpack.c.bf16 %v2228_v40, %v2227_v47 }
 0xd81   :  { %v3318_v25 = vpop.permute.xlu0 %3317 }
 0xd82   :  { %v3337_v7 = vmul.f32 %v8049_v29, %v3318_v25  ;;  %3355 = vrot.lane.b32.xlu1 %v3336_v56, %s6869_s24  ;;  %v2230_v25 = vld [vmem:[%s9113_s2 + $0x98] sm:$0xff]  ;;  %5869 = vmatprep.mubr.msk.bf16.mxu1 %vm2264_vm2, %v2251_v19 }
 0xd83   :  { %v3320_v27 = vpop.permute.xlu1 %3319  ;;  %v2252_v56 = vpack.c.bf16 %v2230_v25, %v2229_v49 }
 0xd84   :  { %3357 = vrot.lane.b32.xlu0 %v3337_v7, %s6869_s24  ;;  %v3338_v51 = vmul.f32 %v8059_v50, %v3320_v27 }
 0xd85   :  { %v3322_v9 = vpop.permute.xlu0 %3321  ;;  %5870 = vmatmul.mubr.msk.bf16.gmra.mrb[60].mxu1 %vm2264_vm2, %v2252_v56 }
 0xd86   :  { %v3339_v15 = vmul.f32 %v8055_v46, %v3322_v9  ;;  %3359 = vrot.lane.b32.xlu1 %v3338_v51, %s6869_s24 }
 0xd87   :  { %v3324_v33 = vpop.permute.xlu1 %3323 }
 0xd88   :  { %3361 = vrot.lane.b32.xlu0 %v3339_v15, %s6869_s24  ;;  %v3340_v6 = vmul.f32 %v8063_v28, %v3324_v33 }
 0xd8a   :  { %3363 = vrot.lane.b32.xlu1 %v3340_v6, %s6869_s24 }
 0xdee   :  { %v3350_v31 = vpop.permute.xlu0 %3349 }
 0xdef   :  { %v8069_v41 = vadd.f32 %v3350_v31, %v3293_v42  ;;  %v2231_v42 = vld [vmem:[%s9113_s2 + $0xa0] sm:$0xff]  ;;  %v2232_v31 = vld [vmem:[%s9113_s2 + $0xa8] sm:$0xff] }
 0xdf0   :  { %v3352_v0 = vpop.permute.xlu1 %3351 }
 0xdf1   :  { %6575 = vtanh.f32 %v8069_v41  ;;  %v8078_v1 = vadd.f32 %v3352_v0, %v3294_v10  ;;  %v2234_v10 = vld [vmem:[%s9113_s2 + $0xb8] sm:$0xff] }
 0xdf2   :  { %v3354_v8 = vpop.permute.xlu0 %3353 }
 0xdf3   :  { %v8076_v59 = vadd.f32 %v3354_v8, %v3295_v57  ;;  %v2233_v8 = vld [vmem:[%s9113_s2 + $0xb0] sm:$0xff] }
 0xdf4   :  { %v3356_v32 = vpop.permute.xlu1 %3355  ;;  %v2254_v0 = vpack.c.bf16 %v2234_v10, %v2233_v8 }
 0xdf5   :  { %6577 = vtanh.f32 %v8076_v59  ;;  %v8086_v36 = vadd.f32 %v3356_v32, %v3296_v52 }
 0xdf6   :  { %6579 = vtanh.f32 %v8078_v1  ;;  %v3358_v62 = vpop.permute.xlu0 %3357 }
 0xdf7   :  { %v8088_v35 = vadd.f32 %v3358_v62, %v3297_v61  ;;  %6581 = vtanh.f32 %v8086_v36 }
 0xdf8   :  { %v3360_v12 = vpop.permute.xlu1 %3359 }
 0xdf9   :  { %6583 = vtanh.f32 %v8088_v35  ;;  %v8102_v60 = vadd.f32 %v3360_v12, %v3298_v5 }
 0xdfa   :  { %v3362_v43 = vpop.permute.xlu0 %3361 }
 0xdfb   :  { %v6576_v2 = vpop.eup %6575  ;;  %v8095_v11 = vadd.f32 %v3362_v43, %v3299_v38 }
 0xdfc   :  { %3397 = vrot.lane.b32.xlu0 %v6576_v2, %s6869_s24  ;;  %v3364_v44 = vpop.permute.xlu1 %3363 }
 0xdfd   :  { %6585 = vtanh.f32 %v8095_v11  ;;  %v8108_v23 = vadd.f32 %v3364_v44, %v3300_v63 }
 0xdfe   :  { %6587 = vtanh.f32 %v8102_v60 }
 0xdff   :  { %v6578_v34 = vpop.eup %6577  ;;  %6589 = vtanh.f32 %v8108_v23 }
 0xe00   :  { %3401 = vrot.lane.b32.xlu0 %v6578_v34, %s6869_s24  ;;  %v6580_v4 = vpop.eup %6579 }
 0xe01   :  { %3399 = vrot.lane.b32.xlu1 %v6580_v4, %s6869_s24  ;;  %v6582_v13 = vpop.eup %6581 }
 0xe03   :  { %v6584_v22 = vpop.eup %6583 }
 0xe04   :  { %3405 = vrot.lane.b32.xlu0 %v6584_v22, %s6869_s24 }
 0xe05   :  { %3403 = vrot.lane.b32.xlu1 %v6582_v13, %s6869_s24 }
 0xe07   :  { %v6586_v37 = vpop.eup %6585 }
 0xe08   :  { %3409 = vrot.lane.b32.xlu0 %v6586_v37, %s6869_s24  ;;  %v6588_v14 = vpop.eup %6587 }
 0xe09   :  { %3407 = vrot.lane.b32.xlu1 %v6588_v14, %s6869_s24  ;;  %v6590_v39 = vpop.eup %6589 }
 0xe0d   :  { %3411 = vrot.lane.b32.xlu1 %v6590_v39, %s6869_s24 }
 0xe58   :  { %v5871_v5 = vpop.f32.mrb[60].mxu1 }
 0xe59   :  { %v2415_v12 = vpop.f32.mrb[61].mxu1 }
 0xe5a   :  { %v5872_v13 = vpop.f32.mrb[62].mxu1  ;;  %v6191_v39 = vadd.f32 %v7857_v58, %v2415_v12 }
 0xe5b   :  { %v2418_v63 = vpop.f32.mrb[63].mxu1 }
 0xe5c   :  { %v6195_v19 = vadd.f32 %v7857_v58, %v2418_v63 }
 0xe6e   :  { %v3398_v7 = vpop.permute.xlu0 %3397 }
 0xe6f   :  { %v8130_v15 = vmul.f32 %v8035_v45, %v3398_v7 }
 0xe72   :  { %v3402_v51 = vpop.permute.xlu0 %3401 }
 0xe73   :  { %v3400_v9 = vpop.permute.xlu1 %3399  ;;  %v8144_v57 = vmul.f32 %v8039_v3, %v3402_v51 }
 0xe74   :  { %v8133_v27 = vmul.f32 %v8042_v16, %v3400_v9  ;;  %v2253_v16 = vpack.c.bf16 %v2232_v31, %v2231_v42 }
 0xe76   :  { %v3677_v33 = vpack.c.bf16 %v8133_v27, %v8130_v15  ;;  %5873 = vmatprep.mubr.msk.bf16.mxu1 %vm2264_vm2, %v2253_v16  ;;  %v3406_v3 = vpop.permute.xlu0 %3405 }
 0xe77   :  { %v3404_v6 = vpop.permute.xlu1 %3403  ;;  %5874 = vmatmul.mubr.msk.bf16.gmra.mrb[64].mxu1 %vm2264_vm2, %v2254_v0  ;;  %v8162_v61 = vmul.f32 %v8049_v29, %v3406_v3 }
 0xe78   :  { %v8147_v45 = vmul.f32 %v8046_v18, %v3404_v6  ;;  %3685 = vrot.lane.b32.xlu0 %v3677_v33, %s6870_s5 }
 0xe79   :  { %9159 = vst [vmem:[#allocation8_spill] sm:$0xff] %v8162_v61 }
 0xe7a   :  { %v3678_v52 = vpack.c.bf16 %v8147_v45, %v8144_v57  ;;  %v3410_v62 = vpop.permute.xlu0 %3409 }
 0xe7b   :  { %v3408_v18 = vpop.permute.xlu1 %3407  ;;  %v8170_v43 = vmul.f32 %v8055_v46, %v3410_v62 }
 0xe7c   :  { %3687 = vrot.lane.b32.xlu1 %v3678_v52, %s6870_s5  ;;  %v8165_v32 = vmul.f32 %v8059_v50, %v3408_v18 }
 0xe7d   :  { %9161 = vst [vmem:[#allocation10_spill] sm:$0xff] %v8170_v43 }
 0xe7e   :  { %9160 = vst [vmem:[#allocation9_spill] sm:$0xff] %v8165_v32  ;;  %v3679_v2 = vpack.c.bf16 %v8165_v32, %v8162_v61 }
 0xe7f   :  { %v3412_v38 = vpop.permute.xlu1 %3411 }
 0xe80   :  { %v8173_v34 = vmul.f32 %v8063_v28, %v3412_v38  ;;  %3689 = vrot.lane.b32.xlu0 %v3679_v2, %s6870_s5 }
 0xe82   :  { %9162 = vst [vmem:[#allocation11_spill] sm:$0xff] %v8173_v34  ;;  %v3680_v29 = vpack.c.bf16 %v8173_v34, %v8170_v43 }
 0xe84   :  { %3691 = vrot.lane.b32.xlu1 %v3680_v29, %s6870_s5 }
 0xeea   :  { %v3686_v50 = vpop.permute.xlu0 %3685 }
 0xeeb   :  { %5949 = vmatprep.mubr.msk.bf16.mxu0 %vm106_vm0, %v3686_v50 }
 0xeee   :  { %v3688_v4 = vpop.permute.xlu1 %3687 }
 0xeef   :  { %5950 = vmatmul.mubr.msk.bf16.vlgmr.msra.gmra.mrb[56].mxu0 %vm106_vm0, %v3688_v4 }
 0xef0   :  { %5958 = vmatpush3.bf16.msra.mxu0 %v7769_v53  ;;  %v6189_v53 = vadd.f32 %v5871_v5, %v7857_v58 }
 0xef1   :  { %5959 = vmatprep.subr.bf16.mxu0 %v7804_v20 }
 0xef2   :  { %v3690_v46 = vpop.permute.xlu0 %3689 }
 0xef3   :  { %5953 = vmatprep.mubr.msk.bf16.mxu0 %vm106_vm0, %v3690_v46 }
 0xef4   :  { %5960 = vmatpush3.bf16.msra.mxu0 %v7804_v20  ;;  %v6193_v20 = vadd.f32 %v5872_v13, %v7857_v58 }
 0xef6   :  { %v3692_v28 = vpop.permute.xlu1 %3691 }
 0xef7   :  { %5954 = vmatmul.mubr.msk.bf16.gmra.mrb[60].mxu0 %vm106_vm0, %v3692_v28 }
 0xf4a   :  { %v5875_v22 = vpop.f32.mrb[64].mxu1 }
 0xf4b   :  { %v2431_v44 = vpop.f32.mrb[65].mxu1  ;;  %v6197_v33 = vadd.f32 %v5875_v22, %v7857_v58 }
 0xf4c   :  { %v5876_v37 = vpop.f32.mrb[66].mxu1  ;;  %v6199_v6 = vadd.f32 %v7857_v58, %v2431_v44 }
 0xf4d   :  { %v2434_v14 = vpop.f32.mrb[67].mxu1  ;;  %v6201_v42 = vadd.f32 %v5876_v37, %v7857_v58 }
 0xf4e   :  { %v6203_v8 = vadd.f32 %v7857_v58, %v2434_v14 }
 0xfc2   :  { %v5951_v47 = vpop.f32.mrb[56].mxu0 }
 0xfc3   :  { %v6190_v40 = vadd.f32 %v6189_v53, %v5951_v47  ;;  %v3739_v49 = vpop.f32.mrb[57].mxu0 }
 0xfc4   :  { %v6192_v25 = vadd.f32 %v6191_v39, %v3739_v49  ;;  %v5952_v56 = vpop.f32.mrb[58].mxu0 }
 0xfc5   :  { %v6194_v7 = vadd.f32 %v6193_v20, %v5952_v56  ;;  %v3742_v9 = vpop.f32.mrb[59].mxu0  ;;  %v5291_v12 = vmul.f32 -1.442695, %v6190_v40 }
 0xfc6   :  { %6591 = vtanh.f32 %v6192_v25  ;;  %v6196_v51 = vadd.f32 %v6195_v19, %v3742_v9  ;;  %v5289_v5 = vmul.f32 -1.442695, %v6192_v25 }
 0xfc7   :  { %6593 = vtanh.f32 %v6190_v40  ;;  %v5292_v63 = vmul.f32 -1.442695, %v6194_v7 }
 0xfc8   :  { %6595 = vtanh.f32 %v6196_v51  ;;  %v5290_v13 = vmul.f32 -1.442695, %v6196_v51 }
 0xfc9   :  { %6597 = vtanh.f32 %v6194_v7 }
 0xfca   :  { %v5955_v16 = vpop.f32.mrb[60].mxu0 }
 0xfcb   :  { %v6198_v10 = vadd.f32 %v6197_v33, %v5955_v16  ;;  %v3755_v0 = vpop.f32.mrb[61].mxu0 }
 0xfcc   :  { %v6200_v52 = vadd.f32 %v6199_v6, %v3755_v0  ;;  %v5956_v3 = vpop.f32.mrb[62].mxu0 }
 0xfcd   :  { %v6202_v18 = vadd.f32 %v6201_v42, %v5956_v3  ;;  %v3758_v62 = vpop.f32.mrb[63].mxu0  ;;  %v5295_v47 = vmul.f32 -1.442695, %v6198_v10 }
 0xfce   :  { %v6204_v38 = vadd.f32 %v6203_v8, %v3758_v62  ;;  %6599 = vtanh.f32 %v6200_v52  ;;  %v5293_v53 = vmul.f32 -1.442695, %v6200_v52 }
 0xfcf   :  { %6601 = vtanh.f32 %v6198_v10  ;;  %v5296_v25 = vmul.f32 -1.442695, %v6202_v18 }
 0xfd0   :  { %v6592_v31 = vpop.eup %6591  ;;  %6603 = vtanh.f32 %v6204_v38  ;;  %v5294_v19 = vmul.f32 -1.442695, %v6204_v38 }
 0xfd1   :  { %3850 = vrot.lane.b32.xlu0 %v6592_v31, %s6869_s24  ;;  %v6594_v2 = vpop.eup %6593  ;;  %6605 = vtanh.f32 %v6202_v18 }
 0xfd2   :  { %v6596_v29 = vpop.eup %6595  ;;  %6607 = vpow2.f32 %v5289_v5 }
 0xfd3   :  { %3852 = vrot.lane.b32.xlu1 %v6596_v29, %s6869_s24  ;;  %v6598_v50 = vpop.eup %6597  ;;  %6609 = vpow2.f32 %v5291_v12 }
 0xfd4   :  { %6611 = vpow2.f32 %v5290_v13 }
 0xfd5   :  { %3854 = vrot.lane.b32.xlu0 %v6594_v2, %s6869_s24  ;;  %6613 = vpow2.f32 %v5292_v63 }
 0xfd7   :  { %3856 = vrot.lane.b32.xlu1 %v6598_v50, %s6869_s24 }
 0xfd8   :  { %v6600_v58 = vpop.eup %6599 }
 0xfd9   :  { %3858 = vrot.lane.b32.xlu0 %v6600_v58, %s6869_s24  ;;  %v6602_v4 = vpop.eup %6601 }
 0xfda   :  { %v6604_v46 = vpop.eup %6603 }
 0xfdb   :  { %3860 = vrot.lane.b32.xlu1 %v6604_v46, %s6869_s24  ;;  %v6606_v28 = vpop.eup %6605 }
 0xfdc   :  { %v6608_v22 = vpop.eup %6607 }
 0xfdd   :  { %3862 = vrot.lane.b32.xlu0 %v6602_v4, %s6869_s24  ;;  %v3802_v44 = vadd.f32 1.0, %v6608_v22  ;;  %v6610_v37 = vpop.eup %6609 }
 0xfde   :  { %v6612_v14 = vpop.eup %6611  ;;  %v3804_v39 = vadd.f32 1.0, %v6610_v37 }
 0xfdf   :  { %3864 = vrot.lane.b32.xlu1 %v6606_v28, %s6869_s24  ;;  %6615 = vrcp.f32 %v3802_v44  ;;  %v3803_v20 = vadd.f32 1.0, %v6612_v14  ;;  %v6614_v49 = vpop.eup %6613 }
 0xfe0   :  { %6617 = vpow2.f32 %v5293_v53  ;;  %v3805_v40 = vadd.f32 1.0, %v6614_v49 }
 0xfe1   :  { %6619 = vrcp.f32 %v3804_v39 }
 0xfe2   :  { %6621 = vpow2.f32 %v5295_v47 }
 0xfe3   :  { %6623 = vrcp.f32 %v3803_v20 }
 0xfe4   :  { %6625 = vpow2.f32 %v5294_v19 }
 0xfe5   :  { %6627 = vrcp.f32 %v3805_v40 }
 0xfe6   :  { %6629 = vpow2.f32 %v5296_v25 }
 0xfe9   :  { %v8202_v56 = vpop.eup %6615 }
 0xfea   :  { %v6618_v51 = vpop.eup %6617  ;;  %v3834_v53 = vmul.f32 %v8202_v56, %v8069_v41 }
 0xfeb   :  { %v8206_v33 = vpop.eup %6619  ;;  %v3806_v8 = vadd.f32 1.0, %v6618_v51 }
 0xfec   :  { %v6622_v42 = vpop.eup %6621  ;;  %v3836_v20 = vmul.f32 %v8206_v33, %v8076_v59 }
 0xfed   :  { %v8209_v16 = vpop.eup %6623  ;;  %v3808_v3 = vadd.f32 1.0, %v6622_v42  ;;  %6631 = vrcp.f32 %v3806_v8 }
 0xfee   :  { %v6626_v0 = vpop.eup %6625  ;;  %v3835_v19 = vmul.f32 %v8209_v16, %v8078_v1 }
 0xfef   :  { %v8214_v18 = vpop.eup %6627  ;;  %v3807_v62 = vadd.f32 1.0, %v6626_v0  ;;  %6633 = vrcp.f32 %v3808_v3 }
 0xff0   :  { %v6630_v38 = vpop.eup %6629  ;;  %v3837_v41 = vmul.f32 %v8214_v18, %v8086_v36 }
 0xff1   :  { %v3809_v50 = vadd.f32 1.0, %v6630_v38  ;;  %6635 = vrcp.f32 %v3807_v62 }
 0xff3   :  { %6637 = vrcp.f32 %v3809_v50 }
 0xff7   :  { %v8218_v58 = vpop.eup %6631 }
 0xff8   :  { %v3838_v42 = vmul.f32 %v8218_v58, %v8088_v35 }
 0xff9   :  { %v8221_v28 = vpop.eup %6633 }
 0xffa   :  { %v3840_v0 = vmul.f32 %v8221_v28, %v8095_v11 }
 0xffb   :  { %v8224_v5 = vpop.eup %6635 }
 0xffd   :  { %v8230_v44 = vpop.eup %6637 }
0x1043   :  { %v3851_v7 = vpop.permute.xlu0 %3850 }
0x1044   :  { %v3874_v9 = vmul.f32 %v8202_v56, %v3851_v7 }
0x1045   :  { %v3853_v10 = vpop.permute.xlu1 %3852 }
0x1046   :  { %3890 = vrot.lane.b32.xlu0 %v3874_v9, %s6869_s24  ;;  %v3875_v52 = vmul.f32 %v8209_v16, %v3853_v10  ;;  %v3839_v10 = vmul.f32 %v8224_v5, %v8102_v60 }
0x1047   :  { %v3855_v6 = vpop.permute.xlu0 %3854 }
0x1048   :  { %v3876_v31 = vmul.f32 %v8206_v33, %v3855_v6  ;;  %3892 = vrot.lane.b32.xlu1 %v3875_v52, %s6869_s24 }
0x1049   :  { %v3857_v2 = vpop.permute.xlu1 %3856 }
0x104a   :  { %3894 = vrot.lane.b32.xlu0 %v3876_v31, %s6869_s24  ;;  %v3877_v29 = vmul.f32 %v8214_v18, %v3857_v2  ;;  %v3841_v2 = vmul.f32 %v8230_v44, %v8108_v23  ;;  %v2235_v23 = vld [vmem:[%s9113_s2 + $0xc0] sm:$0xff] }
0x104b   :  { %v3859_v4 = vpop.permute.xlu0 %3858 }
0x104c   :  { %3896 = vrot.lane.b32.xlu1 %v3877_v29, %s6869_s24  ;;  %v3878_v46 = vmul.f32 %v8218_v58, %v3859_v4 }
0x104d   :  { %v3861_v12 = vpop.permute.xlu1 %3860 }
0x104e   :  { %3898 = vrot.lane.b32.xlu0 %v3878_v46, %s6869_s24  ;;  %v3879_v63 = vmul.f32 %v8224_v5, %v3861_v12  ;;  %v2236_v46 = vld [vmem:[%s9113_s2 + $0xc8] sm:$0xff]  ;;  %v2237_v12 = vld [vmem:[%s9113_s2 + $0xd0] sm:$0xff] }
0x104f   :  { %v3863_v13 = vpop.permute.xlu0 %3862 }
0x1050   :  { %v3880_v22 = vmul.f32 %v8221_v28, %v3863_v13  ;;  %3900 = vrot.lane.b32.xlu1 %v3879_v63, %s6869_s24  ;;  %v2255_v13 = vpack.c.bf16 %v2236_v46, %v2235_v23  ;;  %v2238_v63 = vld [vmem:[%s9113_s2 + $0xd8] sm:$0xff] }
0x1051   :  { %v3865_v37 = vpop.permute.xlu1 %3864 }
0x1052   :  { %3902 = vrot.lane.b32.xlu0 %v3880_v22, %s6869_s24  ;;  %v3881_v14 = vmul.f32 %v8230_v44, %v3865_v37  ;;  %v2256_v22 = vpack.c.bf16 %v2238_v63, %v2237_v12  ;;  %5877 = vmatprep.mubr.msk.bf16.mxu1 %vm2264_vm2, %v2255_v13 }
0x1054   :  { %3904 = vrot.lane.b32.xlu1 %v3881_v14, %s6869_s24  ;;  %5878 = vmatmul.mubr.msk.bf16.gmra.mrb[68].mxu1 %vm2264_vm2, %v2256_v22 }
0x10b8   :  { %v3891_v39 = vpop.permute.xlu0 %3890 }
0x10b9   :  { %v8236_v47 = vadd.f32 %v3891_v39, %v3834_v53 }
0x10ba   :  { %v3893_v25 = vpop.permute.xlu1 %3892 }
0x10bb   :  { %6639 = vtanh.f32 %v8236_v47  ;;  %v8245_v7 = vadd.f32 %v3893_v25, %v3835_v19 }
0x10bc   :  { %v3895_v49 = vpop.permute.xlu0 %3894 }
0x10bd   :  { %v8243_v40 = vadd.f32 %v3895_v49, %v3836_v20 }
0x10be   :  { %v3897_v9 = vpop.permute.xlu1 %3896 }
0x10bf   :  { %6641 = vtanh.f32 %v8243_v40  ;;  %v8251_v51 = vadd.f32 %v3897_v9, %v3837_v41  ;;  %v2240_v9 = vld [vmem:[%s9113_s2 + $0xe8] sm:$0xff] }
0x10c0   :  { %6643 = vtanh.f32 %v8245_v7  ;;  %v3899_v31 = vpop.permute.xlu0 %3898 }
0x10c1   :  { %6645 = vtanh.f32 %v8251_v51  ;;  %v8259_v8 = vadd.f32 %v3899_v31, %v3838_v42 }
0x10c2   :  { %v3901_v52 = vpop.permute.xlu1 %3900 }
0x10c3   :  { %6647 = vtanh.f32 %v8259_v8  ;;  %v8267_v62 = vadd.f32 %v3901_v52, %v3839_v10 }
0x10c4   :  { %v3903_v3 = vpop.permute.xlu0 %3902 }
0x10c5   :  { %v6640_v59 = vpop.eup %6639  ;;  %v8269_v35 = vadd.f32 %v3903_v3, %v3840_v0  ;;  %6649 = vtanh.f32 %v8267_v62 }
0x10c6   :  { %3938 = vrot.lane.b32.xlu0 %v6640_v59, %s6869_s24  ;;  %v3905_v38 = vpop.permute.xlu1 %3904  ;;  %v2242_v59 = vld [vmem:[%s9113_s2 + $0xf8] sm:$0xff] }
0x10c7   :  { %6651 = vtanh.f32 %v8269_v35  ;;  %v8275_v60 = vadd.f32 %v3905_v38, %v3841_v2 }
0x10c9   :  { %v6642_v1 = vpop.eup %6641  ;;  %6653 = vtanh.f32 %v8275_v60 }
0x10ca   :  { %3942 = vrot.lane.b32.xlu0 %v6642_v1, %s6869_s24  ;;  %v6644_v6 = vpop.eup %6643 }
0x10cb   :  { %3940 = vrot.lane.b32.xlu1 %v6644_v6, %s6869_s24  ;;  %v6646_v36 = vpop.eup %6645 }
0x10cd   :  { %v6648_v11 = vpop.eup %6647 }
0x10ce   :  { %3946 = vrot.lane.b32.xlu0 %v6648_v11, %s6869_s24 }
0x10cf   :  { %3944 = vrot.lane.b32.xlu1 %v6646_v36, %s6869_s24  ;;  %v6650_v29 = vpop.eup %6649 }
0x10d1   :  { %v6652_v50 = vpop.eup %6651 }
0x10d2   :  { %3950 = vrot.lane.b32.xlu0 %v6652_v50, %s6869_s24 }
0x10d3   :  { %3948 = vrot.lane.b32.xlu1 %v6650_v29, %s6869_s24  ;;  %v6654_v4 = vpop.eup %6653 }
0x10d7   :  { %3952 = vrot.lane.b32.xlu1 %v6654_v4, %s6869_s24 }
0x1138   :  { %v3939_v37 = vpop.permute.xlu0 %3938 }
0x1139   :  { %v8297_v53 = vmul.f32 %v8202_v56, %v3939_v37 }
0x113c   :  { %v3943_v20 = vpop.permute.xlu0 %3942 }
0x113d   :  { %v3941_v14 = vpop.permute.xlu1 %3940  ;;  %v8305_v25 = vmul.f32 %v8206_v33, %v3943_v20 }
0x113e   :  { %v8300_v39 = vmul.f32 %v8209_v16, %v3941_v14  ;;  %v2239_v16 = vld [vmem:[%s9113_s2 + $0xe0] sm:$0xff] }
0x113f   :  { %v2257_v33 = vpack.c.bf16 %v2240_v9, %v2239_v16 }
0x1140   :  { %v4226_v49 = vpack.c.bf16 %v8300_v39, %v8297_v53  ;;  %v3947_v6 = vpop.permute.xlu0 %3946 }
0x1141   :  { %v3945_v19 = vpop.permute.xlu1 %3944  ;;  %5881 = vmatprep.mubr.msk.bf16.mxu1 %vm2264_vm2, %v2257_v33  ;;  %v8329_v31 = vmul.f32 %v8218_v58, %v3947_v6  ;;  %v5271_v58 = vld [vmem:[%s9115_s12] ss:$0 sm:$0xff] }
0x1142   :  { %v8308_v41 = vmul.f32 %v8214_v18, %v3945_v19  ;;  %4234 = vrot.lane.b32.xlu0 %v4226_v49, %s6870_s5  ;;  %v2241_v18 = vld [vmem:[%s9113_s2 + $0xf0] sm:$0xff] }
0x1143   :  { %v2258_v1 = vpack.c.bf16 %v2242_v59, %v2241_v18  ;;  %9163 = vst [vmem:[#allocation12_spill] sm:$0xff] %v8329_v31 }
0x1144   :  { %v4227_v56 = vpack.c.bf16 %v8308_v41, %v8305_v25  ;;  %v3951_v10 = vpop.permute.xlu0 %3950 }
0x1145   :  { %5882 = vmatmul.mubr.msk.bf16.gmra.mrb[72].mxu1 %vm2264_vm2, %v2258_v1  ;;  %v3949_v42 = vpop.permute.xlu1 %3948  ;;  %v8337_v3 = vmul.f32 %v8221_v28, %v3951_v10 }
0x1146   :  { %4236 = vrot.lane.b32.xlu1 %v4227_v56, %s6870_s5  ;;  %v8332_v36 = vmul.f32 %v8224_v5, %v3949_v42 }
0x1147   :  { %9165 = vst [vmem:[#allocation14_spill] sm:$0xff] %v8337_v3 }
0x1148   :  { %9164 = vst [vmem:[#allocation13_spill] sm:$0xff] %v8332_v36  ;;  %v4228_v0 = vpack.c.bf16 %v8332_v36, %v8329_v31 }
0x1149   :  { %v3953_v52 = vpop.permute.xlu1 %3952 }
0x114a   :  { %v8340_v2 = vmul.f32 %v8230_v44, %v3953_v52  ;;  %4238 = vrot.lane.b32.xlu0 %v4228_v0, %s6870_s5  ;;  %v5879_v0 = vpop.f32.mrb[68].mxu1 }
0x114b   :  { %v2447_v52 = vpop.f32.mrb[69].mxu1 }
0x114c   :  { %9166 = vst [vmem:[#allocation15_spill] sm:$0xff] %v8340_v2  ;;  %v4229_v5 = vpack.c.bf16 %v8340_v2, %v8337_v3 }
0x114e   :  { %3047 = vrot.lane.b32.xlu0 %v5271_v58, %s6870_s5  ;;  %4240 = vrot.lane.b32.xlu1 %v4229_v5, %s6870_s5  ;;  %v5880_v58 = vpop.f32.mrb[70].mxu1 }
0x114f   :  { %v2450_v5 = vpop.f32.mrb[71].mxu1 }
0x11b4   :  { %v4235_v38 = vpop.permute.xlu0 %4234 }
0x11b5   :  { %5961 = vmatprep.mubr.msk.bf16.mxu0 %vm106_vm0, %v4235_v38 }
0x11b8   :  { %v4237_v28 = vpop.permute.xlu1 %4236 }
0x11b9   :  { %5962 = vmatmul.mubr.msk.bf16.vlgmr.msra.gmra.mrb[64].mxu0 %vm106_vm0, %v4237_v28 }
0x11bc   :  { %v4239_v44 = vpop.permute.xlu0 %4238 }
0x11bd   :  { %5965 = vmatprep.mubr.msk.bf16.mxu0 %vm106_vm0, %v4239_v44 }
0x11c0   :  { %v8353_v11 = vpop.permute.xlu0 %3047  ;;  %v4241_v29 = vpop.permute.xlu1 %4240 }
0x11c1   :  { %5966 = vmatmul.mubr.msk.bf16.gmra.mrb[68].mxu0 %vm106_vm0, %v4241_v29  ;;  %v3051_v50 = vmul.f32 %v8353_v11, %v7965_v26  ;;  %v3050_v4 = vmul.f32 %v8353_v11, %v7962_v17  ;;  %v3430_v23 = vmul.f32 %v8133_v27, %v8353_v11  ;;  %v3429_v46 = vmul.f32 %v8130_v15, %v8353_v11 }
0x11c2   :  { %v3053_v12 = vmul.f32 %v8353_v11, %v7986_v30  ;;  %v3052_v13 = vmul.f32 %v8353_v11, %v7983_v21  ;;  %v3432_v63 = vmul.f32 %v8147_v45, %v8353_v11  ;;  %v3431_v22 = vmul.f32 %v8144_v57, %v8353_v11 }
0x11c3   :  { %3068 = vrot.lane.b32.xlu0 %v3051_v50, %s6870_s5  ;;  %3066 = vrot.lane.b32.xlu1 %v3050_v4, %s6870_s5  ;;  %v3971_v37 = vmul.f32 %v8300_v39, %v8353_v11  ;;  %v3970_v14 = vmul.f32 %v8297_v53, %v8353_v11  ;;  %v3973_v20 = vmul.f32 %v8308_v41, %v8353_v11  ;;  %v23_v50 = vstv %s9116_s13 }
0x11c4   :  { %v3972_v49 = vmul.f32 %v8305_v25, %v8353_v11  ;;  %v3055_v19 = vmul.f32 %v8353_v11, %v7997_v24  ;;  %v3054_v56 = vmul.f32 %v8353_v11, %v7994_v48  ;;  %v3434_v16 = vmul.f32 %v8165_v32, %v8353_v11  ;;  %24 = vst [vmem:[#allocation3] sm:$0x1] %v23_v50 }
0x11c5   :  { %v3433_v9 = vmul.f32 %v8162_v61, %v8353_v11  ;;  %v3057_v33 = vmul.f32 %v8353_v11, %v8005_v55  ;;  %v3056_v18 = vmul.f32 %v8353_v11, %v8002_v54  ;;  %v3436_v59 = vmul.f32 %v8173_v34, %v8353_v11 }
0x11c6   :  { %v3435_v1 = vmul.f32 %v8170_v43, %v8353_v11  ;;  %v3974_v6 = vmul.f32 %v8329_v31, %v8353_v11  ;;  %v3977_v42 = vmul.f32 %v8340_v2, %v8353_v11  ;;  %v3976_v10 = vmul.f32 %v8337_v3, %v8353_v11 }
0x11c7   :  { %3447 = vrot.lane.b32.xlu0 %v3430_v23, %s6870_s5  ;;  %3445 = vrot.lane.b32.xlu1 %v3429_v46, %s6870_s5 }
0x11cb   :  { %3072 = vrot.lane.b32.xlu0 %v3053_v12, %s6870_s5  ;;  %3070 = vrot.lane.b32.xlu1 %v3052_v13, %s6870_s5 }
0x11cf   :  { %3451 = vrot.lane.b32.xlu0 %v3432_v63, %s6870_s5  ;;  %3449 = vrot.lane.b32.xlu1 %v3431_v22, %s6870_s5 }
0x11d3   :  { %3988 = vrot.lane.b32.xlu0 %v3971_v37, %s6870_s5  ;;  %3986 = vrot.lane.b32.xlu1 %v3970_v14, %s6870_s5 }
0x11d7   :  { %3992 = vrot.lane.b32.xlu0 %v3973_v20, %s6870_s5  ;;  %3990 = vrot.lane.b32.xlu1 %v3972_v49, %s6870_s5 }
0x11db   :  { %3076 = vrot.lane.b32.xlu0 %v3055_v19, %s6870_s5  ;;  %3074 = vrot.lane.b32.xlu1 %v3054_v56, %s6870_s5 }
0x11df   :  { %3455 = vrot.lane.b32.xlu0 %v3434_v16, %s6870_s5  ;;  %3453 = vrot.lane.b32.xlu1 %v3433_v9, %s6870_s5 }
0x11e3   :  { %3080 = vrot.lane.b32.xlu0 %v3057_v33, %s6870_s5  ;;  %3078 = vrot.lane.b32.xlu1 %v3056_v18, %s6870_s5 }
0x11e7   :  { %3459 = vrot.lane.b32.xlu0 %v3436_v59, %s6870_s5  ;;  %3457 = vrot.lane.b32.xlu1 %v3435_v1, %s6870_s5 }
0x11eb   :  { %3994 = vrot.lane.b32.xlu1 %v3974_v6, %s6870_s5  ;;  %4000 = vrot.lane.b32.xlu0 %v3977_v42, %s6870_s5 }
0x11ef   :  { %3998 = vrot.lane.b32.xlu1 %v3976_v10, %s6870_s5 }
0x1218   :  { %v8425_v38 = vpop.f32.mrb[72].mxu1 }
0x1219   :  { %v8427_v28 = vpop.f32.mrb[73].mxu1 }
0x121a   :  { %v8429_v44 = vpop.f32.mrb[74].mxu1 }
0x121b   :  { %v8431_v29 = vpop.f32.mrb[75].mxu1 }
0x1235   :  { %v3069_v4 = vpop.permute.xlu0 %3068  ;;  %v3067_v23 = vpop.permute.xlu1 %3066 }
0x1236   :  { %v3093_v46 = vsel %vm106_vm0, %v3069_v4, 0.0  ;;  %v3090_v12 = vsel %vm106_vm0, %v3067_v23, 0.0 }
0x1237   :  { %3094 = vadd.xlane.f32.xlu0 %v3093_v46  ;;  %3091 = vadd.xlane.f32.xlu1 %v3090_v12 }
0x1239   :  { %v3448_v13 = vpop.permute.xlu0 %3447  ;;  %v3446_v63 = vpop.permute.xlu1 %3445 }
0x123a   :  { %v3472_v22 = vsel %vm106_vm0, %v3448_v13, 0.0  ;;  %v3469_v37 = vsel %vm106_vm0, %v3446_v63, 0.0 }
0x123b   :  { %3473 = vadd.xlane.f32.xlu1 %v3472_v22  ;;  %3470 = vadd.xlane.f32.xlu0 %v3469_v37  ;;  %v3975_v37 = vmul.f32 %v8332_v36, %v8353_v11 }
0x123d   :  { %v3073_v14 = vpop.permute.xlu0 %3072  ;;  %v3071_v20 = vpop.permute.xlu1 %3070 }
0x123e   :  { %v3099_v49 = vsel %vm106_vm0, %v3073_v14, 0.0  ;;  %v3096_v19 = vsel %vm106_vm0, %v3071_v20, 0.0  ;;  %v6867_v14 = vld [vmem:[%s9114_s11] ss:$0 sm:$0xff] }
0x123f   :  { %3100 = vadd.xlane.f32.xlu1 %v3099_v49  ;;  %3097 = vadd.xlane.f32.xlu0 %v3096_v19  ;;  %v6205_v20 = vadd.f32 %v6867_v14, %v5879_v0  ;;  %v6207_v49 = vadd.f32 %v6867_v14, %v2447_v52  ;;  %v6213_v0 = vadd.f32 %v6867_v14, %v8425_v38 }
0x1240   :  { %v6215_v52 = vadd.f32 %v6867_v14, %v8427_v28 }
0x1241   :  { %v3452_v56 = vpop.permute.xlu0 %3451  ;;  %v3450_v16 = vpop.permute.xlu1 %3449 }
0x1242   :  { %v3478_v9 = vsel %vm106_vm0, %v3452_v56, 0.0  ;;  %v3475_v33 = vsel %vm106_vm0, %v3450_v16, 0.0  ;;  %v6209_v56 = vadd.f32 %v6867_v14, %v5880_v58  ;;  %v6217_v58 = vadd.f32 %v6867_v14, %v8429_v44 }
0x1243   :  { %3479 = vadd.xlane.f32.xlu1 %v3478_v9  ;;  %3476 = vadd.xlane.f32.xlu0 %v3475_v33  ;;  %v6211_v33 = vadd.f32 %v6867_v14, %v2450_v5 }
0x1245   :  { %v3989_v18 = vpop.permute.xlu0 %3988  ;;  %v3987_v59 = vpop.permute.xlu1 %3986 }
0x1246   :  { %v4013_v22 = vsel %vm106_vm0, %v3989_v18, 0.0 }
0x1249   :  { %v3993_v1 = vpop.permute.xlu0 %3992  ;;  %v3991_v6 = vpop.permute.xlu1 %3990 }
0x124a   :  { %v4019_v63 = vsel %vm106_vm0, %v3993_v1, 0.0 }
0x124d   :  { %v3077_v42 = vpop.permute.xlu0 %3076  ;;  %v3075_v10 = vpop.permute.xlu1 %3074 }
0x124e   :  { %v3105_v50 = vsel %vm106_vm0, %v3077_v42, 0.0  ;;  %v3102_v4 = vsel %vm106_vm0, %v3075_v10, 0.0 }
0x124f   :  { %3106 = vadd.xlane.f32.xlu1 %v3105_v50  ;;  %3103 = vadd.xlane.f32.xlu0 %v3102_v4  ;;  %v4016_v4 = vsel %vm106_vm0, %v3991_v6, 0.0 }
0x1251   :  { %v3456_v23 = vpop.permute.xlu0 %3455  ;;  %v3454_v46 = vpop.permute.xlu1 %3453 }
0x1252   :  { %v3484_v12 = vsel %vm106_vm0, %v3456_v23, 0.0  ;;  %v3481_v13 = vsel %vm106_vm0, %v3454_v46, 0.0  ;;  %v4010_v23 = vsel %vm106_vm0, %v3987_v59, 0.0 }
0x1253   :  { %3485 = vadd.xlane.f32.xlu1 %v3484_v12  ;;  %3482 = vadd.xlane.f32.xlu0 %v3481_v13  ;;  %v6219_v12 = vadd.f32 %v6867_v14, %v8431_v29 }
0x1257   :  { %4020 = vadd.xlane.f32.xlu1 %v4019_v63 }
0x125b   :  { %4014 = vadd.xlane.f32.xlu1 %v4013_v22 }
0x1269   :  { %3996 = vrot.lane.b32.xlu0 %v3975_v37, %s6870_s5 }
0x1288   :  { %4017 = vadd.xlane.f32.xlu0 %v4016_v4 }
0x128c   :  { %v5963_v19 = vpop.f32.mrb[64].mxu0  ;;  %4011 = vadd.xlane.f32.xlu0 %v4010_v23 }
0x128d   :  { %v8456_v16 = vadd.f32 %v6205_v20, %v5963_v19  ;;  %v4288_v9 = vpop.f32.mrb[65].mxu0 }
0x128e   :  { %v8458_v1 = vadd.f32 %v6207_v49, %v4288_v9  ;;  %v5964_v18 = vpop.f32.mrb[66].mxu0  ;;  %v3081_v49 = vpop.permute.xlu0 %3080 }
0x128f   :  { %v6210_v42 = vadd.f32 %v6209_v56, %v5964_v18  ;;  %v4291_v10 = vpop.f32.mrb[67].mxu0  ;;  %v3111_v19 = vsel %vm106_vm0, %v3081_v49, 0.0  ;;  %v3079_v56 = vpop.permute.xlu1 %3078 }
0x1290   :  { %v6212_v50 = vadd.f32 %v6211_v33, %v4291_v10  ;;  %v3108_v33 = vsel %vm106_vm0, %v3079_v56, 0.0 }
0x1291   :  { %6655 = vtanh.f32 %v6210_v42 }
0x1292   :  { %6657 = vtanh.f32 %v6212_v50 }
0x1293   :  { %6659 = vtanh.f32 %v8456_v16  ;;  %v8487_v9 = vpop.permute.xlu1 %3457 }
0x1294   :  { %v5967_v46 = vpop.f32.mrb[68].mxu0  ;;  %6661 = vtanh.f32 %v8458_v1 }
0x1295   :  { %v8466_v13 = vadd.f32 %v6213_v0, %v5967_v46  ;;  %v4304_v63 = vpop.f32.mrb[69].mxu0  ;;  %v5304_v46 = vmul.f32 -1.442695, %v6210_v42 }
0x1296   :  { %v8469_v6 = vadd.f32 %v6215_v52, %v4304_v63  ;;  %v5968_v59 = vpop.f32.mrb[70].mxu0  ;;  %v5302_v63 = vmul.f32 -1.442695, %v6212_v50  ;;  %v5303_v50 = vmul.f32 -1.442695, %v8456_v16 }
0x1297   :  { %v8472_v22 = vadd.f32 %v6217_v58, %v5968_v59  ;;  %v4307_v38 = vpop.f32.mrb[71].mxu0  ;;  %6663 = vtanh.f32 %v8466_v13  ;;  %v8491_v4 = vpop.permute.xlu1 %3994 }
0x1298   :  { %v8474_v37 = vadd.f32 %v6219_v12, %v4307_v38  ;;  %6665 = vtanh.f32 %v8469_v6  ;;  %v8500_v58 = vpop.permute.xlu0 %3459  ;;  %v5305_v16 = vmul.f32 -1.442695, %v8469_v6 }
0x1299   :  { %6667 = vtanh.f32 %v8472_v22 }
0x129a   :  { %6669 = vtanh.f32 %v8474_v37 }
0x129b   :  { %v6656_v5 = vpop.eup %6655  ;;  %v8494_v23 = vpop.permute.xlu1 %3998  ;;  %6671 = vpow2.f32 %v5304_v46 }
0x129c   :  { %4405 = vrot.lane.b32.xlu1 %v6656_v5, %s6869_s24  ;;  %v6658_v28 = vpop.eup %6657  ;;  %v8504_v12 = vpop.permute.xlu0 %4000  ;;  %6673 = vpow2.f32 %v5302_v63  ;;  %v5307_v63 = vmul.f32 -1.442695, %v8466_v13 }
0x129d   :  { %v6660_v44 = vpop.eup %6659 }
0x129e   :  { %v6662_v29 = vpop.eup %6661 }
0x12a0   :  { %4401 = vrot.lane.b32.xlu1 %v6658_v28, %s6869_s24 }
0x12a1   :  { %v6664_v14 = vpop.eup %6663 }
0x12a2   :  { %4403 = vrot.lane.b32.xlu0 %v6660_v44, %s6869_s24  ;;  %v6666_v20 = vpop.eup %6665 }
0x12a3   :  { %v6668_v18 = vpop.eup %6667 }
0x12a4   :  { %v6670_v10 = vpop.eup %6669 }
0x12a6   :  { %4399 = vrot.lane.b32.xlu0 %v6662_v29, %s6869_s24  ;;  %v6672_v29 = vpop.eup %6671 }
0x12a7   :  { %v6674_v49 = vpop.eup %6673 }
0x12a8   :  { %v4352_v42 = vadd.f32 1.0, %v6674_v49 }
0x12aa   :  { %4411 = vrot.lane.b32.xlu0 %v6664_v14, %s6869_s24 }
0x12ae   :  { %4407 = vrot.lane.b32.xlu0 %v6666_v20, %s6869_s24  ;;  %v4354_v20 = vadd.f32 1.0, %v6672_v29 }
0x12b0   :  { %6675 = vrcp.f32 %v4354_v20 }
0x12b1   :  { %6677 = vrcp.f32 %v4352_v42 }
0x12b2   :  { %6679 = vpow2.f32 %v5303_v50 }
0x12ba   :  { %v8529_v29 = vpop.eup %6675 }
0x12bb   :  { %v8534_v42 = vpop.eup %6677 }
0x12bc   :  { %v6680_v3 = vpop.eup %6679 }
0x12bd   :  { %v4353_v13 = vadd.f32 1.0, %v6680_v3 }
0x12c4   :  { %3112 = vadd.xlane.f32.xlu1 %v3111_v19  ;;  %v8496_v0 = vpop.xlane.xlu1 %3091  ;;  %v8508_v38 = vpop.xlane.xlu0 %3094 }
0x12c8   :  { %v8498_v52 = vpop.xlane.xlu1 %3473  ;;  %v8512_v44 = vpop.xlane.xlu0 %3470 }
0x12cc   :  { %v8502_v5 = vpop.xlane.xlu1 %3100  ;;  %v8516_v19 = vpop.xlane.xlu0 %3097 }
0x12cd   :  { %3109 = vadd.xlane.f32.xlu0 %v3108_v33 }
0x12d0   :  { %v8506_v59 = vpop.xlane.xlu1 %3479  ;;  %v8521_v33 = vpop.xlane.xlu0 %3476 }
0x12d5   :  { %4413 = vrot.lane.b32.xlu1 %v6668_v18, %s6869_s24  ;;  %v5301_v18 = vmul.f32 -1.442695, %v8458_v1 }
0x12d7   :  { %6681 = vpow2.f32 %v5301_v18 }
0x12d8   :  { %6683 = vpow2.f32 %v5307_v63 }
0x12d9   :  { %4409 = vrot.lane.b32.xlu1 %v6670_v10, %s6869_s24  ;;  %6685 = vpow2.f32 %v5305_v16 }
0x12da   :  { %6687 = vrcp.f32 %v4353_v13 }
0x12dc   :  { %v8510_v28 = vpop.xlane.xlu1 %3106  ;;  %v8526_v46 = vpop.xlane.xlu0 %3103 }
0x12e0   :  { %v8514_v14 = vpop.xlane.xlu1 %3485  ;;  %v8536_v1 = vpop.xlane.xlu0 %3482 }
0x12e1   :  { %v6682_v2 = vpop.eup %6681 }
0x12e2   :  { %v4351_v63 = vadd.f32 1.0, %v6682_v2  ;;  %v6684_v6 = vpop.eup %6683 }
0x12e3   :  { %v6686_v36 = vpop.eup %6685 }
0x12e4   :  { %v8518_v56 = vpop.xlane.xlu1 %4020  ;;  %v8540_v55 = vpop.permute.xlu0 %3996  ;;  %6689 = vrcp.f32 %v4351_v63  ;;  %v4355_v34 = vadd.f32 1.0, %v6686_v36 }
0x12e8   :  { %v8524_v10 = vpop.xlane.xlu1 %4014 }
0x130e   :  { %v4406_v20 = vpop.permute.xlu1 %4405 }
0x130f   :  { %v4426_v49 = vmul.f32 %v8529_v29, %v4406_v20 }
0x1311   :  { %4445 = vrot.lane.b32.xlu1 %v4426_v49, %s6869_s24  ;;  %v4357_v49 = vadd.f32 1.0, %v6684_v6 }
0x1312   :  { %v4402_v50 = vpop.permute.xlu1 %4401 }
0x1313   :  { %v4424_v18 = vmul.f32 %v8534_v42, %v4402_v50  ;;  %6691 = vrcp.f32 %v4357_v49  ;;  %v8546_v50 = vpop.eup %6687 }
0x1314   :  { %6693 = vrcp.f32 %v4355_v34 }
0x1315   :  { %4441 = vrot.lane.b32.xlu1 %v4424_v18, %s6869_s24  ;;  %v8542_v20 = vpop.xlane.xlu0 %4017  ;;  %v8550_v18 = vpop.eup %6689 }
0x1319   :  { %v8544_v31 = vpop.xlane.xlu0 %4011 }
0x131d   :  { %v4404_v16 = vpop.permute.xlu0 %4403  ;;  %v8554_v63 = vpop.eup %6691 }
0x131e   :  { %v4425_v3 = vmul.f32 %v8546_v50, %v4404_v16  ;;  %v8558_v49 = vpop.eup %6693 }
0x1320   :  { %4443 = vrot.lane.b32.xlu0 %v4425_v3, %s6869_s24  ;;  %v5308_v3 = vmul.f32 -1.442695, %v8472_v22 }
0x1321   :  { %v4400_v2 = vpop.permute.xlu0 %4399 }
0x1322   :  { %v4423_v13 = vmul.f32 %v8550_v18, %v4400_v2  ;;  %v3490_v2 = vsel %vm106_vm0, %v8500_v58, 0.0  ;;  %6695 = vpow2.f32 %v5308_v3 }
0x1324   :  { %4439 = vrot.lane.b32.xlu0 %v4423_v13, %s6869_s24  ;;  %v5306_v13 = vmul.f32 -1.442695, %v8474_v37 }
0x1325   :  { %v4412_v6 = vpop.permute.xlu0 %4411 }
0x1326   :  { %v4429_v36 = vmul.f32 %v8554_v63, %v4412_v6  ;;  %6697 = vpow2.f32 %v5306_v13 }
0x1328   :  { %4451 = vrot.lane.b32.xlu0 %v4429_v36, %s6869_s24 }
0x1329   :  { %v4408_v16 = vpop.permute.xlu0 %4407 }
0x132a   :  { %v4427_v34 = vmul.f32 %v8558_v49, %v4408_v16  ;;  %v3487_v16 = vsel %vm106_vm0, %v8487_v9, 0.0 }
0x132c   :  { %4447 = vrot.lane.b32.xlu0 %v4427_v34, %s6869_s24  ;;  %v6696_v6 = vpop.eup %6695 }
0x132d   :  { %v4358_v54 = vadd.f32 1.0, %v6696_v6  ;;  %v4384_v6 = vmul.f32 %v8534_v42, %v8245_v7 }
0x132f   :  { %6699 = vrcp.f32 %v4358_v54 }
0x1330   :  { %v6698_v36 = vpop.eup %6697 }
0x1331   :  { %v4356_v43 = vadd.f32 1.0, %v6698_v36 }
0x1333   :  { %6701 = vrcp.f32 %v4356_v43  ;;  %v4386_v43 = vmul.f32 %v8529_v29, %v8251_v51 }
0x1339   :  { %3491 = vadd.xlane.f32.xlu1 %v3490_v2  ;;  %v8570_v22 = vpop.eup %6699 }
0x133d   :  { %v8574_v37 = vpop.eup %6701 }
0x134b   :  { %3488 = vadd.xlane.f32.xlu0 %v3487_v16 }
0x1351   :  { %v8568_v34 = vpop.xlane.xlu1 %3112 }
0x1355   :  { %v4414_v58 = vpop.permute.xlu1 %4413 }
0x1356   :  { %v4430_v3 = vmul.f32 %v8570_v22, %v4414_v58 }
0x1358   :  { %4453 = vrot.lane.b32.xlu1 %v4430_v3, %s6869_s24 }
0x1359   :  { %v4410_v2 = vpop.permute.xlu1 %4409 }
0x135a   :  { %v4428_v54 = vmul.f32 %v8574_v37, %v4410_v2  ;;  %v3110_v24 = vpop.xlane.xlu0 %3109  ;;  %v4385_v2 = vmul.f32 %v8546_v50, %v8243_v40 }
0x135c   :  { %4449 = vrot.lane.b32.xlu1 %v4428_v54, %s6869_s24 }
0x1383   :  { %v4446_v9 = vpop.permute.xlu1 %4445 }
0x1384   :  { %v4466_v13 = vadd.f32 %v4446_v9, %v4386_v43  ;;  %v4383_v43 = vmul.f32 %v8550_v18, %v8236_v47 }
0x1386   :  { %6703 = vtanh.f32 %v4466_v13  ;;  %v4389_v13 = vmul.f32 %v8554_v63, %v8269_v35 }
0x1387   :  { %v4442_v36 = vpop.permute.xlu1 %4441 }
0x1388   :  { %v4464_v16 = vadd.f32 %v4442_v36, %v4384_v6 }
0x138a   :  { %6705 = vtanh.f32 %v4464_v16  ;;  %v4387_v16 = vmul.f32 %v8558_v49, %v8259_v8  ;;  %v4390_v8 = vmul.f32 %v8570_v22, %v8275_v60  ;;  %v8606_v60 = vld [vmem:[#allocation3] ss:$0 sm:$0xff] }
0x1390   :  { %v6704_v58 = vpop.eup %6703 }
0x1391   :  { %4493 = vrot.lane.b32.xlu0 %v6704_v58, %s6869_s24 }
0x1392   :  { %v4444_v51 = vpop.permute.xlu0 %4443 }
0x1393   :  { %v4465_v54 = vadd.f32 %v4444_v51, %v4385_v2 }
0x1394   :  { %v6706_v3 = vpop.eup %6705 }
0x1395   :  { %4489 = vrot.lane.b32.xlu0 %v6706_v3, %s6869_s24  ;;  %6707 = vtanh.f32 %v4465_v54 }
0x1396   :  { %v4440_v7 = vpop.permute.xlu0 %4439 }
0x1397   :  { %v4463_v9 = vadd.f32 %v4440_v7, %v4383_v43  ;;  %v4388_v7 = vmul.f32 %v8574_v37, %v8267_v62 }
0x1399   :  { %6709 = vtanh.f32 %v4463_v9 }
0x139a   :  { %v4452_v6 = vpop.permute.xlu0 %4451 }
0x139b   :  { %v4469_v36 = vadd.f32 %v4452_v6, %v4389_v13  ;;  %v4025_v6 = vsel %vm106_vm0, %v8540_v55, 0.0 }
0x139d   :  { %6711 = vtanh.f32 %v4469_v36 }
0x139e   :  { %v4448_v58 = vpop.permute.xlu0 %4447 }
0x139f   :  { %v6708_v40 = vpop.eup %6707  ;;  %v4467_v3 = vadd.f32 %v4448_v58, %v4387_v16 }
0x13a0   :  { %4491 = vrot.lane.b32.xlu1 %v6708_v40, %s6869_s24  ;;  %v8609_v40 = vadd.f32 %v8606_v60, %v3110_v24 }
0x13a1   :  { %6713 = vtanh.f32 %v4467_v3 }
0x13a3   :  { %v6710_v2 = vpop.eup %6709 }
0x13a4   :  { %4487 = vrot.lane.b32.xlu1 %v6710_v2, %s6869_s24 }
0x13a7   :  { %v6712_v47 = vpop.eup %6711 }
0x13a8   :  { %4499 = vrot.lane.b32.xlu1 %v6712_v47, %s6869_s24  ;;  %v4022_v47 = vsel %vm106_vm0, %v8491_v4, 0.0 }
0x13ab   :  { %v6714_v51 = vpop.eup %6713 }
0x13ac   :  { %4495 = vrot.lane.b32.xlu1 %v6714_v51, %s6869_s24 }
0x13c6   :  { %v8596_v35 = vpop.xlane.xlu1 %3491 }
0x13ca   :  { %v4454_v54 = vpop.permute.xlu1 %4453 }
0x13cb   :  { %v4470_v43 = vadd.f32 %v4454_v54, %v4390_v8 }
0x13cd   :  { %6715 = vtanh.f32 %v4470_v43 }
0x13ce   :  { %v4450_v9 = vpop.permute.xlu1 %4449 }
0x13cf   :  { %v4468_v13 = vadd.f32 %v4450_v9, %v4388_v7 }
0x13d0   :  { %4026 = vadd.xlane.f32.xlu1 %v4025_v6 }
0x13d1   :  { %6717 = vtanh.f32 %v4468_v13 }
0x13d7   :  { %v6716_v36 = vpop.eup %6715 }
0x13d8   :  { %4501 = vrot.lane.b32.xlu0 %v6716_v36, %s6869_s24  ;;  %v3489_v58 = vpop.xlane.xlu0 %3488 }
0x13d9   :  { %v8612_v62 = vadd.f32 %v8606_v60, %v3489_v58 }
0x13db   :  { %v6718_v16 = vpop.eup %6717  ;;  %v8616_v3 = vmax.f32 %v8609_v40, %v8612_v62 }
0x13dc   :  { %4497 = vrot.lane.b32.xlu0 %v6718_v16, %s6869_s24 }
0x13fb   :  { %4023 = vadd.xlane.f32.xlu0 %v4022_v47 }
0x1403   :  { %v4494_v51 = vpop.permute.xlu0 %4493 }
0x1404   :  { %v8625_v24 = vmul.f32 %v8529_v29, %v4494_v51  ;;  %v3121_v51 = vadd.f32 %v8606_v60, %v8508_v38  ;;  %v4031_v38 = vsel %vm106_vm0, %v8504_v12, 0.0  ;;  %v3122_v12 = vadd.f32 %v8606_v60, %v8516_v19 }
0x1406   :  { %9167 = vst [vmem:[#allocation16_spill] sm:$0xff] %v8625_v24  ;;  %v4522_v54 = vmul.f32 %v8625_v24, %v8353_v11 }
0x1407   :  { %v4490_v8 = vpop.permute.xlu0 %4489 }
0x1408   :  { %v8630_v43 = vmul.f32 %v8534_v42, %v4490_v8  ;;  %v3493_v8 = vadd.f32 %v8606_v60, %v8512_v44 }
0x140a   :  { %9168 = vst [vmem:[#allocation17_spill] sm:$0xff] %v8630_v43  ;;  %v4520_v7 = vmul.f32 %v8630_v43, %v8353_v11 }
0x1411   :  { %4541 = vrot.lane.b32.xlu0 %v4522_v54, %s6870_s5 }
0x1412   :  { %v4492_v4 = vpop.permute.xlu1 %4491 }
0x1413   :  { %v8637_v9 = vmul.f32 %v8546_v50, %v4492_v4 }
0x1415   :  { %4537 = vrot.lane.b32.xlu0 %v4520_v7, %s6870_s5  ;;  %9169 = vst [vmem:[#allocation18_spill] sm:$0xff] %v8637_v9  ;;  %v4521_v29 = vmul.f32 %v8637_v9, %v8353_v11 }
0x1416   :  { %v4488_v13 = vpop.permute.xlu1 %4487 }
0x1417   :  { %v8642_v6 = vmul.f32 %v8550_v18, %v4488_v13  ;;  %4539 = vrot.lane.b32.xlu1 %v4521_v29, %s6870_s5 }
0x1419   :  { %9170 = vst [vmem:[#allocation19_spill] sm:$0xff] %v8642_v6  ;;  %v4519_v42 = vmul.f32 %v8642_v6, %v8353_v11 }
0x141a   :  { %v4500_v36 = vpop.permute.xlu1 %4499 }
0x141b   :  { %v8648_v16 = vmul.f32 %v8554_v63, %v4500_v36  ;;  %4535 = vrot.lane.b32.xlu1 %v4519_v42, %s6870_s5  ;;  %v3494_v63 = vadd.f32 %v8606_v60, %v8498_v52  ;;  %v3495_v36 = vadd.f32 %v8606_v60, %v8521_v33 }
0x141d   :  { %9171 = vst [vmem:[#allocation20_spill] sm:$0xff] %v8648_v16  ;;  %v4525_v50 = vmul.f32 %v8648_v16, %v8353_v11  ;;  %v8666_v54 = vmax.f32 %v3121_v51, %v3494_v63 }
0x141e   :  { %v4496_v58 = vpop.permute.xlu1 %4495 }
0x141f   :  { %v8654_v47 = vmul.f32 %v8558_v49, %v4496_v58  ;;  %4547 = vrot.lane.b32.xlu1 %v4525_v50, %s6870_s5  ;;  %v8670_v49 = vadd.f32 %v8606_v60, %v8496_v0  ;;  %v3510_v52 = vsub.f32 %v3121_v51, %v8666_v54  ;;  %v3534_v58 = vsub.f32 %v3494_v63, %v8666_v54 }
0x1420   :  { %v3496_v51 = vadd.f32 %v8606_v60, %v8506_v59  ;;  %v4034_v59 = vadd.f32 %v8606_v60, %v8544_v31  ;;  %v4036_v31 = vadd.f32 %v8606_v60, %v8542_v20  ;;  %v8733_v20 = vadd.f32 %v8606_v60, %v8536_v1 }
0x1421   :  { %9172 = vst [vmem:[#allocation21_spill] sm:$0xff] %v8654_v47  ;;  %v4523_v18 = vmul.f32 %v8654_v47, %v8353_v11  ;;  %v8676_v29 = vmax.f32 %v8670_v49, %v3493_v8  ;;  %v3519_v42 = vmul.f32 1.442695, %v3510_v52  ;;  %v3543_v33 = vmul.f32 1.442695, %v3534_v58 }
0x1423   :  { %4543 = vrot.lane.b32.xlu1 %v4523_v18, %s6870_s5  ;;  %6719 = vpow2.f32 %v3519_v42  ;;  %v3503_v18 = vmax.f32 %v3122_v12, %v3495_v36  ;;  %v8713_v42 = vmax.f32 %v8676_v29, %v4034_v59 }
0x142d   :  { %v8703_v52 = vpop.eup %6719 }
0x1447   :  { %4032 = vadd.xlane.f32.xlu1 %v4031_v38  ;;  %v3535_v38 = vsub.f32 %v3495_v36, %v3503_v18 }
0x144a   :  { %v4502_v7 = vpop.permute.xlu0 %4501 }
0x144b   :  { %v8673_v4 = vmul.f32 %v8570_v22, %v4502_v7  ;;  %v3533_v22 = vsub.f32 %v3493_v8, %v8676_v29  ;;  %v3123_v8 = vadd.f32 %v8606_v60, %v8502_v5  ;;  %v3511_v7 = vsub.f32 %v3122_v12, %v3503_v18 }
0x144c   :  { %v4050_v12 = vsub.f32 %v8676_v29, %v8713_v42 }
0x144d   :  { %9173 = vst [vmem:[#allocation22_spill] sm:$0xff] %v8673_v4  ;;  %v4526_v44 = vmul.f32 %v8673_v4, %v8353_v11  ;;  %v3521_v19 = vmul.f32 1.442695, %v3511_v7  ;;  %v3498_v4 = vadd.f32 %v8606_v60, %v8514_v14 }
0x144e   :  { %v4498_v13 = vpop.permute.xlu0 %4497 }
0x144f   :  { %v8684_v0 = vmul.f32 %v8574_v37, %v4498_v13  ;;  %4549 = vrot.lane.b32.xlu0 %v4526_v44, %s6870_s5  ;;  %v3541_v37 = vmul.f32 1.442695, %v3533_v22  ;;  %v3545_v13 = vmul.f32 1.442695, %v3535_v38  ;;  %v4028_v38 = vsel %vm106_vm0, %v8494_v23, 0.0 }
0x1451   :  { %9174 = vst [vmem:[#allocation23_spill] sm:$0xff] %v8684_v0  ;;  %v4524_v50 = vmul.f32 %v8684_v0, %v8353_v11  ;;  %6721 = vpow2.f32 %v3541_v37  ;;  %v8700_v11 = vmax.f32 %v3123_v8, %v3496_v51  ;;  %v8725_v37 = vmax.f32 %v3503_v18, %v4036_v31 }
0x1452   :  { %6723 = vpow2.f32 %v3543_v33 }
0x1453   :  { %4545 = vrot.lane.b32.xlu0 %v4524_v50, %s6870_s5  ;;  %v3512_v63 = vsub.f32 %v3123_v8, %v8700_v11  ;;  %6725 = vpow2.f32 %v3521_v19  ;;  %v3536_v22 = vsub.f32 %v3496_v51, %v8700_v11  ;;  %v4058_v51 = vmul.f32 1.442695, %v4050_v12 }
0x1454   :  { %v4074_v8 = vsub.f32 %v4034_v59, %v8713_v42  ;;  %v4052_v7 = vsub.f32 %v3503_v18, %v8725_v37  ;;  %v3124_v59 = vadd.f32 %v8606_v60, %v8526_v46 }
0x1455   :  { %v3523_v44 = vmul.f32 1.442695, %v3512_v63  ;;  %v3547_v36 = vmul.f32 1.442695, %v3536_v22  ;;  %v4035_v63 = vadd.f32 %v8606_v60, %v8524_v10  ;;  %v3509_v10 = vsub.f32 %v8670_v49, %v8676_v29 }
0x1456   :  { %v4082_v19 = vmul.f32 1.442695, %v4074_v8  ;;  %v8746_v1 = vmax.f32 %v3124_v59, %v8733_v20  ;;  %v4062_v18 = vmul.f32 1.442695, %v4052_v7 }
0x1457   :  { %6727 = vpow2.f32 %v3523_v44  ;;  %v8752_v23 = vmax.f32 %v8666_v54, %v4035_v63  ;;  %v3517_v12 = vmul.f32 1.442695, %v3509_v10 }
0x1458   :  { %3572 = vperm.xlu1 %6302, %v8703_v52   ;;  %6729 = vpow2.f32 %v3545_v13  ;;  %v4076_v13 = vsub.f32 %v4036_v31, %v8725_v37  ;;  %v3513_v46 = vsub.f32 %v3124_v59, %v8746_v1 }
0x1459   :  { %6731 = vpow2.f32 %v3547_v36  ;;  %v4051_v31 = vsub.f32 %v8666_v54, %v8752_v23 }
0x145a   :  { %6733 = vpow2.f32 %v4058_v51  ;;  %v4086_v36 = vmul.f32 1.442695, %v4076_v13  ;;  %v4037_v51 = vadd.f32 %v8606_v60, %v8518_v56  ;;  %v3525_v49 = vmul.f32 1.442695, %v3513_v46 }
0x145b   :  { %v8708_v5 = vpop.eup %6721  ;;  %6735 = vpow2.f32 %v4082_v19  ;;  %v4060_v7 = vmul.f32 1.442695, %v4051_v31  ;;  %v4075_v19 = vsub.f32 %v4035_v63, %v8752_v23 }
0x145c   :  { %3615 = vperm.xlu1 %6302, %v8708_v5   ;;  %v8715_v50 = vpop.eup %6723  ;;  %6737 = vpow2.f32 %v4062_v18  ;;  %v8766_v29 = vmax.f32 %v8700_v11, %v4037_v51 }
0x145d   :  { %v8722_v58 = vpop.eup %6725  ;;  %6739 = vpow2.f32 %v4086_v36  ;;  %v4084_v54 = vmul.f32 1.442695, %v4075_v19 }
0x145e   :  { %6741 = vpow2.f32 %v3517_v12  ;;  %v4053_v56 = vsub.f32 %v8700_v11, %v8766_v29  ;;  %v4077_v13 = vsub.f32 %v4037_v51, %v8766_v29 }
0x145f   :  { %6743 = vpow2.f32 %v3525_v49 }
0x1460   :  { %3620 = vperm.xlu1 %6302, %v8715_v50   ;;  %6745 = vpow2.f32 %v4060_v7  ;;  %v4064_v18 = vmul.f32 1.442695, %v4053_v56  ;;  %v4088_v11 = vmul.f32 1.442695, %v4077_v13  ;;  %v4027_v7 = vpop.xlane.xlu1 %4026 }
0x1461   :  { %v8728_v33 = vpop.eup %6727  ;;  %6747 = vpow2.f32 %v4084_v54 }
0x1462   :  { %v8740_v44 = vpop.eup %6729  ;;  %6749 = vpow2.f32 %v4064_v18 }
0x1463   :  { %v8754_v22 = vpop.eup %6731  ;;  %6751 = vpow2.f32 %v4088_v11 }
0x1464   :  { %3577 = vperm.xlu1 %6302, %v8722_v58   ;;  %v8762_v8 = vpop.eup %6733 }
0x1468   :  { %3582 = vperm.xlu1 %6302, %v8728_v33  }
0x146c   :  { %3625 = vperm.xlu1 %6302, %v8740_v44  }
0x1470   :  { %3630 = vperm.xlu1 %6302, %v8754_v22  }
0x1472   :  { %4029 = vadd.xlane.f32.xlu0 %v4028_v38  ;;  %v8769_v38 = vpop.eup %6735 }
0x1473   :  { %v8774_v59 = vpop.eup %6737 }
0x1474   :  { %4116 = vperm.xlu1 %6302, %v8762_v8   ;;  %v8778_v10 = vpop.eup %6739 }
0x1475   :  { %v8780_v63 = vpop.eup %6741 }
0x1476   :  { %v8784_v46 = vpop.eup %6743 }
0x1477   :  { %v8786_v36 = vpop.eup %6745 }
0x1478   :  { %4164 = vperm.xlu1 %6302, %v8769_v38   ;;  %v8790_v12 = vpop.eup %6747 }
0x1479   :  { %v8793_v51 = vpop.eup %6749 }
0x147a   :  { %v8796_v31 = vpop.eup %6751 }
0x147c   :  { %4126 = vperm.xlu1 %6302, %v8774_v59  }
0x1480   :  { %4174 = vperm.xlu1 %6302, %v8778_v10  }
0x1484   :  { %3587 = vperm.xlu1 %6302, %v8784_v46  }
0x1488   :  { %3567 = vperm.xlu0 %6301, %v8780_v63   ;;  %v4024_v49 = vpop.xlane.xlu0 %4023 }
0x1489   :  { %v4540_v56 = vpop.permute.xlu1 %4539 }
0x148a   :  { %v4565_v2 = vsel %vm106_vm0, %v4540_v56, 0.0 }
0x148c   :  { %4121 = vperm.xlu0 %6301, %v8786_v36   ;;  %v4542_v19 = vpop.permute.xlu0 %4541 }
0x148d   :  { %v4568_v54 = vsel %vm106_vm0, %v4542_v19, 0.0  ;;  %v4536_v11 = vpop.permute.xlu1 %4535  ;;  %v3125_v19 = vadd.f32 %v8606_v60, %v8510_v28  ;;  %v3127_v28 = vadd.f32 %v8606_v60, %v8568_v34  ;;  %v9176_v34 = vsub.f32 %v8612_v62, %v8616_v3 }
0x148e   :  { %v4559_v16 = vsel %vm106_vm0, %v4536_v11, 0.0 }
0x1490   :  { %4169 = vperm.xlu0 %6301, %v8790_v12   ;;  %v4538_v18 = vpop.permute.xlu0 %4537 }
0x1491   :  { %v4562_v13 = vsel %vm106_vm0, %v4538_v18, 0.0  ;;  %v4548_v55 = vpop.permute.xlu1 %4547  ;;  %v3506_v18 = vmax.f32 %v3125_v19, %v3498_v4 }
0x1492   :  { %v4577_v47 = vsel %vm106_vm0, %v4548_v55, 0.0  ;;  %v3500_v55 = vadd.f32 %v8606_v60, %v8596_v35 }
0x1493   :  { %v3514_v14 = vsub.f32 %v3125_v19, %v3506_v18 }
0x1494   :  { %4131 = vperm.xlu0 %6301, %v8793_v51  }
0x1495   :  { %v4544_v0 = vpop.permute.xlu1 %4543 }
0x1498   :  { %4179 = vperm.xlu0 %6301, %v8796_v31  }
0x14a8   :  { %4569 = vadd.xlane.f32.xlu1 %v4568_v54 }
0x14ac   :  { %4563 = vadd.xlane.f32.xlu1 %v4562_v13  ;;  %v4571_v13 = vsel %vm106_vm0, %v4544_v0, 0.0  ;;  %v4038_v0 = vadd.f32 %v8606_v60, %v4024_v49  ;;  %v3553_v49 = vmul.f32 1.442695, %v9176_v34 }
0x14ae   :  { %v8822_v6 = vmax.f32 %v8746_v1, %v4038_v0 }
0x14b7   :  { %4566 = vadd.xlane.f32.xlu0 %v4565_v2 }
0x14bb   :  { %4560 = vadd.xlane.f32.xlu0 %v4559_v16  ;;  %v3537_v16 = vsub.f32 %v8733_v20, %v8746_v1  ;;  %v9175_v20 = vsub.f32 %v8609_v40, %v8616_v3 }
0x14bd   :  { %v3549_v11 = vmul.f32 1.442695, %v3537_v16  ;;  %v3529_v19 = vmul.f32 1.442695, %v9175_v20 }
0x14bf   :  { %4578 = vadd.xlane.f32.xlu0 %v4577_v47  ;;  %6753 = vpow2.f32 %v3549_v11 }
0x14c1   :  { %v4550_v54 = vpop.permute.xlu0 %4549 }
0x14c2   :  { %v4580_v2 = vsel %vm106_vm0, %v4550_v54, 0.0  ;;  %v3527_v54 = vmul.f32 1.442695, %v3514_v14 }
0x14c3   :  { %4581 = vadd.xlane.f32.xlu1 %v4580_v2  ;;  %4572 = vadd.xlane.f32.xlu0 %v4571_v13  ;;  %v3538_v2 = vsub.f32 %v3498_v4, %v3506_v18  ;;  %v3508_v13 = vmax.f32 %v3127_v28, %v3500_v55  ;;  %v4054_v4 = vsub.f32 %v8746_v1, %v8822_v6 }
0x14c4   :  { %6755 = vpow2.f32 %v3527_v54  ;;  %v4078_v54 = vsub.f32 %v4038_v0, %v8822_v6 }
0x14c5   :  { %v4546_v56 = vpop.permute.xlu0 %4545  ;;  %v3551_v35 = vmul.f32 1.442695, %v3538_v2  ;;  %6757 = vpow2.f32 %v3529_v19  ;;  %v3540_v40 = vsub.f32 %v3500_v55, %v3508_v13  ;;  %v4066_v11 = vmul.f32 1.442695, %v4054_v4 }
0x14c6   :  { %v4574_v47 = vsel %vm106_vm0, %v4546_v56, 0.0  ;;  %v3516_v56 = vsub.f32 %v3127_v28, %v3508_v13  ;;  %v4090_v1 = vmul.f32 1.442695, %v4078_v54 }
0x14c7   :  { %4575 = vadd.xlane.f32.xlu1 %v4574_v47  ;;  %v4039_v47 = vadd.f32 %v8606_v60, %v4027_v7  ;;  %6759 = vpow2.f32 %v3551_v35  ;;  %v3555_v28 = vmul.f32 1.442695, %v3540_v40 }
0x14c8   :  { %v3531_v16 = vmul.f32 1.442695, %v3516_v56  ;;  %6761 = vpow2.f32 %v3553_v49 }
0x14c9   :  { %v8830_v14 = vmax.f32 %v3506_v18, %v4039_v47  ;;  %v8834_v2 = vpop.eup %6753 }
0x14ca   :  { %6763 = vpow2.f32 %v3531_v16 }
0x14cb   :  { %v4055_v7 = vsub.f32 %v3506_v18, %v8830_v14  ;;  %6765 = vpow2.f32 %v4066_v11  ;;  %v4079_v20 = vsub.f32 %v4039_v47, %v8830_v14 }
0x14cc   :  { %6767 = vpow2.f32 %v3555_v28 }
0x14cd   :  { %v4068_v55 = vmul.f32 1.442695, %v4055_v7  ;;  %6769 = vpow2.f32 %v4090_v1  ;;  %v4092_v56 = vmul.f32 1.442695, %v4079_v20 }
0x14ce   :  { %v8836_v62 = vpop.eup %6755 }
0x14cf   :  { %v8841_v19 = vpop.eup %6757  ;;  %6771 = vpow2.f32 %v4068_v55 }
0x14d0   :  { %6773 = vpow2.f32 %v4092_v56 }
0x14d1   :  { %v8843_v35 = vpop.eup %6759 }
0x14d2   :  { %v8850_v49 = vpop.eup %6761 }
0x14d4   :  { %v4033_v0 = vpop.xlane.xlu1 %4032  ;;  %v6764_v47 = vpop.eup %6763 }
0x14d5   :  { %v4041_v18 = vadd.f32 %v8606_v60, %v4033_v0  ;;  %v8855_v28 = vpop.eup %6765 }
0x14d6   :  { %v6768_v1 = vpop.eup %6767 }
0x14d7   :  { %v8848_v34 = vmax.f32 %v3508_v13, %v4041_v18  ;;  %v8858_v55 = vpop.eup %6769 }
0x14d8   :  { %3635 = vperm.xlu1 %6302, %v8834_v2   ;;  %v3573_v4 = vpop.permute.xlu1 %3572 }
0x14d9   :  { %3592 = vperm.xlu0 %6301, %v8836_v62   ;;  %v4057_v16 = vsub.f32 %v3508_v13, %v8848_v34  ;;  %v4081_v40 = vsub.f32 %v4041_v18, %v8848_v34  ;;  %v8860_v20 = vpop.eup %6771  ;;  %v3606_v0 = vmul.f32 %v3573_v4, %v7965_v26 }
0x14db   :  { %v4072_v11 = vmul.f32 1.442695, %v4057_v16  ;;  %v4096_v54 = vmul.f32 1.442695, %v4081_v40  ;;  %v8866_v40 = vpop.eup %6773 }
0x14dc   :  { %3597 = vperm.xlu1 %6302, %v8841_v19   ;;  %v3616_v7 = vpop.permute.xlu1 %3615 }
0x14dd   :  { %3640 = vperm.xlu0 %6301, %v8843_v35   ;;  %6775 = vpow2.f32 %v4072_v11  ;;  %v3564_v11 = vadd.f32 %v6768_v1, %v6764_v47 }
0x14de   :  { %6777 = vpow2.f32 %v4096_v54 }
0x14e0   :  { %3645 = vperm.xlu1 %6302, %v8850_v49   ;;  %v3621_v13 = vpop.permute.xlu1 %3620 }
0x14e1   :  { %3602 = vperm.xlu0 %6301, %v6764_v47   ;;  %v3654_v18 = vmul.f32 %v3621_v13, %v8133_v27 }
0x14e3   :  { %v3662_v56 = vadd.f32 %v3654_v18, %v3606_v0 }
0x14e4   :  { %4136 = vperm.xlu1 %6302, %v8855_v28   ;;  %v3578_v16 = vpop.permute.xlu1 %3577 }
0x14e5   :  { %3650 = vperm.xlu0 %6301, %v6768_v1   ;;  %v3607_v27 = vmul.f32 %v3578_v16, %v7983_v21 }
0x14e7   :  { %v6776_v54 = vpop.eup %6775 }
0x14e8   :  { %4184 = vperm.xlu1 %6302, %v8858_v55   ;;  %v4105_v43 = vmul.f32 %v6776_v54, %v3564_v11  ;;  %v3583_v32 = vpop.permute.xlu1 %3582  ;;  %v6778_v48 = vpop.eup %6777 }
0x14e9   :  { %4141 = vperm.xlu0 %6301, %v8860_v20   ;;  %v3608_v18 = vmul.f32 %v3583_v32, %v7986_v30 }
0x14ea   :  { %v8869_v61 = vadd.f32 %v6778_v48, %v4105_v43 }
0x14ec   :  { %9177 = vst [vmem:[#allocation24_spill] sm:$0xff] %v8869_v61  ;;  %v3626_v26 = vpop.permute.xlu1 %3625 }
0x14ed   :  { %4189 = vperm.xlu0 %6301, %v8866_v40   ;;  %v3655_v4 = vmul.f32 %v3626_v26, %v8144_v57  ;;  %v3653_v26 = vmul.f32 %v3616_v7, %v8130_v15  ;;  %v3563_v15 = vadd.f32 %v8850_v49, %v8841_v19 }
0x14ef   :  { %v3663_v13 = vadd.f32 %v3655_v4, %v3607_v27 }
0x14f0   :  { %v3631_v0 = vpop.permute.xlu1 %3630 }
0x14f1   :  { %4151 = vperm.xlu0 %6301, %v6776_v54   ;;  %v3656_v47 = vmul.f32 %v3631_v0, %v8147_v45 }
0x14f3   :  { %v3664_v1 = vadd.f32 %v3656_v47, %v3608_v18 }
0x14f4   :  { %v4117_v9 = vpop.permute.xlu1 %4116 }
0x14f5   :  { %4199 = vperm.xlu0 %6301, %v6778_v48  }
0x14f8   :  { %v4165_v11 = vpop.permute.xlu1 %4164 }
0x14fc   :  { %v4127_v61 = vpop.permute.xlu1 %4126 }
0x14fd   :  { %v4156_v21 = vmul.f32 %v4127_v61, %v3663_v13 }
0x14ff   :  { %v4030_v24 = vpop.xlane.xlu0 %4029 }
0x1500   :  { %v4040_v43 = vadd.f32 %v8606_v60, %v4030_v24  ;;  %v4175_v32 = vpop.permute.xlu1 %4174 }
0x1501   :  { %v4204_v27 = vmul.f32 %v4175_v32, %v8305_v25 }
0x1502   :  { %v8877_v54 = vmax.f32 %v8616_v3, %v4040_v43 }
0x1503   :  { %v8885_v0 = vadd.f32 %v4204_v27, %v4156_v21 }
0x1504   :  { %v4056_v48 = vsub.f32 %v8616_v3, %v8877_v54  ;;  %v4080_v57 = vsub.f32 %v4040_v43, %v8877_v54  ;;  %v4202_v3 = vmul.f32 %v4165_v11, %v8297_v53 }
0x1506   :  { %v4070_v16 = vmul.f32 1.442695, %v4056_v48  ;;  %v4094_v30 = vmul.f32 1.442695, %v4080_v57 }
0x1507   :  { %v3568_v45 = vpop.permute.xlu0 %3567 }
0x1508   :  { %6779 = vpow2.f32 %v4070_v16  ;;  %v3605_v24 = vmul.f32 %v3568_v45, %v7962_v17 }
0x1509   :  { %6781 = vpow2.f32 %v4094_v30 }
0x150a   :  { %v3661_v4 = vadd.f32 %v3653_v26, %v3605_v24 }
0x150b   :  { %v4122_v61 = vpop.permute.xlu0 %4121 }
0x150c   :  { %v4155_v13 = vmul.f32 %v4122_v61, %v3662_v56  ;;  %v4154_v18 = vmul.f32 %v4117_v9, %v3661_v4 }
0x150e   :  { %v8888_v47 = vadd.f32 %v4202_v3, %v4154_v18 }
0x150f   :  { %v4170_v43 = vpop.permute.xlu0 %4169 }
0x1510   :  { %v4203_v48 = vmul.f32 %v4170_v43, %v8300_v39  ;;  %v8900_v39 = vpop.permute.xlu1 %3587 }
0x1512   :  { %v6780_v25 = vpop.eup %6779  ;;  %v8893_v7 = vadd.f32 %v4203_v48, %v4155_v13 }
0x1513   :  { %v4104_v17 = vmul.f32 %v6780_v25, %v3563_v15  ;;  %v4132_v57 = vpop.permute.xlu0 %4131  ;;  %4146 = vperm.xlu1 %6302, %v6780_v25   ;;  %v6782_v21 = vpop.eup %6781 }
0x1514   :  { %v4157_v16 = vmul.f32 %v4132_v57, %v3664_v1 }
0x1515   :  { %v8895_v30 = vadd.f32 %v6782_v21, %v4104_v17 }
0x1517   :  { %v4180_v53 = vpop.permute.xlu0 %4179  ;;  %4194 = vperm.xlu1 %6302, %v6782_v21  }
0x1518   :  { %v4205_v9 = vmul.f32 %v4180_v53, %v8308_v41 }
0x151a   :  { %v8898_v56 = vadd.f32 %v4205_v9, %v4157_v16 }
0x1535   :  { %v4570_v11 = vpop.xlane.xlu1 %4569 }
0x1536   :  { %v4586_v19 = vadd.f32 %v8606_v60, %v4570_v11 }
0x1538   :  { %v4594_v49 = vmax.f32 %v8766_v29, %v4586_v19 }
0x1539   :  { %v4564_v32 = vpop.xlane.xlu1 %4563 }
0x153a   :  { %v4602_v45 = vsub.f32 %v8766_v29, %v4594_v49  ;;  %v4626_v26 = vsub.f32 %v4586_v19, %v4594_v49  ;;  %v4584_v1 = vadd.f32 %v8606_v60, %v4564_v32 }
0x153c   :  { %v4613_v27 = vmul.f32 1.442695, %v4602_v45  ;;  %v4592_v24 = vmax.f32 %v8752_v23, %v4584_v1  ;;  %v4637_v41 = vmul.f32 1.442695, %v4626_v26 }
0x153e   :  { %6783 = vpow2.f32 %v4613_v27  ;;  %v4600_v61 = vsub.f32 %v8752_v23, %v4592_v24  ;;  %v4624_v43 = vsub.f32 %v4584_v1, %v4592_v24 }
0x153f   :  { %6785 = vpow2.f32 %v4637_v41 }
0x1540   :  { %v4609_v18 = vmul.f32 1.442695, %v4600_v61  ;;  %v4633_v21 = vmul.f32 1.442695, %v4624_v43 }
0x1542   :  { %6787 = vpow2.f32 %v4609_v18 }
0x1544   :  { %v4567_v4 = vpop.xlane.xlu0 %4566 }
0x1545   :  { %v4585_v3 = vadd.f32 %v8606_v60, %v4567_v4 }
0x1547   :  { %v4593_v13 = vmax.f32 %v8725_v37, %v4585_v3 }
0x1548   :  { %v4561_v48 = vpop.xlane.xlu0 %4560  ;;  %v6784_v11 = vpop.eup %6783 }
0x1549   :  { %v4601_v29 = vsub.f32 %v8725_v37, %v4593_v13  ;;  %v4625_v15 = vsub.f32 %v4585_v3, %v4593_v13  ;;  %v4583_v25 = vadd.f32 %v8606_v60, %v4561_v48  ;;  %4680 = vperm.xlu0 %6301, %v6784_v11   ;;  %v3560_v48 = vadd.f32 %v8754_v22, %v8728_v33 }
0x154a   :  { %v3558_v33 = vadd.f32 %v8715_v50, %v8703_v52 }
0x154b   :  { %v4611_v17 = vmul.f32 1.442695, %v4601_v29  ;;  %v4591_v57 = vmax.f32 %v8713_v42, %v4583_v25  ;;  %v4635_v23 = vmul.f32 1.442695, %v4625_v15  ;;  %v3559_v15 = vadd.f32 %v8740_v44, %v8722_v58 }
0x154c   :  { %v4579_v16 = vpop.xlane.xlu0 %4578 }
0x154d   :  { %6789 = vpow2.f32 %v4611_v17  ;;  %v4599_v53 = vsub.f32 %v8713_v42, %v4591_v57  ;;  %v8915_v9 = vadd.f32 %v8606_v60, %v4579_v16  ;;  %v4623_v19 = vsub.f32 %v4583_v25, %v4591_v57  ;;  %v6786_v42 = vpop.eup %6785 }
0x154e   :  { %6791 = vpow2.f32 %v4633_v21  ;;  %4728 = vperm.xlu0 %6301, %v6786_v42   ;;  %v6788_v13 = vpop.eup %6787  ;;  %v4100_v21 = vmul.f32 %v8774_v59, %v3559_v15 }
0x154f   :  { %6793 = vpow2.f32 %v4635_v23  ;;  %v4607_v32 = vmul.f32 1.442695, %v4599_v53  ;;  %v8919_v45 = vmax.f32 %v8877_v54, %v8915_v9  ;;  %v4631_v41 = vmul.f32 1.442695, %v4623_v19 }
0x1550   :  { %v4573_v37 = vpop.xlane.xlu0 %4572  ;;  %v4582_v49 = vpop.xlane.xlu1 %4581  ;;  %v4108_v50 = vadd.f32 %v8778_v10, %v4100_v21  ;;  %v4827_v21 = vld [vmem:[%s9117_s14] sm:$0xff] }
0x1551   :  { %v4587_v26 = vadd.f32 %v8606_v60, %v4573_v37  ;;  %v4590_v1 = vadd.f32 %v8606_v60, %v4582_v49  ;;  %6795 = vpow2.f32 %v4607_v32  ;;  %v4605_v61 = vsub.f32 %v8877_v54, %v8919_v45 }
0x1552   :  { %4670 = vperm.xlu0 %6301, %v6788_v13   ;;  %v4101_v54 = vmul.f32 %v8793_v51, %v3560_v48  ;;  %6797 = vpow2.f32 %v4631_v41 }
0x1553   :  { %v4595_v27 = vmax.f32 %v8822_v6, %v4587_v26  ;;  %v4598_v24 = vmax.f32 %v8848_v34, %v4590_v1 }
0x1554   :  { %v4576_v4 = vpop.xlane.xlu1 %4575  ;;  %v4109_v51 = vadd.f32 %v8796_v31, %v4101_v54  ;;  %v4629_v31 = vsub.f32 %v8915_v9, %v8919_v45 }
0x1555   :  { %v4588_v3 = vadd.f32 %v8606_v60, %v4576_v4  ;;  %v4606_v18 = vsub.f32 %v8848_v34, %v4598_v24  ;;  %v4603_v25 = vsub.f32 %v8822_v6, %v4595_v27  ;;  %v4619_v60 = vmul.f32 1.442695, %v4605_v61 }
0x1556   :  { %v3557_v6 = vadd.f32 %v8780_v63, %v8708_v5  ;;  %v4627_v23 = vsub.f32 %v4587_v26, %v4595_v27  ;;  %v4650_v53 = vmul.f32 %v6784_v11, %v4109_v51  ;;  %v4630_v37 = vsub.f32 %v4590_v1, %v4598_v24 }
0x1557   :  { %v6790_v43 = vpop.eup %6789  ;;  %v4596_v29 = vmax.f32 %v8830_v14, %v4588_v3  ;;  %v4621_v17 = vmul.f32 1.442695, %v4606_v18  ;;  %v4615_v16 = vmul.f32 1.442695, %v4603_v25  ;;  %v3561_v11 = vadd.f32 %v8834_v2, %v8784_v46 }
0x1558   :  { %4675 = vperm.xlu1 %6302, %v6790_v43   ;;  %v6792_v57 = vpop.eup %6791  ;;  %v4098_v59 = vmul.f32 %v8762_v8, %v3557_v6  ;;  %v4649_v63 = vmul.f32 %v6790_v43, %v4108_v50  ;;  %v4639_v49 = vmul.f32 1.442695, %v4627_v23  ;;  %v4658_v26 = vadd.f32 %v6786_v42, %v4650_v53  ;;  %v3636_v50 = vpop.permute.xlu1 %3635 }
0x1559   :  { %v4604_v34 = vsub.f32 %v8830_v14, %v4596_v29  ;;  %v6794_v22 = vpop.eup %6793  ;;  %6799 = vpow2.f32 %v4621_v17  ;;  %v4628_v44 = vsub.f32 %v4588_v3, %v4596_v29  ;;  %4718 = vperm.xlu0 %6301, %v6792_v57   ;;  %v4099_v14 = vmul.f32 %v8786_v36, %v3558_v33 }
0x155a   :  { %6801 = vpow2.f32 %v4619_v60  ;;  %v3562_v36 = vadd.f32 %v8843_v35, %v8836_v62  ;;  %v4106_v10 = vadd.f32 %v8769_v38, %v4098_v59  ;;  %v4645_v1 = vmul.f32 1.442695, %v4630_v37 }
0x155b   :  { %v4617_v58 = vmul.f32 1.442695, %v4604_v34  ;;  %v6796_v52 = vpop.eup %6795  ;;  %v4641_v19 = vmul.f32 1.442695, %v4628_v44  ;;  %v4107_v5 = vadd.f32 %v8790_v12, %v4099_v14  ;;  %v4657_v24 = vadd.f32 %v6794_v22, %v4649_v63  ;;  %v4829_v44 = vld [vmem:[%s9117_s14 + $0x10] sm:$0xff]  ;;  %v3593_v14 = vpop.permute.xlu0 %3592 }
0x155c   :  { %4723 = vperm.xlu1 %6302, %v6794_v22   ;;  %v6798_v32 = vpop.eup %6797  ;;  %v4103_v27 = vmul.f32 %v8860_v20, %v3562_v36  ;;  %v4647_v4 = vmul.f32 %v6796_v52, %v4106_v10  ;;  %v4643_v62 = vmul.f32 1.442695, %v4629_v31  ;;  %v4102_v9 = vmul.f32 %v8855_v28, %v3561_v11  ;;  %v3598_v53 = vpop.permute.xlu1 %3597 }
0x155d   :  { %6803 = vpow2.f32 %v4617_v58  ;;  %v4648_v8 = vmul.f32 %v6788_v13, %v4107_v5  ;;  %v9178_v13 = vld [vmem:[#allocation24_spill] sm:$0xff] }
0x155e   :  { %6805 = vpow2.f32 %v4615_v16  ;;  %v4111_v46 = vadd.f32 %v8866_v40, %v4103_v27  ;;  %v4655_v2 = vadd.f32 %v6798_v32, %v4647_v4  ;;  %v4110_v20 = vadd.f32 %v8858_v55, %v4102_v9  ;;  %v4828_v58 = vld [vmem:[%s9117_s14 + $0x8] sm:$0xff]  ;;  %v4830_v16 = vld [vmem:[%s9117_s14 + $0x18] sm:$0xff] }
0x155f   :  { %6807 = vpow2.f32 %v4641_v19  ;;  %v4656_v38 = vadd.f32 %v6792_v57, %v4648_v8  ;;  %v4831_v6 = vpack.c.bf16 %v4828_v58, %v4827_v21  ;;  %v4832_v51 = vpack.c.bf16 %v4830_v16, %v4829_v44  ;;  %v3641_v23 = vpop.permute.xlu0 %3640  ;;  %v9188_v44 = vld [vmem:[#allocation6_spill] sm:$0xff]  ;;  %v9189_v16 = vld [vmem:[#allocation11_spill] sm:$0xff] }
0x1560   :  { %4665 = vperm.xlu1 %6302, %v6796_v52   ;;  %6809 = vpow2.f32 %v4639_v49  ;;  %v3646_v37 = vpop.permute.xlu1 %3645 }
0x1561   :  { %6811 = vrcp.f32 %v4658_v26  ;;  %5969 = vmatprep.subr.bf16.mxu1 %v4831_v6 }
0x1562   :  { %6813 = vpow2.f32 %v4645_v1  ;;  %5970 = vmatpush3.bf16.msra.mxu1 %v4831_v6  ;;  %v3611_v6 = vmul.f32 %v3598_v53, %v9188_v44  ;;  %v9193_v53 = vld [vmem:[#allocation15_spill] sm:$0xff] }
0x1563   :  { %v6800_v12 = vpop.eup %6799  ;;  %6815 = vrcp.f32 %v4657_v24  ;;  %5971 = vmatprep.subr.bf16.mxu1 %v4832_v51  ;;  %v3603_v52 = vpop.permute.xlu0 %3602 }
0x1564   :  { %4713 = vperm.xlu1 %6302, %v6798_v32   ;;  %4700 = vperm.xlu0 %6301, %v6800_v12   ;;  %v6802_v35 = vpop.eup %6801  ;;  %6817 = vpow2.f32 %v4643_v62  ;;  %v4654_v18 = vmul.f32 %v6800_v12, %v9178_v13  ;;  %v4137_v63 = vpop.permute.xlu1 %4136 }
0x1565   :  { %6819 = vrcp.f32 %v4656_v38  ;;  %v4653_v48 = vmul.f32 %v6802_v35, %v8895_v30 }
0x1566   :  { %6821 = vrcp.f32 %v4655_v2  ;;  %5972 = vmatpush3.bf16.msra.mxu1 %v4832_v51 }
0x1567   :  { %v6804_v45 = vpop.eup %6803  ;;  %v3651_v59 = vpop.permute.xlu0 %3650 }
0x1568   :  { %4695 = vperm.xlu1 %6302, %v6802_v35   ;;  %v6806_v42 = vpop.eup %6805  ;;  %4690 = vperm.xlu0 %6301, %v6804_v45   ;;  %v4652_v41 = vmul.f32 %v6804_v45, %v4111_v46  ;;  %v4185_v36 = vpop.permute.xlu1 %4184  ;;  %v9179_v46 = vld [vmem:[#allocation16_spill] sm:$0xff]  ;;  %v3660_v51 = vmul.f32 %v3651_v59, %v9189_v16 }
0x1569   :  { %v6808_v61 = vpop.eup %6807  ;;  %v4651_v28 = vmul.f32 %v6806_v42, %v4110_v20 }
0x156a   :  { %v6810_v3 = vpop.eup %6809  ;;  %v4660_v43 = vadd.f32 %v6808_v61, %v4652_v41  ;;  %v9181_v41 = vld [vmem:[#allocation8_spill] sm:$0xff] }
0x156b   :  { %v6812_v40 = vpop.eup %6811  ;;  %v4659_v29 = vadd.f32 %v6810_v3, %v4651_v28  ;;  %v4142_v19 = vpop.permute.xlu0 %4141 }
0x156c   :  { %4685 = vperm.xlu1 %6302, %v6806_v42   ;;  %4738 = vperm.xlu0 %6301, %v6808_v61   ;;  %v6814_v15 = vpop.eup %6813  ;;  %6823 = vrcp.f32 %v4660_v43  ;;  %v9180_v42 = vld [vmem:[#allocation18_spill] sm:$0xff]  ;;  %v3657_v61 = vmul.f32 %v3636_v50, %v9181_v41  ;;  %v9190_v50 = vld [vmem:[#allocation12_spill] sm:$0xff] }
0x156d   :  { %v6816_v25 = vpop.eup %6815  ;;  %v4662_v55 = vadd.f32 %v6814_v15, %v4654_v18  ;;  %6825 = vrcp.f32 %v4659_v29  ;;  %v9182_v18 = vld [vmem:[#allocation5_spill] sm:$0xff] }
0x156e   :  { %v6818_v17 = vpop.eup %6817  ;;  %v3609_v43 = vmul.f32 %v8900_v39, %v9182_v18 }
0x156f   :  { %v6820_v54 = vpop.eup %6819  ;;  %v4661_v60 = vadd.f32 %v6818_v17, %v4653_v48  ;;  %6827 = vrcp.f32 %v4662_v55  ;;  %v4190_v5 = vpop.permute.xlu0 %4189  ;;  %v9185_v55 = vld [vmem:[#allocation19_spill] sm:$0xff] }
0x1570   :  { %4733 = vperm.xlu1 %6302, %v6810_v3   ;;  %4792 = vperm.xlu0 %6301, %v6812_v40   ;;  %v6822_v34 = vpop.eup %6821  ;;  %v9183_v40 = vld [vmem:[#allocation9_spill] sm:$0xff] }
0x1571   :  { %6829 = vrcp.f32 %v4661_v60  ;;  %v3658_v48 = vmul.f32 %v3641_v23, %v9183_v40 }
0x1573   :  { %v8972_v49 = vpop.permute.xlu0 %4151 }
0x1574   :  { %4787 = vperm.xlu1 %6302, %v6816_v25   ;;  %4782 = vperm.xlu0 %6301, %v6820_v54  }
0x1576   :  { %v6824_v57 = vpop.eup %6823 }
0x1577   :  { %v6826_v30 = vpop.eup %6825  ;;  %v4200_v31 = vpop.permute.xlu0 %4199 }
0x1578   :  { %4777 = vperm.xlu1 %6302, %v6822_v34   ;;  %4748 = vperm.xlu0 %6301, %v6814_v15   ;;  %v9184_v15 = vld [vmem:[#allocation17_spill] sm:$0xff]  ;;  %v9186_v34 = vld [vmem:[#allocation4_spill] sm:$0xff] }
0x1579   :  { %v6828_v33 = vpop.eup %6827 }
0x157b   :  { %v6830_v22 = vpop.eup %6829 }
0x157c   :  { %4743 = vperm.xlu1 %6302, %v6818_v17   ;;  %4802 = vperm.xlu0 %6301, %v6824_v57   ;;  %v3610_v57 = vmul.f32 %v3593_v14, %v9186_v34 }
0x157e   :  { %v3666_v23 = vadd.f32 %v3658_v48, %v3610_v57 }
0x1580   :  { %4797 = vperm.xlu1 %6302, %v6826_v30   ;;  %4812 = vperm.xlu0 %6301, %v6828_v33   ;;  %v9187_v30 = vld [vmem:[#allocation10_spill] sm:$0xff] }
0x1581   :  { %v3659_v33 = vmul.f32 %v3646_v37, %v9187_v30 }
0x1584   :  { %4807 = vperm.xlu1 %6302, %v6830_v22   ;;  %v3665_v22 = vadd.f32 %v3657_v61, %v3609_v43  ;;  %v9196_v43 = vld [vmem:[#allocation21_spill] sm:$0xff] }
0x1592   :  { %v8974_v32 = vpop.permute.xlu1 %4146 }
0x1596   :  { %v4195_v26 = vpop.permute.xlu1 %4194 }
0x15c8   :  { %v4681_v10 = vpop.permute.xlu0 %4680 }
0x15c9   :  { %v4706_v3 = vmul.f32 %v4681_v10, %v8898_v56  ;;  %v4206_v10 = vmul.f32 %v4185_v36, %v9190_v50  ;;  %v9194_v36 = vld [vmem:[#allocation14_spill] sm:$0xff]  ;;  %v4945_v50 = vld [vmem:[%s9118_s16 + $0x20] sm:$0xff] }
0x15ca   :  { %v4208_v41 = vmul.f32 %v4195_v26, %v9194_v36  ;;  %v4942_v26 = vld [vmem:[%s9118_s16 + $0x8] sm:$0xff] }
0x15cd   :  { %v4729_v8 = vpop.permute.xlu0 %4728 }
0x15ce   :  { %v4754_v2 = vmul.f32 %v4729_v8, %v9179_v46 }
0x15d0   :  { %v4762_v54 = vadd.f32 %v4754_v2, %v4706_v3 }
0x15d1   :  { %v4671_v1 = vpop.permute.xlu0 %4670 }
0x15d7   :  { %v4676_v11 = vpop.permute.xlu1 %4675 }
0x15d8   :  { %v4719_v24 = vpop.permute.xlu0 %4718  ;;  %v4705_v13 = vmul.f32 %v4676_v11, %v8885_v0  ;;  %v4704_v0 = vmul.f32 %v4671_v1, %v8893_v7  ;;  %v9191_v11 = vld [vmem:[#allocation13_spill] sm:$0xff]  ;;  %v4158_v7 = vmul.f32 %v4137_v63, %v3665_v22 }
0x15d9   :  { %v4752_v25 = vmul.f32 %v4719_v24, %v9184_v15  ;;  %v4207_v14 = vmul.f32 %v4190_v5, %v9191_v11  ;;  %v4947_v11 = vld [vmem:[%s9118_s16 + $0x30] sm:$0xff] }
0x15da   :  { %v4214_v61 = vadd.f32 %v4206_v10, %v4158_v7  ;;  %v4946_v10 = vld [vmem:[%s9118_s16 + $0x28] sm:$0xff] }
0x15db   :  { %v4724_v12 = vpop.permute.xlu1 %4723 }
0x15dc   :  { %v4753_v20 = vmul.f32 %v4724_v12, %v9180_v42  ;;  %v4760_v12 = vadd.f32 %v4752_v25, %v4704_v0 }
0x15de   :  { %v4761_v60 = vadd.f32 %v4753_v20, %v4705_v13  ;;  %v4209_v20 = vmul.f32 %v4200_v31, %v9193_v53  ;;  %v9195_v13 = vld [vmem:[#allocation23_spill] sm:$0xff] }
0x15df   :  { %v4666_v27 = vpop.permute.xlu1 %4665  ;;  %v4941_v31 = vld [vmem:[%s9118_s16] sm:$0xff] }
0x15e0   :  { %v4703_v21 = vmul.f32 %v4666_v27, %v8888_v47  ;;  %v4159_v47 = vmul.f32 %v4142_v19, %v3666_v23  ;;  %v3667_v27 = vadd.f32 %v3659_v33, %v3611_v6 }
0x15e2   :  { %v4215_v3 = vadd.f32 %v4207_v14, %v4159_v47  ;;  %v4160_v40 = vmul.f32 %v8974_v32, %v3667_v27  ;;  %v4948_v14 = vld [vmem:[%s9118_s16 + $0x38] sm:$0xff] }
0x15e3   :  { %v4714_v4 = vpop.permute.xlu1 %4713  ;;  %v8976_v62 = vpop.permute.xlu0 %4700  ;;  %v4952_v47 = vld [vmem:[%s9118_s16 + $0x58] sm:$0xff] }
0x15e4   :  { %v4751_v17 = vmul.f32 %v4714_v4, %v9185_v55  ;;  %v9192_v4 = vld [vmem:[#allocation7_spill] sm:$0xff]  ;;  %v4957_v55 = vpack.c.bf16 %v4942_v26, %v4941_v31 }
0x15e5   :  { %v3612_v46 = vmul.f32 %v3603_v52, %v9192_v4  ;;  %v4950_v4 = vld [vmem:[%s9118_s16 + $0x48] sm:$0xff] }
0x15e6   :  { %v4759_v24 = vadd.f32 %v4751_v17, %v4703_v21  ;;  %5981 = vmatprep.subr.bf16.mxu1 %v4957_v55 }
0x15e7   :  { %v8978_v35 = vpop.permute.xlu1 %4695  ;;  %v4691_v9 = vpop.permute.xlu0 %4690  ;;  %v3668_v59 = vadd.f32 %v3660_v51, %v3612_v46 }
0x15e9   :  { %v4161_v19 = vmul.f32 %v8972_v49, %v3668_v59  ;;  %v9197_v49 = vld [vmem:[#allocation22_spill] sm:$0xff] }
0x15ea   :  { %v4955_v59 = vld [vmem:[%s9118_s16 + $0x70] sm:$0xff] }
0x15eb   :  { %v4686_v38 = vpop.permute.xlu1 %4685  ;;  %v4739_v45 = vpop.permute.xlu0 %4738 }
0x15ec   :  { %v4756_v18 = vmul.f32 %v4739_v45, %v9195_v13  ;;  %v4707_v15 = vmul.f32 %v4686_v38, %v4214_v61  ;;  %v4217_v45 = vadd.f32 %v4209_v20, %v4161_v19  ;;  %v4956_v20 = vld [vmem:[%s9118_s16 + $0x78] sm:$0xff] }
0x15ed   :  { %v4964_v36 = vpack.c.bf16 %v4956_v20, %v4955_v59 }
0x15ee   :  { %v4710_v34 = vmul.f32 %v8976_v62, %v4217_v45  ;;  %v4943_v62 = vld [vmem:[%s9118_s16 + $0x10] sm:$0xff] }
0x15ef   :  { %v4734_v28 = vpop.permute.xlu1 %4733  ;;  %v4793_v29 = vpop.permute.xlu0 %4792 }
0x15f0   :  { %v4818_v39 = vmul.f32 %v4793_v29, %v4762_v54  ;;  %v4755_v52 = vmul.f32 %v4734_v28, %v9196_v43  ;;  %v4708_v29 = vmul.f32 %v4691_v9, %v4215_v3  ;;  %v4216_v28 = vadd.f32 %v4208_v41, %v4160_v40  ;;  %v9198_v54 = vld [vmem:[#allocation20_spill] sm:$0xff]  ;;  %v5309_v41 = vld [vmem:[%s9119_s15] ss:$0 sm:$0xff] }
0x15f2   :  { %v4764_v32 = vadd.f32 %v4756_v18, %v4708_v29  ;;  %v4763_v38 = vadd.f32 %v4755_v52, %v4707_v15  ;;  %v4709_v57 = vmul.f32 %v8978_v35, %v4216_v28  ;;  %v4944_v35 = vld [vmem:[%s9118_s16 + $0x18] sm:$0xff] }
0x15f3   :  { %v4788_v56 = vpop.permute.xlu1 %4787  ;;  %v4783_v8 = vpop.permute.xlu0 %4782  ;;  %v4958_v51 = vpack.c.bf16 %v4944_v35, %v4943_v62 }
0x15f4   :  { %v4817_v58 = vmul.f32 %v4788_v56, %v4761_v60  ;;  %v4816_v2 = vmul.f32 %v4783_v8, %v4760_v12  ;;  %v4959_v8 = vpack.c.bf16 %v4946_v10, %v4945_v50 }
0x15f6   :  { %v4824_v37 = vpack.c.bf16 %v4818_v39, %v4817_v58 }
0x15f7   :  { %v4778_v1 = vpop.permute.xlu1 %4777  ;;  %v4749_v5 = vpop.permute.xlu0 %4748 }
0x15f8   :  { %v4815_v42 = vmul.f32 %v4778_v1, %v4759_v24  ;;  %4846 = vrot.lane.b32.xlu0 %v4824_v37, %s6870_s5  ;;  %v4758_v17 = vmul.f32 %v4749_v5, %v9197_v49  ;;  %v4960_v37 = vpack.c.bf16 %v4948_v14, %v4947_v11  ;;  %v4949_v24 = vld [vmem:[%s9118_s16 + $0x40] sm:$0xff]  ;;  %v4951_v1 = vld [vmem:[%s9118_s16 + $0x50] sm:$0xff] }
0x15f9   :  { %v4961_v7 = vpack.c.bf16 %v4950_v4, %v4949_v24  ;;  %v4962_v27 = vpack.c.bf16 %v4952_v47, %v4951_v1 }
0x15fa   :  { %v4823_v63 = vpack.c.bf16 %v4816_v2, %v4815_v42  ;;  %v4766_v56 = vadd.f32 %v4758_v17, %v4710_v34  ;;  %v4953_v2 = vld [vmem:[%s9118_s16 + $0x60] sm:$0xff]  ;;  %v4954_v42 = vld [vmem:[%s9118_s16 + $0x68] sm:$0xff] }
0x15fb   :  { %v4744_v48 = vpop.permute.xlu1 %4743  ;;  %v4803_v25 = vpop.permute.xlu0 %4802  ;;  %v4963_v53 = vpack.c.bf16 %v4954_v42, %v4953_v2 }
0x15fc   :  { %4844 = vrot.lane.b32.xlu1 %v4823_v63, %s6870_s5  ;;  %v4757_v9 = vmul.f32 %v4744_v48, %v9198_v54  ;;  %v4820_v30 = vmul.f32 %v4803_v25, %v4764_v32 }
0x15fe   :  { %v4765_v21 = vadd.f32 %v4757_v9, %v4709_v57 }
0x15ff   :  { %v4798_v60 = vpop.permute.xlu1 %4797  ;;  %v4813_v22 = vpop.permute.xlu0 %4812 }
0x1600   :  { %v4819_v33 = vmul.f32 %v4798_v60, %v4763_v38  ;;  %v4822_v58 = vmul.f32 %v4813_v22, %v4766_v56 }
0x1602   :  { %v4825_v0 = vpack.c.bf16 %v4820_v30, %v4819_v33  ;;  %v5314_v30 = vld [vmem:[%s9120_s17] ss:$0 sm:$0xff] }
0x1603   :  { %v4808_v39 = vpop.permute.xlu1 %4807 }
0x1604   :  { %v4821_v44 = vmul.f32 %v4808_v39, %v4765_v21  ;;  %4848 = vrot.lane.b32.xlu1 %v4825_v0, %s6870_s5 }
0x1606   :  { %v4826_v6 = vpack.c.bf16 %v4822_v58, %v4821_v44 }
0x1608   :  { %4850 = vrot.lane.b32.xlu0 %v4826_v6, %s6870_s5 }
0x166a   :  { %v4847_v23 = vpop.permute.xlu0 %4846 }
0x166e   :  { %v4845_v16 = vpop.permute.xlu1 %4844 }
0x166f   :  { %5973 = vmatprep.mubr.msk.bf16.mxu1 %vm106_vm0, %v4845_v16 }
0x1670   :  { %5974 = vmatmul.mubr.msk.bf16.vlgmr.msra.gmra.mrb[76].mxu1 %vm106_vm0, %v4847_v23 }
0x1671   :  { %5982 = vmatpush3.bf16.msra.mxu1 %v4957_v55 }
0x1672   :  { %5983 = vmatprep.subr.bf16.mxu1 %v4958_v51 }
0x1675   :  { %5984 = vmatpush3.bf16.msra.mxu1 %v4958_v51 }
0x1676   :  { %v4849_v12 = vpop.permute.xlu1 %4848  ;;  %5985 = vmatprep.subr.bf16.mxu1 %v4959_v8 }
0x1677   :  { %5977 = vmatprep.mubr.msk.bf16.mxu1 %vm106_vm0, %v4849_v12 }
0x1679   :  { %5986 = vmatpush3.bf16.msra.mxu1 %v4959_v8 }
0x167a   :  { %v4851_v46 = vpop.permute.xlu0 %4850  ;;  %5987 = vmatprep.subr.bf16.mxu1 %v4960_v37 }
0x167b   :  { %5978 = vmatmul.mubr.msk.bf16.gmra.mrb[80].mxu1 %vm106_vm0, %v4851_v46 }
0x167d   :  { %5988 = vmatpush3.bf16.msra.mxu1 %v4960_v37 }
0x167e   :  { %5989 = vmatprep.subr.bf16.mxu1 %v4961_v7 }
0x1681   :  { %5990 = vmatpush3.bf16.msra.mxu1 %v4961_v7 }
0x1682   :  { %5991 = vmatprep.subr.bf16.mxu1 %v4962_v27 }
0x1685   :  { %5992 = vmatpush3.bf16.msra.mxu1 %v4962_v27 }
0x1686   :  { %5993 = vmatprep.subr.bf16.mxu1 %v4963_v53 }
0x1689   :  { %5994 = vmatpush3.bf16.msra.mxu1 %v4963_v53 }
0x168a   :  { %5995 = vmatprep.subr.bf16.mxu1 %v4964_v36 }
0x168d   :  { %5996 = vmatpush3.bf16.msra.mxu1 %v4964_v36 }
0x1743   :  { %v5975_v61 = vpop.f32.mrb[76].mxu1 }
0x1744   :  { %v4907_v5 = vadd.f32 %v5975_v61, %v5309_v41  ;;  %v4898_v3 = vpop.f32.mrb[77].mxu1 }
0x1745   :  { %v4899_v13 = vadd.f32 %v5309_v41, %v4898_v3  ;;  %v5976_v18 = vpop.f32.mrb[78].mxu1 }
0x1746   :  { %v4910_v43 = vadd.f32 %v5976_v18, %v5309_v41  ;;  %v4901_v52 = vpop.f32.mrb[79].mxu1  ;;  %v4931_v19 = vmax.f32 %v4907_v5, 0.0 }
0x1747   :  { %v4902_v63 = vadd.f32 %v5309_v41, %v4901_v52  ;;  %v4929_v48 = vmax.f32 %v4899_v13, 0.0 }
0x1748   :  { %v4932_v40 = vmax.f32 %v4910_v43, 0.0 }
0x1749   :  { %v4930_v29 = vmax.f32 %v4902_v63, 0.0 }
0x174a   :  { %v4938_v15 = vpack.c.bf16 %v4932_v40, %v4931_v19 }
0x174b   :  { %v4937_v31 = vpack.c.bf16 %v4930_v29, %v4929_v48 }
0x174d   :  { %5997 = vmatprep.mubr.bf16.mxu1 %v4937_v31 }
0x174e   :  { %v5979_v26 = vpop.f32.mrb[80].mxu1  ;;  %5998 = vmatmul.mubr.bf16.vlgmr.msra.gmra.mrb[84].mxu1 %v4938_v15 }
0x174f   :  { %v4923_v45 = vadd.f32 %v5979_v26, %v5309_v41  ;;  %v4914_v28 = vpop.f32.mrb[81].mxu1 }
0x1750   :  { %v4915_v25 = vadd.f32 %v5309_v41, %v4914_v28  ;;  %v5980_v55 = vpop.f32.mrb[82].mxu1 }
0x1751   :  { %v4926_v49 = vadd.f32 %v5980_v55, %v5309_v41  ;;  %v4917_v17 = vpop.f32.mrb[83].mxu1  ;;  %v4935_v54 = vmax.f32 %v4923_v45, 0.0 }
0x1752   :  { %v4918_v32 = vadd.f32 %v5309_v41, %v4917_v17  ;;  %v4933_v38 = vmax.f32 %v4915_v25, 0.0 }
0x1753   :  { %v4936_v9 = vmax.f32 %v4926_v49, 0.0 }
0x1754   :  { %v4934_v60 = vmax.f32 %v4918_v32, 0.0 }
0x1755   :  { %v4940_v34 = vpack.c.bf16 %v4936_v9, %v4935_v54 }
0x1756   :  { %v4939_v57 = vpack.c.bf16 %v4934_v60, %v4933_v38 }
0x1758   :  { %6001 = vmatprep.mubr.bf16.mxu1 %v4939_v57 }
0x1759   :  { %6002 = vmatmul.mubr.bf16.gmra.mrb[88].mxu1 %v4940_v34 }
0x1821   :  { %v5999_v33 = vpop.f32.mrb[84].mxu1 }
0x1822   :  { %v5015_v22 = vadd.f32 %v5999_v33, %v5314_v30  ;;  %v5006_v56 = vpop.f32.mrb[85].mxu1 }
0x1823   :  { %v5007_v0 = vadd.f32 %v5314_v30, %v5006_v56  ;;  %v6000_v21 = vpop.f32.mrb[86].mxu1 }
0x1824   :  { %5040 = vst.msk [vmem:[%s9121_s18 + $0x10] sm:$0xff] %vm5037_vm3, %v5015_v22  ;;  %v5018_v39 = vadd.f32 %v6000_v21, %v5314_v30  ;;  %v5009_v58 = vpop.f32.mrb[87].mxu1 }
0x1825   :  { %5038 = vst.msk [vmem:[%s9121_s18] sm:$0xff] %vm5037_vm3, %v5007_v0  ;;  %v5010_v44 = vadd.f32 %v5314_v30, %v5009_v58 }
0x1826   :  { %5041 = vst.msk [vmem:[%s9121_s18 + $0x18] sm:$0xff] %vm5037_vm3, %v5018_v39 }
0x1827   :  { %5039 = vst.msk [vmem:[%s9121_s18 + $0x8] sm:$0xff] %vm5037_vm3, %v5010_v44 }
0x182c   :  { %v6003_v6 = vpop.f32.mrb[88].mxu1 }
0x182d   :  { %v5031_v62 = vadd.f32 %v6003_v6, %v5314_v30  ;;  %v5022_v35 = vpop.f32.mrb[89].mxu1 }
0x182e   :  { %v5023_v16 = vadd.f32 %v5314_v30, %v5022_v35  ;;  %v6004_v51 = vpop.f32.mrb[90].mxu1 }
0x182f   :  { %5044 = vst.msk [vmem:[%s9121_s18 + $0x30] sm:$0xff] %vm5037_vm3, %v5031_v62  ;;  %v5034_v23 = vadd.f32 %v6004_v51, %v5314_v30  ;;  %v5025_v50 = vpop.f32.mrb[91].mxu1 }
0x1830   :  { %5042 = vst.msk [vmem:[%s9121_s18 + $0x20] sm:$0xff] %vm5037_vm3, %v5023_v16  ;;  %v5026_v10 = vadd.f32 %v5314_v30, %v5025_v50 }
0x1831   :  { %5045 = vst.msk [vmem:[%s9121_s18 + $0x38] sm:$0xff] %vm5037_vm3, %v5034_v23 }
0x1832   :  { %5043 = vst.msk [vmem:[%s9121_s18 + $0x28] sm:$0xff] %vm5037_vm3, %v5026_v10 }

</bundles_post_ra>
